<compile_context>
chip_gen: v7x
topology: tpu7x:2x2x1
jax: 0.10.0
libtpu: 0.0.40
codegen_flags: <defaults>
</compile_context>

<pallas_src>
import jax
import jax.numpy as jnp
from jax import lax
from jax.experimental import pallas as pl
from jax.experimental.pallas import tpu as pltpu


# ------------------------------ Pallas kernels ------------------------------

def _convT_lrelu_bn_kernel(w_ref, p_ref, scale_ref, shift_ref, o_ref):
    # w: (N, K) bf16, p: (K, tm) bf16, scale/shift: (N, 1) f32, o: (N, tm) bf16
    acc = jnp.dot(w_ref[...], p_ref[...], preferred_element_type=jnp.float32)
    y = jnp.where(acc >= 0.0, acc, 0.2 * acc)                  # LeakyReLU(0.2)
    o_ref[...] = (y * scale_ref[...] + shift_ref[...]).astype(o_ref.dtype)


def _convT_lrelu_bn_head_kernel(w_ref, p_ref, scale_ref, shift_ref, w2_ref,
                                o_ref):
    # Last block + folded final Conv3d(C->1) + Sigmoid.
    # w: (N, K) bf16, p: (K, B*S) bf16, scale/shift: (N, 1) f32,
    # w2: (N, S) bf16 = central 2x2x2 taps of the final conv, o: (1, B) f32.
    n, s = w2_ref.shape
    b = o_ref.shape[1]
    acc = jnp.dot(w_ref[...], p_ref[...], preferred_element_type=jnp.float32)
    y = jnp.where(acc >= 0.0, acc, 0.2 * acc)
    y = y * scale_ref[...] + shift_ref[...]
    # Match the bf16 storage rounding the unfused path would apply.
    y = y.astype(jnp.bfloat16).astype(jnp.float32)
    w2 = w2_ref[...].astype(jnp.float32)
    parts = [jnp.sum(y[:, i * s:(i + 1) * s] * w2).reshape(1, 1)
             for i in range(b)]
    o_ref[...] = jax.nn.sigmoid(jnp.concatenate(parts, axis=1))


# ------------------------------ kernel wrappers ------------------------------

def _pick_tm(K, M):
    """Lane-dim (M) tile for the (K, M) bf16 patch operand."""
    if M < 128:
        return M                              # single full-width block, no padding
    budget = 1 << 20                          # <=1 MiB patch block (x2 double buffer)
    tm = max(128, min(2048, (budget // (K * 2) // 128) * 128))
    if M >= 256:                              # >=2 parallel grid steps (v7x megacore)
        tm = min(tm, max(128, (M // 2 // 128) * 128))
    return min(tm, M)


def fused_convT_block(wmat, patches, scale, shift):
    """(N,K)@(K,M) with fused LeakyReLU + eval BatchNorm. Returns (N, M) bf16."""
    N, K = wmat.shape
    M = patches.shape[1]
    tm = _pick_tm(K, M)
    m_pad = pl.cdiv(M, tm) * tm
    if m_pad != M:
        patches = jnp.pad(patches, ((0, 0), (0, m_pad - M)))
    out = pl.pallas_call(
        _convT_lrelu_bn_kernel,
        out_shape=jax.ShapeDtypeStruct((N, m_pad), jnp.bfloat16),
        grid=(m_pad // tm,),
        in_specs=[
            pl.BlockSpec((N, K), lambda i: (0, 0)),
            pl.BlockSpec((K, tm), lambda i: (0, i)),
            pl.BlockSpec((N, 1), lambda i: (0, 0)),
            pl.BlockSpec((N, 1), lambda i: (0, 0)),
        ],
        out_specs=pl.BlockSpec((N, tm), lambda i: (0, i)),
        compiler_params=pltpu.CompilerParams(
            dimension_semantics=("parallel",)),
    )(wmat, patches, scale, shift)
    return out if m_pad == M else out[:, :M]


def fused_convT_head(wmat, patches, scale, shift, w2, batch):
    """Last block + folded final conv + sigmoid. Returns (1, batch) f32."""
    N, K = wmat.shape
    M = patches.shape[1]
    S = w2.shape[1]
    assert M == batch * S
    return pl.pallas_call(
        _convT_lrelu_bn_head_kernel,
        out_shape=jax.ShapeDtypeStruct((1, batch), jnp.float32),
        grid=(1,),
        in_specs=[
            pl.BlockSpec((N, K), lambda i: (0, 0)),
            pl.BlockSpec((K, M), lambda i: (0, 0)),
            pl.BlockSpec((N, 1), lambda i: (0, 0)),
            pl.BlockSpec((N, 1), lambda i: (0, 0)),
            pl.BlockSpec((N, S), lambda i: (0, 0)),
        ],
        out_specs=pl.BlockSpec((1, batch), lambda i: (0, 0)),
        compiler_params=pltpu.CompilerParams(
            dimension_semantics=("arbitrary",)),
    )(wmat, patches, scale, shift, w2)


# ------------------------------ JAX glue -------------------------------------

def im2col_T(x):
    """x: (Cin, B, D, H, W) -> K-major patches (Cin*64, B*Do*Ho*Wo)."""
    Cin, B, D, H, W = x.shape
    Do, Ho, Wo = (D - 2) // 2 + 1, (H - 2) // 2 + 1, (W - 2) // 2 + 1
    xp = jnp.pad(x, ((0, 0), (0, 0), (1, 1), (1, 1), (1, 1)))
    cols = []
    for kd in range(4):
        for kh in range(4):
            for kw in range(4):
                cols.append(xp[:, :,
                               kd:kd + 2 * Do:2,
                               kh:kh + 2 * Ho:2,
                               kw:kw + 2 * Wo:2])
    pT = jnp.stack(cols, axis=1)               # (Cin, 64, B, Do, Ho, Wo)
    return pT.reshape(Cin * 64, B * Do * Ho * Wo), (B, Do, Ho, Wo)


def patch_discriminator_forward(x, kparams):
    """x: (B, T, C, H, W) -> (B, 1, 1, 1, 1) patch probabilities."""
    # PyTorch module does swapaxes(1, 2) -> NCDHW; we additionally move the
    # channel axis to the front so every GEMM output reshapes straight back to
    # the activation layout with no transposes between layers.
    h = jnp.transpose(x, (2, 0, 1, 3, 4)).astype(jnp.bfloat16)  # (C, B, D, H, W)
    blocks = kparams["blocks"]
    for wmat, scale, shift in blocks[:-1]:
        # TODO(synk): nn.Dropout(0.25) is stochastic in train mode; we implement
        # eval-mode dropout (identity).
        patches, (B, Do, Ho, Wo) = im2col_T(h)
        out = fused_convT_block(wmat, patches, scale, shift)    # (Cout, M)
        h = out.reshape(-1, B, Do, Ho, Wo)
    # TODO(synk): im2col is still materialized in plain JAX (8x HBM inflation on
    # the first layer); fusing patch extraction into the kernel is future work.
    wmat, scale, shift = blocks[-1]
    patches, (B, Do, Ho, Wo) = im2col_T(h)
    assert (Do, Ho, Wo) == (2, 2, 2), "head fusion expects a 2x2x2 final volume"
    probs = fused_convT_head(wmat, patches, scale, shift,
                             kparams["head_w2"], B)             # (1, B)
    return probs.reshape(B, 1, 1, 1, 1)


# ------------------------------ parameters -----------------------------------

def init_params(key, input_channels=2, nlayers=3, nfilt=16):
    """Deterministic synthetic parameters; BatchNorm folded (eval mode)."""
    eps = 1e-5
    prev, nxt = input_channels, nfilt
    blocks = []
    for i in range(nlayers + 1):
        key, k1, k2, k3, k4, k5 = jax.random.split(key, 6)
        w = 0.05 * jax.random.normal(k1, (nxt, prev, 4, 4, 4), jnp.float32)
        gamma = 1.0 + 0.1 * jax.random.normal(k2, (nxt,), jnp.float32)
        beta = 0.1 * jax.random.normal(k3, (nxt,), jnp.float32)
        rmean = 0.1 * jax.random.normal(k4, (nxt,), jnp.float32)
        rvar = 1.0 + 0.1 * jnp.abs(jax.random.normal(k5, (nxt,), jnp.float32))
        scale = gamma / jnp.sqrt(rvar + eps)
        shift = beta - rmean * scale
        blocks.append((w, scale, shift))
        prev = nxt
        nxt = nxt * min(2 ** i, 8)
    key, kf = jax.random.split(key)
    final_w = 0.05 * jax.random.normal(kf, (1, prev, 4, 4, 4), jnp.float32)
    return {"blocks": blocks, "final_w": final_w}


def prepare_kernel_params(params):
    """Conv weights -> (Cout, Cin*64) bf16 GEMM form, BN scale/shift -> (C, 1)
    columns, final conv -> its effective central 2x2x2 taps (Cf, 8)."""
    blocks = []
    for w, scale, shift in params["blocks"]:
        blocks.append((w.reshape(w.shape[0], -1).astype(jnp.bfloat16),
                       scale.reshape(-1, 1), shift.reshape(-1, 1)))
    wf = params["final_w"]                                     # (1, Cf, 4, 4, 4)
    head_w2 = wf[0, :, 1:3, 1:3, 1:3].reshape(wf.shape[1], 8).astype(jnp.bfloat16)
    return {"blocks": blocks, "head_w2": head_w2}


# ------------------------------ pure-JAX reference ---------------------------

def _ref_conv(h, w):
    return lax.conv_general_dilated(
        h, w, window_strides=(2, 2, 2), padding=[(1, 1)] * 3,
        dimension_numbers=("NCDHW", "OIDHW", "NCDHW"),
        preferred_element_type=jnp.float32)


def reference_forward(x, params):
    """bf16-matched pure-JAX reference (same casts as the Pallas path)."""
    h = jnp.swapaxes(x, 1, 2).astype(jnp.bfloat16)
    for w, scale, shift in params["blocks"]:
        y = _ref_conv(h, w.astype(jnp.bfloat16))
        y = jnp.where(y >= 0.0, y, 0.2 * y)
        y = (y * scale[None, :, None, None, None]
             + shift[None, :, None, None, None])
        h = y.astype(jnp.bfloat16)
    return jax.nn.sigmoid(_ref_conv(h, params["final_w"].astype(jnp.bfloat16)))


# ------------------------------ main ------------------------------------------

if __name__ == "__main__":
    key = jax.random.PRNGKey(0)
    kx, kp = jax.random.split(key)
    # (batch, time, channels, height, width); five stride-2 convs need spatial
    # extent >= 32, so 32 is the smallest valid size.
    x = jax.random.normal(kx, (2, 32, 2, 32, 32), dtype=jnp.float32)
    params = init_params(kp, input_channels=2, nlayers=3, nfilt=16)
    kparams = prepare_kernel_params(params)

    fwd = jax.jit(patch_discriminator_forward)
    out = jax.block_until_ready(fwd(x, kparams))
    assert out.shape == (2, 1, 1, 1, 1), out.shape

    ref = jax.block_until_ready(jax.jit(reference_forward)(x, params))
    assert jnp.allclose(out, ref, atol=1e-2, rtol=1e-2), (
        float(jnp.max(jnp.abs(out - ref))))

    print("KERNEL_OK")
</pallas_src>

<mosaic_0001>
module attributes {stable_mosaic.version = 11 : i64} {
  func.func @_convT_lrelu_bn_kernel(%arg0: i32, %arg1: memref<16x128xbf16, #tpu.memory_space<vmem>>, %arg2: memref<128x2048xbf16, #tpu.memory_space<vmem>>, %arg3: memref<16x1xf32, #tpu.memory_space<vmem>>, %arg4: memref<16x1xf32, #tpu.memory_space<vmem>>, %arg5: memref<16x2048xbf16, #tpu.memory_space<vmem>>) attributes {dimension_semantics = [#tpu.dimension_semantics<parallel>], iteration_bounds = array<i64: 4>, scalar_prefetch = 0 : i64, scratch_operands = 0 : i64, tpu.core_type = #tpu.core_type<tc>, window_params = [{pipeline_mode = #tpu.pipeline_mode<synchronous>, transform_indices = @transform_0, window_bounds = array<i64: 16, 128>}, {transform_indices = @transform_1, window_bounds = array<i64: 128, 2048>}, {pipeline_mode = #tpu.pipeline_mode<synchronous>, transform_indices = @transform_2, window_bounds = array<i64: 16, 1>}, {pipeline_mode = #tpu.pipeline_mode<synchronous>, transform_indices = @transform_3, window_bounds = array<i64: 16, 1>}, {transform_indices = @transform_4, window_bounds = array<i64: 16, 2048>}]} {
    %c0 = arith.constant 0 : index
    %c0_0 = arith.constant 0 : index
    %0 = vector.load %arg1[%c0, %c0_0] : memref<16x128xbf16, #tpu.memory_space<vmem>>, vector<16x128xbf16>
    %c0_1 = arith.constant 0 : index
    %c0_2 = arith.constant 0 : index
    %1 = vector.load %arg2[%c0_1, %c0_2] : memref<128x2048xbf16, #tpu.memory_space<vmem>>, vector<128x2048xbf16>
    %cst = arith.constant dense<0.000000e+00> : vector<16x2048xf32>
    %2 = tpu.matmul %0, %1, %cst {dimension_numbers = #tpu.dot_dimension_numbers<[1], [0], [0], [1], [0, 0, 1, 1], [], []>} : vector<16x128xbf16>, vector<128x2048xbf16>, vector<16x2048xf32> -> vector<16x2048xf32>
    %cst_3 = arith.constant 0.000000e+00 : f32
    %3 = vector.broadcast %cst_3 : f32 to vector<16x2048xf32>
    %4 = arith.cmpf oge, %2, %3 : vector<16x2048xf32>
    %cst_4 = arith.constant 2.000000e-01 : f32
    %5 = vector.broadcast %cst_4 : f32 to vector<16x2048xf32>
    %6 = arith.mulf %5, %2 : vector<16x2048xf32>
    %7 = arith.select %4, %2, %6 : vector<16x2048xi1>, vector<16x2048xf32>
    %c0_5 = arith.constant 0 : index
    %c0_6 = arith.constant 0 : index
    %8 = vector.load %arg3[%c0_5, %c0_6] : memref<16x1xf32, #tpu.memory_space<vmem>>, vector<16x1xf32>
    %9 = vector.broadcast %8 : vector<16x1xf32> to vector<16x2048xf32>
    %10 = arith.mulf %7, %9 : vector<16x2048xf32>
    %c0_7 = arith.constant 0 : index
    %c0_8 = arith.constant 0 : index
    %11 = vector.load %arg4[%c0_7, %c0_8] : memref<16x1xf32, #tpu.memory_space<vmem>>, vector<16x1xf32>
    %12 = vector.broadcast %11 : vector<16x1xf32> to vector<16x2048xf32>
    %13 = arith.addf %10, %12 : vector<16x2048xf32>
    %14 = arith.truncf %13 : vector<16x2048xf32> to vector<16x2048xbf16>
    %c0_9 = arith.constant 0 : index
    %c0_10 = arith.constant 0 : index
    %15 = vector.load %arg5[%c0_9, %c0_10] : memref<16x2048xbf16, #tpu.memory_space<vmem>>, vector<16x2048xbf16>
    tpu.vector_store %arg5[%c0_9, %c0_10], %14 {strides = array<i32>} : memref<16x2048xbf16, #tpu.memory_space<vmem>>, vector<16x2048xbf16>,
    return
  }
  func.func @transform_0(%arg0: i32) -> (i32, i32) {
    %c0_i32 = arith.constant 0 : i32
    %c0_i32_0 = arith.constant 0 : i32
    %c0_i32_1 = arith.constant 0 : i32
    return %c0_i32, %c0_i32_0 : i32, i32
  }
  func.func @transform_1(%arg0: i32) -> (i32, i32) {
    %c0_i32 = arith.constant 0 : i32
    %c0_i32_0 = arith.constant 0 : i32
    return %c0_i32, %arg0 : i32, i32
  }
  func.func @transform_2(%arg0: i32) -> (i32, i32) {
    %c0_i32 = arith.constant 0 : i32
    %c0_i32_0 = arith.constant 0 : i32
    %c0_i32_1 = arith.constant 0 : i32
    return %c0_i32, %c0_i32_0 : i32, i32
  }
  func.func @transform_3(%arg0: i32) -> (i32, i32) {
    %c0_i32 = arith.constant 0 : i32
    %c0_i32_0 = arith.constant 0 : i32
    %c0_i32_1 = arith.constant 0 : i32
    return %c0_i32, %c0_i32_0 : i32, i32
  }
  func.func @transform_4(%arg0: i32) -> (i32, i32) {
    %c0_i32 = arith.constant 0 : i32
    %c0_i32_0 = arith.constant 0 : i32
    return %c0_i32, %arg0 : i32, i32
  }
}

module attributes {stable_mosaic.version = 11 : i64} {
  func.func @_convT_lrelu_bn_kernel(%arg0: i32, %arg1: memref<16x1024xbf16, #tpu.memory_space<vmem>>, %arg2: memref<1024x512xbf16, #tpu.memory_space<vmem>>, %arg3: memref<16x1xf32, #tpu.memory_space<vmem>>, %arg4: memref<16x1xf32, #tpu.memory_space<vmem>>, %arg5: memref<16x512xbf16, #tpu.memory_space<vmem>>) attributes {dimension_semantics = [#tpu.dimension_semantics<parallel>], iteration_bounds = array<i64: 2>, scalar_prefetch = 0 : i64, scratch_operands = 0 : i64, tpu.core_type = #tpu.core_type<tc>, window_params = [{pipeline_mode = #tpu.pipeline_mode<synchronous>, transform_indices = @transform_0, window_bounds = array<i64: 16, 1024>}, {transform_indices = @transform_1, window_bounds = array<i64: 1024, 512>}, {pipeline_mode = #tpu.pipeline_mode<synchronous>, transform_indices = @transform_2, window_bounds = array<i64: 16, 1>}, {pipeline_mode = #tpu.pipeline_mode<synchronous>, transform_indices = @transform_3, window_bounds = array<i64: 16, 1>}, {transform_indices = @transform_4, window_bounds = array<i64: 16, 512>}]} {
    %c0 = arith.constant 0 : index
    %c0_0 = arith.constant 0 : index
    %0 = vector.load %arg1[%c0, %c0_0] : memref<16x1024xbf16, #tpu.memory_space<vmem>>, vector<16x1024xbf16>
    %c0_1 = arith.constant 0 : index
    %c0_2 = arith.constant 0 : index
    %1 = vector.load %arg2[%c0_1, %c0_2] : memref<1024x512xbf16, #tpu.memory_space<vmem>>, vector<1024x512xbf16>
    %cst = arith.constant dense<0.000000e+00> : vector<16x512xf32>
    %2 = tpu.matmul %0, %1, %cst {dimension_numbers = #tpu.dot_dimension_numbers<[1], [0], [0], [1], [0, 0, 1, 1], [], []>} : vector<16x1024xbf16>, vector<1024x512xbf16>, vector<16x512xf32> -> vector<16x512xf32>
    %cst_3 = arith.constant 0.000000e+00 : f32
    %3 = vector.broadcast %cst_3 : f32 to vector<16x512xf32>
    %4 = arith.cmpf oge, %2, %3 : vector<16x512xf32>
    %cst_4 = arith.constant 2.000000e-01 : f32
    %5 = vector.broadcast %cst_4 : f32 to vector<16x512xf32>
    %6 = arith.mulf %5, %2 : vector<16x512xf32>
    %7 = arith.select %4, %2, %6 : vector<16x512xi1>, vector<16x512xf32>
    %c0_5 = arith.constant 0 : index
    %c0_6 = arith.constant 0 : index
    %8 = vector.load %arg3[%c0_5, %c0_6] : memref<16x1xf32, #tpu.memory_space<vmem>>, vector<16x1xf32>
    %9 = vector.broadcast %8 : vector<16x1xf32> to vector<16x512xf32>
    %10 = arith.mulf %7, %9 : vector<16x512xf32>
    %c0_7 = arith.constant 0 : index
    %c0_8 = arith.constant 0 : index
    %11 = vector.load %arg4[%c0_7, %c0_8] : memref<16x1xf32, #tpu.memory_space<vmem>>, vector<16x1xf32>
    %12 = vector.broadcast %11 : vector<16x1xf32> to vector<16x512xf32>
    %13 = arith.addf %10, %12 : vector<16x512xf32>
    %14 = arith.truncf %13 : vector<16x512xf32> to vector<16x512xbf16>
    %c0_9 = arith.constant 0 : index
    %c0_10 = arith.constant 0 : index
    %15 = vector.load %arg5[%c0_9, %c0_10] : memref<16x512xbf16, #tpu.memory_space<vmem>>, vector<16x512xbf16>
    tpu.vector_store %arg5[%c0_9, %c0_10], %14 {strides = array<i32>} : memref<16x512xbf16, #tpu.memory_space<vmem>>, vector<16x512xbf16>,
    return
  }
  func.func @transform_0(%arg0: i32) -> (i32, i32) {
    %c0_i32 = arith.constant 0 : i32
    %c0_i32_0 = arith.constant 0 : i32
    %c0_i32_1 = arith.constant 0 : i32
    return %c0_i32, %c0_i32_0 : i32, i32
  }
  func.func @transform_1(%arg0: i32) -> (i32, i32) {
    %c0_i32 = arith.constant 0 : i32
    %c0_i32_0 = arith.constant 0 : i32
    return %c0_i32, %arg0 : i32, i32
  }
  func.func @transform_2(%arg0: i32) -> (i32, i32) {
    %c0_i32 = arith.constant 0 : i32
    %c0_i32_0 = arith.constant 0 : i32
    %c0_i32_1 = arith.constant 0 : i32
    return %c0_i32, %c0_i32_0 : i32, i32
  }
  func.func @transform_3(%arg0: i32) -> (i32, i32) {
    %c0_i32 = arith.constant 0 : i32
    %c0_i32_0 = arith.constant 0 : i32
    %c0_i32_1 = arith.constant 0 : i32
    return %c0_i32, %c0_i32_0 : i32, i32
  }
  func.func @transform_4(%arg0: i32) -> (i32, i32) {
    %c0_i32 = arith.constant 0 : i32
    %c0_i32_0 = arith.constant 0 : i32
    return %c0_i32, %arg0 : i32, i32
  }
}

module attributes {stable_mosaic.version = 11 : i64} {
  func.func @_convT_lrelu_bn_kernel(%arg0: i32, %arg1: memref<32x1024xbf16, #tpu.memory_space<vmem>>, %arg2: memref<1024x128xbf16, #tpu.memory_space<vmem>>, %arg3: memref<32x1xf32, #tpu.memory_space<vmem>>, %arg4: memref<32x1xf32, #tpu.memory_space<vmem>>, %arg5: memref<32x128xbf16, #tpu.memory_space<vmem>>) attributes {dimension_semantics = [#tpu.dimension_semantics<parallel>], iteration_bounds = array<i64: 1>, scalar_prefetch = 0 : i64, scratch_operands = 0 : i64, tpu.core_type = #tpu.core_type<tc>, window_params = [{pipeline_mode = #tpu.pipeline_mode<synchronous>, transform_indices = @transform_0, window_bounds = array<i64: 32, 1024>}, {transform_indices = @transform_1, window_bounds = array<i64: 1024, 128>}, {pipeline_mode = #tpu.pipeline_mode<synchronous>, transform_indices = @transform_2, window_bounds = array<i64: 32, 1>}, {pipeline_mode = #tpu.pipeline_mode<synchronous>, transform_indices = @transform_3, window_bounds = array<i64: 32, 1>}, {transform_indices = @transform_4, window_bounds = array<i64: 32, 128>}]} {
    %c0 = arith.constant 0 : index
    %c0_0 = arith.constant 0 : index
    %0 = vector.load %arg1[%c0, %c0_0] : memref<32x1024xbf16, #tpu.memory_space<vmem>>, vector<32x1024xbf16>
    %c0_1 = arith.constant 0 : index
    %c0_2 = arith.constant 0 : index
    %1 = vector.load %arg2[%c0_1, %c0_2] : memref<1024x128xbf16, #tpu.memory_space<vmem>>, vector<1024x128xbf16>
    %cst = arith.constant dense<0.000000e+00> : vector<32x128xf32>
    %2 = tpu.matmul %0, %1, %cst {dimension_numbers = #tpu.dot_dimension_numbers<[1], [0], [0], [1], [0, 0, 1, 1], [], []>} : vector<32x1024xbf16>, vector<1024x128xbf16>, vector<32x128xf32> -> vector<32x128xf32>
    %cst_3 = arith.constant 0.000000e+00 : f32
    %3 = vector.broadcast %cst_3 : f32 to vector<32x128xf32>
    %4 = arith.cmpf oge, %2, %3 : vector<32x128xf32>
    %cst_4 = arith.constant 2.000000e-01 : f32
    %5 = vector.broadcast %cst_4 : f32 to vector<32x128xf32>
    %6 = arith.mulf %5, %2 : vector<32x128xf32>
    %7 = arith.select %4, %2, %6 : vector<32x128xi1>, vector<32x128xf32>
    %c0_5 = arith.constant 0 : index
    %c0_6 = arith.constant 0 : index
    %8 = vector.load %arg3[%c0_5, %c0_6] : memref<32x1xf32, #tpu.memory_space<vmem>>, vector<32x1xf32>
    %9 = vector.broadcast %8 : vector<32x1xf32> to vector<32x128xf32>
    %10 = arith.mulf %7, %9 : vector<32x128xf32>
    %c0_7 = arith.constant 0 : index
    %c0_8 = arith.constant 0 : index
    %11 = vector.load %arg4[%c0_7, %c0_8] : memref<32x1xf32, #tpu.memory_space<vmem>>, vector<32x1xf32>
    %12 = vector.broadcast %11 : vector<32x1xf32> to vector<32x128xf32>
    %13 = arith.addf %10, %12 : vector<32x128xf32>
    %14 = arith.truncf %13 : vector<32x128xf32> to vector<32x128xbf16>
    %c0_9 = arith.constant 0 : index
    %c0_10 = arith.constant 0 : index
    %15 = vector.load %arg5[%c0_9, %c0_10] : memref<32x128xbf16, #tpu.memory_space<vmem>>, vector<32x128xbf16>
    tpu.vector_store %arg5[%c0_9, %c0_10], %14 {strides = array<i32>} : memref<32x128xbf16, #tpu.memory_space<vmem>>, vector<32x128xbf16>,
    return
  }
  func.func @transform_0(%arg0: i32) -> (i32, i32) {
    %c0_i32 = arith.constant 0 : i32
    %c0_i32_0 = arith.constant 0 : i32
    %c0_i32_1 = arith.constant 0 : i32
    return %c0_i32, %c0_i32_0 : i32, i32
  }
  func.func @transform_1(%arg0: i32) -> (i32, i32) {
    %c0_i32 = arith.constant 0 : i32
    %c0_i32_0 = arith.constant 0 : i32
    return %c0_i32, %arg0 : i32, i32
  }
  func.func @transform_2(%arg0: i32) -> (i32, i32) {
    %c0_i32 = arith.constant 0 : i32
    %c0_i32_0 = arith.constant 0 : i32
    %c0_i32_1 = arith.constant 0 : i32
    return %c0_i32, %c0_i32_0 : i32, i32
  }
  func.func @transform_3(%arg0: i32) -> (i32, i32) {
    %c0_i32 = arith.constant 0 : i32
    %c0_i32_0 = arith.constant 0 : i32
    %c0_i32_1 = arith.constant 0 : i32
    return %c0_i32, %c0_i32_0 : i32, i32
  }
  func.func @transform_4(%arg0: i32) -> (i32, i32) {
    %c0_i32 = arith.constant 0 : i32
    %c0_i32_0 = arith.constant 0 : i32
    return %c0_i32, %arg0 : i32, i32
  }
}

module attributes {stable_mosaic.version = 11 : i64} {
  func.func @_convT_lrelu_bn_head_kernel(%arg0: i32, %arg1: memref<128x2048xbf16, #tpu.memory_space<vmem>>, %arg2: memref<2048x16xbf16, #tpu.memory_space<vmem>>, %arg3: memref<128x1xf32, #tpu.memory_space<vmem>>, %arg4: memref<128x1xf32, #tpu.memory_space<vmem>>, %arg5: memref<128x8xbf16, #tpu.memory_space<vmem>>, %arg6: memref<1x2xf32, #tpu.memory_space<vmem>>) attributes {dimension_semantics = [#tpu.dimension_semantics<arbitrary>], iteration_bounds = array<i64: 1>, scalar_prefetch = 0 : i64, scratch_operands = 0 : i64, tpu.core_type = #tpu.core_type<tc>, window_params = [{pipeline_mode = #tpu.pipeline_mode<synchronous>, transform_indices = @transform_0, window_bounds = array<i64: 128, 2048>}, {pipeline_mode = #tpu.pipeline_mode<synchronous>, transform_indices = @transform_1, window_bounds = array<i64: 2048, 16>}, {pipeline_mode = #tpu.pipeline_mode<synchronous>, transform_indices = @transform_2, window_bounds = array<i64: 128, 1>}, {pipeline_mode = #tpu.pipeline_mode<synchronous>, transform_indices = @transform_3, window_bounds = array<i64: 128, 1>}, {pipeline_mode = #tpu.pipeline_mode<synchronous>, transform_indices = @transform_4, window_bounds = array<i64: 128, 8>}, {pipeline_mode = #tpu.pipeline_mode<synchronous>, transform_indices = @transform_5, window_bounds = array<i64: 1, 2>}]} {
    %c0 = arith.constant 0 : index
    %c0_0 = arith.constant 0 : index
    %0 = vector.load %arg1[%c0, %c0_0] : memref<128x2048xbf16, #tpu.memory_space<vmem>>, vector<128x2048xbf16>
    %c0_1 = arith.constant 0 : index
    %c0_2 = arith.constant 0 : index
    %1 = vector.load %arg2[%c0_1, %c0_2] : memref<2048x16xbf16, #tpu.memory_space<vmem>>, vector<2048x16xbf16>
    %cst = arith.constant dense<0.000000e+00> : vector<128x16xf32>
    %2 = tpu.matmul %0, %1, %cst {dimension_numbers = #tpu.dot_dimension_numbers<[1], [0], [0], [1], [0, 0, 1, 1], [], []>} : vector<128x2048xbf16>, vector<2048x16xbf16>, vector<128x16xf32> -> vector<128x16xf32>
    %cst_3 = arith.constant 0.000000e+00 : f32
    %3 = vector.broadcast %cst_3 : f32 to vector<128x16xf32>
    %4 = arith.cmpf oge, %2, %3 : vector<128x16xf32>
    %cst_4 = arith.constant 2.000000e-01 : f32
    %5 = vector.broadcast %cst_4 : f32 to vector<128x16xf32>
    %6 = arith.mulf %5, %2 : vector<128x16xf32>
    %7 = arith.select %4, %2, %6 : vector<128x16xi1>, vector<128x16xf32>
    %c0_5 = arith.constant 0 : index
    %c0_6 = arith.constant 0 : index
    %8 = vector.load %arg3[%c0_5, %c0_6] : memref<128x1xf32, #tpu.memory_space<vmem>>, vector<128x1xf32>
    %9 = vector.broadcast %8 : vector<128x1xf32> to vector<128x16xf32>
    %10 = arith.mulf %7, %9 : vector<128x16xf32>
    %c0_7 = arith.constant 0 : index
    %c0_8 = arith.constant 0 : index
    %11 = vector.load %arg4[%c0_7, %c0_8] : memref<128x1xf32, #tpu.memory_space<vmem>>, vector<128x1xf32>
    %12 = vector.broadcast %11 : vector<128x1xf32> to vector<128x16xf32>
    %13 = arith.addf %10, %12 : vector<128x16xf32>
    %14 = arith.truncf %13 : vector<128x16xf32> to vector<128x16xbf16>
    %15 = arith.extf %14 : vector<128x16xbf16> to vector<128x16xf32>
    %c0_9 = arith.constant 0 : index
    %c0_10 = arith.constant 0 : index
    %16 = vector.load %arg5[%c0_9, %c0_10] : memref<128x8xbf16, #tpu.memory_space<vmem>>, vector<128x8xbf16>
    %17 = arith.extf %16 : vector<128x8xbf16> to vector<128x8xf32>
    %18 = vector.extract_strided_slice %15 {offsets = [0, 0], sizes = [128, 8], strides = [1, 1]} : vector<128x16xf32> to vector<128x8xf32>
    %19 = arith.mulf %18, %17 : vector<128x8xf32>
    %20 = vector.shape_cast %19 : vector<128x8xf32> to vector<1x128x8xf32>
    %cst_11 = arith.constant dense<0.000000e+00> : vector<1xf32>
    %21 = vector.multi_reduction <add>, %20, %cst_11 [1, 2] : vector<1x128x8xf32> to vector<1xf32>
    %22 = vector.shape_cast %21 : vector<1xf32> to vector<1x1x1xf32>
    %23 = vector.extract %22[0, 0, 0] : f32 from vector<1x1x1xf32>
    %24 = vector.broadcast %23 : f32 to vector<1x1xf32>
    %25 = vector.extract_strided_slice %15 {offsets = [0, 8], sizes = [128, 8], strides = [1, 1]} : vector<128x16xf32> to vector<128x8xf32>
    %26 = arith.mulf %25, %17 : vector<128x8xf32>
    %27 = vector.shape_cast %26 : vector<128x8xf32> to vector<1x128x8xf32>
    %cst_12 = arith.constant dense<0.000000e+00> : vector<1xf32>
    %28 = vector.multi_reduction <add>, %27, %cst_12 [1, 2] : vector<1x128x8xf32> to vector<1xf32>
    %29 = vector.shape_cast %28 : vector<1xf32> to vector<1x1x1xf32>
    %30 = vector.extract %29[0, 0, 0] : f32 from vector<1x1x1xf32>
    %31 = vector.broadcast %30 : f32 to vector<1x1xf32>
    %32 = tpu.concatenate %24, %31 in 1 : vector<1x1xf32>, vector<1x1xf32> -> vector<1x2xf32>
    %33 = arith.negf %32 : vector<1x2xf32>
    %34 = math.exp %33 : vector<1x2xf32>
    %cst_13 = arith.constant 1.000000e+00 : f32
    %35 = vector.broadcast %cst_13 : f32 to vector<1x2xf32>
    %36 = arith.addf %35, %34 : vector<1x2xf32>
    %37 = arith.divf %35, %36 : vector<1x2xf32>
    %c0_14 = arith.constant 0 : index
    %c0_15 = arith.constant 0 : index
    %38 = vector.load %arg6[%c0_14, %c0_15] : memref<1x2xf32, #tpu.memory_space<vmem>>, vector<1x2xf32>
    tpu.vector_store %arg6[%c0_14, %c0_15], %37 {strides = array<i32>} : memref<1x2xf32, #tpu.memory_space<vmem>>, vector<1x2xf32>,
    return
  }
  func.func @transform_0(%arg0: i32) -> (i32, i32) {
    %c0_i32 = arith.constant 0 : i32
    %c0_i32_0 = arith.constant 0 : i32
    %c0_i32_1 = arith.constant 0 : i32
    return %c0_i32, %c0_i32_0 : i32, i32
  }
  func.func @transform_1(%arg0: i32) -> (i32, i32) {
    %c0_i32 = arith.constant 0 : i32
    %c0_i32_0 = arith.constant 0 : i32
    %c0_i32_1 = arith.constant 0 : i32
    return %c0_i32, %c0_i32_0 : i32, i32
  }
  func.func @transform_2(%arg0: i32) -> (i32, i32) {
    %c0_i32 = arith.constant 0 : i32
    %c0_i32_0 = arith.constant 0 : i32
    %c0_i32_1 = arith.constant 0 : i32
    return %c0_i32, %c0_i32_0 : i32, i32
  }
  func.func @transform_3(%arg0: i32) -> (i32, i32) {
    %c0_i32 = arith.constant 0 : i32
    %c0_i32_0 = arith.constant 0 : i32
    %c0_i32_1 = arith.constant 0 : i32
    return %c0_i32, %c0_i32_0 : i32, i32
  }
  func.func @transform_4(%arg0: i32) -> (i32, i32) {
    %c0_i32 = arith.constant 0 : i32
    %c0_i32_0 = arith.constant 0 : i32
    %c0_i32_1 = arith.constant 0 : i32
    return %c0_i32, %c0_i32_0 : i32, i32
  }
  func.func @transform_5(%arg0: i32) -> (i32, i32) {
    %c0_i32 = arith.constant 0 : i32
    %c0_i32_0 = arith.constant 0 : i32
    %c0_i32_1 = arith.constant 0 : i32
    return %c0_i32, %c0_i32_0 : i32, i32
  }
}

</mosaic_0001>

<bundles_post_ra>
// kernel: patch_discriminator_forward.4
= control target key start
LH: loop header
LB: loop body
LE: loop exit
PB: predicated region body
PF: predicated region fallthrough
CT: control target
= control target key end

     0   :  { %s2254_s15 = smov 0   ;;  %s2256_s16 = smov 0   ;;  %s2849_s0 = inlined_call_operand.vmem [shape: bf16[16,128], index: 0, kind: input, shape index: {}]   ;;  %s2850_s1 = inlined_call_operand.vmem [shape: bf16[128,8192], index: 1, kind: input, shape index: {}]   ;;  %s2851_s2 = inlined_call_operand.vmem [shape: f32[16,1], index: 2, kind: input, shape index: {}]   ;;  %s2852_s3 = inlined_call_operand.vmem [shape: f32[16,1], index: 3, kind: input, shape index: {}]   ;;  %s2853_s4 = inlined_call_operand.vmem [shape: bf16[16,8192], index: 4, kind: output, shape index: {}]  }
   0x1   :  { %s2258_s17 = smov 0  }
   0x2 LB: > { %s1998_s18 = sadd.s32 4294967295, %s2226_s17   ;;  %s2271_s19 = sadd.s32 1, %s2226_s17   ;;  %s2226_s17 = sphi %s2258_s17, %s2857_s17   ;;  %s2222_s16 = sphi %s2256_s16, %s2856_s16   ;;  %s2218_s15 = sphi %s2254_s15, %s2855_s15  }
   0x3   : > { %s39_s20 = ssub.s32 %s2226_s17, %s2271_s19  ;;  %s42_s21 = sadd.s32 1, %s2222_s16 }
   0x4   : > { %p40_p0 = scmp.eq.s32.totalorder %s39_s20, 0  ;;  %p49_p1 = scmp.ne.s32.totalorder %s2222_s16, %s2218_s15 }
   0x5   : > { %p50_p2 = scmp.eq.s32.totalorder %s2226_s17, 0  ;;  %p121_p3 = scmp.eq.s32.totalorder %s1998_s18, 3 }
   0x6   : > { %s2282_s22 = scalar_select %p40_p0, %s2222_s16, %s42_s21  }
   0x7   : > { %p51_p4 = por %p50_p2, %p49_p1  ;;  %p2284_p5 = por %p121_p3, %p49_p1 }
   0x8   : > { %p2001_p6 = scmp.ge.s32.totalorder %s2226_s17, 4 }
   0xa   : > { %152 = sbr.rel (%p2001_p6) target bundleno = 85 (0x55), region = 28 }
  0x11   : > { %155 = sbr.rel (!%p51_p4) target bundleno = 85 (0x55), region = 32  ;;  %s157_s24 = sand.u32 (%p51_p4), 1, %s2222_s16  }
  0x12   : > { %s2158_s25 = sshll.u32 (%p51_p4), %s2226_s17, 6  ;;  %s2002_s26 = sshll.u32 (%p51_p4), %s157_s24, 10 }
  0x13   : > { %s2294_s29 = scalar_lea.vmem (%p51_p4), %s2850_s1, %s2158_s25  ;;  %s2299_s30 = scalar_lea.vmem (%p51_p4), [#allocation2], %s2002_s26 }
  0x14   : > { %v175_v0 = vld [vmem:[%s2294_s29] sm:$0xff] (%p51_p4)  ;;  %v177_v1 = vld [vmem:[%s2294_s29 + $0x8] sm:$0xff] (%p51_p4)  ;;  %v179_v2 = vld [vmem:[%s2294_s29 + $0x10] sm:$0xff] (%p51_p4) }
  0x15   : > { %176 = vst [vmem:[%s2299_s30] sm:$0xff] (%p51_p4), %v175_v0  ;;  %178 = vst [vmem:[%s2299_s30 + $0x8] sm:$0xff] (%p51_p4), %v177_v1  ;;  %v181_v3 = vld [vmem:[%s2294_s29 + $0x18] sm:$0xff] (%p51_p4)  ;;  %v183_v4 = vld [vmem:[%s2294_s29 + $0x20] sm:$0xff] (%p51_p4) }
  0x16   : > { %180 = vst [vmem:[%s2299_s30 + $0x10] sm:$0xff] (%p51_p4), %v179_v2  ;;  %v185_v5 = vld [vmem:[%s2294_s29 + $0x28] sm:$0xff] (%p51_p4)  ;;  %182 = vst [vmem:[%s2299_s30 + $0x18] sm:$0xff] (%p51_p4), %v181_v3  ;;  %v187_v6 = vld [vmem:[%s2294_s29 + $0x30] sm:$0xff] (%p51_p4) }
  0x17   : > { %184 = vst [vmem:[%s2299_s30 + $0x20] sm:$0xff] (%p51_p4), %v183_v4  ;;  %186 = vst [vmem:[%s2299_s30 + $0x28] sm:$0xff] (%p51_p4), %v185_v5  ;;  %v189_v7 = vld [vmem:[%s2294_s29 + $0x38] sm:$0xff] (%p51_p4)  ;;  %v191_v8 = vld [vmem:[%s2294_s29 + $0x100] sm:$0xff] (%p51_p4) }
  0x18   : > { %188 = vst [vmem:[%s2299_s30 + $0x30] sm:$0xff] %v187_v6  ;;  %190 = vst [vmem:[%s2299_s30 + $0x38] sm:$0xff] %v189_v7  ;;  %v193_v9 = vld [vmem:[%s2294_s29 + $0x108] sm:$0xff]  ;;  %v195_v10 = vld [vmem:[%s2294_s29 + $0x110] sm:$0xff] }
  0x19   : > { %192 = vst [vmem:[%s2299_s30 + $0x40] sm:$0xff] %v191_v8  ;;  %v197_v11 = vld [vmem:[%s2294_s29 + $0x118] sm:$0xff]  ;;  %194 = vst [vmem:[%s2299_s30 + $0x48] sm:$0xff] %v193_v9  ;;  %v199_v12 = vld [vmem:[%s2294_s29 + $0x120] sm:$0xff] }
  0x1a   : > { %196 = vst [vmem:[%s2299_s30 + $0x50] sm:$0xff] %v195_v10  ;;  %198 = vst [vmem:[%s2299_s30 + $0x58] sm:$0xff] %v197_v11  ;;  %v201_v13 = vld [vmem:[%s2294_s29 + $0x128] sm:$0xff]  ;;  %v203_v14 = vld [vmem:[%s2294_s29 + $0x130] sm:$0xff] }
  0x1b   : > { %200 = vst [vmem:[%s2299_s30 + $0x60] sm:$0xff] %v199_v12  ;;  %202 = vst [vmem:[%s2299_s30 + $0x68] sm:$0xff] %v201_v13  ;;  %v205_v15 = vld [vmem:[%s2294_s29 + $0x138] sm:$0xff]  ;;  %v207_v16 = vld [vmem:[%s2294_s29 + $0x200] sm:$0xff] }
  0x1c   : > { %204 = vst [vmem:[%s2299_s30 + $0x70] sm:$0xff] %v203_v14  ;;  %v209_v17 = vld [vmem:[%s2294_s29 + $0x208] sm:$0xff]  ;;  %206 = vst [vmem:[%s2299_s30 + $0x78] sm:$0xff] %v205_v15  ;;  %v211_v18 = vld [vmem:[%s2294_s29 + $0x210] sm:$0xff] }
  0x1d   : > { %208 = vst [vmem:[%s2299_s30 + $0x80] sm:$0xff] %v207_v16  ;;  %210 = vst [vmem:[%s2299_s30 + $0x88] sm:$0xff] %v209_v17  ;;  %v213_v19 = vld [vmem:[%s2294_s29 + $0x218] sm:$0xff]  ;;  %v215_v20 = vld [vmem:[%s2294_s29 + $0x220] sm:$0xff] }
  0x1e   : > { %212 = vst [vmem:[%s2299_s30 + $0x90] sm:$0xff] %v211_v18  ;;  %214 = vst [vmem:[%s2299_s30 + $0x98] sm:$0xff] %v213_v19  ;;  %v217_v21 = vld [vmem:[%s2294_s29 + $0x228] sm:$0xff]  ;;  %v219_v22 = vld [vmem:[%s2294_s29 + $0x230] sm:$0xff] }
  0x1f   : > { %216 = vst [vmem:[%s2299_s30 + $0xa0] sm:$0xff] %v215_v20  ;;  %v221_v23 = vld [vmem:[%s2294_s29 + $0x238] sm:$0xff]  ;;  %218 = vst [vmem:[%s2299_s30 + $0xa8] sm:$0xff] %v217_v21  ;;  %v223_v24 = vld [vmem:[%s2294_s29 + $0x300] sm:$0xff] }
  0x20   : > { %220 = vst [vmem:[%s2299_s30 + $0xb0] sm:$0xff] %v219_v22  ;;  %222 = vst [vmem:[%s2299_s30 + $0xb8] sm:$0xff] %v221_v23  ;;  %v225_v25 = vld [vmem:[%s2294_s29 + $0x308] sm:$0xff]  ;;  %v227_v26 = vld [vmem:[%s2294_s29 + $0x310] sm:$0xff] }
  0x21   : > { %224 = vst [vmem:[%s2299_s30 + $0xc0] sm:$0xff] %v223_v24  ;;  %226 = vst [vmem:[%s2299_s30 + $0xc8] sm:$0xff] %v225_v25  ;;  %v229_v27 = vld [vmem:[%s2294_s29 + $0x318] sm:$0xff]  ;;  %v231_v28 = vld [vmem:[%s2294_s29 + $0x320] sm:$0xff] }
  0x22   : > { %228 = vst [vmem:[%s2299_s30 + $0xd0] sm:$0xff] %v227_v26  ;;  %v233_v29 = vld [vmem:[%s2294_s29 + $0x328] sm:$0xff]  ;;  %230 = vst [vmem:[%s2299_s30 + $0xd8] sm:$0xff] %v229_v27  ;;  %v235_v30 = vld [vmem:[%s2294_s29 + $0x330] sm:$0xff] }
  0x23   : > { %232 = vst [vmem:[%s2299_s30 + $0xe0] sm:$0xff] %v231_v28  ;;  %234 = vst [vmem:[%s2299_s30 + $0xe8] sm:$0xff] %v233_v29  ;;  %v237_v31 = vld [vmem:[%s2294_s29 + $0x338] sm:$0xff]  ;;  %v239_v32 = vld [vmem:[%s2294_s29 + $0x400] sm:$0xff] }
  0x24   : > { %236 = vst [vmem:[%s2299_s30 + $0xf0] sm:$0xff] %v235_v30  ;;  %238 = vst [vmem:[%s2299_s30 + $0xf8] sm:$0xff] %v237_v31  ;;  %v241_v33 = vld [vmem:[%s2294_s29 + $0x408] sm:$0xff]  ;;  %v243_v34 = vld [vmem:[%s2294_s29 + $0x410] sm:$0xff] }
  0x25   : > { %240 = vst [vmem:[%s2299_s30 + $0x100] sm:$0xff] %v239_v32  ;;  %v245_v35 = vld [vmem:[%s2294_s29 + $0x418] sm:$0xff]  ;;  %242 = vst [vmem:[%s2299_s30 + $0x108] sm:$0xff] %v241_v33  ;;  %v247_v36 = vld [vmem:[%s2294_s29 + $0x420] sm:$0xff] }
  0x26   : > { %244 = vst [vmem:[%s2299_s30 + $0x110] sm:$0xff] %v243_v34  ;;  %246 = vst [vmem:[%s2299_s30 + $0x118] sm:$0xff] %v245_v35  ;;  %v249_v37 = vld [vmem:[%s2294_s29 + $0x428] sm:$0xff]  ;;  %v251_v38 = vld [vmem:[%s2294_s29 + $0x430] sm:$0xff] }
  0x27   : > { %248 = vst [vmem:[%s2299_s30 + $0x120] sm:$0xff] %v247_v36  ;;  %250 = vst [vmem:[%s2299_s30 + $0x128] sm:$0xff] %v249_v37  ;;  %v253_v39 = vld [vmem:[%s2294_s29 + $0x438] sm:$0xff]  ;;  %v255_v40 = vld [vmem:[%s2294_s29 + $0x500] sm:$0xff] }
  0x28   : > { %252 = vst [vmem:[%s2299_s30 + $0x130] sm:$0xff] %v251_v38  ;;  %v257_v41 = vld [vmem:[%s2294_s29 + $0x508] sm:$0xff]  ;;  %254 = vst [vmem:[%s2299_s30 + $0x138] sm:$0xff] %v253_v39  ;;  %v259_v42 = vld [vmem:[%s2294_s29 + $0x510] sm:$0xff] }
  0x29   : > { %256 = vst [vmem:[%s2299_s30 + $0x140] sm:$0xff] %v255_v40  ;;  %258 = vst [vmem:[%s2299_s30 + $0x148] sm:$0xff] %v257_v41  ;;  %v261_v43 = vld [vmem:[%s2294_s29 + $0x518] sm:$0xff]  ;;  %v263_v44 = vld [vmem:[%s2294_s29 + $0x520] sm:$0xff] }
  0x2a   : > { %260 = vst [vmem:[%s2299_s30 + $0x150] sm:$0xff] %v259_v42  ;;  %262 = vst [vmem:[%s2299_s30 + $0x158] sm:$0xff] %v261_v43  ;;  %v265_v45 = vld [vmem:[%s2294_s29 + $0x528] sm:$0xff]  ;;  %v267_v46 = vld [vmem:[%s2294_s29 + $0x530] sm:$0xff] }
  0x2b   : > { %264 = vst [vmem:[%s2299_s30 + $0x160] sm:$0xff] %v263_v44  ;;  %v269_v47 = vld [vmem:[%s2294_s29 + $0x538] sm:$0xff]  ;;  %266 = vst [vmem:[%s2299_s30 + $0x168] sm:$0xff] %v265_v45  ;;  %v271_v48 = vld [vmem:[%s2294_s29 + $0x600] sm:$0xff] }
  0x2c   : > { %268 = vst [vmem:[%s2299_s30 + $0x170] sm:$0xff] %v267_v46  ;;  %270 = vst [vmem:[%s2299_s30 + $0x178] sm:$0xff] %v269_v47  ;;  %v273_v49 = vld [vmem:[%s2294_s29 + $0x608] sm:$0xff]  ;;  %v275_v50 = vld [vmem:[%s2294_s29 + $0x610] sm:$0xff] }
  0x2d   : > { %272 = vst [vmem:[%s2299_s30 + $0x180] sm:$0xff] %v271_v48  ;;  %274 = vst [vmem:[%s2299_s30 + $0x188] sm:$0xff] %v273_v49  ;;  %v277_v51 = vld [vmem:[%s2294_s29 + $0x618] sm:$0xff]  ;;  %v279_v52 = vld [vmem:[%s2294_s29 + $0x620] sm:$0xff] }
  0x2e   : > { %276 = vst [vmem:[%s2299_s30 + $0x190] sm:$0xff] %v275_v50  ;;  %v281_v53 = vld [vmem:[%s2294_s29 + $0x628] sm:$0xff]  ;;  %278 = vst [vmem:[%s2299_s30 + $0x198] sm:$0xff] %v277_v51  ;;  %v283_v54 = vld [vmem:[%s2294_s29 + $0x630] sm:$0xff] }
  0x2f   : > { %280 = vst [vmem:[%s2299_s30 + $0x1a0] sm:$0xff] %v279_v52  ;;  %282 = vst [vmem:[%s2299_s30 + $0x1a8] sm:$0xff] %v281_v53  ;;  %v285_v55 = vld [vmem:[%s2294_s29 + $0x638] sm:$0xff]  ;;  %v287_v56 = vld [vmem:[%s2294_s29 + $0x700] sm:$0xff] }
  0x30   : > { %284 = vst [vmem:[%s2299_s30 + $0x1b0] sm:$0xff] %v283_v54  ;;  %286 = vst [vmem:[%s2299_s30 + $0x1b8] sm:$0xff] %v285_v55  ;;  %v289_v57 = vld [vmem:[%s2294_s29 + $0x708] sm:$0xff]  ;;  %v291_v58 = vld [vmem:[%s2294_s29 + $0x710] sm:$0xff] }
  0x31   : > { %288 = vst [vmem:[%s2299_s30 + $0x1c0] sm:$0xff] %v287_v56  ;;  %v293_v59 = vld [vmem:[%s2294_s29 + $0x718] sm:$0xff]  ;;  %290 = vst [vmem:[%s2299_s30 + $0x1c8] sm:$0xff] %v289_v57  ;;  %v295_v60 = vld [vmem:[%s2294_s29 + $0x720] sm:$0xff] }
  0x32   : > { %292 = vst [vmem:[%s2299_s30 + $0x1d0] sm:$0xff] %v291_v58  ;;  %294 = vst [vmem:[%s2299_s30 + $0x1d8] sm:$0xff] %v293_v59  ;;  %v297_v61 = vld [vmem:[%s2294_s29 + $0x728] sm:$0xff]  ;;  %v299_v62 = vld [vmem:[%s2294_s29 + $0x730] sm:$0xff] }
  0x33   : > { %296 = vst [vmem:[%s2299_s30 + $0x1e0] sm:$0xff] %v295_v60  ;;  %298 = vst [vmem:[%s2299_s30 + $0x1e8] sm:$0xff] %v297_v61  ;;  %v301_v63 = vld [vmem:[%s2294_s29 + $0x738] sm:$0xff]  ;;  %v303_v0 = vld [vmem:[%s2294_s29 + $0x800] sm:$0xff] }
  0x34   : > { %300 = vst [vmem:[%s2299_s30 + $0x1f0] sm:$0xff] %v299_v62  ;;  %v305_v1 = vld [vmem:[%s2294_s29 + $0x808] sm:$0xff]  ;;  %302 = vst [vmem:[%s2299_s30 + $0x1f8] sm:$0xff] %v301_v63  ;;  %v307_v2 = vld [vmem:[%s2294_s29 + $0x810] sm:$0xff] }
  0x35   : > { %304 = vst [vmem:[%s2299_s30 + $0x200] sm:$0xff] %v303_v0  ;;  %306 = vst [vmem:[%s2299_s30 + $0x208] sm:$0xff] %v305_v1  ;;  %v309_v3 = vld [vmem:[%s2294_s29 + $0x818] sm:$0xff]  ;;  %v311_v4 = vld [vmem:[%s2294_s29 + $0x820] sm:$0xff] }
  0x36   : > { %308 = vst [vmem:[%s2299_s30 + $0x210] sm:$0xff] %v307_v2  ;;  %310 = vst [vmem:[%s2299_s30 + $0x218] sm:$0xff] %v309_v3  ;;  %v313_v5 = vld [vmem:[%s2294_s29 + $0x828] sm:$0xff]  ;;  %v315_v6 = vld [vmem:[%s2294_s29 + $0x830] sm:$0xff] }
  0x37   : > { %312 = vst [vmem:[%s2299_s30 + $0x220] sm:$0xff] %v311_v4  ;;  %v317_v7 = vld [vmem:[%s2294_s29 + $0x838] sm:$0xff]  ;;  %314 = vst [vmem:[%s2299_s30 + $0x228] sm:$0xff] %v313_v5  ;;  %v319_v8 = vld [vmem:[%s2294_s29 + $0x900] sm:$0xff] }
  0x38   : > { %316 = vst [vmem:[%s2299_s30 + $0x230] sm:$0xff] %v315_v6  ;;  %318 = vst [vmem:[%s2299_s30 + $0x238] sm:$0xff] %v317_v7  ;;  %v321_v9 = vld [vmem:[%s2294_s29 + $0x908] sm:$0xff]  ;;  %v323_v10 = vld [vmem:[%s2294_s29 + $0x910] sm:$0xff] }
  0x39   : > { %320 = vst [vmem:[%s2299_s30 + $0x240] sm:$0xff] %v319_v8  ;;  %322 = vst [vmem:[%s2299_s30 + $0x248] sm:$0xff] %v321_v9  ;;  %v325_v11 = vld [vmem:[%s2294_s29 + $0x918] sm:$0xff]  ;;  %v327_v12 = vld [vmem:[%s2294_s29 + $0x920] sm:$0xff] }
  0x3a   : > { %324 = vst [vmem:[%s2299_s30 + $0x250] sm:$0xff] %v323_v10  ;;  %v329_v13 = vld [vmem:[%s2294_s29 + $0x928] sm:$0xff]  ;;  %326 = vst [vmem:[%s2299_s30 + $0x258] sm:$0xff] %v325_v11  ;;  %v331_v14 = vld [vmem:[%s2294_s29 + $0x930] sm:$0xff] }
  0x3b   : > { %328 = vst [vmem:[%s2299_s30 + $0x260] sm:$0xff] %v327_v12  ;;  %330 = vst [vmem:[%s2299_s30 + $0x268] sm:$0xff] %v329_v13  ;;  %v333_v15 = vld [vmem:[%s2294_s29 + $0x938] sm:$0xff]  ;;  %v335_v16 = vld [vmem:[%s2294_s29 + $0xa00] sm:$0xff] }
  0x3c   : > { %332 = vst [vmem:[%s2299_s30 + $0x270] sm:$0xff] %v331_v14  ;;  %334 = vst [vmem:[%s2299_s30 + $0x278] sm:$0xff] %v333_v15  ;;  %v337_v17 = vld [vmem:[%s2294_s29 + $0xa08] sm:$0xff]  ;;  %v339_v18 = vld [vmem:[%s2294_s29 + $0xa10] sm:$0xff] }
  0x3d   : > { %336 = vst [vmem:[%s2299_s30 + $0x280] sm:$0xff] %v335_v16  ;;  %v341_v19 = vld [vmem:[%s2294_s29 + $0xa18] sm:$0xff]  ;;  %338 = vst [vmem:[%s2299_s30 + $0x288] sm:$0xff] %v337_v17  ;;  %v343_v20 = vld [vmem:[%s2294_s29 + $0xa20] sm:$0xff] }
  0x3e   : > { %340 = vst [vmem:[%s2299_s30 + $0x290] sm:$0xff] %v339_v18  ;;  %342 = vst [vmem:[%s2299_s30 + $0x298] sm:$0xff] %v341_v19  ;;  %v345_v21 = vld [vmem:[%s2294_s29 + $0xa28] sm:$0xff]  ;;  %v347_v22 = vld [vmem:[%s2294_s29 + $0xa30] sm:$0xff] }
  0x3f   : > { %344 = vst [vmem:[%s2299_s30 + $0x2a0] sm:$0xff] %v343_v20  ;;  %346 = vst [vmem:[%s2299_s30 + $0x2a8] sm:$0xff] %v345_v21  ;;  %v349_v23 = vld [vmem:[%s2294_s29 + $0xa38] sm:$0xff]  ;;  %v351_v24 = vld [vmem:[%s2294_s29 + $0xb00] sm:$0xff] }
  0x40   : > { %348 = vst [vmem:[%s2299_s30 + $0x2b0] sm:$0xff] %v347_v22  ;;  %v353_v25 = vld [vmem:[%s2294_s29 + $0xb08] sm:$0xff]  ;;  %350 = vst [vmem:[%s2299_s30 + $0x2b8] sm:$0xff] %v349_v23  ;;  %v355_v26 = vld [vmem:[%s2294_s29 + $0xb10] sm:$0xff] }
  0x41   : > { %352 = vst [vmem:[%s2299_s30 + $0x2c0] sm:$0xff] %v351_v24  ;;  %354 = vst [vmem:[%s2299_s30 + $0x2c8] sm:$0xff] %v353_v25  ;;  %v357_v27 = vld [vmem:[%s2294_s29 + $0xb18] sm:$0xff]  ;;  %v359_v28 = vld [vmem:[%s2294_s29 + $0xb20] sm:$0xff] }
  0x42   : > { %356 = vst [vmem:[%s2299_s30 + $0x2d0] sm:$0xff] %v355_v26  ;;  %358 = vst [vmem:[%s2299_s30 + $0x2d8] sm:$0xff] %v357_v27  ;;  %v361_v29 = vld [vmem:[%s2294_s29 + $0xb28] sm:$0xff]  ;;  %v363_v30 = vld [vmem:[%s2294_s29 + $0xb30] sm:$0xff] }
  0x43   : > { %360 = vst [vmem:[%s2299_s30 + $0x2e0] sm:$0xff] %v359_v28  ;;  %v365_v31 = vld [vmem:[%s2294_s29 + $0xb38] sm:$0xff]  ;;  %362 = vst [vmem:[%s2299_s30 + $0x2e8] sm:$0xff] %v361_v29  ;;  %v367_v32 = vld [vmem:[%s2294_s29 + $0xc00] sm:$0xff] }
  0x44   : > { %364 = vst [vmem:[%s2299_s30 + $0x2f0] sm:$0xff] %v363_v30  ;;  %366 = vst [vmem:[%s2299_s30 + $0x2f8] sm:$0xff] %v365_v31  ;;  %v369_v33 = vld [vmem:[%s2294_s29 + $0xc08] sm:$0xff]  ;;  %v371_v34 = vld [vmem:[%s2294_s29 + $0xc10] sm:$0xff] }
  0x45   : > { %368 = vst [vmem:[%s2299_s30 + $0x300] sm:$0xff] %v367_v32  ;;  %370 = vst [vmem:[%s2299_s30 + $0x308] sm:$0xff] %v369_v33  ;;  %v373_v35 = vld [vmem:[%s2294_s29 + $0xc18] sm:$0xff]  ;;  %v375_v36 = vld [vmem:[%s2294_s29 + $0xc20] sm:$0xff] }
  0x46   : > { %372 = vst [vmem:[%s2299_s30 + $0x310] sm:$0xff] %v371_v34  ;;  %v377_v37 = vld [vmem:[%s2294_s29 + $0xc28] sm:$0xff]  ;;  %374 = vst [vmem:[%s2299_s30 + $0x318] sm:$0xff] %v373_v35  ;;  %v379_v38 = vld [vmem:[%s2294_s29 + $0xc30] sm:$0xff] }
  0x47   : > { %376 = vst [vmem:[%s2299_s30 + $0x320] sm:$0xff] %v375_v36  ;;  %378 = vst [vmem:[%s2299_s30 + $0x328] sm:$0xff] %v377_v37  ;;  %v381_v39 = vld [vmem:[%s2294_s29 + $0xc38] sm:$0xff]  ;;  %v383_v40 = vld [vmem:[%s2294_s29 + $0xd00] sm:$0xff] }
  0x48   : > { %380 = vst [vmem:[%s2299_s30 + $0x330] sm:$0xff] %v379_v38  ;;  %382 = vst [vmem:[%s2299_s30 + $0x338] sm:$0xff] %v381_v39  ;;  %v385_v41 = vld [vmem:[%s2294_s29 + $0xd08] sm:$0xff]  ;;  %v387_v42 = vld [vmem:[%s2294_s29 + $0xd10] sm:$0xff] }
  0x49   : > { %384 = vst [vmem:[%s2299_s30 + $0x340] sm:$0xff] %v383_v40  ;;  %v389_v43 = vld [vmem:[%s2294_s29 + $0xd18] sm:$0xff]  ;;  %386 = vst [vmem:[%s2299_s30 + $0x348] sm:$0xff] %v385_v41  ;;  %v391_v44 = vld [vmem:[%s2294_s29 + $0xd20] sm:$0xff] }
  0x4a   : > { %388 = vst [vmem:[%s2299_s30 + $0x350] sm:$0xff] %v387_v42  ;;  %390 = vst [vmem:[%s2299_s30 + $0x358] sm:$0xff] %v389_v43  ;;  %v393_v45 = vld [vmem:[%s2294_s29 + $0xd28] sm:$0xff]  ;;  %v395_v46 = vld [vmem:[%s2294_s29 + $0xd30] sm:$0xff] }
  0x4b   : > { %392 = vst [vmem:[%s2299_s30 + $0x360] sm:$0xff] %v391_v44  ;;  %394 = vst [vmem:[%s2299_s30 + $0x368] sm:$0xff] %v393_v45  ;;  %v397_v47 = vld [vmem:[%s2294_s29 + $0xd38] sm:$0xff]  ;;  %v399_v48 = vld [vmem:[%s2294_s29 + $0xe00] sm:$0xff] }
  0x4c   : > { %396 = vst [vmem:[%s2299_s30 + $0x370] sm:$0xff] %v395_v46  ;;  %v401_v49 = vld [vmem:[%s2294_s29 + $0xe08] sm:$0xff]  ;;  %398 = vst [vmem:[%s2299_s30 + $0x378] sm:$0xff] %v397_v47  ;;  %v403_v50 = vld [vmem:[%s2294_s29 + $0xe10] sm:$0xff] }
  0x4d   : > { %400 = vst [vmem:[%s2299_s30 + $0x380] sm:$0xff] %v399_v48  ;;  %402 = vst [vmem:[%s2299_s30 + $0x388] sm:$0xff] %v401_v49  ;;  %v405_v51 = vld [vmem:[%s2294_s29 + $0xe18] sm:$0xff]  ;;  %v407_v52 = vld [vmem:[%s2294_s29 + $0xe20] sm:$0xff] }
  0x4e   : > { %404 = vst [vmem:[%s2299_s30 + $0x390] sm:$0xff] %v403_v50  ;;  %406 = vst [vmem:[%s2299_s30 + $0x398] sm:$0xff] %v405_v51  ;;  %v409_v53 = vld [vmem:[%s2294_s29 + $0xe28] sm:$0xff]  ;;  %v411_v54 = vld [vmem:[%s2294_s29 + $0xe30] sm:$0xff] }
  0x4f   : > { %408 = vst [vmem:[%s2299_s30 + $0x3a0] sm:$0xff] %v407_v52  ;;  %v413_v55 = vld [vmem:[%s2294_s29 + $0xe38] sm:$0xff]  ;;  %410 = vst [vmem:[%s2299_s30 + $0x3a8] sm:$0xff] %v409_v53  ;;  %v415_v56 = vld [vmem:[%s2294_s29 + $0xf00] sm:$0xff] }
  0x50   : > { %412 = vst [vmem:[%s2299_s30 + $0x3b0] sm:$0xff] %v411_v54  ;;  %414 = vst [vmem:[%s2299_s30 + $0x3b8] sm:$0xff] %v413_v55  ;;  %v417_v57 = vld [vmem:[%s2294_s29 + $0xf08] sm:$0xff]  ;;  %v419_v58 = vld [vmem:[%s2294_s29 + $0xf10] sm:$0xff] }
  0x51   : > { %416 = vst [vmem:[%s2299_s30 + $0x3c0] sm:$0xff] %v415_v56  ;;  %418 = vst [vmem:[%s2299_s30 + $0x3c8] sm:$0xff] %v417_v57  ;;  %v421_v59 = vld [vmem:[%s2294_s29 + $0xf18] sm:$0xff]  ;;  %v423_v60 = vld [vmem:[%s2294_s29 + $0xf20] sm:$0xff] }
  0x52   : > { %420 = vst [vmem:[%s2299_s30 + $0x3d0] sm:$0xff] %v419_v58  ;;  %v425_v61 = vld [vmem:[%s2294_s29 + $0xf28] sm:$0xff]  ;;  %422 = vst [vmem:[%s2299_s30 + $0x3d8] sm:$0xff] %v421_v59  ;;  %v427_v62 = vld [vmem:[%s2294_s29 + $0xf30] sm:$0xff] }
  0x53   : > { %424 = vst [vmem:[%s2299_s30 + $0x3e0] sm:$0xff] %v423_v60  ;;  %426 = vst [vmem:[%s2299_s30 + $0x3e8] sm:$0xff] %v425_v61  ;;  %v429_v63 = vld [vmem:[%s2294_s29 + $0xf38] sm:$0xff] }
  0x54   : > { %428 = vst [vmem:[%s2299_s30 + $0x3f0] sm:$0xff] %v427_v62  ;;  %430 = vst [vmem:[%s2299_s30 + $0x3f8] sm:$0xff] %v429_v63 }
  0x55 PF: > { %p2005_p7 = scmp.ge.s32.totalorder %s2226_s17, 1  ;;  %p435_p8 = scmp.lt.s32.totalorder %s2226_s17, 5 }
  0x57   : > { %p436_p9 = pnand %p2005_p7, %p435_p8 }
  0x58   : > { %s442_s5 = sand.u32 (!%p436_p9), 1, %s2218_s15   ;;  %v2228_v0 = vmov (!%p436_p9), 0   ;;  %v1685_v1 = vld [vmem:[%s2851_s2] sm:$0xff] (!%p436_p9)  ;;  %v1686_v22 = vld [vmem:[%s2851_s2 + $0x8] sm:$0xff] (!%p436_p9) }
  0x59   : > { %439 = sbr.rel (%p436_p9) target bundleno = 461 (0x1cd), region = 55  ;;  %s2006_s6 = sshll.u32 (!%p436_p9), %s442_s5, 10  ;;  %1277 = vmatprep.mubr.bf16.mxu0 (!%p436_p9), %v2228_v0  ;;  %1320 = vmatprep.mubr.bf16.mxu1 (!%p436_p9), %v2228_v0  ;;  %v1729_v2 = vld [vmem:[%s2852_s3] sm:$0xff] (!%p436_p9)  ;;  %v1730_v23 = vld [vmem:[%s2852_s3 + $0x8] sm:$0xff] (!%p436_p9) }
  0x5a   : > { %2201 = vset.pattern.permute.xlu0 (!%p436_p9), %v2228_v0  ;;  %2202 = vset.pattern.permute.xlu1 (!%p436_p9), %v2228_v0  ;;  %s2569_s11 = scalar_lea.vmem (!%p436_p9), [#allocation2], %s2006_s6  ;;  %s2007_s25 = sshll.u32 (!%p436_p9), %s442_s5, 7 }
  0x5b   : > { %v471_v3 = vld [vmem:[%s2569_s11] sm:$0xff] (!%p436_p9)  ;;  %v472_v5 = vld [vmem:[%s2569_s11 + $0x8] sm:$0xff] (!%p436_p9)  ;;  %1689 = vperm.xlu0 (!%p436_p9), %2201, %v1685_v1   ;;  %1733 = vperm.xlu1 (!%p436_p9), %2202, %v1729_v2   ;;  %s2746_s15 = scalar_lea.vmem (!%p436_p9), [#allocation3], %s2007_s25 }
  0x5c   : > { %v479_v4 = vld [vmem:[%s2569_s11 + $0x40] sm:$0xff] (!%p436_p9)  ;;  %v480_v7 = vld [vmem:[%s2569_s11 + $0x48] sm:$0xff] (!%p436_p9) }
  0x5d   : > { %v2010_v6 = vcombine.high (!%p436_p9), %v471_v3, %v479_v4  ;;  %v2009_v8 = vcombine.low (!%p436_p9), %v471_v3, %v479_v4  ;;  %v487_v9 = vld [vmem:[%s2569_s11 + $0x80] sm:$0xff] (!%p436_p9)  ;;  %v2012_v11 = vcombine.high (!%p436_p9), %v472_v5, %v480_v7  ;;  %v2011_v12 = vcombine.low (!%p436_p9), %v472_v5, %v480_v7  ;;  %v488_v14 = vld [vmem:[%s2569_s11 + $0x88] sm:$0xff] (!%p436_p9)  ;;  %v473_v4 = vld [vmem:[%s2569_s11 + $0x10] sm:$0xff] (!%p436_p9) }
  0x5e   : > { %v495_v10 = vld [vmem:[%s2569_s11 + $0xc0] sm:$0xff] (!%p436_p9)  ;;  %v496_v15 = vld [vmem:[%s2569_s11 + $0xc8] sm:$0xff] (!%p436_p9)  ;;  %v481_v5 = vld [vmem:[%s2569_s11 + $0x50] sm:$0xff] (!%p436_p9) }
  0x5f   : > { %v2026_v13 = vcombine.high (!%p436_p9), %v487_v9, %v495_v10  ;;  %v503_v16 = vld [vmem:[%s2569_s11 + $0x100] sm:$0xff] (!%p436_p9)  ;;  %1245 = vmatprep.subr.bf16.mxu0 (!%p436_p9), %v2010_v6  ;;  %v2028_v17 = vcombine.high (!%p436_p9), %v488_v14, %v496_v15  ;;  %v504_v19 = vld [vmem:[%s2569_s11 + $0x108] sm:$0xff] (!%p436_p9)  ;;  %1288 = vmatprep.subr.bf16.mxu1 (!%p436_p9), %v2012_v11  ;;  %v2025_v21 = vcombine.low (!%p436_p9), %v487_v9, %v495_v10  ;;  %v474_v6 = vld [vmem:[%s2569_s11 + $0x18] sm:$0xff] (!%p436_p9) }
  0x60   : > { %v511_v18 = vld [vmem:[%s2569_s11 + $0x140] sm:$0xff]  ;;  %v512_v20 = vld [vmem:[%s2569_s11 + $0x148] sm:$0xff]  ;;  %1246 = vmatpush1.bf16.msra.mxu0 %v2009_v8  ;;  %1289 = vmatpush1.bf16.msra.mxu1 %v2011_v12  ;;  %v2027_v24 = vcombine.low %v488_v14, %v496_v15  ;;  %v482_v7 = vld [vmem:[%s2569_s11 + $0x58] sm:$0xff]  ;;  %v2014_v10 = vcombine.high %v473_v4, %v481_v5  ;;  %s2175_s26 = sshll.u32 (%p2284_p5), %s1998_s18, 6 }
  0x61   : > { %1247 = vmatprep.subr.bf16.mxu0 %v2026_v13  ;;  %v2042_v25 = vcombine.high %v503_v16, %v511_v18  ;;  %1290 = vmatprep.subr.bf16.mxu1 %v2028_v17  ;;  %v2044_v26 = vcombine.high %v504_v19, %v512_v20  ;;  %v519_v27 = vld [vmem:[%s2569_s11 + $0x180] sm:$0xff]  ;;  %v520_v29 = vld [vmem:[%s2569_s11 + $0x188] sm:$0xff]  ;;  %v2041_v31 = vcombine.low %v503_v16, %v511_v18  ;;  %v489_v12 = vld [vmem:[%s2569_s11 + $0x90] sm:$0xff]  ;;  %s1894_s23 = scalar_lea.vmem (%p2284_p5), %s2853_s4, %s2175_s26 }
  0x62   : > { %v527_v28 = vld [vmem:[%s2569_s11 + $0x1c0] sm:$0xff]  ;;  %v528_v30 = vld [vmem:[%s2569_s11 + $0x1c8] sm:$0xff]  ;;  %1694 = vperm.xlu0 %2201, %v1686_v22   ;;  %1738 = vperm.xlu1 %2202, %v1730_v23   ;;  %v2043_v32 = vcombine.low %v504_v19, %v512_v20  ;;  %v2016_v11 = vcombine.high %v474_v6, %v482_v7  ;;  %v497_v13 = vld [vmem:[%s2569_s11 + $0xd0] sm:$0xff]  ;;  %v2013_v17 = vcombine.low %v473_v4, %v481_v5 }
  0x63   : > { %v2058_v33 = vcombine.high %v519_v27, %v527_v28  ;;  %v2060_v34 = vcombine.high %v520_v29, %v528_v30  ;;  %v535_v35 = vld [vmem:[%s2569_s11 + $0x200] sm:$0xff]  ;;  %v536_v37 = vld [vmem:[%s2569_s11 + $0x208] sm:$0xff]  ;;  %v2057_v39 = vcombine.low %v519_v27, %v527_v28  ;;  %v2059_v40 = vcombine.low %v520_v29, %v528_v30  ;;  %v490_v15 = vld [vmem:[%s2569_s11 + $0x98] sm:$0xff] }
  0x64   : > { %1248 = vmatpush1.bf16.msra.mxu0 %v2025_v21  ;;  %1291 = vmatpush1.bf16.msra.mxu1 %v2027_v24  ;;  %v543_v36 = vld [vmem:[%s2569_s11 + $0x240] sm:$0xff]  ;;  %v544_v38 = vld [vmem:[%s2569_s11 + $0x248] sm:$0xff]  ;;  %v498_v16 = vld [vmem:[%s2569_s11 + $0xd8] sm:$0xff]  ;;  %v2015_v18 = vcombine.low %v474_v6, %v482_v7  ;;  %v2030_v19 = vcombine.high %v489_v12, %v497_v13 }
  0x65   : > { %1249 = vmatprep.subr.bf16.mxu0 %v2042_v25  ;;  %1292 = vmatprep.subr.bf16.mxu1 %v2044_v26  ;;  %v2074_v41 = vcombine.high %v535_v35, %v543_v36  ;;  %v2076_v42 = vcombine.high %v536_v37, %v544_v38  ;;  %v551_v43 = vld [vmem:[%s2569_s11 + $0x280] sm:$0xff]  ;;  %v552_v45 = vld [vmem:[%s2569_s11 + $0x288] sm:$0xff]  ;;  %v2073_v47 = vcombine.low %v535_v35, %v543_v36  ;;  %v505_v21 = vld [vmem:[%s2569_s11 + $0x110] sm:$0xff] }
  0x66   : > { %v559_v44 = vld [vmem:[%s2569_s11 + $0x2c0] sm:$0xff]  ;;  %v560_v46 = vld [vmem:[%s2569_s11 + $0x2c8] sm:$0xff]  ;;  %v2075_v48 = vcombine.low %v536_v37, %v544_v38  ;;  %v2032_v20 = vcombine.high %v490_v15, %v498_v16  ;;  %v513_v22 = vld [vmem:[%s2569_s11 + $0x150] sm:$0xff]  ;;  %v2029_v25 = vcombine.low %v489_v12, %v497_v13  ;;  %v2031_v26 = vcombine.low %v490_v15, %v498_v16 }
  0x67   : > { %v2090_v49 = vcombine.high %v551_v43, %v559_v44  ;;  %v2092_v50 = vcombine.high %v552_v45, %v560_v46  ;;  %v567_v51 = vld [vmem:[%s2569_s11 + $0x300] sm:$0xff]  ;;  %v568_v53 = vld [vmem:[%s2569_s11 + $0x308] sm:$0xff]  ;;  %v2089_v55 = vcombine.low %v551_v43, %v559_v44  ;;  %v2091_v56 = vcombine.low %v552_v45, %v560_v46  ;;  %v506_v23 = vld [vmem:[%s2569_s11 + $0x118] sm:$0xff] }
  0x68   : > { %1250 = vmatpush1.bf16.msra.mxu0 %v2041_v31  ;;  %1293 = vmatpush1.bf16.msra.mxu1 %v2043_v32  ;;  %v575_v52 = vld [vmem:[%s2569_s11 + $0x340] sm:$0xff]  ;;  %v576_v54 = vld [vmem:[%s2569_s11 + $0x348] sm:$0xff]  ;;  %v514_v24 = vld [vmem:[%s2569_s11 + $0x158] sm:$0xff]  ;;  %v2046_v27 = vcombine.high %v505_v21, %v513_v22 }
  0x69   : > { %1251 = vmatprep.subr.bf16.mxu0 %v2058_v33  ;;  %1294 = vmatprep.subr.bf16.mxu1 %v2060_v34  ;;  %v2106_v57 = vcombine.high %v567_v51, %v575_v52  ;;  %v2108_v58 = vcombine.high %v568_v53, %v576_v54  ;;  %v583_v59 = vld [vmem:[%s2569_s11 + $0x380] sm:$0xff]  ;;  %v584_v61 = vld [vmem:[%s2569_s11 + $0x388] sm:$0xff]  ;;  %v2105_v63 = vcombine.low %v567_v51, %v575_v52  ;;  %v521_v29 = vld [vmem:[%s2569_s11 + $0x190] sm:$0xff] }
  0x6a   : > { %v591_v60 = vld [vmem:[%s2569_s11 + $0x3c0] sm:$0xff]  ;;  %v592_v62 = vld [vmem:[%s2569_s11 + $0x3c8] sm:$0xff]  ;;  %v2107_v1 = vcombine.low %v568_v53, %v576_v54  ;;  %v2048_v28 = vcombine.high %v506_v23, %v514_v24  ;;  %v529_v30 = vld [vmem:[%s2569_s11 + $0x1d0] sm:$0xff]  ;;  %v2045_v33 = vcombine.low %v505_v21, %v513_v22  ;;  %v2047_v34 = vcombine.low %v506_v23, %v514_v24 }
  0x6b   : > { %v2122_v2 = vcombine.high %v583_v59, %v591_v60  ;;  %v2124_v3 = vcombine.high %v584_v61, %v592_v62  ;;  %v2121_v8 = vcombine.low %v583_v59, %v591_v60  ;;  %v2123_v9 = vcombine.low %v584_v61, %v592_v62  ;;  %v2618_v14 = vld [vmem:[%s2849_s0] sm:$0xff]   ;;  %v522_v31 = vld [vmem:[%s2569_s11 + $0x198] sm:$0xff]  ;;  %v537_v37 = vld [vmem:[%s2569_s11 + $0x210] sm:$0xff] }
  0x6c   : > { %1252 = vmatpush1.bf16.msra.mxu0 %v2057_v39  ;;  %1295 = vmatpush1.bf16.msra.mxu1 %v2059_v40  ;;  %v530_v32 = vld [vmem:[%s2569_s11 + $0x1d8] sm:$0xff]  ;;  %v2062_v35 = vcombine.high %v521_v29, %v529_v30  ;;  %v545_v38 = vld [vmem:[%s2569_s11 + $0x250] sm:$0xff]  ;;  %v475_v6 = vld [vmem:[%s2569_s11 + $0x20] sm:$0xff] }
  0x6d   : > { %1253 = vmatprep.subr.bf16.mxu0 %v2074_v41  ;;  %1296 = vmatprep.subr.bf16.mxu1 %v2076_v42  ;;  %v2064_v36 = vcombine.high %v522_v31, %v530_v32  ;;  %v538_v39 = vld [vmem:[%s2569_s11 + $0x218] sm:$0xff]  ;;  %v2061_v41 = vcombine.low %v521_v29, %v529_v30  ;;  %v2063_v42 = vcombine.low %v522_v31, %v530_v32  ;;  %v553_v45 = vld [vmem:[%s2569_s11 + $0x290] sm:$0xff]  ;;  %v483_v7 = vld [vmem:[%s2569_s11 + $0x60] sm:$0xff] }
  0x6e   : > { %v546_v40 = vld [vmem:[%s2569_s11 + $0x258] sm:$0xff]  ;;  %v2078_v43 = vcombine.high %v537_v37, %v545_v38  ;;  %v561_v46 = vld [vmem:[%s2569_s11 + $0x2d0] sm:$0xff]  ;;  %v2018_v12 = vcombine.high %v475_v6, %v483_v7  ;;  %v491_v15 = vld [vmem:[%s2569_s11 + $0xa0] sm:$0xff] }
  0x6f   : > { %v2080_v44 = vcombine.high %v538_v39, %v546_v40  ;;  %v2094_v51 = vcombine.high %v553_v45, %v561_v46  ;;  %v569_v53 = vld [vmem:[%s2569_s11 + $0x310] sm:$0xff]  ;;  %v499_v16 = vld [vmem:[%s2569_s11 + $0xe0] sm:$0xff] }
  0x70   : > { %1254 = vmatpush1.bf16.msra.mxu0 %v2073_v47  ;;  %1297 = vmatpush1.bf16.msra.mxu1 %v2075_v48  ;;  %v554_v47 = vld [vmem:[%s2569_s11 + $0x298] sm:$0xff]  ;;  %v577_v54 = vld [vmem:[%s2569_s11 + $0x350] sm:$0xff]  ;;  %v2034_v21 = vcombine.high %v491_v15, %v499_v16  ;;  %v507_v23 = vld [vmem:[%s2569_s11 + $0x120] sm:$0xff] }
  0x71   : > { %1255 = vmatprep.subr.bf16.mxu0 %v2090_v49  ;;  %1298 = vmatprep.subr.bf16.mxu1 %v2092_v50  ;;  %v562_v48 = vld [vmem:[%s2569_s11 + $0x2d8] sm:$0xff]  ;;  %v2077_v49 = vcombine.low %v537_v37, %v545_v38  ;;  %v2079_v50 = vcombine.low %v538_v39, %v546_v40  ;;  %v2110_v59 = vcombine.high %v569_v53, %v577_v54  ;;  %v585_v61 = vld [vmem:[%s2569_s11 + $0x390] sm:$0xff]  ;;  %v515_v24 = vld [vmem:[%s2569_s11 + $0x160] sm:$0xff] }
  0x72   : > { %v2096_v52 = vcombine.high %v554_v47, %v562_v48  ;;  %v593_v62 = vld [vmem:[%s2569_s11 + $0x3d0] sm:$0xff]  ;;  %v2050_v29 = vcombine.high %v507_v23, %v515_v24  ;;  %v523_v31 = vld [vmem:[%s2569_s11 + $0x1a0] sm:$0xff] }
  0x73   : > { %v2126_v4 = vcombine.high %v585_v61, %v593_v62  ;;  %v531_v32 = vld [vmem:[%s2569_s11 + $0x1e0] sm:$0xff] }
  0x74   : > { %1256 = vmatpush1.bf16.msra.mxu0 %v2089_v55  ;;  %1299 = vmatpush1.bf16.msra.mxu1 %v2091_v56  ;;  %v570_v55 = vld [vmem:[%s2569_s11 + $0x318] sm:$0xff]  ;;  %v2066_v37 = vcombine.high %v523_v31, %v531_v32  ;;  %v539_v39 = vld [vmem:[%s2569_s11 + $0x220] sm:$0xff] }
  0x75   : > { %1257 = vmatprep.subr.bf16.mxu0 %v2106_v57  ;;  %1300 = vmatprep.subr.bf16.mxu1 %v2108_v58  ;;  %v578_v56 = vld [vmem:[%s2569_s11 + $0x358] sm:$0xff]  ;;  %v2093_v57 = vcombine.low %v553_v45, %v561_v46  ;;  %v2095_v58 = vcombine.low %v554_v47, %v562_v48  ;;  %v547_v40 = vld [vmem:[%s2569_s11 + $0x260] sm:$0xff] }
  0x76   : > { %v2112_v60 = vcombine.high %v570_v55, %v578_v56  ;;  %v2082_v45 = vcombine.high %v539_v39, %v547_v40  ;;  %v555_v47 = vld [vmem:[%s2569_s11 + $0x2a0] sm:$0xff] }
  0x77   : > { %v563_v48 = vld [vmem:[%s2569_s11 + $0x2e0] sm:$0xff] }
  0x78   : > { %1258 = vmatpush1.bf16.msra.mxu0 %v2105_v63  ;;  %1301 = vmatpush1.bf16.msra.mxu1 %v2107_v1  ;;  %v586_v63 = vld [vmem:[%s2569_s11 + $0x398] sm:$0xff] }
  0x79   : > { %1259 = vmatprep.subr.bf16.mxu0 %v2122_v2  ;;  %1302 = vmatprep.subr.bf16.mxu1 %v2124_v3  ;;  %v594_v1 = vld [vmem:[%s2569_s11 + $0x3d8] sm:$0xff]  ;;  %v2109_v2 = vcombine.low %v569_v53, %v577_v54  ;;  %v2111_v3 = vcombine.low %v570_v55, %v578_v56  ;;  %v2098_v53 = vcombine.high %v555_v47, %v563_v48  ;;  %v571_v55 = vld [vmem:[%s2569_s11 + $0x320] sm:$0xff] }
  0x7a   : > { %v2128_v5 = vcombine.high %v586_v63, %v594_v1  ;;  %v579_v56 = vld [vmem:[%s2569_s11 + $0x360] sm:$0xff] }
  0x7c   : > { %1260 = vmatpush1.bf16.msra.mxu0 %v2121_v8  ;;  %1303 = vmatpush1.bf16.msra.mxu1 %v2123_v9  ;;  %v476_v8 = vld [vmem:[%s2569_s11 + $0x28] sm:$0xff] }
  0x7d   : > { %1331 = vmatprep.subr.bf16.mxu0 %v2014_v10  ;;  %1374 = vmatprep.subr.bf16.mxu1 %v2016_v11  ;;  %v484_v9 = vld [vmem:[%s2569_s11 + $0x68] sm:$0xff]  ;;  %v2125_v10 = vcombine.low %v585_v61, %v593_v62  ;;  %v2127_v11 = vcombine.low %v586_v63, %v594_v1  ;;  %v2114_v61 = vcombine.high %v571_v55, %v579_v56  ;;  %v587_v63 = vld [vmem:[%s2569_s11 + $0x3a0] sm:$0xff] }
  0x7e   : > { %v2020_v13 = vcombine.high %v476_v8, %v484_v9  ;;  %v595_v1 = vld [vmem:[%s2569_s11 + $0x3e0] sm:$0xff] }
  0x7f   : > { %1278 = vmatmul.mubr.bf16.vlgmr.msra.gmra.mrb[0].mxu0 %v2618_v14  ;;  %1321 = vmatmul.mubr.bf16.vlgmr.msra.gmra.mrb[0].mxu1 %v2618_v14 }
  0x80   : > { %1332 = vmatpush1.bf16.msra.mxu0 %v2013_v17  ;;  %1375 = vmatpush1.bf16.msra.mxu1 %v2015_v18  ;;  %v492_v17 = vld [vmem:[%s2569_s11 + $0xa8] sm:$0xff] }
  0x81   : > { %1333 = vmatprep.subr.bf16.mxu0 %v2030_v19  ;;  %1376 = vmatprep.subr.bf16.mxu1 %v2032_v20  ;;  %v500_v18 = vld [vmem:[%s2569_s11 + $0xe8] sm:$0xff]  ;;  %v2017_v19 = vcombine.low %v475_v6, %v483_v7  ;;  %v2019_v20 = vcombine.low %v476_v8, %v484_v9  ;;  %v2130_v6 = vcombine.high %v587_v63, %v595_v1  ;;  %v477_v8 = vld [vmem:[%s2569_s11 + $0x30] sm:$0xff] }
  0x82   : > { %1363 = vmatprep.mubr.bf16.mxu0 %v2228_v0  ;;  %1406 = vmatprep.mubr.bf16.mxu1 %v2228_v0  ;;  %v2036_v22 = vcombine.high %v492_v17, %v500_v18  ;;  %v485_v9 = vld [vmem:[%s2569_s11 + $0x70] sm:$0xff] }
  0x84   : > { %1334 = vmatpush1.bf16.msra.mxu0 %v2029_v25  ;;  %1377 = vmatpush1.bf16.msra.mxu1 %v2031_v26  ;;  %v508_v25 = vld [vmem:[%s2569_s11 + $0x128] sm:$0xff] }
  0x85   : > { %1335 = vmatprep.subr.bf16.mxu0 %v2046_v27  ;;  %1378 = vmatprep.subr.bf16.mxu1 %v2048_v28  ;;  %v516_v26 = vld [vmem:[%s2569_s11 + $0x168] sm:$0xff]  ;;  %v2033_v27 = vcombine.low %v491_v15, %v499_v16  ;;  %v2035_v28 = vcombine.low %v492_v17, %v500_v18  ;;  %v2022_v15 = vcombine.high %v477_v8, %v485_v9  ;;  %v493_v17 = vld [vmem:[%s2569_s11 + $0xb0] sm:$0xff] }
  0x86   : > { %v2052_v30 = vcombine.high %v508_v25, %v516_v26  ;;  %v501_v18 = vld [vmem:[%s2569_s11 + $0xf0] sm:$0xff] }
  0x88   : > { %1336 = vmatpush1.bf16.msra.mxu0 %v2045_v33  ;;  %1379 = vmatpush1.bf16.msra.mxu1 %v2047_v34  ;;  %v524_v33 = vld [vmem:[%s2569_s11 + $0x1a8] sm:$0xff] }
  0x89   : > { %1337 = vmatprep.subr.bf16.mxu0 %v2062_v35  ;;  %1380 = vmatprep.subr.bf16.mxu1 %v2064_v36  ;;  %v532_v34 = vld [vmem:[%s2569_s11 + $0x1e8] sm:$0xff]  ;;  %v2049_v35 = vcombine.low %v507_v23, %v515_v24  ;;  %v2051_v36 = vcombine.low %v508_v25, %v516_v26  ;;  %v2038_v23 = vcombine.high %v493_v17, %v501_v18  ;;  %v509_v25 = vld [vmem:[%s2569_s11 + $0x130] sm:$0xff] }
  0x8a   : > { %v2068_v38 = vcombine.high %v524_v33, %v532_v34  ;;  %v517_v26 = vld [vmem:[%s2569_s11 + $0x170] sm:$0xff] }
  0x8c   : > { %1338 = vmatpush1.bf16.msra.mxu0 %v2061_v41  ;;  %1381 = vmatpush1.bf16.msra.mxu1 %v2063_v42  ;;  %v540_v41 = vld [vmem:[%s2569_s11 + $0x228] sm:$0xff] }
  0x8d   : > { %1339 = vmatprep.subr.bf16.mxu0 %v2078_v43  ;;  %1382 = vmatprep.subr.bf16.mxu1 %v2080_v44  ;;  %v548_v42 = vld [vmem:[%s2569_s11 + $0x268] sm:$0xff]  ;;  %v2065_v43 = vcombine.low %v523_v31, %v531_v32  ;;  %v2067_v44 = vcombine.low %v524_v33, %v532_v34  ;;  %v2054_v31 = vcombine.high %v509_v25, %v517_v26  ;;  %v525_v33 = vld [vmem:[%s2569_s11 + $0x1b0] sm:$0xff] }
  0x8e   : > { %v2084_v46 = vcombine.high %v540_v41, %v548_v42  ;;  %v533_v34 = vld [vmem:[%s2569_s11 + $0x1f0] sm:$0xff] }
  0x90   : > { %1340 = vmatpush1.bf16.msra.mxu0 %v2077_v49  ;;  %1383 = vmatpush1.bf16.msra.mxu1 %v2079_v50  ;;  %v556_v49 = vld [vmem:[%s2569_s11 + $0x2a8] sm:$0xff] }
  0x91   : > { %1341 = vmatprep.subr.bf16.mxu0 %v2094_v51  ;;  %1384 = vmatprep.subr.bf16.mxu1 %v2096_v52  ;;  %v564_v50 = vld [vmem:[%s2569_s11 + $0x2e8] sm:$0xff]  ;;  %v2081_v51 = vcombine.low %v539_v39, %v547_v40  ;;  %v2083_v52 = vcombine.low %v540_v41, %v548_v42  ;;  %v2070_v39 = vcombine.high %v525_v33, %v533_v34  ;;  %v541_v41 = vld [vmem:[%s2569_s11 + $0x230] sm:$0xff] }
  0x92   : > { %v2100_v54 = vcombine.high %v556_v49, %v564_v50  ;;  %v549_v42 = vld [vmem:[%s2569_s11 + $0x270] sm:$0xff] }
  0x94   : > { %1342 = vmatpush1.bf16.msra.mxu0 %v2093_v57  ;;  %1385 = vmatpush1.bf16.msra.mxu1 %v2095_v58  ;;  %v572_v57 = vld [vmem:[%s2569_s11 + $0x328] sm:$0xff] }
  0x95   : > { %1343 = vmatprep.subr.bf16.mxu0 %v2110_v59  ;;  %1386 = vmatprep.subr.bf16.mxu1 %v2112_v60  ;;  %v580_v58 = vld [vmem:[%s2569_s11 + $0x368] sm:$0xff]  ;;  %v2097_v59 = vcombine.low %v555_v47, %v563_v48  ;;  %v2099_v60 = vcombine.low %v556_v49, %v564_v50  ;;  %v557_v48 = vld [vmem:[%s2569_s11 + $0x2b0] sm:$0xff]  ;;  %v558_v50 = vld [vmem:[%s2569_s11 + $0x2b8] sm:$0xff] }
  0x96   : > { %v2116_v62 = vcombine.high %v572_v57, %v580_v58  ;;  %v565_v49 = vld [vmem:[%s2569_s11 + $0x2f0] sm:$0xff] }
  0x98   : > { %1344 = vmatpush1.bf16.msra.mxu0 %v2109_v2  ;;  %1387 = vmatpush1.bf16.msra.mxu1 %v2111_v3  ;;  %v588_v2 = vld [vmem:[%s2569_s11 + $0x3a8] sm:$0xff] }
  0x99   : > { %1345 = vmatprep.subr.bf16.mxu0 %v2126_v4  ;;  %1388 = vmatprep.subr.bf16.mxu1 %v2128_v5  ;;  %v596_v3 = vld [vmem:[%s2569_s11 + $0x3e8] sm:$0xff]  ;;  %v2113_v4 = vcombine.low %v571_v55, %v579_v56  ;;  %v2115_v5 = vcombine.low %v572_v57, %v580_v58  ;;  %v573_v56 = vld [vmem:[%s2569_s11 + $0x330] sm:$0xff]  ;;  %v574_v58 = vld [vmem:[%s2569_s11 + $0x338] sm:$0xff] }
  0x9a   : > { %v2132_v7 = vcombine.high %v588_v2, %v596_v3  ;;  %v581_v57 = vld [vmem:[%s2569_s11 + $0x370] sm:$0xff] }
  0x9c   : > { %1346 = vmatpush1.bf16.msra.mxu0 %v2125_v10  ;;  %1389 = vmatpush1.bf16.msra.mxu1 %v2127_v11  ;;  %v478_v10 = vld [vmem:[%s2569_s11 + $0x38] sm:$0xff] }
  0x9d   : > { %1417 = vmatprep.subr.bf16.mxu0 %v2018_v12  ;;  %1460 = vmatprep.subr.bf16.mxu1 %v2020_v13  ;;  %v486_v11 = vld [vmem:[%s2569_s11 + $0x78] sm:$0xff]  ;;  %v2129_v12 = vcombine.low %v587_v63, %v595_v1  ;;  %v2131_v13 = vcombine.low %v588_v2, %v596_v3  ;;  %v589_v1 = vld [vmem:[%s2569_s11 + $0x3b0] sm:$0xff] }
  0x9e   : > { %v2024_v16 = vcombine.high %v478_v10, %v486_v11  ;;  %v597_v2 = vld [vmem:[%s2569_s11 + $0x3f0] sm:$0xff]  ;;  %v590_v3 = vld [vmem:[%s2569_s11 + $0x3b8] sm:$0xff] }
  0x9f   : > { %1364 = vmatmul.mubr.bf16.vlgmr.msra.gmra.mrb[4].mxu0 %v2618_v14  ;;  %1407 = vmatmul.mubr.bf16.vlgmr.msra.gmra.mrb[4].mxu1 %v2618_v14 }
  0xa0   : > { %1418 = vmatpush1.bf16.msra.mxu0 %v2017_v19  ;;  %1461 = vmatpush1.bf16.msra.mxu1 %v2019_v20  ;;  %v494_v19 = vld [vmem:[%s2569_s11 + $0xb8] sm:$0xff] }
  0xa1   : > { %1419 = vmatprep.subr.bf16.mxu0 %v2034_v21  ;;  %1462 = vmatprep.subr.bf16.mxu1 %v2036_v22  ;;  %v502_v20 = vld [vmem:[%s2569_s11 + $0xf8] sm:$0xff]  ;;  %v2021_v21 = vcombine.low %v477_v8, %v485_v9  ;;  %v2023_v22 = vcombine.low %v478_v10, %v486_v11  ;;  %v2133_v9 = vcombine.low %v589_v1, %v597_v2 }
  0xa2   : > { %1449 = vmatprep.mubr.bf16.mxu0 %v2228_v0  ;;  %1492 = vmatprep.mubr.bf16.mxu1 %v2228_v0  ;;  %v2040_v24 = vcombine.high %v494_v19, %v502_v20 }
  0xa4   : > { %1420 = vmatpush1.bf16.msra.mxu0 %v2033_v27  ;;  %1463 = vmatpush1.bf16.msra.mxu1 %v2035_v28  ;;  %v510_v27 = vld [vmem:[%s2569_s11 + $0x138] sm:$0xff] }
  0xa5   : > { %1421 = vmatprep.subr.bf16.mxu0 %v2050_v29  ;;  %1464 = vmatprep.subr.bf16.mxu1 %v2052_v30  ;;  %v518_v28 = vld [vmem:[%s2569_s11 + $0x178] sm:$0xff]  ;;  %v2037_v29 = vcombine.low %v493_v17, %v501_v18  ;;  %v2039_v30 = vcombine.low %v494_v19, %v502_v20 }
  0xa6   : > { %v2056_v32 = vcombine.high %v510_v27, %v518_v28 }
  0xa8   : > { %1422 = vmatpush1.bf16.msra.mxu0 %v2049_v35  ;;  %1465 = vmatpush1.bf16.msra.mxu1 %v2051_v36  ;;  %v526_v35 = vld [vmem:[%s2569_s11 + $0x1b8] sm:$0xff] }
  0xa9   : > { %1423 = vmatprep.subr.bf16.mxu0 %v2066_v37  ;;  %1466 = vmatprep.subr.bf16.mxu1 %v2068_v38  ;;  %v534_v36 = vld [vmem:[%s2569_s11 + $0x1f8] sm:$0xff]  ;;  %v2053_v37 = vcombine.low %v509_v25, %v517_v26  ;;  %v2055_v38 = vcombine.low %v510_v27, %v518_v28 }
  0xaa   : > { %v2072_v40 = vcombine.high %v526_v35, %v534_v36 }
  0xac   : > { %1424 = vmatpush1.bf16.msra.mxu0 %v2065_v43  ;;  %1467 = vmatpush1.bf16.msra.mxu1 %v2067_v44  ;;  %v542_v43 = vld [vmem:[%s2569_s11 + $0x238] sm:$0xff] }
  0xad   : > { %1425 = vmatprep.subr.bf16.mxu0 %v2082_v45  ;;  %1468 = vmatprep.subr.bf16.mxu1 %v2084_v46  ;;  %v550_v44 = vld [vmem:[%s2569_s11 + $0x278] sm:$0xff]  ;;  %v2069_v45 = vcombine.low %v525_v33, %v533_v34  ;;  %v2086_v46 = vcombine.high %v541_v41, %v549_v42 }
  0xae   : > { %v2088_v47 = vcombine.high %v542_v43, %v550_v44 }
  0xb0   : > { %1426 = vmatpush1.bf16.msra.mxu0 %v2081_v51  ;;  %1469 = vmatpush1.bf16.msra.mxu1 %v2083_v52  ;;  %v566_v51 = vld [vmem:[%s2569_s11 + $0x2f8] sm:$0xff]  ;;  %v2085_v52 = vcombine.low %v541_v41, %v549_v42 }
  0xb1   : > { %1427 = vmatprep.subr.bf16.mxu0 %v2098_v53  ;;  %1470 = vmatprep.subr.bf16.mxu1 %v2100_v54  ;;  %v2087_v53 = vcombine.low %v542_v43, %v550_v44  ;;  %v2102_v54 = vcombine.high %v557_v48, %v565_v49  ;;  %v2104_v55 = vcombine.high %v558_v50, %v566_v51 }
  0xb4   : > { %1428 = vmatpush1.bf16.msra.mxu0 %v2097_v59  ;;  %1471 = vmatpush1.bf16.msra.mxu1 %v2099_v60  ;;  %v582_v59 = vld [vmem:[%s2569_s11 + $0x378] sm:$0xff]  ;;  %v2101_v60 = vcombine.low %v557_v48, %v565_v49 }
  0xb5   : > { %1429 = vmatprep.subr.bf16.mxu0 %v2114_v61  ;;  %1472 = vmatprep.subr.bf16.mxu1 %v2116_v62  ;;  %v2103_v61 = vcombine.low %v558_v50, %v566_v51  ;;  %v2118_v62 = vcombine.high %v573_v56, %v581_v57  ;;  %v2120_v63 = vcombine.high %v574_v58, %v582_v59 }
  0xb8   : > { %1430 = vmatpush1.bf16.msra.mxu0 %v2113_v4  ;;  %1473 = vmatpush1.bf16.msra.mxu1 %v2115_v5  ;;  %v598_v4 = vld [vmem:[%s2569_s11 + $0x3f8] sm:$0xff]  ;;  %v2117_v5 = vcombine.low %v573_v56, %v581_v57 }
  0xb9   : > { %1431 = vmatprep.subr.bf16.mxu0 %v2130_v6  ;;  %1474 = vmatprep.subr.bf16.mxu1 %v2132_v7  ;;  %v2119_v6 = vcombine.low %v574_v58, %v582_v59  ;;  %v2134_v7 = vcombine.high %v589_v1, %v597_v2  ;;  %v2136_v8 = vcombine.high %v590_v3, %v598_v4 }
  0xba   : > { %v2135_v10 = vcombine.low %v590_v3, %v598_v4 }
  0xbc   : > { %1432 = vmatpush1.bf16.msra.mxu0 %v2129_v12  ;;  %1475 = vmatpush1.bf16.msra.mxu1 %v2131_v13 }
  0xbd   : > { %1503 = vmatprep.subr.bf16.mxu0 %v2022_v15  ;;  %1546 = vmatprep.subr.bf16.mxu1 %v2024_v16 }
  0xbf   : > { %1450 = vmatmul.mubr.bf16.vlgmr.msra.gmra.mrb[8].mxu0 %v2618_v14  ;;  %1493 = vmatmul.mubr.bf16.vlgmr.msra.gmra.mrb[8].mxu1 %v2618_v14 }
  0xc0   : > { %1504 = vmatpush1.bf16.msra.mxu0 %v2021_v21  ;;  %1547 = vmatpush1.bf16.msra.mxu1 %v2023_v22 }
  0xc1   : > { %1505 = vmatprep.subr.bf16.mxu0 %v2038_v23  ;;  %1548 = vmatprep.subr.bf16.mxu1 %v2040_v24 }
  0xc2   : > { %1535 = vmatprep.mubr.bf16.mxu0 %v2228_v0  ;;  %1578 = vmatprep.mubr.bf16.mxu1 %v2228_v0  ;;  %v2071_v0 = vcombine.low %v526_v35, %v534_v36 }
  0xc4   : > { %1506 = vmatpush1.bf16.msra.mxu0 %v2037_v29  ;;  %1549 = vmatpush1.bf16.msra.mxu1 %v2039_v30 }
  0xc5   : > { %1507 = vmatprep.subr.bf16.mxu0 %v2054_v31  ;;  %1550 = vmatprep.subr.bf16.mxu1 %v2056_v32 }
  0xc8   : > { %1508 = vmatpush1.bf16.msra.mxu0 %v2053_v37  ;;  %1551 = vmatpush1.bf16.msra.mxu1 %v2055_v38 }
  0xc9   : > { %1509 = vmatprep.subr.bf16.mxu0 %v2070_v39  ;;  %1552 = vmatprep.subr.bf16.mxu1 %v2072_v40 }
  0xcc   : > { %1510 = vmatpush1.bf16.msra.mxu0 %v2069_v45  ;;  %1553 = vmatpush1.bf16.msra.mxu1 %v2071_v0 }
  0xcd   : > { %1511 = vmatprep.subr.bf16.mxu0 %v2086_v46  ;;  %1554 = vmatprep.subr.bf16.mxu1 %v2088_v47 }
  0xd0   : > { %1512 = vmatpush1.bf16.msra.mxu0 %v2085_v52  ;;  %1555 = vmatpush1.bf16.msra.mxu1 %v2087_v53 }
  0xd1   : > { %1513 = vmatprep.subr.bf16.mxu0 %v2102_v54  ;;  %1556 = vmatprep.subr.bf16.mxu1 %v2104_v55 }
  0xd4   : > { %1514 = vmatpush1.bf16.msra.mxu0 %v2101_v60  ;;  %1557 = vmatpush1.bf16.msra.mxu1 %v2103_v61 }
  0xd5   : > { %1515 = vmatprep.subr.bf16.mxu0 %v2118_v62  ;;  %1558 = vmatprep.subr.bf16.mxu1 %v2120_v63 }
  0xd8   : > { %1516 = vmatpush1.bf16.msra.mxu0 %v2117_v5  ;;  %1559 = vmatpush1.bf16.msra.mxu1 %v2119_v6 }
  0xd9   : > { %1517 = vmatprep.subr.bf16.mxu0 %v2134_v7  ;;  %1560 = vmatprep.subr.bf16.mxu1 %v2136_v8 }
  0xda   : > { %v2724_v12 = vpop.permute.xlu0 %1689  ;;  %v2726_v19 = vpop.permute.xlu1 %1733 }
  0xdc   : > { %1518 = vmatpush1.bf16.msra.mxu0 %v2133_v9  ;;  %1561 = vmatpush1.bf16.msra.mxu1 %v2135_v10 }
  0xdf   : > { %1536 = vmatmul.mubr.bf16.vlgmr.msra.gmra.mrb[12].mxu0 %v2618_v14  ;;  %1579 = vmatmul.mubr.bf16.vlgmr.msra.gmra.mrb[12].mxu1 %v2618_v14 }
  0xe1   : > { %v2734_v34 = vpop.permute.xlu0 %1694  ;;  %v2739_v42 = vpop.permute.xlu1 %1738 }
 0x152   : > { %v1279_v11 = vpop.f32.mrb[0].mxu0  ;;  %v1322_v15 = vpop.f32.mrb[0].mxu1 }
 0x153   : > { %vm1589_vm0 = vcmp.ge.f32.partialorder %v1279_v11, 0.0  ;;  %v1621_v13 = vmul.f32 0.2, %v1279_v11  ;;  %v1281_v16 = vpop.f32.mrb[1].mxu0  ;;  %vm1591_vm1 = vcmp.ge.f32.partialorder %v1322_v15, 0.0  ;;  %v1324_v21 = vpop.f32.mrb[1].mxu1 }
 0x154   : > { %v1623_v17 = vmul.f32 0.2, %v1322_v15  ;;  %vm1590_vm2 = vcmp.ge.f32.partialorder %v1281_v16, 0.0  ;;  %v1622_v18 = vmul.f32 0.2, %v1281_v16  ;;  %v1283_v22 = vpop.f32.mrb[2].mxu0 }
 0x155   : > { %v1653_v20 = vsel %vm1589_vm0, %v1279_v11, %v1621_v13  ;;  %vm1592_vm3 = vcmp.ge.f32.partialorder %v1324_v21, 0.0  ;;  %v1326_v25 = vpop.f32.mrb[2].mxu1  ;;  %v1285_v26 = vpop.f32.mrb[3].mxu0  ;;  %v1624_v29 = vmul.f32 0.2, %v1324_v21  ;;  %vm1605_vm4 = vcmp.ge.f32.partialorder %v1283_v22, 0.0 }
 0x156   : > { %v1655_v23 = vsel %vm1591_vm1, %v1322_v15, %v1623_v17  ;;  %v1697_v14 = vmul.f32 %v2724_v12, %v1653_v20  ;;  %v1654_v24 = vsel %vm1590_vm2, %v1281_v16, %v1622_v18  ;;  %v1328_v30 = vpop.f32.mrb[3].mxu1  ;;  %v1637_v31 = vmul.f32 0.2, %v1283_v22 }
 0x157   : > { %v1699_v27 = vmul.f32 %v2724_v12, %v1655_v23  ;;  %v1698_v28 = vmul.f32 %v2724_v12, %v1654_v24  ;;  %vm1607_vm5 = vcmp.ge.f32.partialorder %v1326_v25, 0.0  ;;  %v1639_v32 = vmul.f32 0.2, %v1326_v25 }
 0x158   : > { %v1741_v33 = vadd.f32 %v2726_v19, %v1697_v14  ;;  %v1656_v35 = vsel %vm1592_vm3, %v1324_v21, %v1624_v29  ;;  %vm1606_vm6 = vcmp.ge.f32.partialorder %v1285_v26, 0.0  ;;  %v1669_v39 = vsel %vm1605_vm4, %v1283_v22, %v1637_v31 }
 0x159   : > { %v1742_v36 = vadd.f32 %v2726_v19, %v1698_v28  ;;  %v1743_v37 = vadd.f32 %v2726_v19, %v1699_v27  ;;  %v1700_v38 = vmul.f32 %v2724_v12, %v1656_v35  ;;  %v1671_v40 = vsel %vm1607_vm5, %v1326_v25, %v1639_v32 }
 0x15a   : > { %v1638_v41 = vmul.f32 0.2, %v1285_v26  ;;  %vm1608_vm7 = vcmp.ge.f32.partialorder %v1328_v30, 0.0  ;;  %v1640_v44 = vmul.f32 0.2, %v1328_v30  ;;  %v1713_v45 = vmul.f32 %v2734_v34, %v1669_v39 }
 0x15b   : > { %v2159_v43 = vpack.c.bf16 %v1742_v36, %v1741_v33  ;;  %v1744_v0 = vadd.f32 %v2726_v19, %v1700_v38  ;;  %v1715_v47 = vmul.f32 %v2734_v34, %v1671_v40 }
 0x15c   : > { %v1670_v46 = vsel %vm1606_vm6, %v1285_v26, %v1638_v41  ;;  %v1672_v48 = vsel %vm1608_vm7, %v1328_v30, %v1640_v44  ;;  %v1757_v50 = vadd.f32 %v2739_v42, %v1713_v45 }
 0x15d   : > { %v1714_v49 = vmul.f32 %v2734_v34, %v1670_v46  ;;  %1869 = vst [vmem:[%s2746_s15] sm:$0xff] %v2159_v43  ;;  %v2160_v51 = vpack.c.bf16 %v1744_v0, %v1743_v37  ;;  %v1716_v52 = vmul.f32 %v2734_v34, %v1672_v48  ;;  %v1759_v53 = vadd.f32 %v2739_v42, %v1715_v47 }
 0x15f   : > { %v1758_v54 = vadd.f32 %v2739_v42, %v1714_v49  ;;  %v1760_v55 = vadd.f32 %v2739_v42, %v1716_v52  ;;  %1870 = vst [vmem:[%s2746_s15 + $0x8] sm:$0xff] %v2160_v51 }
 0x161   : > { %v2167_v56 = vpack.c.bf16 %v1758_v54, %v1757_v50  ;;  %v2168_v57 = vpack.c.bf16 %v1760_v55, %v1759_v53 }
 0x163   : > { %1877 = vst [vmem:[%s2746_s15 + $0x40] sm:$0xff] %v2167_v56  ;;  %1878 = vst [vmem:[%s2746_s15 + $0x48] sm:$0xff] %v2168_v57 }
 0x172   : > { %v1365_v58 = vpop.f32.mrb[4].mxu0  ;;  %v1408_v60 = vpop.f32.mrb[4].mxu1 }
 0x173   : > { %vm1593_vm8 = vcmp.ge.f32.partialorder %v1365_v58, 0.0  ;;  %v1625_v59 = vmul.f32 0.2, %v1365_v58  ;;  %v1367_v61 = vpop.f32.mrb[5].mxu0  ;;  %vm1595_vm9 = vcmp.ge.f32.partialorder %v1408_v60, 0.0  ;;  %v1410_v2 = vpop.f32.mrb[5].mxu1 }
 0x174   : > { %v1627_v62 = vmul.f32 0.2, %v1408_v60  ;;  %vm1594_vm10 = vcmp.ge.f32.partialorder %v1367_v61, 0.0  ;;  %v1626_v63 = vmul.f32 0.2, %v1367_v61  ;;  %v1369_v3 = vpop.f32.mrb[6].mxu0 }
 0x175   : > { %v1657_v1 = vsel %vm1593_vm8, %v1365_v58, %v1625_v59  ;;  %vm1596_vm11 = vcmp.ge.f32.partialorder %v1410_v2, 0.0  ;;  %v1412_v7 = vpop.f32.mrb[6].mxu1  ;;  %v1371_v8 = vpop.f32.mrb[7].mxu0  ;;  %v1628_v11 = vmul.f32 0.2, %v1410_v2  ;;  %vm1609_vm12 = vcmp.ge.f32.partialorder %v1369_v3, 0.0 }
 0x176   : > { %v1701_v4 = vmul.f32 %v2724_v12, %v1657_v1  ;;  %v1659_v5 = vsel %vm1595_vm9, %v1408_v60, %v1627_v62  ;;  %v1658_v6 = vsel %vm1594_vm10, %v1367_v61, %v1626_v63  ;;  %v1414_v13 = vpop.f32.mrb[7].mxu1  ;;  %v1641_v16 = vmul.f32 0.2, %v1369_v3 }
 0x177   : > { %v1703_v9 = vmul.f32 %v2724_v12, %v1659_v5  ;;  %v1702_v10 = vmul.f32 %v2724_v12, %v1658_v6  ;;  %vm1611_vm13 = vcmp.ge.f32.partialorder %v1412_v7, 0.0  ;;  %v1643_v17 = vmul.f32 0.2, %v1412_v7 }
 0x178   : > { %v1745_v15 = vadd.f32 %v2726_v19, %v1701_v4  ;;  %v1660_v21 = vsel %vm1596_vm11, %v1410_v2, %v1628_v11  ;;  %vm1610_vm14 = vcmp.ge.f32.partialorder %v1371_v8, 0.0  ;;  %v1673_v23 = vsel %vm1609_vm12, %v1369_v3, %v1641_v16 }
 0x179   : > { %v1747_v18 = vadd.f32 %v2726_v19, %v1703_v9  ;;  %v1746_v20 = vadd.f32 %v2726_v19, %v1702_v10  ;;  %v1704_v22 = vmul.f32 %v2724_v12, %v1660_v21  ;;  %v1675_v14 = vsel %vm1611_vm13, %v1412_v7, %v1643_v17 }
 0x17a   : > { %v1642_v24 = vmul.f32 0.2, %v1371_v8  ;;  %v1717_v26 = vmul.f32 %v2734_v34, %v1673_v23  ;;  %v1719_v27 = vmul.f32 %v2734_v34, %v1675_v14  ;;  %vm1612_vm15 = vcmp.ge.f32.partialorder %v1414_v13, 0.0 }
 0x17b   : > { %v2161_v25 = vpack.c.bf16 %v1746_v20, %v1745_v15  ;;  %v1748_v28 = vadd.f32 %v2726_v19, %v1704_v22  ;;  %v1644_v30 = vmul.f32 0.2, %v1414_v13 }
 0x17c   : > { %v1674_v29 = vsel %vm1610_vm14, %v1371_v8, %v1642_v24  ;;  %v1761_v31 = vadd.f32 %v2739_v42, %v1717_v26  ;;  %v1763_v36 = vadd.f32 %v2739_v42, %v1719_v27 }
 0x17d   : > { %1871 = vst [vmem:[%s2746_s15 + $0x10] sm:$0xff] %v2161_v25  ;;  %v1718_v32 = vmul.f32 %v2734_v34, %v1674_v29  ;;  %v2162_v33 = vpack.c.bf16 %v1748_v28, %v1747_v18  ;;  %v1676_v35 = vsel %vm1612_vm15, %v1414_v13, %v1644_v30 }
 0x17e   : > { %v1720_v38 = vmul.f32 %v2734_v34, %v1676_v35 }
 0x17f   : > { %v1762_v37 = vadd.f32 %v2739_v42, %v1718_v32  ;;  %1872 = vst [vmem:[%s2746_s15 + $0x18] sm:$0xff] %v2162_v33 }
 0x180   : > { %v1764_v40 = vadd.f32 %v2739_v42, %v1720_v38 }
 0x181   : > { %v2169_v39 = vpack.c.bf16 %v1762_v37, %v1761_v31 }
 0x182   : > { %v2170_v41 = vpack.c.bf16 %v1764_v40, %v1763_v36 }
 0x183   : > { %1879 = vst [vmem:[%s2746_s15 + $0x50] sm:$0xff] %v2169_v39 }
 0x184   : > { %1880 = vst [vmem:[%s2746_s15 + $0x58] sm:$0xff] %v2170_v41 }
 0x192   : > { %v1451_v43 = vpop.f32.mrb[8].mxu0  ;;  %v1494_v45 = vpop.f32.mrb[8].mxu1 }
 0x193   : > { %vm1597_vm0 = vcmp.ge.f32.partialorder %v1451_v43, 0.0  ;;  %v1629_v44 = vmul.f32 0.2, %v1451_v43  ;;  %v1453_v0 = vpop.f32.mrb[9].mxu0  ;;  %vm1599_vm1 = vcmp.ge.f32.partialorder %v1494_v45, 0.0  ;;  %v1496_v49 = vpop.f32.mrb[9].mxu1 }
 0x194   : > { %v1631_v46 = vmul.f32 0.2, %v1494_v45  ;;  %vm1598_vm2 = vcmp.ge.f32.partialorder %v1453_v0, 0.0  ;;  %v1630_v47 = vmul.f32 0.2, %v1453_v0  ;;  %v1455_v50 = vpop.f32.mrb[10].mxu0 }
 0x195   : > { %v1661_v48 = vsel %vm1597_vm0, %v1451_v43, %v1629_v44  ;;  %vm1600_vm3 = vcmp.ge.f32.partialorder %v1496_v49, 0.0  ;;  %v1498_v54 = vpop.f32.mrb[10].mxu1  ;;  %v1457_v55 = vpop.f32.mrb[11].mxu0  ;;  %v1632_v58 = vmul.f32 0.2, %v1496_v49  ;;  %vm1613_vm4 = vcmp.ge.f32.partialorder %v1455_v50, 0.0 }
 0x196   : > { %v1705_v51 = vmul.f32 %v2724_v12, %v1661_v48  ;;  %v1663_v52 = vsel %vm1599_vm1, %v1494_v45, %v1631_v46  ;;  %v1662_v53 = vsel %vm1598_vm2, %v1453_v0, %v1630_v47  ;;  %v1500_v59 = vpop.f32.mrb[11].mxu1  ;;  %v1645_v61 = vmul.f32 0.2, %v1455_v50 }
 0x197   : > { %v1707_v56 = vmul.f32 %v2724_v12, %v1663_v52  ;;  %v1706_v57 = vmul.f32 %v2724_v12, %v1662_v53  ;;  %vm1615_vm5 = vcmp.ge.f32.partialorder %v1498_v54, 0.0  ;;  %v1647_v62 = vmul.f32 0.2, %v1498_v54 }
 0x198   : > { %v1749_v60 = vadd.f32 %v2726_v19, %v1705_v51  ;;  %v1664_v2 = vsel %vm1600_vm3, %v1496_v49, %v1632_v58  ;;  %vm1614_vm6 = vcmp.ge.f32.partialorder %v1457_v55, 0.0  ;;  %v1677_v4 = vsel %vm1613_vm4, %v1455_v50, %v1645_v61 }
 0x199   : > { %v1751_v63 = vadd.f32 %v2726_v19, %v1707_v56  ;;  %v1750_v1 = vadd.f32 %v2726_v19, %v1706_v57  ;;  %v1708_v3 = vmul.f32 %v2724_v12, %v1664_v2  ;;  %v1679_v5 = vsel %vm1615_vm5, %v1498_v54, %v1647_v62 }
 0x19a   : > { %v1646_v6 = vmul.f32 0.2, %v1457_v55  ;;  %v1721_v8 = vmul.f32 %v2734_v34, %v1677_v4  ;;  %v1723_v9 = vmul.f32 %v2734_v34, %v1679_v5  ;;  %vm1616_vm7 = vcmp.ge.f32.partialorder %v1500_v59, 0.0  ;;  %v1911_v5 = vld [vmem:[%s2746_s15 + $0x10] sm:$0xff] (%p2284_p5) }
 0x19b   : > { %v2163_v7 = vpack.c.bf16 %v1750_v1, %v1749_v60  ;;  %v1752_v10 = vadd.f32 %v2726_v19, %v1708_v3  ;;  %v1648_v13 = vmul.f32 0.2, %v1500_v59  ;;  %1912 = vst [vmem:[%s1894_s23 + $0x10] sm:$0xff] (%p2284_p5), %v1911_v5 }
 0x19c   : > { %v1678_v11 = vsel %vm1614_vm6, %v1457_v55, %v1646_v6  ;;  %v1765_v15 = vadd.f32 %v2739_v42, %v1721_v8  ;;  %v1767_v20 = vadd.f32 %v2739_v42, %v1723_v9  ;;  %v1913_v6 = vld [vmem:[%s2746_s15 + $0x18] sm:$0xff] (%p2284_p5) }
 0x19d   : > { %1873 = vst [vmem:[%s2746_s15 + $0x20] sm:$0xff] %v2163_v7  ;;  %v1722_v16 = vmul.f32 %v2734_v34, %v1678_v11  ;;  %v2164_v17 = vpack.c.bf16 %v1752_v10, %v1751_v63  ;;  %v1680_v18 = vsel %vm1616_vm7, %v1500_v59, %v1648_v13  ;;  %1914 = vst [vmem:[%s1894_s23 + $0x18] sm:$0xff] (%p2284_p5), %v1913_v6  ;;  %v1923_v11 = vld [vmem:[%s2746_s15 + $0x40] sm:$0xff] (%p2284_p5)  ;;  %v1925_v13 = vld [vmem:[%s2746_s15 + $0x48] sm:$0xff] (%p2284_p5) }
 0x19e   : > { %v1724_v22 = vmul.f32 %v2734_v34, %v1680_v18  ;;  %1924 = vst [vmem:[%s1894_s23 + $0x100] sm:$0xff] (%p2284_p5), %v1923_v11  ;;  %1926 = vst [vmem:[%s1894_s23 + $0x108] sm:$0xff] (%p2284_p5), %v1925_v13 }
 0x19f   : > { %v1766_v21 = vadd.f32 %v2739_v42, %v1722_v16  ;;  %1874 = vst [vmem:[%s2746_s15 + $0x28] sm:$0xff] %v2164_v17  ;;  %v1929_v16 = vld [vmem:[%s2746_s15 + $0x58] sm:$0xff] (%p2284_p5) }
 0x1a0   : > { %v1768_v14 = vadd.f32 %v2739_v42, %v1724_v22  ;;  %1930 = vst [vmem:[%s1894_s23 + $0x118] sm:$0xff] (%p2284_p5), %v1929_v16 }
 0x1a1   : > { %v2171_v23 = vpack.c.bf16 %v1766_v21, %v1765_v15  ;;  %v1927_v15 = vld [vmem:[%s2746_s15 + $0x50] sm:$0xff] (%p2284_p5) }
 0x1a2   : > { %v2172_v24 = vpack.c.bf16 %v1768_v14, %v1767_v20  ;;  %1928 = vst [vmem:[%s1894_s23 + $0x110] sm:$0xff] (%p2284_p5), %v1927_v15 }
 0x1a3   : > { %1881 = vst [vmem:[%s2746_s15 + $0x60] sm:$0xff] %v2171_v23 }
 0x1a4   : > { %1882 = vst [vmem:[%s2746_s15 + $0x68] sm:$0xff] %v2172_v24  ;;  %v1915_v7 = vld [vmem:[%s2746_s15 + $0x20] sm:$0xff] (%p2284_p5) }
 0x1a5   : > { %1916 = vst [vmem:[%s1894_s23 + $0x20] sm:$0xff] (%p2284_p5), %v1915_v7 }
 0x1a6   : > { %v1917_v8 = vld [vmem:[%s2746_s15 + $0x28] sm:$0xff] (%p2284_p5) }
 0x1a7   : > { %1918 = vst [vmem:[%s1894_s23 + $0x28] sm:$0xff] (%p2284_p5), %v1917_v8 }
 0x1aa   : > { %v1931_v17 = vld [vmem:[%s2746_s15 + $0x60] sm:$0xff] (%p2284_p5) }
 0x1ab   : > { %v1933_v18 = vld [vmem:[%s2746_s15 + $0x68] sm:$0xff] (%p2284_p5)  ;;  %1932 = vst [vmem:[%s1894_s23 + $0x120] sm:$0xff] (%p2284_p5), %v1931_v17 }
 0x1ac   : > { %1934 = vst [vmem:[%s1894_s23 + $0x128] sm:$0xff] (%p2284_p5), %v1933_v18 }
 0x1b2   : > { %v1537_v25 = vpop.f32.mrb[12].mxu0  ;;  %v1580_v27 = vpop.f32.mrb[12].mxu1 }
 0x1b3   : > { %vm1601_vm8 = vcmp.ge.f32.partialorder %v1537_v25, 0.0  ;;  %v1633_v26 = vmul.f32 0.2, %v1537_v25  ;;  %v1539_v28 = vpop.f32.mrb[13].mxu0  ;;  %vm1603_vm9 = vcmp.ge.f32.partialorder %v1580_v27, 0.0  ;;  %v1582_v32 = vpop.f32.mrb[13].mxu1 }
 0x1b4   : > { %v1635_v29 = vmul.f32 0.2, %v1580_v27  ;;  %vm1602_vm10 = vcmp.ge.f32.partialorder %v1539_v28, 0.0  ;;  %v1634_v30 = vmul.f32 0.2, %v1539_v28  ;;  %v1541_v33 = vpop.f32.mrb[14].mxu0 }
 0x1b5   : > { %v1665_v31 = vsel %vm1601_vm8, %v1537_v25, %v1633_v26  ;;  %vm1604_vm11 = vcmp.ge.f32.partialorder %v1582_v32, 0.0  ;;  %v1584_v38 = vpop.f32.mrb[14].mxu1  ;;  %v1543_v39 = vpop.f32.mrb[15].mxu0  ;;  %v1636_v43 = vmul.f32 0.2, %v1582_v32  ;;  %vm1617_vm12 = vcmp.ge.f32.partialorder %v1541_v33, 0.0 }
 0x1b6   : > { %v1709_v35 = vmul.f32 %v2724_v12, %v1665_v31  ;;  %v1667_v36 = vsel %vm1603_vm9, %v1580_v27, %v1635_v29  ;;  %v1666_v37 = vsel %vm1602_vm10, %v1539_v28, %v1634_v30  ;;  %v1586_v44 = vpop.f32.mrb[15].mxu1  ;;  %v1649_v0 = vmul.f32 0.2, %v1541_v33 }
 0x1b7   : > { %v1711_v40 = vmul.f32 %v2724_v12, %v1667_v36  ;;  %v1710_v41 = vmul.f32 %v2724_v12, %v1666_v37  ;;  %vm1619_vm13 = vcmp.ge.f32.partialorder %v1584_v38, 0.0  ;;  %v1651_v46 = vmul.f32 0.2, %v1584_v38 }
 0x1b8   : > { %v1753_v45 = vadd.f32 %v2726_v19, %v1709_v35  ;;  %v1668_v49 = vsel %vm1604_vm11, %v1582_v32, %v1636_v43  ;;  %vm1618_vm14 = vcmp.ge.f32.partialorder %v1543_v39, 0.0  ;;  %v1681_v51 = vsel %vm1617_vm12, %v1541_v33, %v1649_v0 }
 0x1b9   : > { %v1755_v47 = vadd.f32 %v2726_v19, %v1711_v40  ;;  %v1754_v48 = vadd.f32 %v2726_v19, %v1710_v41  ;;  %v1712_v50 = vmul.f32 %v2724_v12, %v1668_v49  ;;  %v1683_v52 = vsel %vm1619_vm13, %v1584_v38, %v1651_v46 }
 0x1ba   : > { %v1650_v53 = vmul.f32 0.2, %v1543_v39  ;;  %v1725_v55 = vmul.f32 %v2734_v34, %v1681_v51  ;;  %v1727_v56 = vmul.f32 %v2734_v34, %v1683_v52  ;;  %vm1620_vm15 = vcmp.ge.f32.partialorder %v1586_v44, 0.0 }
 0x1bb   : > { %v2165_v54 = vpack.c.bf16 %v1754_v48, %v1753_v45  ;;  %v1756_v57 = vadd.f32 %v2726_v19, %v1712_v50  ;;  %v1652_v59 = vmul.f32 0.2, %v1586_v44 }
 0x1bc   : > { %v1682_v58 = vsel %vm1618_vm14, %v1543_v39, %v1650_v53  ;;  %v1769_v60 = vadd.f32 %v2739_v42, %v1725_v55  ;;  %v1771_v63 = vadd.f32 %v2739_v42, %v1727_v56 }
 0x1bd   : > { %1875 = vst [vmem:[%s2746_s15 + $0x30] sm:$0xff] %v2165_v54  ;;  %v1726_v12 = vmul.f32 %v2734_v34, %v1682_v58  ;;  %v2166_v61 = vpack.c.bf16 %v1756_v57, %v1755_v47  ;;  %v1684_v62 = vsel %vm1620_vm15, %v1586_v44, %v1652_v59 }
 0x1be   : > { %v1728_v2 = vmul.f32 %v2734_v34, %v1684_v62  ;;  %1891 = sbr.rel (!%p2284_p5) target bundleno = 461 (0x1cd), region = 63  ;;  %v1907_v34 = vld [vmem:[%s2746_s15] sm:$0xff] (%p2284_p5) }
 0x1bf   : > { %v1770_v1 = vadd.f32 %v2739_v42, %v1726_v12  ;;  %1876 = vst [vmem:[%s2746_s15 + $0x38] sm:$0xff] %v2166_v61  ;;  %1908 = vst [vmem:[%s1894_s23] sm:$0xff] (%p2284_p5), %v1907_v34 }
 0x1c0   : > { %v1772_v19 = vadd.f32 %v2739_v42, %v1728_v2  ;;  %v1909_v42 = vld [vmem:[%s2746_s15 + $0x8] sm:$0xff] (%p2284_p5) }
 0x1c1   : > { %v2173_v3 = vpack.c.bf16 %v1770_v1, %v1769_v60  ;;  %1910 = vst [vmem:[%s1894_s23 + $0x8] sm:$0xff] (%p2284_p5), %v1909_v42 }
 0x1c2   : > { %v2174_v4 = vpack.c.bf16 %v1772_v19, %v1771_v63 }
 0x1c3   : > { %1883 = vst [vmem:[%s2746_s15 + $0x70] sm:$0xff] %v2173_v3 }
 0x1c4   : > { %1884 = vst [vmem:[%s2746_s15 + $0x78] sm:$0xff] %v2174_v4  ;;  %v1919_v9 = vld [vmem:[%s2746_s15 + $0x30] sm:$0xff] (%p2284_p5) }
 0x1c5   : > { %1920 = vst [vmem:[%s1894_s23 + $0x30] sm:$0xff] %v1919_v9 }
 0x1c6   : > { %v1921_v10 = vld [vmem:[%s2746_s15 + $0x38] sm:$0xff] }
 0x1c7   : > { %1922 = vst [vmem:[%s1894_s23 + $0x38] sm:$0xff] %v1921_v10 }
 0x1ca   : > { %v1935_v20 = vld [vmem:[%s2746_s15 + $0x70] sm:$0xff] }
 0x1cb   : > { %1936 = vst [vmem:[%s1894_s23 + $0x130] sm:$0xff] %v1935_v20  ;;  %v1937_v21 = vld [vmem:[%s2746_s15 + $0x78] sm:$0xff] }
 0x1cc   : > { %1938 = vst [vmem:[%s1894_s23 + $0x138] sm:$0xff] %v1937_v21 }
 0x1cd PF: > { %p11_p10 = scmp.ge.s32.totalorder %s2271_s19, 6   ;;  %s2855_s15 = smov %s2222_s16 }
 0x1ce   : > { %s2856_s16 = smov %s2282_s22  ;;  %s2857_s17 = smov %s2271_s19 }
 0x1cf   :  { %13 = sbr.rel (!%p11_p10) target bundleno = 2 (0x2), region = 117 }

// kernel: patch_discriminator_forward.5
= control target key start
LH: loop header
LB: loop body
LE: loop exit
PB: predicated region body
PF: predicated region fallthrough
CT: control target
= control target key end

     0   :  { %s3607_s15 = smov 0   ;;  %s3609_s16 = smov 0   ;;  %s4510_s0 = inlined_call_operand.vmem [shape: bf16[16,1024], index: 0, kind: input, shape index: {}]   ;;  %s4511_s1 = inlined_call_operand.vmem [shape: bf16[1024,1024], index: 1, kind: input, shape index: {}]   ;;  %s4512_s2 = inlined_call_operand.vmem [shape: f32[16,1], index: 2, kind: input, shape index: {}]   ;;  %s4513_s3 = inlined_call_operand.vmem [shape: f32[16,1], index: 3, kind: input, shape index: {}]   ;;  %s4514_s4 = inlined_call_operand.vmem [shape: bf16[16,1024], index: 4, kind: output, shape index: {}]  }
   0x1   :  { %s3611_s17 = smov 0  }
   0x2 LB: > { %s2833_s18 = sadd.s32 4294967295, %s3579_s17   ;;  %s3624_s19 = sadd.s32 1, %s3579_s17   ;;  %s3579_s17 = sphi %s3611_s17, %s4518_s17   ;;  %s3575_s16 = sphi %s3609_s16, %s4517_s16   ;;  %s3571_s15 = sphi %s3607_s15, %s4516_s15  }
   0x3   : > { %s39_s20 = ssub.s32 %s3579_s17, %s3624_s19  ;;  %s42_s21 = sadd.s32 1, %s3575_s16 }
   0x4   : > { %p40_p0 = scmp.eq.s32.totalorder %s39_s20, 0  ;;  %p49_p1 = scmp.ne.s32.totalorder %s3575_s16, %s3571_s15 }
   0x5   : > { %p50_p2 = scmp.eq.s32.totalorder %s3579_s17, 0  ;;  %p121_p3 = scmp.eq.s32.totalorder %s2833_s18, 1 }
   0x6   : > { %s3635_s22 = scalar_select %p40_p0, %s3575_s16, %s42_s21  }
   0x7   : > { %p51_p4 = por %p50_p2, %p49_p1  ;;  %p3637_p5 = por %p121_p3, %p49_p1 }
   0x8   : > { %p2836_p6 = scmp.ge.s32.totalorder %s3579_s17, 2 }
   0xa   : > { %152 = sbr.rel (%p2836_p6) target bundleno = 149 (0x95), region = 28 }
  0x11   : > { %155 = sbr.rel (!%p51_p4) target bundleno = 149 (0x95), region = 32  ;;  %s157_s24 = sand.u32 (%p51_p4), 1, %s3575_s16  }
  0x12   : > { %s3116_s25 = sshll.u32 (%p51_p4), %s3579_s17, 4  ;;  %s2837_s26 = sshll.u32 (%p51_p4), %s157_s24, 11 }
  0x13   : > { %s3647_s29 = scalar_lea.vmem (%p51_p4), %s4511_s1, %s3116_s25  ;;  %s3652_s30 = scalar_lea.vmem (%p51_p4), [#allocation2], %s2837_s26 }
  0x14   : > { %v175_v0 = vld [vmem:[%s3647_s29] sm:$0xff] (%p51_p4)  ;;  %v177_v1 = vld [vmem:[%s3647_s29 + $0x8] sm:$0xff] (%p51_p4) }
  0x15   : > { %v179_v2 = vld [vmem:[%s3647_s29 + $0x20] sm:$0xff] (%p51_p4)  ;;  %176 = vst [vmem:[%s3652_s30] sm:$0xff] (%p51_p4), %v175_v0  ;;  %178 = vst [vmem:[%s3652_s30 + $0x8] sm:$0xff] (%p51_p4), %v177_v1  ;;  %v181_v3 = vld [vmem:[%s3647_s29 + $0x28] sm:$0xff] (%p51_p4) }
  0x16   : > { %180 = vst [vmem:[%s3652_s30 + $0x10] sm:$0xff] (%p51_p4), %v179_v2  ;;  %v183_v4 = vld [vmem:[%s3647_s29 + $0x40] sm:$0xff] (%p51_p4)  ;;  %v185_v5 = vld [vmem:[%s3647_s29 + $0x48] sm:$0xff] (%p51_p4)  ;;  %182 = vst [vmem:[%s3652_s30 + $0x18] sm:$0xff] (%p51_p4), %v181_v3 }
  0x17   : > { %184 = vst [vmem:[%s3652_s30 + $0x20] sm:$0xff] (%p51_p4), %v183_v4  ;;  %186 = vst [vmem:[%s3652_s30 + $0x28] sm:$0xff] (%p51_p4), %v185_v5  ;;  %v187_v6 = vld [vmem:[%s3647_s29 + $0x60] sm:$0xff] (%p51_p4)  ;;  %v189_v7 = vld [vmem:[%s3647_s29 + $0x68] sm:$0xff] (%p51_p4) }
  0x18   : > { %v191_v8 = vld [vmem:[%s3647_s29 + $0x80] sm:$0xff]  ;;  %188 = vst [vmem:[%s3652_s30 + $0x30] sm:$0xff] %v187_v6  ;;  %190 = vst [vmem:[%s3652_s30 + $0x38] sm:$0xff] %v189_v7  ;;  %v193_v9 = vld [vmem:[%s3647_s29 + $0x88] sm:$0xff] }
  0x19   : > { %192 = vst [vmem:[%s3652_s30 + $0x40] sm:$0xff] %v191_v8  ;;  %v195_v10 = vld [vmem:[%s3647_s29 + $0xa0] sm:$0xff]  ;;  %v197_v11 = vld [vmem:[%s3647_s29 + $0xa8] sm:$0xff]  ;;  %194 = vst [vmem:[%s3652_s30 + $0x48] sm:$0xff] %v193_v9 }
  0x1a   : > { %196 = vst [vmem:[%s3652_s30 + $0x50] sm:$0xff] %v195_v10  ;;  %198 = vst [vmem:[%s3652_s30 + $0x58] sm:$0xff] %v197_v11  ;;  %v199_v12 = vld [vmem:[%s3647_s29 + $0xc0] sm:$0xff]  ;;  %v201_v13 = vld [vmem:[%s3647_s29 + $0xc8] sm:$0xff] }
  0x1b   : > { %v203_v14 = vld [vmem:[%s3647_s29 + $0xe0] sm:$0xff]  ;;  %200 = vst [vmem:[%s3652_s30 + $0x60] sm:$0xff] %v199_v12  ;;  %202 = vst [vmem:[%s3652_s30 + $0x68] sm:$0xff] %v201_v13  ;;  %v205_v15 = vld [vmem:[%s3647_s29 + $0xe8] sm:$0xff] }
  0x1c   : > { %204 = vst [vmem:[%s3652_s30 + $0x70] sm:$0xff] %v203_v14  ;;  %v207_v16 = vld [vmem:[%s3647_s29 + $0x100] sm:$0xff]  ;;  %v209_v17 = vld [vmem:[%s3647_s29 + $0x108] sm:$0xff]  ;;  %206 = vst [vmem:[%s3652_s30 + $0x78] sm:$0xff] %v205_v15 }
  0x1d   : > { %208 = vst [vmem:[%s3652_s30 + $0x80] sm:$0xff] %v207_v16  ;;  %210 = vst [vmem:[%s3652_s30 + $0x88] sm:$0xff] %v209_v17  ;;  %v211_v18 = vld [vmem:[%s3647_s29 + $0x120] sm:$0xff]  ;;  %v213_v19 = vld [vmem:[%s3647_s29 + $0x128] sm:$0xff] }
  0x1e   : > { %v215_v20 = vld [vmem:[%s3647_s29 + $0x140] sm:$0xff]  ;;  %212 = vst [vmem:[%s3652_s30 + $0x90] sm:$0xff] %v211_v18  ;;  %214 = vst [vmem:[%s3652_s30 + $0x98] sm:$0xff] %v213_v19  ;;  %v217_v21 = vld [vmem:[%s3647_s29 + $0x148] sm:$0xff] }
  0x1f   : > { %216 = vst [vmem:[%s3652_s30 + $0xa0] sm:$0xff] %v215_v20  ;;  %v219_v22 = vld [vmem:[%s3647_s29 + $0x160] sm:$0xff]  ;;  %v221_v23 = vld [vmem:[%s3647_s29 + $0x168] sm:$0xff]  ;;  %218 = vst [vmem:[%s3652_s30 + $0xa8] sm:$0xff] %v217_v21 }
  0x20   : > { %220 = vst [vmem:[%s3652_s30 + $0xb0] sm:$0xff] %v219_v22  ;;  %222 = vst [vmem:[%s3652_s30 + $0xb8] sm:$0xff] %v221_v23  ;;  %v223_v24 = vld [vmem:[%s3647_s29 + $0x180] sm:$0xff]  ;;  %v225_v25 = vld [vmem:[%s3647_s29 + $0x188] sm:$0xff] }
  0x21   : > { %v227_v26 = vld [vmem:[%s3647_s29 + $0x1a0] sm:$0xff]  ;;  %224 = vst [vmem:[%s3652_s30 + $0xc0] sm:$0xff] %v223_v24  ;;  %226 = vst [vmem:[%s3652_s30 + $0xc8] sm:$0xff] %v225_v25  ;;  %v229_v27 = vld [vmem:[%s3647_s29 + $0x1a8] sm:$0xff] }
  0x22   : > { %228 = vst [vmem:[%s3652_s30 + $0xd0] sm:$0xff] %v227_v26  ;;  %v231_v28 = vld [vmem:[%s3647_s29 + $0x1c0] sm:$0xff]  ;;  %v233_v29 = vld [vmem:[%s3647_s29 + $0x1c8] sm:$0xff]  ;;  %230 = vst [vmem:[%s3652_s30 + $0xd8] sm:$0xff] %v229_v27 }
  0x23   : > { %232 = vst [vmem:[%s3652_s30 + $0xe0] sm:$0xff] %v231_v28  ;;  %234 = vst [vmem:[%s3652_s30 + $0xe8] sm:$0xff] %v233_v29  ;;  %v235_v30 = vld [vmem:[%s3647_s29 + $0x1e0] sm:$0xff]  ;;  %v237_v31 = vld [vmem:[%s3647_s29 + $0x1e8] sm:$0xff] }
  0x24   : > { %v239_v32 = vld [vmem:[%s3647_s29 + $0x200] sm:$0xff]  ;;  %236 = vst [vmem:[%s3652_s30 + $0xf0] sm:$0xff] %v235_v30  ;;  %238 = vst [vmem:[%s3652_s30 + $0xf8] sm:$0xff] %v237_v31  ;;  %v241_v33 = vld [vmem:[%s3647_s29 + $0x208] sm:$0xff] }
  0x25   : > { %240 = vst [vmem:[%s3652_s30 + $0x100] sm:$0xff] %v239_v32  ;;  %v243_v34 = vld [vmem:[%s3647_s29 + $0x220] sm:$0xff]  ;;  %v245_v35 = vld [vmem:[%s3647_s29 + $0x228] sm:$0xff]  ;;  %242 = vst [vmem:[%s3652_s30 + $0x108] sm:$0xff] %v241_v33 }
  0x26   : > { %244 = vst [vmem:[%s3652_s30 + $0x110] sm:$0xff] %v243_v34  ;;  %246 = vst [vmem:[%s3652_s30 + $0x118] sm:$0xff] %v245_v35  ;;  %v247_v36 = vld [vmem:[%s3647_s29 + $0x240] sm:$0xff]  ;;  %v249_v37 = vld [vmem:[%s3647_s29 + $0x248] sm:$0xff] }
  0x27   : > { %v251_v38 = vld [vmem:[%s3647_s29 + $0x260] sm:$0xff]  ;;  %248 = vst [vmem:[%s3652_s30 + $0x120] sm:$0xff] %v247_v36  ;;  %250 = vst [vmem:[%s3652_s30 + $0x128] sm:$0xff] %v249_v37  ;;  %v253_v39 = vld [vmem:[%s3647_s29 + $0x268] sm:$0xff] }
  0x28   : > { %252 = vst [vmem:[%s3652_s30 + $0x130] sm:$0xff] %v251_v38  ;;  %v255_v40 = vld [vmem:[%s3647_s29 + $0x280] sm:$0xff]  ;;  %v257_v41 = vld [vmem:[%s3647_s29 + $0x288] sm:$0xff]  ;;  %254 = vst [vmem:[%s3652_s30 + $0x138] sm:$0xff] %v253_v39 }
  0x29   : > { %256 = vst [vmem:[%s3652_s30 + $0x140] sm:$0xff] %v255_v40  ;;  %258 = vst [vmem:[%s3652_s30 + $0x148] sm:$0xff] %v257_v41  ;;  %v259_v42 = vld [vmem:[%s3647_s29 + $0x2a0] sm:$0xff]  ;;  %v261_v43 = vld [vmem:[%s3647_s29 + $0x2a8] sm:$0xff] }
  0x2a   : > { %v263_v44 = vld [vmem:[%s3647_s29 + $0x2c0] sm:$0xff]  ;;  %260 = vst [vmem:[%s3652_s30 + $0x150] sm:$0xff] %v259_v42  ;;  %262 = vst [vmem:[%s3652_s30 + $0x158] sm:$0xff] %v261_v43  ;;  %v265_v45 = vld [vmem:[%s3647_s29 + $0x2c8] sm:$0xff] }
  0x2b   : > { %264 = vst [vmem:[%s3652_s30 + $0x160] sm:$0xff] %v263_v44  ;;  %v267_v46 = vld [vmem:[%s3647_s29 + $0x2e0] sm:$0xff]  ;;  %v269_v47 = vld [vmem:[%s3647_s29 + $0x2e8] sm:$0xff]  ;;  %266 = vst [vmem:[%s3652_s30 + $0x168] sm:$0xff] %v265_v45 }
  0x2c   : > { %268 = vst [vmem:[%s3652_s30 + $0x170] sm:$0xff] %v267_v46  ;;  %270 = vst [vmem:[%s3652_s30 + $0x178] sm:$0xff] %v269_v47  ;;  %v271_v48 = vld [vmem:[%s3647_s29 + $0x300] sm:$0xff]  ;;  %v273_v49 = vld [vmem:[%s3647_s29 + $0x308] sm:$0xff] }
  0x2d   : > { %v275_v50 = vld [vmem:[%s3647_s29 + $0x320] sm:$0xff]  ;;  %272 = vst [vmem:[%s3652_s30 + $0x180] sm:$0xff] %v271_v48  ;;  %274 = vst [vmem:[%s3652_s30 + $0x188] sm:$0xff] %v273_v49  ;;  %v277_v51 = vld [vmem:[%s3647_s29 + $0x328] sm:$0xff] }
  0x2e   : > { %276 = vst [vmem:[%s3652_s30 + $0x190] sm:$0xff] %v275_v50  ;;  %v279_v52 = vld [vmem:[%s3647_s29 + $0x340] sm:$0xff]  ;;  %v281_v53 = vld [vmem:[%s3647_s29 + $0x348] sm:$0xff]  ;;  %278 = vst [vmem:[%s3652_s30 + $0x198] sm:$0xff] %v277_v51 }
  0x2f   : > { %280 = vst [vmem:[%s3652_s30 + $0x1a0] sm:$0xff] %v279_v52  ;;  %282 = vst [vmem:[%s3652_s30 + $0x1a8] sm:$0xff] %v281_v53  ;;  %v283_v54 = vld [vmem:[%s3647_s29 + $0x360] sm:$0xff]  ;;  %v285_v55 = vld [vmem:[%s3647_s29 + $0x368] sm:$0xff] }
  0x30   : > { %v287_v56 = vld [vmem:[%s3647_s29 + $0x380] sm:$0xff]  ;;  %284 = vst [vmem:[%s3652_s30 + $0x1b0] sm:$0xff] %v283_v54  ;;  %286 = vst [vmem:[%s3652_s30 + $0x1b8] sm:$0xff] %v285_v55  ;;  %v289_v57 = vld [vmem:[%s3647_s29 + $0x388] sm:$0xff] }
  0x31   : > { %288 = vst [vmem:[%s3652_s30 + $0x1c0] sm:$0xff] %v287_v56  ;;  %v291_v58 = vld [vmem:[%s3647_s29 + $0x3a0] sm:$0xff]  ;;  %v293_v59 = vld [vmem:[%s3647_s29 + $0x3a8] sm:$0xff]  ;;  %290 = vst [vmem:[%s3652_s30 + $0x1c8] sm:$0xff] %v289_v57 }
  0x32   : > { %292 = vst [vmem:[%s3652_s30 + $0x1d0] sm:$0xff] %v291_v58  ;;  %294 = vst [vmem:[%s3652_s30 + $0x1d8] sm:$0xff] %v293_v59  ;;  %v295_v60 = vld [vmem:[%s3647_s29 + $0x3c0] sm:$0xff]  ;;  %v297_v61 = vld [vmem:[%s3647_s29 + $0x3c8] sm:$0xff] }
  0x33   : > { %v299_v62 = vld [vmem:[%s3647_s29 + $0x3e0] sm:$0xff]  ;;  %296 = vst [vmem:[%s3652_s30 + $0x1e0] sm:$0xff] %v295_v60  ;;  %298 = vst [vmem:[%s3652_s30 + $0x1e8] sm:$0xff] %v297_v61  ;;  %v301_v63 = vld [vmem:[%s3647_s29 + $0x3e8] sm:$0xff] }
  0x34   : > { %300 = vst [vmem:[%s3652_s30 + $0x1f0] sm:$0xff] %v299_v62  ;;  %v303_v0 = vld [vmem:[%s3647_s29 + $0x400] sm:$0xff]  ;;  %v305_v1 = vld [vmem:[%s3647_s29 + $0x408] sm:$0xff]  ;;  %302 = vst [vmem:[%s3652_s30 + $0x1f8] sm:$0xff] %v301_v63 }
  0x35   : > { %304 = vst [vmem:[%s3652_s30 + $0x200] sm:$0xff] %v303_v0  ;;  %306 = vst [vmem:[%s3652_s30 + $0x208] sm:$0xff] %v305_v1  ;;  %v307_v2 = vld [vmem:[%s3647_s29 + $0x420] sm:$0xff]  ;;  %v309_v3 = vld [vmem:[%s3647_s29 + $0x428] sm:$0xff] }
  0x36   : > { %v311_v4 = vld [vmem:[%s3647_s29 + $0x440] sm:$0xff]  ;;  %308 = vst [vmem:[%s3652_s30 + $0x210] sm:$0xff] %v307_v2  ;;  %310 = vst [vmem:[%s3652_s30 + $0x218] sm:$0xff] %v309_v3  ;;  %v313_v5 = vld [vmem:[%s3647_s29 + $0x448] sm:$0xff] }
  0x37   : > { %312 = vst [vmem:[%s3652_s30 + $0x220] sm:$0xff] %v311_v4  ;;  %v315_v6 = vld [vmem:[%s3647_s29 + $0x460] sm:$0xff]  ;;  %v317_v7 = vld [vmem:[%s3647_s29 + $0x468] sm:$0xff]  ;;  %314 = vst [vmem:[%s3652_s30 + $0x228] sm:$0xff] %v313_v5 }
  0x38   : > { %316 = vst [vmem:[%s3652_s30 + $0x230] sm:$0xff] %v315_v6  ;;  %318 = vst [vmem:[%s3652_s30 + $0x238] sm:$0xff] %v317_v7  ;;  %v319_v8 = vld [vmem:[%s3647_s29 + $0x480] sm:$0xff]  ;;  %v321_v9 = vld [vmem:[%s3647_s29 + $0x488] sm:$0xff] }
  0x39   : > { %v323_v10 = vld [vmem:[%s3647_s29 + $0x4a0] sm:$0xff]  ;;  %320 = vst [vmem:[%s3652_s30 + $0x240] sm:$0xff] %v319_v8  ;;  %322 = vst [vmem:[%s3652_s30 + $0x248] sm:$0xff] %v321_v9  ;;  %v325_v11 = vld [vmem:[%s3647_s29 + $0x4a8] sm:$0xff] }
  0x3a   : > { %324 = vst [vmem:[%s3652_s30 + $0x250] sm:$0xff] %v323_v10  ;;  %v327_v12 = vld [vmem:[%s3647_s29 + $0x4c0] sm:$0xff]  ;;  %v329_v13 = vld [vmem:[%s3647_s29 + $0x4c8] sm:$0xff]  ;;  %326 = vst [vmem:[%s3652_s30 + $0x258] sm:$0xff] %v325_v11 }
  0x3b   : > { %328 = vst [vmem:[%s3652_s30 + $0x260] sm:$0xff] %v327_v12  ;;  %330 = vst [vmem:[%s3652_s30 + $0x268] sm:$0xff] %v329_v13  ;;  %v331_v14 = vld [vmem:[%s3647_s29 + $0x4e0] sm:$0xff]  ;;  %v333_v15 = vld [vmem:[%s3647_s29 + $0x4e8] sm:$0xff] }
  0x3c   : > { %v335_v16 = vld [vmem:[%s3647_s29 + $0x500] sm:$0xff]  ;;  %332 = vst [vmem:[%s3652_s30 + $0x270] sm:$0xff] %v331_v14  ;;  %334 = vst [vmem:[%s3652_s30 + $0x278] sm:$0xff] %v333_v15  ;;  %v337_v17 = vld [vmem:[%s3647_s29 + $0x508] sm:$0xff] }
  0x3d   : > { %336 = vst [vmem:[%s3652_s30 + $0x280] sm:$0xff] %v335_v16  ;;  %v339_v18 = vld [vmem:[%s3647_s29 + $0x520] sm:$0xff]  ;;  %v341_v19 = vld [vmem:[%s3647_s29 + $0x528] sm:$0xff]  ;;  %338 = vst [vmem:[%s3652_s30 + $0x288] sm:$0xff] %v337_v17 }
  0x3e   : > { %340 = vst [vmem:[%s3652_s30 + $0x290] sm:$0xff] %v339_v18  ;;  %342 = vst [vmem:[%s3652_s30 + $0x298] sm:$0xff] %v341_v19  ;;  %v343_v20 = vld [vmem:[%s3647_s29 + $0x540] sm:$0xff]  ;;  %v345_v21 = vld [vmem:[%s3647_s29 + $0x548] sm:$0xff] }
  0x3f   : > { %v347_v22 = vld [vmem:[%s3647_s29 + $0x560] sm:$0xff]  ;;  %344 = vst [vmem:[%s3652_s30 + $0x2a0] sm:$0xff] %v343_v20  ;;  %346 = vst [vmem:[%s3652_s30 + $0x2a8] sm:$0xff] %v345_v21  ;;  %v349_v23 = vld [vmem:[%s3647_s29 + $0x568] sm:$0xff] }
  0x40   : > { %348 = vst [vmem:[%s3652_s30 + $0x2b0] sm:$0xff] %v347_v22  ;;  %v351_v24 = vld [vmem:[%s3647_s29 + $0x580] sm:$0xff]  ;;  %v353_v25 = vld [vmem:[%s3647_s29 + $0x588] sm:$0xff]  ;;  %350 = vst [vmem:[%s3652_s30 + $0x2b8] sm:$0xff] %v349_v23 }
  0x41   : > { %352 = vst [vmem:[%s3652_s30 + $0x2c0] sm:$0xff] %v351_v24  ;;  %354 = vst [vmem:[%s3652_s30 + $0x2c8] sm:$0xff] %v353_v25  ;;  %v355_v26 = vld [vmem:[%s3647_s29 + $0x5a0] sm:$0xff]  ;;  %v357_v27 = vld [vmem:[%s3647_s29 + $0x5a8] sm:$0xff] }
  0x42   : > { %v359_v28 = vld [vmem:[%s3647_s29 + $0x5c0] sm:$0xff]  ;;  %356 = vst [vmem:[%s3652_s30 + $0x2d0] sm:$0xff] %v355_v26  ;;  %358 = vst [vmem:[%s3652_s30 + $0x2d8] sm:$0xff] %v357_v27  ;;  %v361_v29 = vld [vmem:[%s3647_s29 + $0x5c8] sm:$0xff] }
  0x43   : > { %360 = vst [vmem:[%s3652_s30 + $0x2e0] sm:$0xff] %v359_v28  ;;  %v363_v30 = vld [vmem:[%s3647_s29 + $0x5e0] sm:$0xff]  ;;  %v365_v31 = vld [vmem:[%s3647_s29 + $0x5e8] sm:$0xff]  ;;  %362 = vst [vmem:[%s3652_s30 + $0x2e8] sm:$0xff] %v361_v29 }
  0x44   : > { %364 = vst [vmem:[%s3652_s30 + $0x2f0] sm:$0xff] %v363_v30  ;;  %366 = vst [vmem:[%s3652_s30 + $0x2f8] sm:$0xff] %v365_v31  ;;  %v367_v32 = vld [vmem:[%s3647_s29 + $0x600] sm:$0xff]  ;;  %v369_v33 = vld [vmem:[%s3647_s29 + $0x608] sm:$0xff] }
  0x45   : > { %v371_v34 = vld [vmem:[%s3647_s29 + $0x620] sm:$0xff]  ;;  %368 = vst [vmem:[%s3652_s30 + $0x300] sm:$0xff] %v367_v32  ;;  %370 = vst [vmem:[%s3652_s30 + $0x308] sm:$0xff] %v369_v33  ;;  %v373_v35 = vld [vmem:[%s3647_s29 + $0x628] sm:$0xff] }
  0x46   : > { %372 = vst [vmem:[%s3652_s30 + $0x310] sm:$0xff] %v371_v34  ;;  %v375_v36 = vld [vmem:[%s3647_s29 + $0x640] sm:$0xff]  ;;  %v377_v37 = vld [vmem:[%s3647_s29 + $0x648] sm:$0xff]  ;;  %374 = vst [vmem:[%s3652_s30 + $0x318] sm:$0xff] %v373_v35 }
  0x47   : > { %376 = vst [vmem:[%s3652_s30 + $0x320] sm:$0xff] %v375_v36  ;;  %378 = vst [vmem:[%s3652_s30 + $0x328] sm:$0xff] %v377_v37  ;;  %v379_v38 = vld [vmem:[%s3647_s29 + $0x660] sm:$0xff]  ;;  %v381_v39 = vld [vmem:[%s3647_s29 + $0x668] sm:$0xff] }
  0x48   : > { %v383_v40 = vld [vmem:[%s3647_s29 + $0x680] sm:$0xff]  ;;  %380 = vst [vmem:[%s3652_s30 + $0x330] sm:$0xff] %v379_v38  ;;  %382 = vst [vmem:[%s3652_s30 + $0x338] sm:$0xff] %v381_v39  ;;  %v385_v41 = vld [vmem:[%s3647_s29 + $0x688] sm:$0xff] }
  0x49   : > { %384 = vst [vmem:[%s3652_s30 + $0x340] sm:$0xff] %v383_v40  ;;  %v387_v42 = vld [vmem:[%s3647_s29 + $0x6a0] sm:$0xff]  ;;  %v389_v43 = vld [vmem:[%s3647_s29 + $0x6a8] sm:$0xff]  ;;  %386 = vst [vmem:[%s3652_s30 + $0x348] sm:$0xff] %v385_v41 }
  0x4a   : > { %388 = vst [vmem:[%s3652_s30 + $0x350] sm:$0xff] %v387_v42  ;;  %390 = vst [vmem:[%s3652_s30 + $0x358] sm:$0xff] %v389_v43  ;;  %v391_v44 = vld [vmem:[%s3647_s29 + $0x6c0] sm:$0xff]  ;;  %v393_v45 = vld [vmem:[%s3647_s29 + $0x6c8] sm:$0xff] }
  0x4b   : > { %v395_v46 = vld [vmem:[%s3647_s29 + $0x6e0] sm:$0xff]  ;;  %392 = vst [vmem:[%s3652_s30 + $0x360] sm:$0xff] %v391_v44  ;;  %394 = vst [vmem:[%s3652_s30 + $0x368] sm:$0xff] %v393_v45  ;;  %v397_v47 = vld [vmem:[%s3647_s29 + $0x6e8] sm:$0xff] }
  0x4c   : > { %396 = vst [vmem:[%s3652_s30 + $0x370] sm:$0xff] %v395_v46  ;;  %v399_v48 = vld [vmem:[%s3647_s29 + $0x700] sm:$0xff]  ;;  %v401_v49 = vld [vmem:[%s3647_s29 + $0x708] sm:$0xff]  ;;  %398 = vst [vmem:[%s3652_s30 + $0x378] sm:$0xff] %v397_v47 }
  0x4d   : > { %400 = vst [vmem:[%s3652_s30 + $0x380] sm:$0xff] %v399_v48  ;;  %402 = vst [vmem:[%s3652_s30 + $0x388] sm:$0xff] %v401_v49  ;;  %v403_v50 = vld [vmem:[%s3647_s29 + $0x720] sm:$0xff]  ;;  %v405_v51 = vld [vmem:[%s3647_s29 + $0x728] sm:$0xff] }
  0x4e   : > { %v407_v52 = vld [vmem:[%s3647_s29 + $0x740] sm:$0xff]  ;;  %404 = vst [vmem:[%s3652_s30 + $0x390] sm:$0xff] %v403_v50  ;;  %406 = vst [vmem:[%s3652_s30 + $0x398] sm:$0xff] %v405_v51  ;;  %v409_v53 = vld [vmem:[%s3647_s29 + $0x748] sm:$0xff] }
  0x4f   : > { %408 = vst [vmem:[%s3652_s30 + $0x3a0] sm:$0xff] %v407_v52  ;;  %v411_v54 = vld [vmem:[%s3647_s29 + $0x760] sm:$0xff]  ;;  %v413_v55 = vld [vmem:[%s3647_s29 + $0x768] sm:$0xff]  ;;  %410 = vst [vmem:[%s3652_s30 + $0x3a8] sm:$0xff] %v409_v53 }
  0x50   : > { %412 = vst [vmem:[%s3652_s30 + $0x3b0] sm:$0xff] %v411_v54  ;;  %414 = vst [vmem:[%s3652_s30 + $0x3b8] sm:$0xff] %v413_v55  ;;  %v415_v56 = vld [vmem:[%s3647_s29 + $0x780] sm:$0xff]  ;;  %v417_v57 = vld [vmem:[%s3647_s29 + $0x788] sm:$0xff] }
  0x51   : > { %v419_v58 = vld [vmem:[%s3647_s29 + $0x7a0] sm:$0xff]  ;;  %416 = vst [vmem:[%s3652_s30 + $0x3c0] sm:$0xff] %v415_v56  ;;  %418 = vst [vmem:[%s3652_s30 + $0x3c8] sm:$0xff] %v417_v57  ;;  %v421_v59 = vld [vmem:[%s3647_s29 + $0x7a8] sm:$0xff] }
  0x52   : > { %420 = vst [vmem:[%s3652_s30 + $0x3d0] sm:$0xff] %v419_v58  ;;  %v423_v60 = vld [vmem:[%s3647_s29 + $0x7c0] sm:$0xff]  ;;  %v425_v61 = vld [vmem:[%s3647_s29 + $0x7c8] sm:$0xff]  ;;  %422 = vst [vmem:[%s3652_s30 + $0x3d8] sm:$0xff] %v421_v59 }
  0x53   : > { %424 = vst [vmem:[%s3652_s30 + $0x3e0] sm:$0xff] %v423_v60  ;;  %426 = vst [vmem:[%s3652_s30 + $0x3e8] sm:$0xff] %v425_v61  ;;  %v427_v62 = vld [vmem:[%s3647_s29 + $0x7e0] sm:$0xff]  ;;  %v429_v63 = vld [vmem:[%s3647_s29 + $0x7e8] sm:$0xff] }
  0x54   : > { %v431_v0 = vld [vmem:[%s3647_s29 + $0x800] sm:$0xff]  ;;  %428 = vst [vmem:[%s3652_s30 + $0x3f0] sm:$0xff] %v427_v62  ;;  %430 = vst [vmem:[%s3652_s30 + $0x3f8] sm:$0xff] %v429_v63  ;;  %v433_v1 = vld [vmem:[%s3647_s29 + $0x808] sm:$0xff] }
  0x55   : > { %432 = vst [vmem:[%s3652_s30 + $0x400] sm:$0xff] %v431_v0  ;;  %v435_v2 = vld [vmem:[%s3647_s29 + $0x820] sm:$0xff]  ;;  %v437_v3 = vld [vmem:[%s3647_s29 + $0x828] sm:$0xff]  ;;  %434 = vst [vmem:[%s3652_s30 + $0x408] sm:$0xff] %v433_v1 }
  0x56   : > { %436 = vst [vmem:[%s3652_s30 + $0x410] sm:$0xff] %v435_v2  ;;  %438 = vst [vmem:[%s3652_s30 + $0x418] sm:$0xff] %v437_v3  ;;  %v439_v4 = vld [vmem:[%s3647_s29 + $0x840] sm:$0xff]  ;;  %v441_v5 = vld [vmem:[%s3647_s29 + $0x848] sm:$0xff] }
  0x57   : > { %v443_v6 = vld [vmem:[%s3647_s29 + $0x860] sm:$0xff]  ;;  %440 = vst [vmem:[%s3652_s30 + $0x420] sm:$0xff] %v439_v4  ;;  %442 = vst [vmem:[%s3652_s30 + $0x428] sm:$0xff] %v441_v5  ;;  %v445_v7 = vld [vmem:[%s3647_s29 + $0x868] sm:$0xff] }
  0x58   : > { %444 = vst [vmem:[%s3652_s30 + $0x430] sm:$0xff] %v443_v6  ;;  %v447_v8 = vld [vmem:[%s3647_s29 + $0x880] sm:$0xff]  ;;  %v449_v9 = vld [vmem:[%s3647_s29 + $0x888] sm:$0xff]  ;;  %446 = vst [vmem:[%s3652_s30 + $0x438] sm:$0xff] %v445_v7 }
  0x59   : > { %448 = vst [vmem:[%s3652_s30 + $0x440] sm:$0xff] %v447_v8  ;;  %450 = vst [vmem:[%s3652_s30 + $0x448] sm:$0xff] %v449_v9  ;;  %v451_v10 = vld [vmem:[%s3647_s29 + $0x8a0] sm:$0xff]  ;;  %v453_v11 = vld [vmem:[%s3647_s29 + $0x8a8] sm:$0xff] }
  0x5a   : > { %v455_v12 = vld [vmem:[%s3647_s29 + $0x8c0] sm:$0xff]  ;;  %452 = vst [vmem:[%s3652_s30 + $0x450] sm:$0xff] %v451_v10  ;;  %454 = vst [vmem:[%s3652_s30 + $0x458] sm:$0xff] %v453_v11  ;;  %v457_v13 = vld [vmem:[%s3647_s29 + $0x8c8] sm:$0xff] }
  0x5b   : > { %456 = vst [vmem:[%s3652_s30 + $0x460] sm:$0xff] %v455_v12  ;;  %v459_v14 = vld [vmem:[%s3647_s29 + $0x8e0] sm:$0xff]  ;;  %v461_v15 = vld [vmem:[%s3647_s29 + $0x8e8] sm:$0xff]  ;;  %458 = vst [vmem:[%s3652_s30 + $0x468] sm:$0xff] %v457_v13 }
  0x5c   : > { %460 = vst [vmem:[%s3652_s30 + $0x470] sm:$0xff] %v459_v14  ;;  %462 = vst [vmem:[%s3652_s30 + $0x478] sm:$0xff] %v461_v15  ;;  %v463_v16 = vld [vmem:[%s3647_s29 + $0x900] sm:$0xff]  ;;  %v465_v17 = vld [vmem:[%s3647_s29 + $0x908] sm:$0xff] }
  0x5d   : > { %v467_v18 = vld [vmem:[%s3647_s29 + $0x920] sm:$0xff]  ;;  %464 = vst [vmem:[%s3652_s30 + $0x480] sm:$0xff] %v463_v16  ;;  %466 = vst [vmem:[%s3652_s30 + $0x488] sm:$0xff] %v465_v17  ;;  %v469_v19 = vld [vmem:[%s3647_s29 + $0x928] sm:$0xff] }
  0x5e   : > { %468 = vst [vmem:[%s3652_s30 + $0x490] sm:$0xff] %v467_v18  ;;  %v471_v20 = vld [vmem:[%s3647_s29 + $0x940] sm:$0xff]  ;;  %v473_v21 = vld [vmem:[%s3647_s29 + $0x948] sm:$0xff]  ;;  %470 = vst [vmem:[%s3652_s30 + $0x498] sm:$0xff] %v469_v19 }
  0x5f   : > { %472 = vst [vmem:[%s3652_s30 + $0x4a0] sm:$0xff] %v471_v20  ;;  %474 = vst [vmem:[%s3652_s30 + $0x4a8] sm:$0xff] %v473_v21  ;;  %v475_v22 = vld [vmem:[%s3647_s29 + $0x960] sm:$0xff]  ;;  %v477_v23 = vld [vmem:[%s3647_s29 + $0x968] sm:$0xff] }
  0x60   : > { %v479_v24 = vld [vmem:[%s3647_s29 + $0x980] sm:$0xff]  ;;  %476 = vst [vmem:[%s3652_s30 + $0x4b0] sm:$0xff] %v475_v22  ;;  %478 = vst [vmem:[%s3652_s30 + $0x4b8] sm:$0xff] %v477_v23  ;;  %v481_v25 = vld [vmem:[%s3647_s29 + $0x988] sm:$0xff] }
  0x61   : > { %480 = vst [vmem:[%s3652_s30 + $0x4c0] sm:$0xff] %v479_v24  ;;  %v483_v26 = vld [vmem:[%s3647_s29 + $0x9a0] sm:$0xff]  ;;  %v485_v27 = vld [vmem:[%s3647_s29 + $0x9a8] sm:$0xff]  ;;  %482 = vst [vmem:[%s3652_s30 + $0x4c8] sm:$0xff] %v481_v25 }
  0x62   : > { %484 = vst [vmem:[%s3652_s30 + $0x4d0] sm:$0xff] %v483_v26  ;;  %486 = vst [vmem:[%s3652_s30 + $0x4d8] sm:$0xff] %v485_v27  ;;  %v487_v28 = vld [vmem:[%s3647_s29 + $0x9c0] sm:$0xff]  ;;  %v489_v29 = vld [vmem:[%s3647_s29 + $0x9c8] sm:$0xff] }
  0x63   : > { %v491_v30 = vld [vmem:[%s3647_s29 + $0x9e0] sm:$0xff]  ;;  %488 = vst [vmem:[%s3652_s30 + $0x4e0] sm:$0xff] %v487_v28  ;;  %490 = vst [vmem:[%s3652_s30 + $0x4e8] sm:$0xff] %v489_v29  ;;  %v493_v31 = vld [vmem:[%s3647_s29 + $0x9e8] sm:$0xff] }
  0x64   : > { %492 = vst [vmem:[%s3652_s30 + $0x4f0] sm:$0xff] %v491_v30  ;;  %v495_v32 = vld [vmem:[%s3647_s29 + $0xa00] sm:$0xff]  ;;  %v497_v33 = vld [vmem:[%s3647_s29 + $0xa08] sm:$0xff]  ;;  %494 = vst [vmem:[%s3652_s30 + $0x4f8] sm:$0xff] %v493_v31 }
  0x65   : > { %496 = vst [vmem:[%s3652_s30 + $0x500] sm:$0xff] %v495_v32  ;;  %498 = vst [vmem:[%s3652_s30 + $0x508] sm:$0xff] %v497_v33  ;;  %v499_v34 = vld [vmem:[%s3647_s29 + $0xa20] sm:$0xff]  ;;  %v501_v35 = vld [vmem:[%s3647_s29 + $0xa28] sm:$0xff] }
  0x66   : > { %v503_v36 = vld [vmem:[%s3647_s29 + $0xa40] sm:$0xff]  ;;  %500 = vst [vmem:[%s3652_s30 + $0x510] sm:$0xff] %v499_v34  ;;  %502 = vst [vmem:[%s3652_s30 + $0x518] sm:$0xff] %v501_v35  ;;  %v505_v37 = vld [vmem:[%s3647_s29 + $0xa48] sm:$0xff] }
  0x67   : > { %504 = vst [vmem:[%s3652_s30 + $0x520] sm:$0xff] %v503_v36  ;;  %v507_v38 = vld [vmem:[%s3647_s29 + $0xa60] sm:$0xff]  ;;  %v509_v39 = vld [vmem:[%s3647_s29 + $0xa68] sm:$0xff]  ;;  %506 = vst [vmem:[%s3652_s30 + $0x528] sm:$0xff] %v505_v37 }
  0x68   : > { %508 = vst [vmem:[%s3652_s30 + $0x530] sm:$0xff] %v507_v38  ;;  %510 = vst [vmem:[%s3652_s30 + $0x538] sm:$0xff] %v509_v39  ;;  %v511_v40 = vld [vmem:[%s3647_s29 + $0xa80] sm:$0xff]  ;;  %v513_v41 = vld [vmem:[%s3647_s29 + $0xa88] sm:$0xff] }
  0x69   : > { %v515_v42 = vld [vmem:[%s3647_s29 + $0xaa0] sm:$0xff]  ;;  %512 = vst [vmem:[%s3652_s30 + $0x540] sm:$0xff] %v511_v40  ;;  %514 = vst [vmem:[%s3652_s30 + $0x548] sm:$0xff] %v513_v41  ;;  %v517_v43 = vld [vmem:[%s3647_s29 + $0xaa8] sm:$0xff] }
  0x6a   : > { %516 = vst [vmem:[%s3652_s30 + $0x550] sm:$0xff] %v515_v42  ;;  %v519_v44 = vld [vmem:[%s3647_s29 + $0xac0] sm:$0xff]  ;;  %v521_v45 = vld [vmem:[%s3647_s29 + $0xac8] sm:$0xff]  ;;  %518 = vst [vmem:[%s3652_s30 + $0x558] sm:$0xff] %v517_v43 }
  0x6b   : > { %520 = vst [vmem:[%s3652_s30 + $0x560] sm:$0xff] %v519_v44  ;;  %522 = vst [vmem:[%s3652_s30 + $0x568] sm:$0xff] %v521_v45  ;;  %v523_v46 = vld [vmem:[%s3647_s29 + $0xae0] sm:$0xff]  ;;  %v525_v47 = vld [vmem:[%s3647_s29 + $0xae8] sm:$0xff] }
  0x6c   : > { %v527_v48 = vld [vmem:[%s3647_s29 + $0xb00] sm:$0xff]  ;;  %524 = vst [vmem:[%s3652_s30 + $0x570] sm:$0xff] %v523_v46  ;;  %526 = vst [vmem:[%s3652_s30 + $0x578] sm:$0xff] %v525_v47  ;;  %v529_v49 = vld [vmem:[%s3647_s29 + $0xb08] sm:$0xff] }
  0x6d   : > { %528 = vst [vmem:[%s3652_s30 + $0x580] sm:$0xff] %v527_v48  ;;  %v531_v50 = vld [vmem:[%s3647_s29 + $0xb20] sm:$0xff]  ;;  %v533_v51 = vld [vmem:[%s3647_s29 + $0xb28] sm:$0xff]  ;;  %530 = vst [vmem:[%s3652_s30 + $0x588] sm:$0xff] %v529_v49 }
  0x6e   : > { %532 = vst [vmem:[%s3652_s30 + $0x590] sm:$0xff] %v531_v50  ;;  %534 = vst [vmem:[%s3652_s30 + $0x598] sm:$0xff] %v533_v51  ;;  %v535_v52 = vld [vmem:[%s3647_s29 + $0xb40] sm:$0xff]  ;;  %v537_v53 = vld [vmem:[%s3647_s29 + $0xb48] sm:$0xff] }
  0x6f   : > { %v539_v54 = vld [vmem:[%s3647_s29 + $0xb60] sm:$0xff]  ;;  %536 = vst [vmem:[%s3652_s30 + $0x5a0] sm:$0xff] %v535_v52  ;;  %538 = vst [vmem:[%s3652_s30 + $0x5a8] sm:$0xff] %v537_v53  ;;  %v541_v55 = vld [vmem:[%s3647_s29 + $0xb68] sm:$0xff] }
  0x70   : > { %540 = vst [vmem:[%s3652_s30 + $0x5b0] sm:$0xff] %v539_v54  ;;  %v543_v56 = vld [vmem:[%s3647_s29 + $0xb80] sm:$0xff]  ;;  %v545_v57 = vld [vmem:[%s3647_s29 + $0xb88] sm:$0xff]  ;;  %542 = vst [vmem:[%s3652_s30 + $0x5b8] sm:$0xff] %v541_v55 }
  0x71   : > { %544 = vst [vmem:[%s3652_s30 + $0x5c0] sm:$0xff] %v543_v56  ;;  %546 = vst [vmem:[%s3652_s30 + $0x5c8] sm:$0xff] %v545_v57  ;;  %v547_v58 = vld [vmem:[%s3647_s29 + $0xba0] sm:$0xff]  ;;  %v549_v59 = vld [vmem:[%s3647_s29 + $0xba8] sm:$0xff] }
  0x72   : > { %v551_v60 = vld [vmem:[%s3647_s29 + $0xbc0] sm:$0xff]  ;;  %548 = vst [vmem:[%s3652_s30 + $0x5d0] sm:$0xff] %v547_v58  ;;  %550 = vst [vmem:[%s3652_s30 + $0x5d8] sm:$0xff] %v549_v59  ;;  %v553_v61 = vld [vmem:[%s3647_s29 + $0xbc8] sm:$0xff] }
  0x73   : > { %552 = vst [vmem:[%s3652_s30 + $0x5e0] sm:$0xff] %v551_v60  ;;  %v555_v62 = vld [vmem:[%s3647_s29 + $0xbe0] sm:$0xff]  ;;  %v557_v63 = vld [vmem:[%s3647_s29 + $0xbe8] sm:$0xff]  ;;  %554 = vst [vmem:[%s3652_s30 + $0x5e8] sm:$0xff] %v553_v61 }
  0x74   : > { %556 = vst [vmem:[%s3652_s30 + $0x5f0] sm:$0xff] %v555_v62  ;;  %558 = vst [vmem:[%s3652_s30 + $0x5f8] sm:$0xff] %v557_v63  ;;  %v559_v0 = vld [vmem:[%s3647_s29 + $0xc00] sm:$0xff]  ;;  %v561_v1 = vld [vmem:[%s3647_s29 + $0xc08] sm:$0xff] }
  0x75   : > { %v563_v2 = vld [vmem:[%s3647_s29 + $0xc20] sm:$0xff]  ;;  %560 = vst [vmem:[%s3652_s30 + $0x600] sm:$0xff] %v559_v0  ;;  %562 = vst [vmem:[%s3652_s30 + $0x608] sm:$0xff] %v561_v1  ;;  %v565_v3 = vld [vmem:[%s3647_s29 + $0xc28] sm:$0xff] }
  0x76   : > { %564 = vst [vmem:[%s3652_s30 + $0x610] sm:$0xff] %v563_v2  ;;  %v567_v4 = vld [vmem:[%s3647_s29 + $0xc40] sm:$0xff]  ;;  %v569_v5 = vld [vmem:[%s3647_s29 + $0xc48] sm:$0xff]  ;;  %566 = vst [vmem:[%s3652_s30 + $0x618] sm:$0xff] %v565_v3 }
  0x77   : > { %568 = vst [vmem:[%s3652_s30 + $0x620] sm:$0xff] %v567_v4  ;;  %570 = vst [vmem:[%s3652_s30 + $0x628] sm:$0xff] %v569_v5  ;;  %v571_v6 = vld [vmem:[%s3647_s29 + $0xc60] sm:$0xff]  ;;  %v573_v7 = vld [vmem:[%s3647_s29 + $0xc68] sm:$0xff] }
  0x78   : > { %v575_v8 = vld [vmem:[%s3647_s29 + $0xc80] sm:$0xff]  ;;  %572 = vst [vmem:[%s3652_s30 + $0x630] sm:$0xff] %v571_v6  ;;  %574 = vst [vmem:[%s3652_s30 + $0x638] sm:$0xff] %v573_v7  ;;  %v577_v9 = vld [vmem:[%s3647_s29 + $0xc88] sm:$0xff] }
  0x79   : > { %576 = vst [vmem:[%s3652_s30 + $0x640] sm:$0xff] %v575_v8  ;;  %v579_v10 = vld [vmem:[%s3647_s29 + $0xca0] sm:$0xff]  ;;  %v581_v11 = vld [vmem:[%s3647_s29 + $0xca8] sm:$0xff]  ;;  %578 = vst [vmem:[%s3652_s30 + $0x648] sm:$0xff] %v577_v9 }
  0x7a   : > { %580 = vst [vmem:[%s3652_s30 + $0x650] sm:$0xff] %v579_v10  ;;  %582 = vst [vmem:[%s3652_s30 + $0x658] sm:$0xff] %v581_v11  ;;  %v583_v12 = vld [vmem:[%s3647_s29 + $0xcc0] sm:$0xff]  ;;  %v585_v13 = vld [vmem:[%s3647_s29 + $0xcc8] sm:$0xff] }
  0x7b   : > { %v587_v14 = vld [vmem:[%s3647_s29 + $0xce0] sm:$0xff]  ;;  %584 = vst [vmem:[%s3652_s30 + $0x660] sm:$0xff] %v583_v12  ;;  %586 = vst [vmem:[%s3652_s30 + $0x668] sm:$0xff] %v585_v13  ;;  %v589_v15 = vld [vmem:[%s3647_s29 + $0xce8] sm:$0xff] }
  0x7c   : > { %588 = vst [vmem:[%s3652_s30 + $0x670] sm:$0xff] %v587_v14  ;;  %v591_v16 = vld [vmem:[%s3647_s29 + $0xd00] sm:$0xff]  ;;  %v593_v17 = vld [vmem:[%s3647_s29 + $0xd08] sm:$0xff]  ;;  %590 = vst [vmem:[%s3652_s30 + $0x678] sm:$0xff] %v589_v15 }
  0x7d   : > { %592 = vst [vmem:[%s3652_s30 + $0x680] sm:$0xff] %v591_v16  ;;  %594 = vst [vmem:[%s3652_s30 + $0x688] sm:$0xff] %v593_v17  ;;  %v595_v18 = vld [vmem:[%s3647_s29 + $0xd20] sm:$0xff]  ;;  %v597_v19 = vld [vmem:[%s3647_s29 + $0xd28] sm:$0xff] }
  0x7e   : > { %v599_v20 = vld [vmem:[%s3647_s29 + $0xd40] sm:$0xff]  ;;  %596 = vst [vmem:[%s3652_s30 + $0x690] sm:$0xff] %v595_v18  ;;  %598 = vst [vmem:[%s3652_s30 + $0x698] sm:$0xff] %v597_v19  ;;  %v601_v21 = vld [vmem:[%s3647_s29 + $0xd48] sm:$0xff] }
  0x7f   : > { %600 = vst [vmem:[%s3652_s30 + $0x6a0] sm:$0xff] %v599_v20  ;;  %v603_v22 = vld [vmem:[%s3647_s29 + $0xd60] sm:$0xff]  ;;  %v605_v23 = vld [vmem:[%s3647_s29 + $0xd68] sm:$0xff]  ;;  %602 = vst [vmem:[%s3652_s30 + $0x6a8] sm:$0xff] %v601_v21 }
  0x80   : > { %604 = vst [vmem:[%s3652_s30 + $0x6b0] sm:$0xff] %v603_v22  ;;  %606 = vst [vmem:[%s3652_s30 + $0x6b8] sm:$0xff] %v605_v23  ;;  %v607_v24 = vld [vmem:[%s3647_s29 + $0xd80] sm:$0xff]  ;;  %v609_v25 = vld [vmem:[%s3647_s29 + $0xd88] sm:$0xff] }
  0x81   : > { %v611_v26 = vld [vmem:[%s3647_s29 + $0xda0] sm:$0xff]  ;;  %608 = vst [vmem:[%s3652_s30 + $0x6c0] sm:$0xff] %v607_v24  ;;  %610 = vst [vmem:[%s3652_s30 + $0x6c8] sm:$0xff] %v609_v25  ;;  %v613_v27 = vld [vmem:[%s3647_s29 + $0xda8] sm:$0xff] }
  0x82   : > { %612 = vst [vmem:[%s3652_s30 + $0x6d0] sm:$0xff] %v611_v26  ;;  %v615_v28 = vld [vmem:[%s3647_s29 + $0xdc0] sm:$0xff]  ;;  %v617_v29 = vld [vmem:[%s3647_s29 + $0xdc8] sm:$0xff]  ;;  %614 = vst [vmem:[%s3652_s30 + $0x6d8] sm:$0xff] %v613_v27 }
  0x83   : > { %616 = vst [vmem:[%s3652_s30 + $0x6e0] sm:$0xff] %v615_v28  ;;  %618 = vst [vmem:[%s3652_s30 + $0x6e8] sm:$0xff] %v617_v29  ;;  %v619_v30 = vld [vmem:[%s3647_s29 + $0xde0] sm:$0xff]  ;;  %v621_v31 = vld [vmem:[%s3647_s29 + $0xde8] sm:$0xff] }
  0x84   : > { %v623_v32 = vld [vmem:[%s3647_s29 + $0xe00] sm:$0xff]  ;;  %620 = vst [vmem:[%s3652_s30 + $0x6f0] sm:$0xff] %v619_v30  ;;  %622 = vst [vmem:[%s3652_s30 + $0x6f8] sm:$0xff] %v621_v31  ;;  %v625_v33 = vld [vmem:[%s3647_s29 + $0xe08] sm:$0xff] }
  0x85   : > { %624 = vst [vmem:[%s3652_s30 + $0x700] sm:$0xff] %v623_v32  ;;  %v627_v34 = vld [vmem:[%s3647_s29 + $0xe20] sm:$0xff]  ;;  %v629_v35 = vld [vmem:[%s3647_s29 + $0xe28] sm:$0xff]  ;;  %626 = vst [vmem:[%s3652_s30 + $0x708] sm:$0xff] %v625_v33 }
  0x86   : > { %628 = vst [vmem:[%s3652_s30 + $0x710] sm:$0xff] %v627_v34  ;;  %630 = vst [vmem:[%s3652_s30 + $0x718] sm:$0xff] %v629_v35  ;;  %v631_v36 = vld [vmem:[%s3647_s29 + $0xe40] sm:$0xff]  ;;  %v633_v37 = vld [vmem:[%s3647_s29 + $0xe48] sm:$0xff] }
  0x87   : > { %v635_v38 = vld [vmem:[%s3647_s29 + $0xe60] sm:$0xff]  ;;  %632 = vst [vmem:[%s3652_s30 + $0x720] sm:$0xff] %v631_v36  ;;  %634 = vst [vmem:[%s3652_s30 + $0x728] sm:$0xff] %v633_v37  ;;  %v637_v39 = vld [vmem:[%s3647_s29 + $0xe68] sm:$0xff] }
  0x88   : > { %636 = vst [vmem:[%s3652_s30 + $0x730] sm:$0xff] %v635_v38  ;;  %v639_v40 = vld [vmem:[%s3647_s29 + $0xe80] sm:$0xff]  ;;  %v641_v41 = vld [vmem:[%s3647_s29 + $0xe88] sm:$0xff]  ;;  %638 = vst [vmem:[%s3652_s30 + $0x738] sm:$0xff] %v637_v39 }
  0x89   : > { %640 = vst [vmem:[%s3652_s30 + $0x740] sm:$0xff] %v639_v40  ;;  %642 = vst [vmem:[%s3652_s30 + $0x748] sm:$0xff] %v641_v41  ;;  %v643_v42 = vld [vmem:[%s3647_s29 + $0xea0] sm:$0xff]  ;;  %v645_v43 = vld [vmem:[%s3647_s29 + $0xea8] sm:$0xff] }
  0x8a   : > { %v647_v44 = vld [vmem:[%s3647_s29 + $0xec0] sm:$0xff]  ;;  %644 = vst [vmem:[%s3652_s30 + $0x750] sm:$0xff] %v643_v42  ;;  %646 = vst [vmem:[%s3652_s30 + $0x758] sm:$0xff] %v645_v43  ;;  %v649_v45 = vld [vmem:[%s3647_s29 + $0xec8] sm:$0xff] }
  0x8b   : > { %648 = vst [vmem:[%s3652_s30 + $0x760] sm:$0xff] %v647_v44  ;;  %v651_v46 = vld [vmem:[%s3647_s29 + $0xee0] sm:$0xff]  ;;  %v653_v47 = vld [vmem:[%s3647_s29 + $0xee8] sm:$0xff]  ;;  %650 = vst [vmem:[%s3652_s30 + $0x768] sm:$0xff] %v649_v45 }
  0x8c   : > { %652 = vst [vmem:[%s3652_s30 + $0x770] sm:$0xff] %v651_v46  ;;  %654 = vst [vmem:[%s3652_s30 + $0x778] sm:$0xff] %v653_v47  ;;  %v655_v48 = vld [vmem:[%s3647_s29 + $0xf00] sm:$0xff]  ;;  %v657_v49 = vld [vmem:[%s3647_s29 + $0xf08] sm:$0xff] }
  0x8d   : > { %v659_v50 = vld [vmem:[%s3647_s29 + $0xf20] sm:$0xff]  ;;  %656 = vst [vmem:[%s3652_s30 + $0x780] sm:$0xff] %v655_v48  ;;  %658 = vst [vmem:[%s3652_s30 + $0x788] sm:$0xff] %v657_v49  ;;  %v661_v51 = vld [vmem:[%s3647_s29 + $0xf28] sm:$0xff] }
  0x8e   : > { %660 = vst [vmem:[%s3652_s30 + $0x790] sm:$0xff] %v659_v50  ;;  %v663_v52 = vld [vmem:[%s3647_s29 + $0xf40] sm:$0xff]  ;;  %v665_v53 = vld [vmem:[%s3647_s29 + $0xf48] sm:$0xff]  ;;  %662 = vst [vmem:[%s3652_s30 + $0x798] sm:$0xff] %v661_v51 }
  0x8f   : > { %664 = vst [vmem:[%s3652_s30 + $0x7a0] sm:$0xff] %v663_v52  ;;  %666 = vst [vmem:[%s3652_s30 + $0x7a8] sm:$0xff] %v665_v53  ;;  %v667_v54 = vld [vmem:[%s3647_s29 + $0xf60] sm:$0xff]  ;;  %v669_v55 = vld [vmem:[%s3647_s29 + $0xf68] sm:$0xff] }
  0x90   : > { %v671_v56 = vld [vmem:[%s3647_s29 + $0xf80] sm:$0xff]  ;;  %668 = vst [vmem:[%s3652_s30 + $0x7b0] sm:$0xff] %v667_v54  ;;  %670 = vst [vmem:[%s3652_s30 + $0x7b8] sm:$0xff] %v669_v55  ;;  %v673_v57 = vld [vmem:[%s3647_s29 + $0xf88] sm:$0xff] }
  0x91   : > { %672 = vst [vmem:[%s3652_s30 + $0x7c0] sm:$0xff] %v671_v56  ;;  %v675_v58 = vld [vmem:[%s3647_s29 + $0xfa0] sm:$0xff]  ;;  %v677_v59 = vld [vmem:[%s3647_s29 + $0xfa8] sm:$0xff]  ;;  %674 = vst [vmem:[%s3652_s30 + $0x7c8] sm:$0xff] %v673_v57 }
  0x92   : > { %676 = vst [vmem:[%s3652_s30 + $0x7d0] sm:$0xff] %v675_v58  ;;  %678 = vst [vmem:[%s3652_s30 + $0x7d8] sm:$0xff] %v677_v59  ;;  %v679_v60 = vld [vmem:[%s3647_s29 + $0xfc0] sm:$0xff]  ;;  %v681_v61 = vld [vmem:[%s3647_s29 + $0xfc8] sm:$0xff] }
  0x93   : > { %v683_v62 = vld [vmem:[%s3647_s29 + $0xfe0] sm:$0xff]  ;;  %680 = vst [vmem:[%s3652_s30 + $0x7e0] sm:$0xff] %v679_v60  ;;  %682 = vst [vmem:[%s3652_s30 + $0x7e8] sm:$0xff] %v681_v61  ;;  %v685_v63 = vld [vmem:[%s3647_s29 + $0xfe8] sm:$0xff] }
  0x94   : > { %684 = vst [vmem:[%s3652_s30 + $0x7f0] sm:$0xff] %v683_v62  ;;  %686 = vst [vmem:[%s3652_s30 + $0x7f8] sm:$0xff] %v685_v63 }
  0x95 PF: > { %p2840_p7 = scmp.ge.s32.totalorder %s3579_s17, 1  ;;  %p691_p8 = scmp.lt.s32.totalorder %s3579_s17, 3 }
  0x97   : > { %p692_p9 = pnand %p2840_p7, %p691_p8 }
  0x98   : > { %s698_s5 = sand.u32 (!%p692_p9), 1, %s3571_s15   ;;  %v724_v0 = vld [vmem:[%s4510_s0] sm:$0xff] (!%p692_p9) }
  0x99   : > { %695 = sbr.rel (%p692_p9) target bundleno = 651 (0x28b), region = 55  ;;  %v728_v1 = vld [vmem:[%s4510_s0 + $0x20] sm:$0xff] (!%p692_p9)  ;;  %s2841_s10 = sshll.u32 (!%p692_p9), %s698_s5, 11 }
  0x9a   : > { %v4174_v2 = vcombine.low (!%p692_p9), %v724_v0, %v728_v1  ;;  %v2844_v3 = vcombine.high (!%p692_p9), %v724_v0, %v728_v1  ;;  %s4176_s11 = scalar_lea.vmem (!%p692_p9), [#allocation2], %s2841_s10 }
  0x9b   : > { %v3173_v4 = vld [vmem:[%s4176_s11 + $0x4] ss:$16 sps:$4 sm:$0xff] (!%p692_p9)   ;;  %v3175_v5 = vld [vmem:[%s4176_s11 + $0xc] ss:$16 sps:$4 sm:$0xff] (!%p692_p9)   ;;  %v3177_v6 = vld [vmem:[%s4176_s11] ss:$16 sps:$4 sm:$0xff] (!%p692_p9)  }
  0x9c   : > { %2340 = vmatprep.mubr.bf16.mxu0 (!%p692_p9), %v2844_v3  ;;  %2512 = vmatprep.mubr.bf16.mxu1 (!%p692_p9), %v2844_v3  ;;  %v3178_v7 = vld [vmem:[%s4176_s11 + $0x8] ss:$16 sps:$4 sm:$0xff] (!%p692_p9)   ;;  %v3179_v8 = vld [vmem:[%s4176_s11 + $0x24] ss:$16 sps:$4 sm:$0xff] (!%p692_p9)   ;;  %v3181_v9 = vld [vmem:[%s4176_s11 + $0x2c] ss:$16 sps:$4 sm:$0xff] (!%p692_p9)  }
  0x9d   : > { %2308 = vmatprep.subr.bf16.mxu0 (!%p692_p9), %v3173_v4  ;;  %2480 = vmatprep.subr.bf16.mxu1 (!%p692_p9), %v3175_v5  ;;  %v3183_v10 = vld [vmem:[%s4176_s11 + $0x20] ss:$16 sps:$4 sm:$0xff] (!%p692_p9)   ;;  %v3184_v11 = vld [vmem:[%s4176_s11 + $0x28] ss:$16 sps:$4 sm:$0xff] (!%p692_p9)   ;;  %v3185_v12 = vld [vmem:[%s4176_s11 + $0x44] ss:$16 sps:$4 sm:$0xff] (!%p692_p9)  }
  0x9e   : > { %2309 = vmatpush1.bf16.msra.mxu0 (!%p692_p9), %v3177_v6  ;;  %2481 = vmatpush1.bf16.msra.mxu1 (!%p692_p9), %v3178_v7  ;;  %v3187_v13 = vld [vmem:[%s4176_s11 + $0x4c] ss:$16 sps:$4 sm:$0xff] (!%p692_p9)   ;;  %v3189_v14 = vld [vmem:[%s4176_s11 + $0x40] ss:$16 sps:$4 sm:$0xff] (!%p692_p9)   ;;  %v3190_v15 = vld [vmem:[%s4176_s11 + $0x48] ss:$16 sps:$4 sm:$0xff] (!%p692_p9)  }
  0x9f   : > { %2310 = vmatprep.subr.bf16.mxu0 (!%p692_p9), %v3179_v8  ;;  %2482 = vmatprep.subr.bf16.mxu1 (!%p692_p9), %v3181_v9  ;;  %v3191_v16 = vld [vmem:[%s4176_s11 + $0x64] ss:$16 sps:$4 sm:$0xff] (!%p692_p9)   ;;  %v3193_v17 = vld [vmem:[%s4176_s11 + $0x6c] ss:$16 sps:$4 sm:$0xff] (!%p692_p9)   ;;  %v3195_v18 = vld [vmem:[%s4176_s11 + $0x60] ss:$16 sps:$4 sm:$0xff] (!%p692_p9)  }
  0xa0   : > { %v3196_v19 = vld [vmem:[%s4176_s11 + $0x68] ss:$16 sps:$4 sm:$0xff]   ;;  %v3197_v20 = vld [vmem:[%s4176_s11 + $0x84] ss:$16 sps:$4 sm:$0xff]   ;;  %v3199_v21 = vld [vmem:[%s4176_s11 + $0x8c] ss:$16 sps:$4 sm:$0xff]  }
  0xa1   : > { %v3201_v22 = vld [vmem:[%s4176_s11 + $0x80] ss:$16 sps:$4 sm:$0xff]   ;;  %v3202_v23 = vld [vmem:[%s4176_s11 + $0x88] ss:$16 sps:$4 sm:$0xff]   ;;  %v3203_v24 = vld [vmem:[%s4176_s11 + $0xa4] ss:$16 sps:$4 sm:$0xff]  }
  0xa2   : > { %2311 = vmatpush1.bf16.msra.mxu0 %v3183_v10  ;;  %2483 = vmatpush1.bf16.msra.mxu1 %v3184_v11  ;;  %v3205_v25 = vld [vmem:[%s4176_s11 + $0xac] ss:$16 sps:$4 sm:$0xff]   ;;  %v3207_v26 = vld [vmem:[%s4176_s11 + $0xa0] ss:$16 sps:$4 sm:$0xff]   ;;  %v3208_v27 = vld [vmem:[%s4176_s11 + $0xa8] ss:$16 sps:$4 sm:$0xff]  }
  0xa3   : > { %2312 = vmatprep.subr.bf16.mxu0 %v3185_v12  ;;  %2484 = vmatprep.subr.bf16.mxu1 %v3187_v13  ;;  %v3209_v28 = vld [vmem:[%s4176_s11 + $0xc4] ss:$16 sps:$4 sm:$0xff]   ;;  %v3211_v29 = vld [vmem:[%s4176_s11 + $0xcc] ss:$16 sps:$4 sm:$0xff]   ;;  %v3213_v30 = vld [vmem:[%s4176_s11 + $0xc0] ss:$16 sps:$4 sm:$0xff]  }
  0xa4   : > { %v3214_v31 = vld [vmem:[%s4176_s11 + $0xc8] ss:$16 sps:$4 sm:$0xff]   ;;  %v3215_v32 = vld [vmem:[%s4176_s11 + $0xe4] ss:$16 sps:$4 sm:$0xff]   ;;  %v3217_v33 = vld [vmem:[%s4176_s11 + $0xec] ss:$16 sps:$4 sm:$0xff]  }
  0xa5   : > { %v3219_v34 = vld [vmem:[%s4176_s11 + $0xe0] ss:$16 sps:$4 sm:$0xff]   ;;  %v3220_v35 = vld [vmem:[%s4176_s11 + $0xe8] ss:$16 sps:$4 sm:$0xff]   ;;  %v3221_v36 = vld [vmem:[%s4176_s11 + $0x104] ss:$16 sps:$4 sm:$0xff]  }
  0xa6   : > { %2313 = vmatpush1.bf16.msra.mxu0 %v3189_v14  ;;  %2485 = vmatpush1.bf16.msra.mxu1 %v3190_v15  ;;  %v3223_v37 = vld [vmem:[%s4176_s11 + $0x10c] ss:$16 sps:$4 sm:$0xff]   ;;  %v3225_v38 = vld [vmem:[%s4176_s11 + $0x100] ss:$16 sps:$4 sm:$0xff]   ;;  %v3226_v39 = vld [vmem:[%s4176_s11 + $0x108] ss:$16 sps:$4 sm:$0xff]  }
  0xa7   : > { %2314 = vmatprep.subr.bf16.mxu0 %v3191_v16  ;;  %2486 = vmatprep.subr.bf16.mxu1 %v3193_v17  ;;  %v3227_v40 = vld [vmem:[%s4176_s11 + $0x124] ss:$16 sps:$4 sm:$0xff]   ;;  %v3229_v41 = vld [vmem:[%s4176_s11 + $0x12c] ss:$16 sps:$4 sm:$0xff]   ;;  %v3231_v42 = vld [vmem:[%s4176_s11 + $0x120] ss:$16 sps:$4 sm:$0xff]  }
  0xa8   : > { %v3232_v43 = vld [vmem:[%s4176_s11 + $0x128] ss:$16 sps:$4 sm:$0xff]   ;;  %v3233_v44 = vld [vmem:[%s4176_s11 + $0x144] ss:$16 sps:$4 sm:$0xff]   ;;  %v3235_v45 = vld [vmem:[%s4176_s11 + $0x14c] ss:$16 sps:$4 sm:$0xff]  }
  0xa9   : > { %v3237_v46 = vld [vmem:[%s4176_s11 + $0x140] ss:$16 sps:$4 sm:$0xff]   ;;  %v3238_v47 = vld [vmem:[%s4176_s11 + $0x148] ss:$16 sps:$4 sm:$0xff]   ;;  %v3239_v48 = vld [vmem:[%s4176_s11 + $0x164] ss:$16 sps:$4 sm:$0xff]  }
  0xaa   : > { %2315 = vmatpush1.bf16.msra.mxu0 %v3195_v18  ;;  %2487 = vmatpush1.bf16.msra.mxu1 %v3196_v19  ;;  %v3241_v49 = vld [vmem:[%s4176_s11 + $0x16c] ss:$16 sps:$4 sm:$0xff]   ;;  %v3243_v50 = vld [vmem:[%s4176_s11 + $0x160] ss:$16 sps:$4 sm:$0xff]   ;;  %v3244_v51 = vld [vmem:[%s4176_s11 + $0x168] ss:$16 sps:$4 sm:$0xff]  }
  0xab   : > { %2316 = vmatprep.subr.bf16.mxu0 %v3197_v20  ;;  %2488 = vmatprep.subr.bf16.mxu1 %v3199_v21  ;;  %v3245_v52 = vld [vmem:[%s4176_s11 + $0x184] ss:$16 sps:$4 sm:$0xff]   ;;  %v3247_v53 = vld [vmem:[%s4176_s11 + $0x18c] ss:$16 sps:$4 sm:$0xff]   ;;  %v3249_v54 = vld [vmem:[%s4176_s11 + $0x180] ss:$16 sps:$4 sm:$0xff]  }
  0xac   : > { %v3250_v55 = vld [vmem:[%s4176_s11 + $0x188] ss:$16 sps:$4 sm:$0xff]   ;;  %v3251_v56 = vld [vmem:[%s4176_s11 + $0x1a4] ss:$16 sps:$4 sm:$0xff]   ;;  %v3253_v57 = vld [vmem:[%s4176_s11 + $0x1ac] ss:$16 sps:$4 sm:$0xff]  }
  0xad   : > { %v3255_v58 = vld [vmem:[%s4176_s11 + $0x1a0] ss:$16 sps:$4 sm:$0xff]   ;;  %v3256_v59 = vld [vmem:[%s4176_s11 + $0x1a8] ss:$16 sps:$4 sm:$0xff]   ;;  %v3257_v60 = vld [vmem:[%s4176_s11 + $0x1c4] ss:$16 sps:$4 sm:$0xff]  }
  0xae   : > { %2317 = vmatpush1.bf16.msra.mxu0 %v3201_v22  ;;  %2489 = vmatpush1.bf16.msra.mxu1 %v3202_v23  ;;  %v3259_v61 = vld [vmem:[%s4176_s11 + $0x1cc] ss:$16 sps:$4 sm:$0xff]   ;;  %v3261_v62 = vld [vmem:[%s4176_s11 + $0x1c0] ss:$16 sps:$4 sm:$0xff]   ;;  %v3262_v63 = vld [vmem:[%s4176_s11 + $0x1c8] ss:$16 sps:$4 sm:$0xff]  }
  0xaf   : > { %2318 = vmatprep.subr.bf16.mxu0 %v3203_v24  ;;  %2490 = vmatprep.subr.bf16.mxu1 %v3205_v25  ;;  %v3263_v0 = vld [vmem:[%s4176_s11 + $0x1e4] ss:$16 sps:$4 sm:$0xff]   ;;  %v3265_v1 = vld [vmem:[%s4176_s11 + $0x1ec] ss:$16 sps:$4 sm:$0xff]   ;;  %v3267_v3 = vld [vmem:[%s4176_s11 + $0x1e0] ss:$16 sps:$4 sm:$0xff]  }
  0xb0   : > { %v3268_v4 = vld [vmem:[%s4176_s11 + $0x1e8] ss:$16 sps:$4 sm:$0xff]   ;;  %v3271_v5 = vld [vmem:[%s4176_s11 + $0x204] ss:$16 sps:$4 sm:$0xff]   ;;  %v3274_v6 = vld [vmem:[%s4176_s11 + $0x20c] ss:$16 sps:$4 sm:$0xff]  }
  0xb1   : > { %v3269_v7 = vld [vmem:[%s4176_s11 + $0x200] ss:$16 sps:$4 sm:$0xff]   ;;  %v3272_v8 = vld [vmem:[%s4176_s11 + $0x208] ss:$16 sps:$4 sm:$0xff]   ;;  %v3277_v9 = vld [vmem:[%s4176_s11 + $0x224] ss:$16 sps:$4 sm:$0xff]  }
  0xb2   : > { %2319 = vmatpush1.bf16.msra.mxu0 %v3207_v26  ;;  %2491 = vmatpush1.bf16.msra.mxu1 %v3208_v27  ;;  %v3280_v10 = vld [vmem:[%s4176_s11 + $0x22c] ss:$16 sps:$4 sm:$0xff]   ;;  %v3275_v11 = vld [vmem:[%s4176_s11 + $0x220] ss:$16 sps:$4 sm:$0xff]   ;;  %v3278_v12 = vld [vmem:[%s4176_s11 + $0x228] ss:$16 sps:$4 sm:$0xff]  }
  0xb3   : > { %2320 = vmatprep.subr.bf16.mxu0 %v3209_v28  ;;  %2492 = vmatprep.subr.bf16.mxu1 %v3211_v29  ;;  %v3283_v13 = vld [vmem:[%s4176_s11 + $0x244] ss:$16 sps:$4 sm:$0xff]   ;;  %v3286_v14 = vld [vmem:[%s4176_s11 + $0x24c] ss:$16 sps:$4 sm:$0xff]   ;;  %v3281_v15 = vld [vmem:[%s4176_s11 + $0x240] ss:$16 sps:$4 sm:$0xff]  }
  0xb4   : > { %v3284_v16 = vld [vmem:[%s4176_s11 + $0x248] ss:$16 sps:$4 sm:$0xff]   ;;  %v3292_v17 = vld [vmem:[%s4176_s11 + $0x26c] ss:$16 sps:$4 sm:$0xff]   ;;  %v3287_v18 = vld [vmem:[%s4176_s11 + $0x260] ss:$16 sps:$4 sm:$0xff]  }
  0xb5   : > { %v3290_v19 = vld [vmem:[%s4176_s11 + $0x268] ss:$16 sps:$4 sm:$0xff]   ;;  %v3295_v20 = vld [vmem:[%s4176_s11 + $0x284] ss:$16 sps:$4 sm:$0xff]   ;;  %v3298_v21 = vld [vmem:[%s4176_s11 + $0x28c] ss:$16 sps:$4 sm:$0xff]  }
  0xb6   : > { %2321 = vmatpush1.bf16.msra.mxu0 %v3213_v30  ;;  %2493 = vmatpush1.bf16.msra.mxu1 %v3214_v31  ;;  %v3293_v22 = vld [vmem:[%s4176_s11 + $0x280] ss:$16 sps:$4 sm:$0xff]   ;;  %v3296_v23 = vld [vmem:[%s4176_s11 + $0x288] ss:$16 sps:$4 sm:$0xff]   ;;  %v3301_v24 = vld [vmem:[%s4176_s11 + $0x2a4] ss:$16 sps:$4 sm:$0xff]  }
  0xb7   : > { %2322 = vmatprep.subr.bf16.mxu0 %v3215_v32  ;;  %2494 = vmatprep.subr.bf16.mxu1 %v3217_v33  ;;  %v3304_v25 = vld [vmem:[%s4176_s11 + $0x2ac] ss:$16 sps:$4 sm:$0xff]   ;;  %v3299_v26 = vld [vmem:[%s4176_s11 + $0x2a0] ss:$16 sps:$4 sm:$0xff]   ;;  %v3302_v27 = vld [vmem:[%s4176_s11 + $0x2a8] ss:$16 sps:$4 sm:$0xff]  }
  0xb8   : > { %v3307_v28 = vld [vmem:[%s4176_s11 + $0x2c4] ss:$16 sps:$4 sm:$0xff]   ;;  %v3310_v29 = vld [vmem:[%s4176_s11 + $0x2cc] ss:$16 sps:$4 sm:$0xff]   ;;  %v3305_v33 = vld [vmem:[%s4176_s11 + $0x2c0] ss:$16 sps:$4 sm:$0xff]  }
  0xb9   : > { %v4273_v30 = vld [vmem:[%s4510_s0 + $0x8] sm:$0xff] }
  0xba   : > { %2323 = vmatpush1.bf16.msra.mxu0 %v3219_v34  ;;  %2495 = vmatpush1.bf16.msra.mxu1 %v3220_v35  ;;  %v4278_v31 = vld [vmem:[%s4510_s0 + $0x28] sm:$0xff]  ;;  %v3313_v35 = vld [vmem:[%s4176_s11 + $0x2e4] ss:$16 sps:$4 sm:$0xff]  }
  0xbb   : > { %2324 = vmatprep.subr.bf16.mxu0 %v3221_v36  ;;  %2496 = vmatprep.subr.bf16.mxu1 %v3223_v37  ;;  %v2846_v32 = vcombine.high %v4273_v30, %v4278_v31  ;;  %v3308_v34 = vld [vmem:[%s4176_s11 + $0x2c8] ss:$16 sps:$4 sm:$0xff]   ;;  %v3316_v36 = vld [vmem:[%s4176_s11 + $0x2ec] ss:$16 sps:$4 sm:$0xff]   ;;  %v3311_v37 = vld [vmem:[%s4176_s11 + $0x2e0] ss:$16 sps:$4 sm:$0xff]  }
  0xbe   : > { %2325 = vmatpush1.bf16.msra.mxu0 %v3225_v38  ;;  %2497 = vmatpush1.bf16.msra.mxu1 %v3226_v39  ;;  %v3314_v38 = vld [vmem:[%s4176_s11 + $0x2e8] ss:$16 sps:$4 sm:$0xff]   ;;  %v3319_v39 = vld [vmem:[%s4176_s11 + $0x304] ss:$16 sps:$4 sm:$0xff]  }
  0xbf   : > { %2326 = vmatprep.subr.bf16.mxu0 %v3227_v40  ;;  %2498 = vmatprep.subr.bf16.mxu1 %v3229_v41  ;;  %v3322_v40 = vld [vmem:[%s4176_s11 + $0x30c] ss:$16 sps:$4 sm:$0xff]   ;;  %v3317_v41 = vld [vmem:[%s4176_s11 + $0x300] ss:$16 sps:$4 sm:$0xff]  }
  0xc2   : > { %2327 = vmatpush1.bf16.msra.mxu0 %v3231_v42  ;;  %2499 = vmatpush1.bf16.msra.mxu1 %v3232_v43  ;;  %v3320_v42 = vld [vmem:[%s4176_s11 + $0x308] ss:$16 sps:$4 sm:$0xff]   ;;  %v3325_v43 = vld [vmem:[%s4176_s11 + $0x324] ss:$16 sps:$4 sm:$0xff]  }
  0xc3   : > { %2328 = vmatprep.subr.bf16.mxu0 %v3233_v44  ;;  %2500 = vmatprep.subr.bf16.mxu1 %v3235_v45  ;;  %v3328_v44 = vld [vmem:[%s4176_s11 + $0x32c] ss:$16 sps:$4 sm:$0xff]   ;;  %v3323_v45 = vld [vmem:[%s4176_s11 + $0x320] ss:$16 sps:$4 sm:$0xff]  }
  0xc6   : > { %2329 = vmatpush1.bf16.msra.mxu0 %v3237_v46  ;;  %2501 = vmatpush1.bf16.msra.mxu1 %v3238_v47  ;;  %v3326_v46 = vld [vmem:[%s4176_s11 + $0x328] ss:$16 sps:$4 sm:$0xff]   ;;  %v3331_v47 = vld [vmem:[%s4176_s11 + $0x344] ss:$16 sps:$4 sm:$0xff]  }
  0xc7   : > { %2330 = vmatprep.subr.bf16.mxu0 %v3239_v48  ;;  %2502 = vmatprep.subr.bf16.mxu1 %v3241_v49  ;;  %v3334_v48 = vld [vmem:[%s4176_s11 + $0x34c] ss:$16 sps:$4 sm:$0xff]   ;;  %v3329_v49 = vld [vmem:[%s4176_s11 + $0x340] ss:$16 sps:$4 sm:$0xff]  }
  0xca   : > { %2331 = vmatpush1.bf16.msra.mxu0 %v3243_v50  ;;  %2503 = vmatpush1.bf16.msra.mxu1 %v3244_v51  ;;  %v3332_v50 = vld [vmem:[%s4176_s11 + $0x348] ss:$16 sps:$4 sm:$0xff]   ;;  %v3337_v51 = vld [vmem:[%s4176_s11 + $0x364] ss:$16 sps:$4 sm:$0xff]  }
  0xcb   : > { %2332 = vmatprep.subr.bf16.mxu0 %v3245_v52  ;;  %2504 = vmatprep.subr.bf16.mxu1 %v3247_v53  ;;  %v3340_v52 = vld [vmem:[%s4176_s11 + $0x36c] ss:$16 sps:$4 sm:$0xff]   ;;  %v3335_v53 = vld [vmem:[%s4176_s11 + $0x360] ss:$16 sps:$4 sm:$0xff]  }
  0xce   : > { %2333 = vmatpush1.bf16.msra.mxu0 %v3249_v54  ;;  %2505 = vmatpush1.bf16.msra.mxu1 %v3250_v55  ;;  %v3338_v54 = vld [vmem:[%s4176_s11 + $0x368] ss:$16 sps:$4 sm:$0xff]   ;;  %v3343_v55 = vld [vmem:[%s4176_s11 + $0x384] ss:$16 sps:$4 sm:$0xff]  }
  0xcf   : > { %2334 = vmatprep.subr.bf16.mxu0 %v3251_v56  ;;  %2506 = vmatprep.subr.bf16.mxu1 %v3253_v57  ;;  %v3346_v56 = vld [vmem:[%s4176_s11 + $0x38c] ss:$16 sps:$4 sm:$0xff]   ;;  %v3341_v57 = vld [vmem:[%s4176_s11 + $0x380] ss:$16 sps:$4 sm:$0xff]  }
  0xd2   : > { %2335 = vmatpush1.bf16.msra.mxu0 %v3255_v58  ;;  %2507 = vmatpush1.bf16.msra.mxu1 %v3256_v59  ;;  %v3344_v58 = vld [vmem:[%s4176_s11 + $0x388] ss:$16 sps:$4 sm:$0xff]   ;;  %v3349_v59 = vld [vmem:[%s4176_s11 + $0x3a4] ss:$16 sps:$4 sm:$0xff]  }
  0xd3   : > { %2336 = vmatprep.subr.bf16.mxu0 %v3257_v60  ;;  %2508 = vmatprep.subr.bf16.mxu1 %v3259_v61  ;;  %v3352_v60 = vld [vmem:[%s4176_s11 + $0x3ac] ss:$16 sps:$4 sm:$0xff]   ;;  %v3347_v61 = vld [vmem:[%s4176_s11 + $0x3a0] ss:$16 sps:$4 sm:$0xff]  }
  0xd6   : > { %2337 = vmatpush1.bf16.msra.mxu0 %v3261_v62  ;;  %2509 = vmatpush1.bf16.msra.mxu1 %v3262_v63  ;;  %v3350_v62 = vld [vmem:[%s4176_s11 + $0x3a8] ss:$16 sps:$4 sm:$0xff]   ;;  %v3355_v63 = vld [vmem:[%s4176_s11 + $0x3c4] ss:$16 sps:$4 sm:$0xff]  }
  0xd7   : > { %2338 = vmatprep.subr.bf16.mxu0 %v3263_v0  ;;  %2510 = vmatprep.subr.bf16.mxu1 %v3265_v1  ;;  %v3358_v0 = vld [vmem:[%s4176_s11 + $0x3cc] ss:$16 sps:$4 sm:$0xff]   ;;  %v3353_v1 = vld [vmem:[%s4176_s11 + $0x3c0] ss:$16 sps:$4 sm:$0xff]  }
  0xda   : > { %2339 = vmatpush1.bf16.msra.mxu0 %v3267_v3  ;;  %2511 = vmatpush1.bf16.msra.mxu1 %v3268_v4  ;;  %v3356_v3 = vld [vmem:[%s4176_s11 + $0x3c8] ss:$16 sps:$4 sm:$0xff]   ;;  %v3361_v4 = vld [vmem:[%s4176_s11 + $0x3e4] ss:$16 sps:$4 sm:$0xff]  }
  0xdb   : > { %2351 = vmatprep.subr.bf16.mxu0 %v3271_v5  ;;  %2523 = vmatprep.subr.bf16.mxu1 %v3274_v6  ;;  %v3364_v5 = vld [vmem:[%s4176_s11 + $0x3ec] ss:$16 sps:$4 sm:$0xff]   ;;  %v3359_v6 = vld [vmem:[%s4176_s11 + $0x3e0] ss:$16 sps:$4 sm:$0xff]  }
  0xdd   : > { %2341 = vmatmul.mubr.bf16.vlgmr.msra.gmra.mrb[0].mxu0 %v4174_v2  ;;  %2513 = vmatmul.mubr.bf16.vlgmr.msra.gmra.mrb[0].mxu1 %v4174_v2  ;;  %v3289_v2 = vld [vmem:[%s4176_s11 + $0x264] ss:$16 sps:$4 sm:$0xff]  }
  0xde   : > { %2352 = vmatpush1.bf16.msra.mxu0 %v3269_v7  ;;  %2524 = vmatpush1.bf16.msra.mxu1 %v3272_v8  ;;  %v3362_v7 = vld [vmem:[%s4176_s11 + $0x3e8] ss:$16 sps:$4 sm:$0xff]   ;;  %v3367_v8 = vld [vmem:[%s4176_s11 + $0x404] ss:$16 sps:$4 sm:$0xff]  }
  0xdf   : > { %2353 = vmatprep.subr.bf16.mxu0 %v3277_v9  ;;  %2525 = vmatprep.subr.bf16.mxu1 %v3280_v10  ;;  %v3370_v9 = vld [vmem:[%s4176_s11 + $0x40c] ss:$16 sps:$4 sm:$0xff]   ;;  %v3365_v10 = vld [vmem:[%s4176_s11 + $0x400] ss:$16 sps:$4 sm:$0xff]  }
  0xe0   : > { %2383 = vmatprep.mubr.bf16.mxu0 %v2846_v32  ;;  %2555 = vmatprep.mubr.bf16.mxu1 %v2846_v32  ;;  %v3397_v32 = vld [vmem:[%s4176_s11 + $0x4a4] ss:$16 sps:$4 sm:$0xff]  }
  0xe2   : > { %2354 = vmatpush1.bf16.msra.mxu0 %v3275_v11  ;;  %2526 = vmatpush1.bf16.msra.mxu1 %v3278_v12  ;;  %v2845_v11 = vcombine.low %v4273_v30, %v4278_v31  ;;  %v3368_v12 = vld [vmem:[%s4176_s11 + $0x408] ss:$16 sps:$4 sm:$0xff]   ;;  %v3389_v30 = vld [vmem:[%s4176_s11 + $0x480] ss:$16 sps:$4 sm:$0xff]  }
  0xe3   : > { %2355 = vmatprep.subr.bf16.mxu0 %v3283_v13  ;;  %2527 = vmatprep.subr.bf16.mxu1 %v3286_v14  ;;  %v3373_v13 = vld [vmem:[%s4176_s11 + $0x424] ss:$16 sps:$4 sm:$0xff]   ;;  %v3376_v14 = vld [vmem:[%s4176_s11 + $0x42c] ss:$16 sps:$4 sm:$0xff]   ;;  %v3392_v31 = vld [vmem:[%s4176_s11 + $0x488] ss:$16 sps:$4 sm:$0xff]  }
  0xe6   : > { %2356 = vmatpush1.bf16.msra.mxu0 %v3281_v15  ;;  %2528 = vmatpush1.bf16.msra.mxu1 %v3284_v16  ;;  %v4331_v15 = vld [vmem:[%s4510_s0 + $0x10] sm:$0xff] }
  0xe7   : > { %2357 = vmatprep.subr.bf16.mxu0 %v3289_v2  ;;  %2529 = vmatprep.subr.bf16.mxu1 %v3292_v17  ;;  %v4336_v16 = vld [vmem:[%s4510_s0 + $0x30] sm:$0xff] }
  0xe8   : > { %v2848_v2 = vcombine.high %v4331_v15, %v4336_v16  ;;  %v3371_v17 = vld [vmem:[%s4176_s11 + $0x420] ss:$16 sps:$4 sm:$0xff]  }
  0xea   : > { %2358 = vmatpush1.bf16.msra.mxu0 %v3287_v18  ;;  %2530 = vmatpush1.bf16.msra.mxu1 %v3290_v19  ;;  %v3374_v18 = vld [vmem:[%s4176_s11 + $0x428] ss:$16 sps:$4 sm:$0xff]   ;;  %v3379_v19 = vld [vmem:[%s4176_s11 + $0x444] ss:$16 sps:$4 sm:$0xff]  }
  0xeb   : > { %2359 = vmatprep.subr.bf16.mxu0 %v3295_v20  ;;  %2531 = vmatprep.subr.bf16.mxu1 %v3298_v21  ;;  %v3382_v20 = vld [vmem:[%s4176_s11 + $0x44c] ss:$16 sps:$4 sm:$0xff]   ;;  %v3377_v21 = vld [vmem:[%s4176_s11 + $0x440] ss:$16 sps:$4 sm:$0xff]  }
  0xee   : > { %2360 = vmatpush1.bf16.msra.mxu0 %v3293_v22  ;;  %2532 = vmatpush1.bf16.msra.mxu1 %v3296_v23  ;;  %v3380_v22 = vld [vmem:[%s4176_s11 + $0x448] ss:$16 sps:$4 sm:$0xff]   ;;  %v3581_v23 = vmov 0  }
  0xef   : > { %2361 = vmatprep.subr.bf16.mxu0 %v3301_v24  ;;  %2533 = vmatprep.subr.bf16.mxu1 %v3304_v25  ;;  %v3385_v24 = vld [vmem:[%s4176_s11 + $0x464] ss:$16 sps:$4 sm:$0xff]   ;;  %v3388_v25 = vld [vmem:[%s4176_s11 + $0x46c] ss:$16 sps:$4 sm:$0xff]  }
  0xf0   : > { %3171 = vset.pattern.permute.xlu0 %v3581_v23  ;;  %3172 = vset.pattern.permute.xlu1 %v3581_v23  ;;  %v3461_v23 = vld [vmem:[%s4176_s11 + $0x600] ss:$16 sps:$4 sm:$0xff]  }
  0xf2   : > { %2362 = vmatpush1.bf16.msra.mxu0 %v3299_v26  ;;  %2534 = vmatpush1.bf16.msra.mxu1 %v3302_v27  ;;  %v3383_v26 = vld [vmem:[%s4176_s11 + $0x460] ss:$16 sps:$4 sm:$0xff]   ;;  %v3386_v27 = vld [vmem:[%s4176_s11 + $0x468] ss:$16 sps:$4 sm:$0xff]  }
  0xf3   : > { %2363 = vmatprep.subr.bf16.mxu0 %v3307_v28  ;;  %2535 = vmatprep.subr.bf16.mxu1 %v3310_v29  ;;  %v3391_v28 = vld [vmem:[%s4176_s11 + $0x484] ss:$16 sps:$4 sm:$0xff]   ;;  %v3394_v29 = vld [vmem:[%s4176_s11 + $0x48c] ss:$16 sps:$4 sm:$0xff]  }
  0xf6   : > { %2364 = vmatpush1.bf16.msra.mxu0 %v3305_v33  ;;  %2536 = vmatpush1.bf16.msra.mxu1 %v3308_v34  ;;  %v3400_v33 = vld [vmem:[%s4176_s11 + $0x4ac] ss:$16 sps:$4 sm:$0xff]   ;;  %v3395_v34 = vld [vmem:[%s4176_s11 + $0x4a0] ss:$16 sps:$4 sm:$0xff]  }
  0xf7   : > { %2365 = vmatprep.subr.bf16.mxu0 %v3313_v35  ;;  %2537 = vmatprep.subr.bf16.mxu1 %v3316_v36  ;;  %v3398_v35 = vld [vmem:[%s4176_s11 + $0x4a8] ss:$16 sps:$4 sm:$0xff]   ;;  %v3403_v36 = vld [vmem:[%s4176_s11 + $0x4c4] ss:$16 sps:$4 sm:$0xff]  }
  0xfa   : > { %2366 = vmatpush1.bf16.msra.mxu0 %v3311_v37  ;;  %2538 = vmatpush1.bf16.msra.mxu1 %v3314_v38  ;;  %v3406_v37 = vld [vmem:[%s4176_s11 + $0x4cc] ss:$16 sps:$4 sm:$0xff]   ;;  %v3401_v38 = vld [vmem:[%s4176_s11 + $0x4c0] ss:$16 sps:$4 sm:$0xff]  }
  0xfb   : > { %2367 = vmatprep.subr.bf16.mxu0 %v3319_v39  ;;  %2539 = vmatprep.subr.bf16.mxu1 %v3322_v40  ;;  %v3404_v39 = vld [vmem:[%s4176_s11 + $0x4c8] ss:$16 sps:$4 sm:$0xff]   ;;  %v3409_v40 = vld [vmem:[%s4176_s11 + $0x4e4] ss:$16 sps:$4 sm:$0xff]  }
  0xfe   : > { %2368 = vmatpush1.bf16.msra.mxu0 %v3317_v41  ;;  %2540 = vmatpush1.bf16.msra.mxu1 %v3320_v42  ;;  %v3412_v41 = vld [vmem:[%s4176_s11 + $0x4ec] ss:$16 sps:$4 sm:$0xff]   ;;  %v3407_v42 = vld [vmem:[%s4176_s11 + $0x4e0] ss:$16 sps:$4 sm:$0xff]  }
  0xff   : > { %2369 = vmatprep.subr.bf16.mxu0 %v3325_v43  ;;  %2541 = vmatprep.subr.bf16.mxu1 %v3328_v44  ;;  %v3410_v43 = vld [vmem:[%s4176_s11 + $0x4e8] ss:$16 sps:$4 sm:$0xff]   ;;  %v3415_v44 = vld [vmem:[%s4176_s11 + $0x504] ss:$16 sps:$4 sm:$0xff]  }
 0x102   : > { %2370 = vmatpush1.bf16.msra.mxu0 %v3323_v45  ;;  %2542 = vmatpush1.bf16.msra.mxu1 %v3326_v46  ;;  %v3418_v45 = vld [vmem:[%s4176_s11 + $0x50c] ss:$16 sps:$4 sm:$0xff]   ;;  %v3413_v46 = vld [vmem:[%s4176_s11 + $0x500] ss:$16 sps:$4 sm:$0xff]  }
 0x103   : > { %2371 = vmatprep.subr.bf16.mxu0 %v3331_v47  ;;  %2543 = vmatprep.subr.bf16.mxu1 %v3334_v48  ;;  %v3416_v47 = vld [vmem:[%s4176_s11 + $0x508] ss:$16 sps:$4 sm:$0xff]   ;;  %v3421_v48 = vld [vmem:[%s4176_s11 + $0x524] ss:$16 sps:$4 sm:$0xff]  }
 0x106   : > { %2372 = vmatpush1.bf16.msra.mxu0 %v3329_v49  ;;  %2544 = vmatpush1.bf16.msra.mxu1 %v3332_v50  ;;  %v3424_v49 = vld [vmem:[%s4176_s11 + $0x52c] ss:$16 sps:$4 sm:$0xff]   ;;  %v3419_v50 = vld [vmem:[%s4176_s11 + $0x520] ss:$16 sps:$4 sm:$0xff]  }
 0x107   : > { %2373 = vmatprep.subr.bf16.mxu0 %v3337_v51  ;;  %2545 = vmatprep.subr.bf16.mxu1 %v3340_v52  ;;  %v3422_v51 = vld [vmem:[%s4176_s11 + $0x528] ss:$16 sps:$4 sm:$0xff]   ;;  %v3427_v52 = vld [vmem:[%s4176_s11 + $0x544] ss:$16 sps:$4 sm:$0xff]  }
 0x10a   : > { %2374 = vmatpush1.bf16.msra.mxu0 %v3335_v53  ;;  %2546 = vmatpush1.bf16.msra.mxu1 %v3338_v54  ;;  %v3430_v53 = vld [vmem:[%s4176_s11 + $0x54c] ss:$16 sps:$4 sm:$0xff]   ;;  %v3425_v54 = vld [vmem:[%s4176_s11 + $0x540] ss:$16 sps:$4 sm:$0xff]  }
 0x10b   : > { %2375 = vmatprep.subr.bf16.mxu0 %v3343_v55  ;;  %2547 = vmatprep.subr.bf16.mxu1 %v3346_v56  ;;  %v3428_v55 = vld [vmem:[%s4176_s11 + $0x548] ss:$16 sps:$4 sm:$0xff]   ;;  %v3433_v56 = vld [vmem:[%s4176_s11 + $0x564] ss:$16 sps:$4 sm:$0xff]  }
 0x10e   : > { %2376 = vmatpush1.bf16.msra.mxu0 %v3341_v57  ;;  %2548 = vmatpush1.bf16.msra.mxu1 %v3344_v58  ;;  %v3436_v57 = vld [vmem:[%s4176_s11 + $0x56c] ss:$16 sps:$4 sm:$0xff]   ;;  %v3431_v58 = vld [vmem:[%s4176_s11 + $0x560] ss:$16 sps:$4 sm:$0xff]  }
 0x10f   : > { %2377 = vmatprep.subr.bf16.mxu0 %v3349_v59  ;;  %2549 = vmatprep.subr.bf16.mxu1 %v3352_v60  ;;  %v3434_v59 = vld [vmem:[%s4176_s11 + $0x568] ss:$16 sps:$4 sm:$0xff]   ;;  %v2676_v60 = vld [vmem:[%s4512_s2] sm:$0xff] }
 0x110   : > { %2680 = vperm.xlu0 %3171, %v2676_v60   ;;  %v3523_v60 = vld [vmem:[%s4176_s11 + $0x744] ss:$16 sps:$4 sm:$0xff]  }
 0x112   : > { %2378 = vmatpush1.bf16.msra.mxu0 %v3347_v61  ;;  %2550 = vmatpush1.bf16.msra.mxu1 %v3350_v62  ;;  %v3439_v61 = vld [vmem:[%s4176_s11 + $0x584] ss:$16 sps:$4 sm:$0xff]   ;;  %v3442_v62 = vld [vmem:[%s4176_s11 + $0x58c] ss:$16 sps:$4 sm:$0xff]  }
 0x113   : > { %2379 = vmatprep.subr.bf16.mxu0 %v3355_v63  ;;  %2551 = vmatprep.subr.bf16.mxu1 %v3358_v0  ;;  %v2696_v63 = vld [vmem:[%s4513_s3] sm:$0xff]  ;;  %v2677_v0 = vld [vmem:[%s4512_s2 + $0x8] sm:$0xff] }
 0x114   : > { %2700 = vperm.xlu1 %3172, %v2696_v63   ;;  %2685 = vperm.xlu0 %3171, %v2677_v0   ;;  %v3524_v63 = vld [vmem:[%s4176_s11 + $0x748] ss:$16 sps:$4 sm:$0xff]   ;;  %v3529_v0 = vld [vmem:[%s4176_s11 + $0x764] ss:$16 sps:$4 sm:$0xff]  }
 0x116   : > { %2380 = vmatpush1.bf16.msra.mxu0 %v3353_v1  ;;  %2552 = vmatpush1.bf16.msra.mxu1 %v3356_v3  ;;  %v2697_v1 = vld [vmem:[%s4513_s3 + $0x8] sm:$0xff]  ;;  %v3437_v3 = vld [vmem:[%s4176_s11 + $0x580] ss:$16 sps:$4 sm:$0xff]  }
 0x117   : > { %2381 = vmatprep.subr.bf16.mxu0 %v3361_v4  ;;  %2553 = vmatprep.subr.bf16.mxu1 %v3364_v5  ;;  %v3440_v4 = vld [vmem:[%s4176_s11 + $0x588] ss:$16 sps:$4 sm:$0xff]   ;;  %v3445_v5 = vld [vmem:[%s4176_s11 + $0x5a4] ss:$16 sps:$4 sm:$0xff]  }
 0x118   : > { %2705 = vperm.xlu1 %3172, %v2697_v1   ;;  %v3532_v1 = vld [vmem:[%s4176_s11 + $0x76c] ss:$16 sps:$4 sm:$0xff]  }
 0x11a   : > { %2382 = vmatpush1.bf16.msra.mxu0 %v3359_v6  ;;  %2554 = vmatpush1.bf16.msra.mxu1 %v3362_v7  ;;  %v3448_v6 = vld [vmem:[%s4176_s11 + $0x5ac] ss:$16 sps:$4 sm:$0xff]   ;;  %v3443_v7 = vld [vmem:[%s4176_s11 + $0x5a0] ss:$16 sps:$4 sm:$0xff]  }
 0x11b   : > { %2394 = vmatprep.subr.bf16.mxu0 %v3367_v8  ;;  %2566 = vmatprep.subr.bf16.mxu1 %v3370_v9  ;;  %v3446_v8 = vld [vmem:[%s4176_s11 + $0x5a8] ss:$16 sps:$4 sm:$0xff]   ;;  %v3451_v9 = vld [vmem:[%s4176_s11 + $0x5c4] ss:$16 sps:$4 sm:$0xff]  }
 0x11d   : > { %2384 = vmatmul.mubr.bf16.vlgmr.msra.gmra.mrb[0].mxu0 %v2845_v11  ;;  %2556 = vmatmul.mubr.bf16.vlgmr.msra.gmra.mrb[0].mxu1 %v2845_v11  ;;  %v3449_v11 = vld [vmem:[%s4176_s11 + $0x5c0] ss:$16 sps:$4 sm:$0xff]  }
 0x11e   : > { %2395 = vmatpush1.bf16.msra.mxu0 %v3365_v10  ;;  %2567 = vmatpush1.bf16.msra.mxu1 %v3368_v12  ;;  %v3454_v10 = vld [vmem:[%s4176_s11 + $0x5cc] ss:$16 sps:$4 sm:$0xff]   ;;  %v3452_v12 = vld [vmem:[%s4176_s11 + $0x5c8] ss:$16 sps:$4 sm:$0xff]  }
 0x11f   : > { %2396 = vmatprep.subr.bf16.mxu0 %v3373_v13  ;;  %2568 = vmatprep.subr.bf16.mxu1 %v3376_v14  ;;  %v3457_v13 = vld [vmem:[%s4176_s11 + $0x5e4] ss:$16 sps:$4 sm:$0xff]   ;;  %v3460_v14 = vld [vmem:[%s4176_s11 + $0x5ec] ss:$16 sps:$4 sm:$0xff]  }
 0x120   : > { %2426 = vmatprep.mubr.bf16.mxu0 %v2848_v2  ;;  %2598 = vmatprep.mubr.bf16.mxu1 %v2848_v2  ;;  %v3455_v2 = vld [vmem:[%s4176_s11 + $0x5e0] ss:$16 sps:$4 sm:$0xff]  }
 0x122   : > { %2397 = vmatpush1.bf16.msra.mxu0 %v3371_v17  ;;  %2569 = vmatpush1.bf16.msra.mxu1 %v3374_v18  ;;  %v3458_v17 = vld [vmem:[%s4176_s11 + $0x5e8] ss:$16 sps:$4 sm:$0xff]   ;;  %v3463_v18 = vld [vmem:[%s4176_s11 + $0x604] ss:$16 sps:$4 sm:$0xff]  }
 0x123   : > { %2398 = vmatprep.subr.bf16.mxu0 %v3379_v19  ;;  %2570 = vmatprep.subr.bf16.mxu1 %v3382_v20  ;;  %v3466_v19 = vld [vmem:[%s4176_s11 + $0x60c] ss:$16 sps:$4 sm:$0xff]   ;;  %v2847_v20 = vcombine.low %v4331_v15, %v4336_v16  ;;  %v3469_v15 = vld [vmem:[%s4176_s11 + $0x624] ss:$16 sps:$4 sm:$0xff]  }
 0x124   : > { %v3472_v16 = vld [vmem:[%s4176_s11 + $0x62c] ss:$16 sps:$4 sm:$0xff]  }
 0x126   : > { %2399 = vmatpush1.bf16.msra.mxu0 %v3377_v21  ;;  %2571 = vmatpush1.bf16.msra.mxu1 %v3380_v22  ;;  %v4417_v21 = vld [vmem:[%s4510_s0 + $0x18] sm:$0xff] }
 0x127   : > { %2400 = vmatprep.subr.bf16.mxu0 %v3385_v24  ;;  %2572 = vmatprep.subr.bf16.mxu1 %v3388_v25  ;;  %v4422_v22 = vld [vmem:[%s4510_s0 + $0x38] sm:$0xff] }
 0x128   : > { %v3464_v24 = vld [vmem:[%s4176_s11 + $0x608] ss:$16 sps:$4 sm:$0xff]   ;;  %v2850_v25 = vcombine.high %v4417_v21, %v4422_v22 }
 0x12a   : > { %2401 = vmatpush1.bf16.msra.mxu0 %v3383_v26  ;;  %2573 = vmatpush1.bf16.msra.mxu1 %v3386_v27  ;;  %v3467_v26 = vld [vmem:[%s4176_s11 + $0x620] ss:$16 sps:$4 sm:$0xff]   ;;  %v3470_v27 = vld [vmem:[%s4176_s11 + $0x628] ss:$16 sps:$4 sm:$0xff]  }
 0x12b   : > { %2402 = vmatprep.subr.bf16.mxu0 %v3391_v28  ;;  %2574 = vmatprep.subr.bf16.mxu1 %v3394_v29  ;;  %v3475_v28 = vld [vmem:[%s4176_s11 + $0x644] ss:$16 sps:$4 sm:$0xff]   ;;  %v3478_v29 = vld [vmem:[%s4176_s11 + $0x64c] ss:$16 sps:$4 sm:$0xff]  }
 0x12e   : > { %2403 = vmatpush1.bf16.msra.mxu0 %v3389_v30  ;;  %2575 = vmatpush1.bf16.msra.mxu1 %v3392_v31  ;;  %v3473_v30 = vld [vmem:[%s4176_s11 + $0x640] ss:$16 sps:$4 sm:$0xff]   ;;  %v3476_v31 = vld [vmem:[%s4176_s11 + $0x648] ss:$16 sps:$4 sm:$0xff]  }
 0x12f   : > { %2404 = vmatprep.subr.bf16.mxu0 %v3397_v32  ;;  %2576 = vmatprep.subr.bf16.mxu1 %v3400_v33  ;;  %v3481_v32 = vld [vmem:[%s4176_s11 + $0x664] ss:$16 sps:$4 sm:$0xff]   ;;  %v3484_v33 = vld [vmem:[%s4176_s11 + $0x66c] ss:$16 sps:$4 sm:$0xff]  }
 0x132   : > { %2405 = vmatpush1.bf16.msra.mxu0 %v3395_v34  ;;  %2577 = vmatpush1.bf16.msra.mxu1 %v3398_v35  ;;  %v3479_v34 = vld [vmem:[%s4176_s11 + $0x660] ss:$16 sps:$4 sm:$0xff]   ;;  %v3482_v35 = vld [vmem:[%s4176_s11 + $0x668] ss:$16 sps:$4 sm:$0xff]  }
 0x133   : > { %2406 = vmatprep.subr.bf16.mxu0 %v3403_v36  ;;  %2578 = vmatprep.subr.bf16.mxu1 %v3406_v37  ;;  %v3487_v36 = vld [vmem:[%s4176_s11 + $0x684] ss:$16 sps:$4 sm:$0xff]   ;;  %v3490_v37 = vld [vmem:[%s4176_s11 + $0x68c] ss:$16 sps:$4 sm:$0xff]  }
 0x136   : > { %2407 = vmatpush1.bf16.msra.mxu0 %v3401_v38  ;;  %2579 = vmatpush1.bf16.msra.mxu1 %v3404_v39  ;;  %v3485_v38 = vld [vmem:[%s4176_s11 + $0x680] ss:$16 sps:$4 sm:$0xff]   ;;  %v3488_v39 = vld [vmem:[%s4176_s11 + $0x688] ss:$16 sps:$4 sm:$0xff]  }
 0x137   : > { %2408 = vmatprep.subr.bf16.mxu0 %v3409_v40  ;;  %2580 = vmatprep.subr.bf16.mxu1 %v3412_v41  ;;  %v3493_v40 = vld [vmem:[%s4176_s11 + $0x6a4] ss:$16 sps:$4 sm:$0xff]   ;;  %v3496_v41 = vld [vmem:[%s4176_s11 + $0x6ac] ss:$16 sps:$4 sm:$0xff]  }
 0x13a   : > { %2409 = vmatpush1.bf16.msra.mxu0 %v3407_v42  ;;  %2581 = vmatpush1.bf16.msra.mxu1 %v3410_v43  ;;  %v3491_v42 = vld [vmem:[%s4176_s11 + $0x6a0] ss:$16 sps:$4 sm:$0xff]   ;;  %v3494_v43 = vld [vmem:[%s4176_s11 + $0x6a8] ss:$16 sps:$4 sm:$0xff]  }
 0x13b   : > { %2410 = vmatprep.subr.bf16.mxu0 %v3415_v44  ;;  %2582 = vmatprep.subr.bf16.mxu1 %v3418_v45  ;;  %v3499_v44 = vld [vmem:[%s4176_s11 + $0x6c4] ss:$16 sps:$4 sm:$0xff]   ;;  %v3502_v45 = vld [vmem:[%s4176_s11 + $0x6cc] ss:$16 sps:$4 sm:$0xff]  }
 0x13e   : > { %2411 = vmatpush1.bf16.msra.mxu0 %v3413_v46  ;;  %2583 = vmatpush1.bf16.msra.mxu1 %v3416_v47  ;;  %v3497_v46 = vld [vmem:[%s4176_s11 + $0x6c0] ss:$16 sps:$4 sm:$0xff]   ;;  %v3500_v47 = vld [vmem:[%s4176_s11 + $0x6c8] ss:$16 sps:$4 sm:$0xff]  }
 0x13f   : > { %2412 = vmatprep.subr.bf16.mxu0 %v3421_v48  ;;  %2584 = vmatprep.subr.bf16.mxu1 %v3424_v49  ;;  %v3505_v48 = vld [vmem:[%s4176_s11 + $0x6e4] ss:$16 sps:$4 sm:$0xff]   ;;  %v3508_v49 = vld [vmem:[%s4176_s11 + $0x6ec] ss:$16 sps:$4 sm:$0xff]  }
 0x142   : > { %2413 = vmatpush1.bf16.msra.mxu0 %v3419_v50  ;;  %2585 = vmatpush1.bf16.msra.mxu1 %v3422_v51  ;;  %v3503_v50 = vld [vmem:[%s4176_s11 + $0x6e0] ss:$16 sps:$4 sm:$0xff]   ;;  %v3506_v51 = vld [vmem:[%s4176_s11 + $0x6e8] ss:$16 sps:$4 sm:$0xff]  }
 0x143   : > { %2414 = vmatprep.subr.bf16.mxu0 %v3427_v52  ;;  %2586 = vmatprep.subr.bf16.mxu1 %v3430_v53  ;;  %v3511_v52 = vld [vmem:[%s4176_s11 + $0x704] ss:$16 sps:$4 sm:$0xff]   ;;  %v3514_v53 = vld [vmem:[%s4176_s11 + $0x70c] ss:$16 sps:$4 sm:$0xff]  }
 0x146   : > { %2415 = vmatpush1.bf16.msra.mxu0 %v3425_v54  ;;  %2587 = vmatpush1.bf16.msra.mxu1 %v3428_v55  ;;  %v3509_v54 = vld [vmem:[%s4176_s11 + $0x700] ss:$16 sps:$4 sm:$0xff]   ;;  %v3512_v55 = vld [vmem:[%s4176_s11 + $0x708] ss:$16 sps:$4 sm:$0xff]  }
 0x147   : > { %2416 = vmatprep.subr.bf16.mxu0 %v3433_v56  ;;  %2588 = vmatprep.subr.bf16.mxu1 %v3436_v57  ;;  %v3517_v56 = vld [vmem:[%s4176_s11 + $0x724] ss:$16 sps:$4 sm:$0xff]   ;;  %v3520_v57 = vld [vmem:[%s4176_s11 + $0x72c] ss:$16 sps:$4 sm:$0xff]  }
 0x14a   : > { %2417 = vmatpush1.bf16.msra.mxu0 %v3431_v58  ;;  %2589 = vmatpush1.bf16.msra.mxu1 %v3434_v59  ;;  %v3515_v58 = vld [vmem:[%s4176_s11 + $0x720] ss:$16 sps:$4 sm:$0xff]   ;;  %v3518_v59 = vld [vmem:[%s4176_s11 + $0x728] ss:$16 sps:$4 sm:$0xff]  }
 0x14b   : > { %2418 = vmatprep.subr.bf16.mxu0 %v3439_v61  ;;  %2590 = vmatprep.subr.bf16.mxu1 %v3442_v62  ;;  %v3526_v61 = vld [vmem:[%s4176_s11 + $0x74c] ss:$16 sps:$4 sm:$0xff]   ;;  %v3521_v62 = vld [vmem:[%s4176_s11 + $0x740] ss:$16 sps:$4 sm:$0xff]  }
 0x14e   : > { %2419 = vmatpush1.bf16.msra.mxu0 %v3437_v3  ;;  %2591 = vmatpush1.bf16.msra.mxu1 %v3440_v4  ;;  %v3527_v3 = vld [vmem:[%s4176_s11 + $0x760] ss:$16 sps:$4 sm:$0xff]   ;;  %v3530_v4 = vld [vmem:[%s4176_s11 + $0x768] ss:$16 sps:$4 sm:$0xff]  }
 0x14f   : > { %2420 = vmatprep.subr.bf16.mxu0 %v3445_v5  ;;  %2592 = vmatprep.subr.bf16.mxu1 %v3448_v6  ;;  %v3535_v5 = vld [vmem:[%s4176_s11 + $0x784] ss:$16 sps:$4 sm:$0xff]   ;;  %v3538_v6 = vld [vmem:[%s4176_s11 + $0x78c] ss:$16 sps:$4 sm:$0xff]  }
 0x152   : > { %2421 = vmatpush1.bf16.msra.mxu0 %v3443_v7  ;;  %2593 = vmatpush1.bf16.msra.mxu1 %v3446_v8  ;;  %v3533_v7 = vld [vmem:[%s4176_s11 + $0x780] ss:$16 sps:$4 sm:$0xff]   ;;  %v3536_v8 = vld [vmem:[%s4176_s11 + $0x788] ss:$16 sps:$4 sm:$0xff]  }
 0x153   : > { %2422 = vmatprep.subr.bf16.mxu0 %v3451_v9  ;;  %2594 = vmatprep.subr.bf16.mxu1 %v3454_v10  ;;  %v3541_v9 = vld [vmem:[%s4176_s11 + $0x7a4] ss:$16 sps:$4 sm:$0xff]   ;;  %v3544_v10 = vld [vmem:[%s4176_s11 + $0x7ac] ss:$16 sps:$4 sm:$0xff]  }
 0x156   : > { %2423 = vmatpush1.bf16.msra.mxu0 %v3449_v11  ;;  %2595 = vmatpush1.bf16.msra.mxu1 %v3452_v12  ;;  %v3539_v11 = vld [vmem:[%s4176_s11 + $0x7a0] ss:$16 sps:$4 sm:$0xff]   ;;  %v3542_v12 = vld [vmem:[%s4176_s11 + $0x7a8] ss:$16 sps:$4 sm:$0xff]  }
 0x157   : > { %2424 = vmatprep.subr.bf16.mxu0 %v3457_v13  ;;  %2596 = vmatprep.subr.bf16.mxu1 %v3460_v14  ;;  %v3547_v13 = vld [vmem:[%s4176_s11 + $0x7c4] ss:$16 sps:$4 sm:$0xff]   ;;  %v3550_v14 = vld [vmem:[%s4176_s11 + $0x7cc] ss:$16 sps:$4 sm:$0xff]  }
 0x15a   : > { %2425 = vmatpush1.bf16.msra.mxu0 %v3455_v2  ;;  %2597 = vmatpush1.bf16.msra.mxu1 %v3458_v17  ;;  %v3545_v2 = vld [vmem:[%s4176_s11 + $0x7c0] ss:$16 sps:$4 sm:$0xff]   ;;  %v3548_v17 = vld [vmem:[%s4176_s11 + $0x7c8] ss:$16 sps:$4 sm:$0xff]  }
 0x15b   : > { %2437 = vmatprep.subr.bf16.mxu0 %v3463_v18  ;;  %2609 = vmatprep.subr.bf16.mxu1 %v3466_v19  ;;  %v3553_v18 = vld [vmem:[%s4176_s11 + $0x7e4] ss:$16 sps:$4 sm:$0xff]   ;;  %v3556_v19 = vld [vmem:[%s4176_s11 + $0x7ec] ss:$16 sps:$4 sm:$0xff]  }
 0x15d   : > { %2427 = vmatmul.mubr.bf16.vlgmr.msra.gmra.mrb[0].mxu0 %v2847_v20  ;;  %2599 = vmatmul.mubr.bf16.vlgmr.msra.gmra.mrb[0].mxu1 %v2847_v20  ;;  %v3551_v20 = vld [vmem:[%s4176_s11 + $0x7e0] ss:$16 sps:$4 sm:$0xff]  }
 0x15e   : > { %2438 = vmatpush1.bf16.msra.mxu0 %v3461_v23  ;;  %2610 = vmatpush1.bf16.msra.mxu1 %v3464_v24  ;;  %v3554_v23 = vld [vmem:[%s4176_s11 + $0x7e8] ss:$16 sps:$4 sm:$0xff]   ;;  %v2849_v24 = vcombine.low %v4417_v21, %v4422_v22  ;;  %s2842_s11 = sshll.u32 %s698_s5, 5  ;;  %s3121_s5 = sshll.u32 (%p3637_p5), %s2833_s18, 4 }
 0x15f   : > { %2439 = vmatprep.subr.bf16.mxu0 %v3469_v15  ;;  %2611 = vmatprep.subr.bf16.mxu1 %v3472_v16  ;;  %s721_s15 = scalar_lea.vmem [#allocation3], %s2842_s11  ;;  %s2753_s24 = scalar_lea.vmem (%p3637_p5), %s4514_s4, %s3121_s5 }
 0x160   : > { %2469 = vmatprep.mubr.bf16.mxu0 %v2850_v25  ;;  %2641 = vmatprep.mubr.bf16.mxu1 %v2850_v25 }
 0x162   : > { %2440 = vmatpush1.bf16.msra.mxu0 %v3467_v26  ;;  %2612 = vmatpush1.bf16.msra.mxu1 %v3470_v27 }
 0x163   : > { %2441 = vmatprep.subr.bf16.mxu0 %v3475_v28  ;;  %2613 = vmatprep.subr.bf16.mxu1 %v3478_v29 }
 0x166   : > { %2442 = vmatpush1.bf16.msra.mxu0 %v3473_v30  ;;  %2614 = vmatpush1.bf16.msra.mxu1 %v3476_v31 }
 0x167   : > { %2443 = vmatprep.subr.bf16.mxu0 %v3481_v32  ;;  %2615 = vmatprep.subr.bf16.mxu1 %v3484_v33 }
 0x16a   : > { %2444 = vmatpush1.bf16.msra.mxu0 %v3479_v34  ;;  %2616 = vmatpush1.bf16.msra.mxu1 %v3482_v35 }
 0x16b   : > { %2445 = vmatprep.subr.bf16.mxu0 %v3487_v36  ;;  %2617 = vmatprep.subr.bf16.mxu1 %v3490_v37 }
 0x16e   : > { %2446 = vmatpush1.bf16.msra.mxu0 %v3485_v38  ;;  %2618 = vmatpush1.bf16.msra.mxu1 %v3488_v39 }
 0x16f   : > { %2447 = vmatprep.subr.bf16.mxu0 %v3493_v40  ;;  %2619 = vmatprep.subr.bf16.mxu1 %v3496_v41 }
 0x172   : > { %2448 = vmatpush1.bf16.msra.mxu0 %v3491_v42  ;;  %2620 = vmatpush1.bf16.msra.mxu1 %v3494_v43 }
 0x173   : > { %2449 = vmatprep.subr.bf16.mxu0 %v3499_v44  ;;  %2621 = vmatprep.subr.bf16.mxu1 %v3502_v45 }
 0x176   : > { %2450 = vmatpush1.bf16.msra.mxu0 %v3497_v46  ;;  %2622 = vmatpush1.bf16.msra.mxu1 %v3500_v47 }
 0x177   : > { %2451 = vmatprep.subr.bf16.mxu0 %v3505_v48  ;;  %2623 = vmatprep.subr.bf16.mxu1 %v3508_v49 }
 0x17a   : > { %2452 = vmatpush1.bf16.msra.mxu0 %v3503_v50  ;;  %2624 = vmatpush1.bf16.msra.mxu1 %v3506_v51 }
 0x17b   : > { %2453 = vmatprep.subr.bf16.mxu0 %v3511_v52  ;;  %2625 = vmatprep.subr.bf16.mxu1 %v3514_v53 }
 0x17e   : > { %2454 = vmatpush1.bf16.msra.mxu0 %v3509_v54  ;;  %2626 = vmatpush1.bf16.msra.mxu1 %v3512_v55 }
 0x17f   : > { %2455 = vmatprep.subr.bf16.mxu0 %v3517_v56  ;;  %2627 = vmatprep.subr.bf16.mxu1 %v3520_v57 }
 0x182   : > { %2456 = vmatpush1.bf16.msra.mxu0 %v3515_v58  ;;  %2628 = vmatpush1.bf16.msra.mxu1 %v3518_v59 }
 0x183   : > { %2457 = vmatprep.subr.bf16.mxu0 %v3523_v60  ;;  %2629 = vmatprep.subr.bf16.mxu1 %v3526_v61 }
 0x186   : > { %2458 = vmatpush1.bf16.msra.mxu0 %v3521_v62  ;;  %2630 = vmatpush1.bf16.msra.mxu1 %v3524_v63 }
 0x187   : > { %2459 = vmatprep.subr.bf16.mxu0 %v3529_v0  ;;  %2631 = vmatprep.subr.bf16.mxu1 %v3532_v1 }
 0x18a   : > { %2460 = vmatpush1.bf16.msra.mxu0 %v3527_v3  ;;  %2632 = vmatpush1.bf16.msra.mxu1 %v3530_v4 }
 0x18b   : > { %2461 = vmatprep.subr.bf16.mxu0 %v3535_v5  ;;  %2633 = vmatprep.subr.bf16.mxu1 %v3538_v6 }
 0x18e   : > { %2462 = vmatpush1.bf16.msra.mxu0 %v3533_v7  ;;  %2634 = vmatpush1.bf16.msra.mxu1 %v3536_v8 }
 0x18f   : > { %2463 = vmatprep.subr.bf16.mxu0 %v3541_v9  ;;  %2635 = vmatprep.subr.bf16.mxu1 %v3544_v10  ;;  %v2681_v25 = vpop.permute.xlu0 %2680 }
 0x192   : > { %2464 = vmatpush1.bf16.msra.mxu0 %v3539_v11  ;;  %2636 = vmatpush1.bf16.msra.mxu1 %v3542_v12 }
 0x193   : > { %2465 = vmatprep.subr.bf16.mxu0 %v3547_v13  ;;  %2637 = vmatprep.subr.bf16.mxu1 %v3550_v14  ;;  %v2701_v26 = vpop.permute.xlu1 %2700  ;;  %v2686_v46 = vpop.permute.xlu0 %2685 }
 0x196   : > { %2466 = vmatpush1.bf16.msra.mxu0 %v3545_v2  ;;  %2638 = vmatpush1.bf16.msra.mxu1 %v3548_v17 }
 0x197   : > { %2467 = vmatprep.subr.bf16.mxu0 %v3553_v18  ;;  %2639 = vmatprep.subr.bf16.mxu1 %v3556_v19  ;;  %v2706_v58 = vpop.permute.xlu1 %2705 }
 0x19a   : > { %2468 = vmatpush1.bf16.msra.mxu0 %v3551_v20  ;;  %2640 = vmatpush1.bf16.msra.mxu1 %v3554_v23 }
 0x19d   : > { %2470 = vmatmul.mubr.bf16.vlgmr.msra.gmra.mrb[0].mxu0 %v2849_v24  ;;  %2642 = vmatmul.mubr.bf16.vlgmr.msra.gmra.mrb[0].mxu1 %v2849_v24 }
 0x270   : > { %v2471_v15 = vpop.f32.mrb[0].mxu0  ;;  %v2643_v16 = vpop.f32.mrb[0].mxu1 }
 0x271   : > { %vm2652_vm0 = vcmp.ge.f32.partialorder %v2471_v15, 0.0  ;;  %v2660_v27 = vmul.f32 0.2, %v2471_v15  ;;  %vm2654_vm1 = vcmp.ge.f32.partialorder %v2643_v16, 0.0  ;;  %v2662_v28 = vmul.f32 0.2, %v2643_v16 }
 0x272   : > { %v2473_v29 = vpop.f32.mrb[1].mxu0  ;;  %v2645_v30 = vpop.f32.mrb[1].mxu1 }
 0x273   : > { %v2668_v31 = vsel %vm2652_vm0, %v2471_v15, %v2660_v27  ;;  %v2670_v32 = vsel %vm2654_vm1, %v2643_v16, %v2662_v28  ;;  %vm2653_vm2 = vcmp.ge.f32.partialorder %v2473_v29, 0.0  ;;  %v2661_v33 = vmul.f32 0.2, %v2473_v29  ;;  %v2475_v21 = vpop.f32.mrb[2].mxu0  ;;  %v2647_v22 = vpop.f32.mrb[2].mxu1 }
 0x274   : > { %v2688_v34 = vmul.f32 %v2681_v25, %v2668_v31  ;;  %v2690_v35 = vmul.f32 %v2681_v25, %v2670_v32  ;;  %vm2655_vm3 = vcmp.ge.f32.partialorder %v2645_v30, 0.0  ;;  %v2663_v36 = vmul.f32 0.2, %v2645_v30  ;;  %v2477_v37 = vpop.f32.mrb[3].mxu0  ;;  %v2649_v38 = vpop.f32.mrb[3].mxu1 }
 0x275   : > { %v2669_v39 = vsel %vm2653_vm2, %v2473_v29, %v2661_v33  ;;  %vm2656_vm4 = vcmp.ge.f32.partialorder %v2475_v21, 0.0  ;;  %v2664_v40 = vmul.f32 0.2, %v2475_v21  ;;  %vm2658_vm5 = vcmp.ge.f32.partialorder %v2647_v22, 0.0 }
 0x276   : > { %v2708_v41 = vadd.f32 %v2701_v26, %v2688_v34  ;;  %v2710_v42 = vadd.f32 %v2701_v26, %v2690_v35  ;;  %v2689_v43 = vmul.f32 %v2681_v25, %v2669_v39  ;;  %v2671_v44 = vsel %vm2655_vm3, %v2645_v30, %v2663_v36 }
 0x277   : > { %v2691_v45 = vmul.f32 %v2681_v25, %v2671_v44  ;;  %v2672_v47 = vsel %vm2656_vm4, %v2475_v21, %v2664_v40  ;;  %v2666_v48 = vmul.f32 0.2, %v2647_v22  ;;  %vm2657_vm6 = vcmp.ge.f32.partialorder %v2477_v37, 0.0 }
 0x278   : > { %v2709_v49 = vadd.f32 %v2701_v26, %v2689_v43  ;;  %v2692_v50 = vmul.f32 %v2686_v46, %v2672_v47  ;;  %v2665_v51 = vmul.f32 0.2, %v2477_v37  ;;  %vm2659_vm7 = vcmp.ge.f32.partialorder %v2649_v38, 0.0 }
 0x279   : > { %v2711_v52 = vadd.f32 %v2701_v26, %v2691_v45  ;;  %v2674_v53 = vsel %vm2658_vm5, %v2647_v22, %v2666_v48  ;;  %v2667_v54 = vmul.f32 0.2, %v2649_v38 }
 0x27a   : > { %v3117_v55 = vpack.c.bf16 %v2709_v49, %v2708_v41  ;;  %v2694_v56 = vmul.f32 %v2686_v46, %v2674_v53  ;;  %v2673_v57 = vsel %vm2657_vm6, %v2477_v37, %v2665_v51  ;;  %v2712_v62 = vadd.f32 %v2706_v58, %v2692_v50 }
 0x27b   : > { %v3118_v59 = vpack.c.bf16 %v2711_v52, %v2710_v42  ;;  %v2693_v60 = vmul.f32 %v2686_v46, %v2673_v57  ;;  %v2675_v61 = vsel %vm2659_vm7, %v2649_v38, %v2667_v54 }
 0x27c   : > { %2740 = vst [vmem:[%s721_s15] sm:$0xff] %v3117_v55  ;;  %v2695_v63 = vmul.f32 %v2686_v46, %v2675_v61  ;;  %v2714_v0 = vadd.f32 %v2706_v58, %v2694_v56  ;;  %2750 = sbr.rel (!%p3637_p5) target bundleno = 651 (0x28b), region = 63 }
 0x27d   : > { %2741 = vst [vmem:[%s721_s15 + $0x8] sm:$0xff] %v3118_v59  ;;  %v2713_v1 = vadd.f32 %v2706_v58, %v2693_v60 }
 0x27e   : > { %v2715_v3 = vadd.f32 %v2706_v58, %v2695_v63 }
 0x27f   : > { %v3119_v4 = vpack.c.bf16 %v2713_v1, %v2712_v62 }
 0x280   : > { %v3120_v5 = vpack.c.bf16 %v2715_v3, %v2714_v0 }
 0x281   : > { %2742 = vst [vmem:[%s721_s15 + $0x10] sm:$0xff] %v3119_v4 }
 0x282   : > { %2743 = vst [vmem:[%s721_s15 + $0x18] sm:$0xff] %v3120_v5 }
 0x283   : > { %v2766_v6 = vld [vmem:[%s721_s15] sm:$0xff] }
 0x284   : > { %v2768_v7 = vld [vmem:[%s721_s15 + $0x8] sm:$0xff]  ;;  %2767 = vst [vmem:[%s2753_s24] sm:$0xff] %v2766_v6 }
 0x285   : > { %2769 = vst [vmem:[%s2753_s24 + $0x8] sm:$0xff] %v2768_v7 }
 0x288   : > { %v2770_v8 = vld [vmem:[%s721_s15 + $0x10] sm:$0xff] }
 0x289   : > { %v2772_v9 = vld [vmem:[%s721_s15 + $0x18] sm:$0xff]  ;;  %2771 = vst [vmem:[%s2753_s24 + $0x20] sm:$0xff] %v2770_v8 }
 0x28a   : > { %2773 = vst [vmem:[%s2753_s24 + $0x28] sm:$0xff] %v2772_v9 }
 0x28b PF: > { %p11_p10 = scmp.ge.s32.totalorder %s3624_s19, 4   ;;  %s4516_s15 = smov %s3575_s16 }
 0x28c   : > { %s4517_s16 = smov %s3635_s22  ;;  %s4518_s17 = smov %s3624_s19 }
 0x28d   :  { %13 = sbr.rel (!%p11_p10) target bundleno = 2 (0x2), region = 117 }

// kernel: patch_discriminator_forward.6
= control target key start
LH: loop header
LB: loop body
LE: loop exit
PB: predicated region body
PF: predicated region fallthrough
CT: control target
= control target key end

     0   :  { %v1192_v1 = vmov 0   ;;  %s1488_s1 = inlined_call_operand.vmem [shape: bf16[1024,128], index: 1, kind: input, shape index: {}]   ;;  %s1489_s0 = inlined_call_operand.vmem [shape: bf16[32,1024], index: 0, kind: input, shape index: {}]   ;;  %s1490_s2 = inlined_call_operand.vmem [shape: f32[32,1], index: 2, kind: input, shape index: {}]   ;;  %s1491_s3 = inlined_call_operand.vmem [shape: f32[32,1], index: 3, kind: input, shape index: {}]   ;;  %s1492_s4 = inlined_call_operand.vmem [shape: bf16[32,128], index: 4, kind: output, shape index: {}]  }
   0x1   :  { %v1128_v0 = vld [vmem:[%s1488_s1 + $0x40] sm:$0xff]   ;;  %1127 = vset.pattern.permute.xlu1 %v1192_v1  ;;  %1126 = vset.pattern.permute.xlu0 %v1192_v1  ;;  %v1132_v5 = vld [vmem:[%s1488_s1 + $0x48] sm:$0xff]   ;;  %v1136_v9 = vld [vmem:[%s1488_s1 + $0x50] sm:$0xff]  }
   0x2   :  { %v1129_v2 = vld [vmem:[%s1488_s1 + $0xc0] sm:$0xff]   ;;  %1013 = vmatprep.subr.bf16.mxu0 %v1128_v0  ;;  %v1133_v6 = vld [vmem:[%s1488_s1 + $0xc8] sm:$0xff]   ;;  %v1137_v10 = vld [vmem:[%s1488_s1 + $0xd0] sm:$0xff]  }
   0x3   :  { %v1130_v3 = vld [vmem:[%s1488_s1] sm:$0xff]   ;;  %1041 = vmatprep.subr.bf16.mxu1 %v1129_v2  ;;  %v1134_v7 = vld [vmem:[%s1488_s1 + $0x8] sm:$0xff]   ;;  %v1138_v11 = vld [vmem:[%s1488_s1 + $0x10] sm:$0xff]  }
   0x4   :  { %v1131_v4 = vld [vmem:[%s1488_s1 + $0x80] sm:$0xff]   ;;  %1014 = vmatpush3.bf16.msra.mxu0 %v1130_v3  ;;  %v1135_v8 = vld [vmem:[%s1488_s1 + $0x88] sm:$0xff]   ;;  %v1139_v12 = vld [vmem:[%s1488_s1 + $0x90] sm:$0xff]  }
   0x5   :  { %1042 = vmatpush3.bf16.msra.mxu1 %v1131_v4  ;;  %1015 = vmatprep.subr.bf16.mxu0 %v1132_v5  ;;  %v1140_v13 = vld [vmem:[%s1488_s1 + $0x58] sm:$0xff]   ;;  %v1144_v17 = vld [vmem:[%s1488_s1 + $0x60] sm:$0xff]   ;;  %v1148_v21 = vld [vmem:[%s1488_s1 + $0x68] sm:$0xff]  }
   0x6   :  { %1043 = vmatprep.subr.bf16.mxu1 %v1133_v6  ;;  %v1141_v14 = vld [vmem:[%s1488_s1 + $0xd8] sm:$0xff]   ;;  %v1145_v18 = vld [vmem:[%s1488_s1 + $0xe0] sm:$0xff]   ;;  %v1149_v22 = vld [vmem:[%s1488_s1 + $0xe8] sm:$0xff]  }
   0x7   :  { %v1142_v15 = vld [vmem:[%s1488_s1 + $0x18] sm:$0xff]   ;;  %v1146_v19 = vld [vmem:[%s1488_s1 + $0x20] sm:$0xff]   ;;  %v1150_v23 = vld [vmem:[%s1488_s1 + $0x28] sm:$0xff]  }
   0x8   :  { %1016 = vmatpush3.bf16.msra.mxu0 %v1134_v7  ;;  %v1143_v16 = vld [vmem:[%s1488_s1 + $0x98] sm:$0xff]   ;;  %v1147_v20 = vld [vmem:[%s1488_s1 + $0xa0] sm:$0xff]   ;;  %v1151_v24 = vld [vmem:[%s1488_s1 + $0xa8] sm:$0xff]  }
   0x9   :  { %1044 = vmatpush3.bf16.msra.mxu1 %v1135_v8  ;;  %1017 = vmatprep.subr.bf16.mxu0 %v1136_v9  ;;  %v1152_v25 = vld [vmem:[%s1488_s1 + $0x70] sm:$0xff]   ;;  %v1156_v29 = vld [vmem:[%s1488_s1 + $0x78] sm:$0xff]   ;;  %v18_v33 = vld [vmem:[%s1489_s0] sm:$0xff] }
   0xa   :  { %1045 = vmatprep.subr.bf16.mxu1 %v1137_v10  ;;  %v1153_v26 = vld [vmem:[%s1488_s1 + $0xf0] sm:$0xff]   ;;  %v1157_v30 = vld [vmem:[%s1488_s1 + $0xf8] sm:$0xff]   ;;  %v22_v34 = vld [vmem:[%s1489_s0 + $0x20] sm:$0xff] }
   0xb   :  { %v1154_v27 = vld [vmem:[%s1488_s1 + $0x30] sm:$0xff]   ;;  %v1158_v31 = vld [vmem:[%s1488_s1 + $0x38] sm:$0xff]   ;;  %v19_v35 = vld [vmem:[%s1489_s0 + $0x8] sm:$0xff]  ;;  %v914_v36 = vcombine.low %v18_v33, %v22_v34  ;;  %v915_v37 = vcombine.high %v18_v33, %v22_v34 }
   0xc   :  { %1018 = vmatpush3.bf16.msra.mxu0 %v1138_v11  ;;  %v1155_v28 = vld [vmem:[%s1488_s1 + $0xb0] sm:$0xff]   ;;  %v1159_v32 = vld [vmem:[%s1488_s1 + $0xb8] sm:$0xff]   ;;  %v23_v38 = vld [vmem:[%s1489_s0 + $0x28] sm:$0xff] }
   0xd   :  { %1046 = vmatpush3.bf16.msra.mxu1 %v1139_v12  ;;  %1019 = vmatprep.subr.bf16.mxu0 %v1140_v13  ;;  %v916_v39 = vcombine.low %v19_v35, %v23_v38  ;;  %v917_v40 = vcombine.high %v19_v35, %v23_v38  ;;  %v1160_v41 = vld [vmem:[%s1488_s1 + $0x140] sm:$0xff]   ;;  %v1164_v45 = vld [vmem:[%s1488_s1 + $0x148] sm:$0xff]   ;;  %v1168_v49 = vld [vmem:[%s1488_s1 + $0x150] sm:$0xff]  }
   0xe   :  { %1047 = vmatprep.subr.bf16.mxu1 %v1141_v14  ;;  %658 = vmatprep.mubr.bf16.mxu0 %v915_v37  ;;  %v1161_v42 = vld [vmem:[%s1488_s1 + $0x1c0] sm:$0xff]   ;;  %v1165_v46 = vld [vmem:[%s1488_s1 + $0x1c8] sm:$0xff]   ;;  %v1169_v50 = vld [vmem:[%s1488_s1 + $0x1d0] sm:$0xff]  }
   0xf   :  { %707 = vmatprep.mubr.bf16.mxu1 %v917_v40  ;;  %v1162_v43 = vld [vmem:[%s1488_s1 + $0x100] sm:$0xff]   ;;  %v1166_v47 = vld [vmem:[%s1488_s1 + $0x108] sm:$0xff]   ;;  %v1170_v51 = vld [vmem:[%s1488_s1 + $0x110] sm:$0xff]  }
  0x10   :  { %1020 = vmatpush3.bf16.msra.mxu0 %v1142_v15  ;;  %v1163_v44 = vld [vmem:[%s1488_s1 + $0x180] sm:$0xff]   ;;  %v1167_v48 = vld [vmem:[%s1488_s1 + $0x188] sm:$0xff]   ;;  %v1171_v52 = vld [vmem:[%s1488_s1 + $0x190] sm:$0xff]  }
  0x11   :  { %1048 = vmatpush3.bf16.msra.mxu1 %v1143_v16  ;;  %1021 = vmatprep.subr.bf16.mxu0 %v1144_v17  ;;  %v1172_v53 = vld [vmem:[%s1488_s1 + $0x158] sm:$0xff]   ;;  %v1176_v57 = vld [vmem:[%s1488_s1 + $0x160] sm:$0xff]   ;;  %v27_v0 = vld [vmem:[%s1489_s0 + $0x48] sm:$0xff] }
  0x12   :  { %1049 = vmatprep.subr.bf16.mxu1 %v1145_v18  ;;  %v1173_v54 = vld [vmem:[%s1488_s1 + $0x1d8] sm:$0xff]   ;;  %v1177_v58 = vld [vmem:[%s1488_s1 + $0x1e0] sm:$0xff]   ;;  %v31_v1 = vld [vmem:[%s1489_s0 + $0x68] sm:$0xff] }
  0x13   :  { %v1174_v55 = vld [vmem:[%s1488_s1 + $0x118] sm:$0xff]   ;;  %v1178_v59 = vld [vmem:[%s1488_s1 + $0x120] sm:$0xff]   ;;  %v925_v3 = vcombine.high %v27_v0, %v31_v1  ;;  %v1180_v4 = vld [vmem:[%s1488_s1 + $0x168] sm:$0xff]   ;;  %v924_v5 = vcombine.low %v27_v0, %v31_v1 }
  0x14   :  { %1022 = vmatpush3.bf16.msra.mxu0 %v1146_v19  ;;  %v1175_v56 = vld [vmem:[%s1488_s1 + $0x198] sm:$0xff]   ;;  %v1179_v60 = vld [vmem:[%s1488_s1 + $0x1a0] sm:$0xff]   ;;  %v1181_v6 = vld [vmem:[%s1488_s1 + $0x1e8] sm:$0xff]  }
  0x15   :  { %1050 = vmatpush3.bf16.msra.mxu1 %v1147_v20  ;;  %1023 = vmatprep.subr.bf16.mxu0 %v1148_v21  ;;  %v26_v61 = vld [vmem:[%s1489_s0 + $0x40] sm:$0xff]  ;;  %v1182_v7 = vld [vmem:[%s1488_s1 + $0x128] sm:$0xff]   ;;  %v1184_v9 = vld [vmem:[%s1488_s1 + $0x170] sm:$0xff]  }
  0x16   :  { %1051 = vmatprep.subr.bf16.mxu1 %v1149_v22  ;;  %v30_v62 = vld [vmem:[%s1489_s0 + $0x60] sm:$0xff]  ;;  %v1183_v8 = vld [vmem:[%s1488_s1 + $0x1a8] sm:$0xff]   ;;  %v1185_v10 = vld [vmem:[%s1488_s1 + $0x1f0] sm:$0xff]  }
  0x17   :  { %v923_v63 = vcombine.high %v26_v61, %v30_v62  ;;  %v922_v2 = vcombine.low %v26_v61, %v30_v62  ;;  %v1186_v11 = vld [vmem:[%s1488_s1 + $0x130] sm:$0xff]   ;;  %v1188_v13 = vld [vmem:[%s1488_s1 + $0x178] sm:$0xff]   ;;  %v835_v34 = vld [vmem:[%s1490_s2 + $0x8] sm:$0xff] }
  0x18   :  { %1024 = vmatpush3.bf16.msra.mxu0 %v1150_v23  ;;  %v1187_v12 = vld [vmem:[%s1488_s1 + $0x1b0] sm:$0xff]   ;;  %v1189_v14 = vld [vmem:[%s1488_s1 + $0x1f8] sm:$0xff]   ;;  %v863_v37 = vld [vmem:[%s1491_s3 + $0x8] sm:$0xff] }
  0x19   :  { %1052 = vmatpush3.bf16.msra.mxu1 %v1151_v24  ;;  %1025 = vmatprep.subr.bf16.mxu0 %v1152_v25  ;;  %v1190_v15 = vld [vmem:[%s1488_s1 + $0x138] sm:$0xff]   ;;  %v20_v17 = vld [vmem:[%s1489_s0 + $0x10] sm:$0xff]  ;;  %v862_v38 = vld [vmem:[%s1491_s3] sm:$0xff] }
  0x1a   :  { %1053 = vmatprep.subr.bf16.mxu1 %v1153_v26  ;;  %v1191_v16 = vld [vmem:[%s1488_s1 + $0x1b8] sm:$0xff]   ;;  %v24_v18 = vld [vmem:[%s1489_s0 + $0x30] sm:$0xff] }
  0x1b   :  { %v21_v19 = vld [vmem:[%s1489_s0 + $0x18] sm:$0xff]  ;;  %v918_v21 = vcombine.low %v20_v17, %v24_v18  ;;  %v919_v22 = vcombine.high %v20_v17, %v24_v18  ;;  %v28_v25 = vld [vmem:[%s1489_s0 + $0x50] sm:$0xff] }
  0x1c   :  { %1026 = vmatpush3.bf16.msra.mxu0 %v1154_v27  ;;  %v25_v20 = vld [vmem:[%s1489_s0 + $0x38] sm:$0xff]  ;;  %v32_v26 = vld [vmem:[%s1489_s0 + $0x70] sm:$0xff] }
  0x1d   :  { %1054 = vmatpush3.bf16.msra.mxu1 %v1155_v28  ;;  %1027 = vmatprep.subr.bf16.mxu0 %v1156_v29  ;;  %v920_v23 = vcombine.low %v21_v19, %v25_v20  ;;  %v921_v24 = vcombine.high %v21_v19, %v25_v20  ;;  %v29_v27 = vld [vmem:[%s1489_s0 + $0x58] sm:$0xff]  ;;  %v927_v28 = vcombine.high %v28_v25, %v32_v26  ;;  %v864_v40 = vld [vmem:[%s1491_s3 + $0x10] sm:$0xff] }
  0x1e   :  { %1055 = vmatprep.subr.bf16.mxu1 %v1157_v30  ;;  %v33_v29 = vld [vmem:[%s1489_s0 + $0x78] sm:$0xff]  ;;  %v926_v35 = vcombine.low %v28_v25, %v32_v26 }
  0x1f   :  { %v929_v30 = vcombine.high %v29_v27, %v33_v29  ;;  %v837_v33 = vld [vmem:[%s1490_s2 + $0x18] sm:$0xff] }
  0x20   :  { %1028 = vmatpush3.bf16.msra.mxu0 %v1158_v31  ;;  %v836_v31 = vld [vmem:[%s1490_s2 + $0x10] sm:$0xff] }
  0x21   :  { %1056 = vmatpush3.bf16.msra.mxu1 %v1159_v32  ;;  %1069 = vmatprep.subr.bf16.mxu0 %v1160_v41  ;;  %v834_v32 = vld [vmem:[%s1490_s2] sm:$0xff] }
  0x22   :  { %1097 = vmatprep.subr.bf16.mxu1 %v1161_v42  ;;  %850 = vperm.xlu1 %1127, %v836_v31  }
  0x23   :  { %659 = vmatmul.mubr.bf16.vlgmr.msra.gmra.mrb[0].mxu0 %v914_v36  ;;  %840 = vperm.xlu0 %1126, %v834_v32   ;;  %v928_v36 = vcombine.low %v29_v27, %v33_v29 }
  0x24   :  { %708 = vmatmul.mubr.bf16.vlgmr.msra.gmra.mrb[0].mxu1 %v916_v39  ;;  %1070 = vmatpush3.bf16.msra.mxu0 %v1162_v43  ;;  %v865_v39 = vld [vmem:[%s1491_s3 + $0x18] sm:$0xff] }
  0x25   :  { %1098 = vmatpush3.bf16.msra.mxu1 %v1163_v44  ;;  %1071 = vmatprep.subr.bf16.mxu0 %v1164_v45 }
  0x26   :  { %1099 = vmatprep.subr.bf16.mxu1 %v1165_v46  ;;  %666 = vmatprep.mubr.bf16.mxu0 %v923_v63 }
  0x27   :  { %715 = vmatprep.mubr.bf16.mxu1 %v925_v3  ;;  %855 = vperm.xlu1 %1127, %v837_v33  }
  0x28   :  { %1072 = vmatpush3.bf16.msra.mxu0 %v1166_v47  ;;  %845 = vperm.xlu0 %1126, %v835_v34  }
  0x29   :  { %1100 = vmatpush3.bf16.msra.mxu1 %v1167_v48  ;;  %1073 = vmatprep.subr.bf16.mxu0 %v1168_v49 }
  0x2a   :  { %1101 = vmatprep.subr.bf16.mxu1 %v1169_v50 }
  0x2b   :  { %667 = vmatmul.mubr.bf16.gmra.mrb[4].mxu0 %v922_v2  ;;  %873 = vperm.xlu1 %1127, %v863_v37  }
  0x2c   :  { %1074 = vmatpush3.bf16.msra.mxu0 %v1170_v51  ;;  %716 = vmatmul.mubr.bf16.gmra.mrb[4].mxu1 %v924_v5 }
  0x2d   :  { %1102 = vmatpush3.bf16.msra.mxu1 %v1171_v52  ;;  %1075 = vmatprep.subr.bf16.mxu0 %v1172_v53 }
  0x2e   :  { %1103 = vmatprep.subr.bf16.mxu1 %v1173_v54  ;;  %756 = vmatprep.mubr.bf16.mxu0 %v919_v22 }
  0x2f   :  { %805 = vmatprep.mubr.bf16.mxu1 %v921_v24  ;;  %868 = vperm.xlu0 %1126, %v862_v38  }
  0x30   :  { %1076 = vmatpush3.bf16.msra.mxu0 %v1174_v55  ;;  %883 = vperm.xlu1 %1127, %v865_v39  }
  0x31   :  { %1104 = vmatpush3.bf16.msra.mxu1 %v1175_v56  ;;  %1077 = vmatprep.subr.bf16.mxu0 %v1176_v57 }
  0x32   :  { %1105 = vmatprep.subr.bf16.mxu1 %v1177_v58 }
  0x33   :  { %878 = vperm.xlu0 %1126, %v864_v40  }
  0x34   :  { %1078 = vmatpush3.bf16.msra.mxu0 %v1178_v59 }
  0x35   :  { %1106 = vmatpush3.bf16.msra.mxu1 %v1179_v60  ;;  %1079 = vmatprep.subr.bf16.mxu0 %v1180_v4 }
  0x36   :  { %1107 = vmatprep.subr.bf16.mxu1 %v1181_v6 }
  0x38   :  { %1080 = vmatpush3.bf16.msra.mxu0 %v1182_v7 }
  0x39   :  { %1108 = vmatpush3.bf16.msra.mxu1 %v1183_v8  ;;  %1081 = vmatprep.subr.bf16.mxu0 %v1184_v9 }
  0x3a   :  { %1109 = vmatprep.subr.bf16.mxu1 %v1185_v10 }
  0x3c   :  { %1082 = vmatpush3.bf16.msra.mxu0 %v1186_v11 }
  0x3d   :  { %1110 = vmatpush3.bf16.msra.mxu1 %v1187_v12  ;;  %1083 = vmatprep.subr.bf16.mxu0 %v1188_v13 }
  0x3e   :  { %1111 = vmatprep.subr.bf16.mxu1 %v1189_v14 }
  0x40   :  { %1084 = vmatpush3.bf16.msra.mxu0 %v1190_v15 }
  0x41   :  { %1112 = vmatpush3.bf16.msra.mxu1 %v1191_v16 }
  0x43   :  { %757 = vmatmul.mubr.bf16.vlgmr.msra.gmra.mrb[8].mxu0 %v918_v21 }
  0x44   :  { %806 = vmatmul.mubr.bf16.vlgmr.msra.gmra.mrb[8].mxu1 %v920_v23  ;;  %764 = vmatprep.mubr.bf16.mxu0 %v927_v28 }
  0x45   :  { %813 = vmatprep.mubr.bf16.mxu1 %v929_v30 }
  0x4b   :  { %765 = vmatmul.mubr.bf16.gmra.mrb[12].mxu0 %v926_v35 }
  0x4c   :  { %814 = vmatmul.mubr.bf16.gmra.mrb[12].mxu1 %v928_v36 }
  0xa1   :  { %v851_v5 = vpop.permute.xlu1 %850 }
  0xa2   :  { %v841_v6 = vpop.permute.xlu0 %840 }
  0xa6   :  { %v856_v22 = vpop.permute.xlu1 %855 }
  0xa7   :  { %v846_v23 = vpop.permute.xlu0 %845 }
  0xf6   :  { %v1029_v41 = vpop.f32.mrb[0].mxu0 }
  0xf7   :  { %v1057_v42 = vpop.f32.mrb[0].mxu1  ;;  %v1030_v43 = vpop.f32.mrb[1].mxu0 }
  0xf8   :  { %v1031_v44 = vadd.f32 %v1030_v43, %v1029_v41  ;;  %v1058_v45 = vpop.f32.mrb[1].mxu1  ;;  %v1032_v46 = vpop.f32.mrb[2].mxu0 }
  0xf9   :  { %v1059_v47 = vadd.f32 %v1058_v45, %v1057_v42  ;;  %v1060_v48 = vpop.f32.mrb[2].mxu1  ;;  %v1033_v49 = vpop.f32.mrb[3].mxu0 }
  0xfa   :  { %v1034_v50 = vadd.f32 %v1033_v49, %v1032_v46  ;;  %v1061_v51 = vpop.f32.mrb[3].mxu1  ;;  %v869_v45 = vpop.permute.xlu0 %868 }
  0xfb   :  { %v710_v52 = vadd.f32 %v1059_v47, %v1031_v44  ;;  %v1062_v53 = vadd.f32 %v1061_v51, %v1060_v48  ;;  %v874_v44 = vpop.permute.xlu1 %873 }
  0xfd   :  { %v713_v54 = vadd.f32 %v1062_v53, %v1034_v50 }
  0xfe   :  { %v1035_v55 = vpop.f32.mrb[4].mxu0 }
  0xff   :  { %v1063_v56 = vpop.f32.mrb[4].mxu1  ;;  %v1036_v57 = vpop.f32.mrb[5].mxu0 }
 0x100   :  { %v1037_v58 = vadd.f32 %v1036_v57, %v1035_v55  ;;  %v1064_v59 = vpop.f32.mrb[5].mxu1  ;;  %v1038_v60 = vpop.f32.mrb[6].mxu0 }
 0x101   :  { %v1065_v61 = vadd.f32 %v1064_v59, %v1063_v56  ;;  %v1066_v62 = vpop.f32.mrb[6].mxu1  ;;  %v1039_v63 = vpop.f32.mrb[7].mxu0 }
 0x102   :  { %v1040_v0 = vadd.f32 %v1039_v63, %v1038_v60  ;;  %v1067_v1 = vpop.f32.mrb[7].mxu1  ;;  %v879_v59 = vpop.permute.xlu0 %878 }
 0x103   :  { %v718_v2 = vadd.f32 %v1065_v61, %v1037_v58  ;;  %v1068_v3 = vadd.f32 %v1067_v1, %v1066_v62  ;;  %v884_v58 = vpop.permute.xlu1 %883 }
 0x105   :  { %v721_v4 = vadd.f32 %v1068_v3, %v1040_v0 }
 0x116   :  { %v1085_v7 = vpop.f32.mrb[8].mxu0 }
 0x117   :  { %v1113_v8 = vpop.f32.mrb[8].mxu1  ;;  %v1086_v9 = vpop.f32.mrb[9].mxu0 }
 0x118   :  { %v1114_v10 = vpop.f32.mrb[9].mxu1  ;;  %v1087_v11 = vadd.f32 %v1086_v9, %v1085_v7  ;;  %v1088_v13 = vpop.f32.mrb[10].mxu0 }
 0x119   :  { %v1115_v12 = vadd.f32 %v1114_v10, %v1113_v8  ;;  %v1116_v14 = vpop.f32.mrb[10].mxu1  ;;  %v1089_v15 = vpop.f32.mrb[11].mxu0 }
 0x11a   :  { %v1117_v16 = vpop.f32.mrb[11].mxu1  ;;  %v759_v17 = vadd.f32 %v1087_v11, %v710_v52  ;;  %v1090_v18 = vadd.f32 %v1089_v15, %v1088_v13 }
 0x11b   :  { %v1118_v19 = vadd.f32 %v1117_v16, %v1116_v14 }
 0x11c   :  { %v808_v20 = vadd.f32 %v1115_v12, %v759_v17  ;;  %v762_v21 = vadd.f32 %v1090_v18, %v713_v54 }
 0x11e   :  { %v826_v24 = vmul.f32 0.2, %v808_v20  ;;  %v811_v25 = vadd.f32 %v1118_v19, %v762_v21  ;;  %vm822_vm0 = vcmp.ge.f32.partialorder %v808_v20, 0.0  ;;  %v1091_v26 = vpop.f32.mrb[12].mxu0 }
 0x11f   :  { %v1119_v27 = vpop.f32.mrb[12].mxu1  ;;  %v1092_v28 = vpop.f32.mrb[13].mxu0 }
 0x120   :  { %v1120_v29 = vpop.f32.mrb[13].mxu1  ;;  %v827_v30 = vmul.f32 0.2, %v811_v25  ;;  %vm823_vm1 = vcmp.ge.f32.partialorder %v811_v25, 0.0  ;;  %v830_v31 = vsel %vm822_vm0, %v808_v20, %v826_v24  ;;  %v1093_v32 = vadd.f32 %v1092_v28, %v1091_v26  ;;  %v1094_v33 = vpop.f32.mrb[14].mxu0 }
 0x121   :  { %v1122_v34 = vpop.f32.mrb[14].mxu1  ;;  %v858_v35 = vmul.f32 %v841_v6, %v830_v31  ;;  %v1121_v36 = vadd.f32 %v1120_v29, %v1119_v27  ;;  %v1095_v37 = vpop.f32.mrb[15].mxu0 }
 0x122   :  { %v1123_v38 = vpop.f32.mrb[15].mxu1  ;;  %v831_v39 = vsel %vm823_vm1, %v811_v25, %v827_v30  ;;  %v767_v40 = vadd.f32 %v1093_v32, %v718_v2  ;;  %v1096_v41 = vadd.f32 %v1095_v37, %v1094_v33 }
 0x123   :  { %v1124_v42 = vadd.f32 %v1123_v38, %v1122_v34  ;;  %v859_v43 = vmul.f32 %v846_v23, %v831_v39  ;;  %v886_v49 = vadd.f32 %v869_v45, %v858_v35 }
 0x124   :  { %v816_v46 = vadd.f32 %v1121_v36, %v767_v40  ;;  %v770_v47 = vadd.f32 %v1096_v41, %v721_v4 }
 0x125   :  { %v887_v48 = vadd.f32 %v874_v44, %v859_v43 }
 0x126   :  { %v828_v50 = vmul.f32 0.2, %v816_v46  ;;  %vm824_vm2 = vcmp.ge.f32.partialorder %v816_v46, 0.0  ;;  %v819_v51 = vadd.f32 %v1124_v42, %v770_v47 }
 0x127   :  { %v1005_v52 = vpack.c.bf16 %v887_v48, %v886_v49 }
 0x128   :  { %v832_v53 = vsel %vm824_vm2, %v816_v46, %v828_v50  ;;  %vm825_vm3 = vcmp.ge.f32.partialorder %v819_v51, 0.0  ;;  %v829_v54 = vmul.f32 0.2, %v819_v51 }
 0x129   :  { %1006 = vst [vmem:[%s1492_s4] sm:$0xff] %v1005_v52   ;;  %v860_v55 = vmul.f32 %v851_v5, %v832_v53 }
 0x12a   :  { %v833_v56 = vsel %vm825_vm3, %v819_v51, %v829_v54 }
 0x12b   :  { %v861_v57 = vmul.f32 %v856_v22, %v833_v56  ;;  %v888_v60 = vadd.f32 %v879_v59, %v860_v55 }
 0x12d   :  { %v889_v61 = vadd.f32 %v884_v58, %v861_v57 }
 0x12f   :  { %v1010_v62 = vpack.c.bf16 %v889_v61, %v888_v60 }
 0x131   :  { %1012 = vst [vmem:[%s1492_s4 + $0x8] sm:$0xff] %v1010_v62  }

// kernel: patch_discriminator_forward.7
= control target key start
LH: loop header
LB: loop body
LE: loop exit
PB: predicated region body
PF: predicated region fallthrough
CT: control target
= control target key end

     0   :  { %10 = vsyncpa [#allocation3], 0  ;;  %s5198_s0 = inlined_call_operand.hbm [shape: bf16[128,2048], index: 0, kind: input, shape index: {}]   ;;  %s5199_s1 = inlined_call_operand.vmem [shape: bf16[2048,16], index: 1, kind: input, shape index: {}]   ;;  %s5200_s2 = inlined_call_operand.vmem [shape: f32[128,1], index: 2, kind: input, shape index: {}]   ;;  %s5201_s3 = inlined_call_operand.vmem [shape: f32[128,1], index: 3, kind: input, shape index: {}]   ;;  %s5202_s4 = inlined_call_operand.vmem [shape: bf16[128,8], index: 4, kind: input, shape index: {}]   ;;  %s5203_s5 = inlined_call_operand.hbm [shape: f32[1,2], index: 5, kind: output, shape index: {}]  }
   0x1   :  { %11 = vsyncpa [#allocation4], 0  ;;  %s4221_s18 = smov [#allocation2]   ;;  %s4173_s22 = scalar_lea.hbm %s5198_s0, 16384 }
   0x2   :  { %s17_s19 = sshll.u32 %s4221_s18, 4  ;;  %p4174_p0 = scmp.ne.s32.totalorder %s5198_s0, %s4173_s22  ;;  %s18_s19 = int_to_ptr.vmem [resolvable:$true] %s17_s19 }
   0x3   :  { %p4177_p1 = scmp.lt.u32.totalorder %s4173_s22, %s5198_s0 }
   0x5   :  { %p4179_p2 = pnand %p4177_p1, %p4174_p0 }
   0x7   :  { %4182 = shalt.err (!%p4179_p2)
}
   0x8   :  { %s4183_s27 = scalar_lea.vmem %s18_s19, 16384  ;;  %p4188_p4 = scmp.lt.s32.totalorder %s18_s19, %s18_s19 }
   0x9   :  { %p4184_p3 = scmp.ne.s32.totalorder %s18_s19, %s4183_s27  ;;  %p4189_p5 = scmp.lt.s32.totalorder %s4183_s27, %s4183_s27 }
   0xb   :  { %p4190_p6 = por %p4189_p5, %p4188_p4 }
   0xd   :  { %p4191_p7 = pnand %p4190_p6, %p4184_p3 }
   0xf   :  { %4194 = shalt.err (!%p4191_p7)
}
  0x10   :  { %s4222_s28 = smov 1024   ;;  %s4223_s29 = smov 64  }
  0x11   :  { %23 = dma.hbm_to_vmem [thread:$0]  %s5198_s0, 16384, %s18_s19, [#allocation3], %s4222_s28, %s4222_s28, %s4223_s29  }
  0x12   :  { %4217 = dma.done.wait [#allocation3], 16384  }
  0x13   :  { %4218 = vsyncadd [#allocation3], 4294950912  ;;  %v4041_v0 = vld [vmem:[%s5199_s1 + $0x40] sm:$0xff]   ;;  %v4045_v4 = vld [vmem:[%s5199_s1 + $0x48] sm:$0xff]   ;;  %s4225_s17 = smov 8   ;;  %vm2948_vm4 = vcmask 64512  }
  0x14   :  { %v4042_v1 = vld [vmem:[%s5199_s1 + $0xc0] sm:$0xff]   ;;  %3496 = vmatprep.subr.bf16.mxu0 %v4041_v0  ;;  %v4046_v5 = vld [vmem:[%s5199_s1 + $0xc8] sm:$0xff]   ;;  %v4049_v8 = vld [vmem:[%s5199_s1 + $0x50] sm:$0xff]   ;;  %s4227_s28 = smov [#allocation5]  }
  0x15   :  { %v4043_v2 = vld [vmem:[%s5199_s1] sm:$0xff]   ;;  %3560 = vmatprep.subr.bf16.mxu1 %v4042_v1  ;;  %v4047_v6 = vld [vmem:[%s5199_s1 + $0x8] sm:$0xff]   ;;  %v4050_v9 = vld [vmem:[%s5199_s1 + $0xd0] sm:$0xff]   ;;  %s3191_s29 = sshll.u32 %s4227_s28, 4  ;;  %s3192_s29 = int_to_ptr.vmem [resolvable:$true] %s3191_s29 }
  0x16   :  { %v4044_v3 = vld [vmem:[%s5199_s1 + $0x80] sm:$0xff]   ;;  %3497 = vmatpush3.bf16.msra.mxu0 %v4043_v2  ;;  %v4048_v7 = vld [vmem:[%s5199_s1 + $0x88] sm:$0xff]   ;;  %v4051_v10 = vld [vmem:[%s5199_s1 + $0x10] sm:$0xff]   ;;  %s4195_s30 = scalar_lea.vmem %s3192_s29, 16  ;;  %s4199_s6 = scalar_lea.vmem %s3192_s29, 32 }
  0x17   :  { %3561 = vmatpush3.bf16.msra.mxu1 %v4044_v3  ;;  %3498 = vmatprep.subr.bf16.mxu0 %v4045_v4  ;;  %v4052_v11 = vld [vmem:[%s5199_s1 + $0x90] sm:$0xff]   ;;  %v4053_v12 = vld [vmem:[%s5199_s1 + $0x58] sm:$0xff]   ;;  %v4057_v16 = vld [vmem:[%s5199_s1 + $0x60] sm:$0xff]   ;;  %p4196_p8 = scmp.ne.s32.totalorder %s3192_s29, %s4195_s30  ;;  %p4200_p9 = scmp.lt.s32.totalorder %s3192_s29, %s3192_s29 }
  0x18   :  { %3562 = vmatprep.subr.bf16.mxu1 %v4046_v5  ;;  %v4054_v13 = vld [vmem:[%s5199_s1 + $0xd8] sm:$0xff]   ;;  %v4058_v17 = vld [vmem:[%s5199_s1 + $0xe0] sm:$0xff]   ;;  %v4061_v20 = vld [vmem:[%s5199_s1 + $0x68] sm:$0xff]   ;;  %p4201_p10 = scmp.lt.s32.totalorder %s4199_s6, %s4195_s30 }
  0x19   :  { %v4055_v14 = vld [vmem:[%s5199_s1 + $0x18] sm:$0xff]   ;;  %v4059_v18 = vld [vmem:[%s5199_s1 + $0x20] sm:$0xff]   ;;  %v4062_v21 = vld [vmem:[%s5199_s1 + $0xe8] sm:$0xff]  }
  0x1a   :  { %3499 = vmatpush3.bf16.msra.mxu0 %v4047_v6  ;;  %v4056_v15 = vld [vmem:[%s5199_s1 + $0x98] sm:$0xff]   ;;  %v4060_v19 = vld [vmem:[%s5199_s1 + $0xa0] sm:$0xff]   ;;  %v4063_v22 = vld [vmem:[%s5199_s1 + $0x28] sm:$0xff]   ;;  %p4202_p11 = por %p4201_p10, %p4200_p9 }
  0x1b   :  { %3563 = vmatpush3.bf16.msra.mxu1 %v4048_v7  ;;  %3500 = vmatprep.subr.bf16.mxu0 %v4049_v8  ;;  %v4064_v23 = vld [vmem:[%s5199_s1 + $0xa8] sm:$0xff]   ;;  %v4065_v24 = vld [vmem:[%s5199_s1 + $0x70] sm:$0xff]   ;;  %v4069_v28 = vld [vmem:[%s5199_s1 + $0x78] sm:$0xff]  }
  0x1c   :  { %3564 = vmatprep.subr.bf16.mxu1 %v4050_v9  ;;  %v4066_v25 = vld [vmem:[%s5199_s1 + $0xf0] sm:$0xff]   ;;  %v4070_v29 = vld [vmem:[%s5199_s1 + $0xf8] sm:$0xff]   ;;  %v36_v32 = vld [vmem:[#allocation2] sm:$0xff]  ;;  %p4203_p12 = pnand %p4202_p11, %p4196_p8 }
  0x1d   :  { %v4067_v26 = vld [vmem:[%s5199_s1 + $0x30] sm:$0xff]   ;;  %v4071_v30 = vld [vmem:[%s5199_s1 + $0x38] sm:$0xff]   ;;  %v44_v33 = vld [vmem:[#allocation2 + $0x40] sm:$0xff] }
  0x1e   :  { %3501 = vmatpush3.bf16.msra.mxu0 %v4051_v10  ;;  %v4068_v27 = vld [vmem:[%s5199_s1 + $0xb0] sm:$0xff]   ;;  %v4072_v31 = vld [vmem:[%s5199_s1 + $0xb8] sm:$0xff]   ;;  %v37_v34 = vld [vmem:[#allocation2 + $0x8] sm:$0xff]  ;;  %v3200_v35 = vcombine.low %v36_v32, %v44_v33  ;;  %v3201_v36 = vcombine.high %v36_v32, %v44_v33 }
  0x1f   :  { %3565 = vmatpush3.bf16.msra.mxu1 %v4052_v11  ;;  %3502 = vmatprep.subr.bf16.mxu0 %v4053_v12  ;;  %v45_v37 = vld [vmem:[#allocation2 + $0x48] sm:$0xff]  ;;  %v4073_v40 = vld [vmem:[%s5199_s1 + $0x140] sm:$0xff]   ;;  %v4081_v62 = vld [vmem:[%s5199_s1 + $0x150] sm:$0xff]  }
  0x20   :  { %3566 = vmatprep.subr.bf16.mxu1 %v4054_v13  ;;  %v3202_v38 = vcombine.low %v37_v34, %v45_v37  ;;  %v3203_v39 = vcombine.high %v37_v34, %v45_v37  ;;  %1860 = vmatprep.mubr.bf16.mxu0 %v3201_v36  ;;  %v4074_v41 = vld [vmem:[%s5199_s1 + $0x100] sm:$0xff]   ;;  %v53_v47 = vld [vmem:[#allocation2 + $0x88] sm:$0xff]  ;;  %v4082_v63 = vld [vmem:[%s5199_s1 + $0x110] sm:$0xff]  }
  0x21   :  { %v4075_v42 = vld [vmem:[%s5199_s1 + $0x1c0] sm:$0xff]   ;;  %v61_v48 = vld [vmem:[#allocation2 + $0xc8] sm:$0xff]  ;;  %v4083_v0 = vld [vmem:[%s5199_s1 + $0x1d0] sm:$0xff]  }
  0x22   :  { %3503 = vmatpush3.bf16.msra.mxu0 %v4055_v14  ;;  %1957 = vmatprep.mubr.bf16.mxu1 %v3203_v39  ;;  %v4076_v43 = vld [vmem:[%s5199_s1 + $0x180] sm:$0xff]   ;;  %v3219_v49 = vcombine.high %v53_v47, %v61_v48  ;;  %v4077_v50 = vld [vmem:[%s5199_s1 + $0x148] sm:$0xff]   ;;  %v3218_v53 = vcombine.low %v53_v47, %v61_v48  ;;  %v4084_v1 = vld [vmem:[%s5199_s1 + $0x190] sm:$0xff]  }
  0x23   :  { %3567 = vmatpush3.bf16.msra.mxu1 %v4056_v15  ;;  %3504 = vmatprep.subr.bf16.mxu0 %v4057_v16  ;;  %v52_v44 = vld [vmem:[#allocation2 + $0x80] sm:$0xff]  ;;  %v4078_v52 = vld [vmem:[%s5199_s1 + $0x108] sm:$0xff]   ;;  %v4085_v10 = vld [vmem:[%s5199_s1 + $0x158] sm:$0xff]  }
  0x24   :  { %3568 = vmatprep.subr.bf16.mxu1 %v4058_v17  ;;  %v60_v45 = vld [vmem:[#allocation2 + $0xc0] sm:$0xff]  ;;  %v4079_v54 = vld [vmem:[%s5199_s1 + $0x1c8] sm:$0xff]   ;;  %v4086_v11 = vld [vmem:[%s5199_s1 + $0x118] sm:$0xff]  }
  0x25   :  { %v3217_v46 = vcombine.high %v52_v44, %v60_v45  ;;  %v3216_v51 = vcombine.low %v52_v44, %v60_v45  ;;  %v4080_v55 = vld [vmem:[%s5199_s1 + $0x188] sm:$0xff]   ;;  %v68_v56 = vld [vmem:[#allocation2 + $0x100] sm:$0xff]  ;;  %v4087_v12 = vld [vmem:[%s5199_s1 + $0x1d8] sm:$0xff]  }
  0x26   :  { %3505 = vmatpush3.bf16.msra.mxu0 %v4059_v18  ;;  %v76_v57 = vld [vmem:[#allocation2 + $0x140] sm:$0xff]  ;;  %v69_v58 = vld [vmem:[#allocation2 + $0x108] sm:$0xff]  ;;  %v4088_v13 = vld [vmem:[%s5199_s1 + $0x198] sm:$0xff]  }
  0x27   :  { %3569 = vmatpush3.bf16.msra.mxu1 %v4060_v19  ;;  %3506 = vmatprep.subr.bf16.mxu0 %v4061_v20  ;;  %v77_v59 = vld [vmem:[#allocation2 + $0x148] sm:$0xff]  ;;  %v3233_v60 = vcombine.high %v68_v56, %v76_v57  ;;  %v3232_v2 = vcombine.low %v68_v56, %v76_v57  ;;  %v84_v3 = vld [vmem:[#allocation2 + $0x180] sm:$0xff]  ;;  %v4098_v39 = vld [vmem:[%s5199_s1 + $0x130] sm:$0xff]  }
  0x28   :  { %3570 = vmatprep.subr.bf16.mxu1 %v4062_v21  ;;  %v3235_v61 = vcombine.high %v69_v58, %v77_v59  ;;  %v92_v4 = vld [vmem:[#allocation2 + $0x1c0] sm:$0xff]  ;;  %v85_v5 = vld [vmem:[#allocation2 + $0x188] sm:$0xff]  ;;  %v3234_v6 = vcombine.low %v69_v58, %v77_v59  ;;  %v4102_v48 = vld [vmem:[%s5199_s1 + $0x138] sm:$0xff]  }
  0x29   :  { %v3249_v7 = vcombine.high %v84_v3, %v92_v4  ;;  %v93_v8 = vld [vmem:[#allocation2 + $0x1c8] sm:$0xff]  ;;  %v100_v14 = vld [vmem:[#allocation2 + $0x200] sm:$0xff]  ;;  %v3248_v19 = vcombine.low %v84_v3, %v92_v4  ;;  %v47_v3 = vld [vmem:[#allocation2 + $0x58] sm:$0xff] }
  0x2a   :  { %3507 = vmatpush3.bf16.msra.mxu0 %v4063_v22  ;;  %v3251_v9 = vcombine.high %v85_v5, %v93_v8  ;;  %v108_v15 = vld [vmem:[#allocation2 + $0x240] sm:$0xff]  ;;  %v101_v16 = vld [vmem:[#allocation2 + $0x208] sm:$0xff]  ;;  %v3250_v21 = vcombine.low %v85_v5, %v93_v8  ;;  %v54_v8 = vld [vmem:[#allocation2 + $0x90] sm:$0xff] }
  0x2b   :  { %3571 = vmatpush3.bf16.msra.mxu1 %v4064_v23  ;;  %3508 = vmatprep.subr.bf16.mxu0 %v4065_v24  ;;  %v109_v17 = vld [vmem:[#allocation2 + $0x248] sm:$0xff]  ;;  %v4089_v18 = vld [vmem:[%s5199_s1 + $0x160] sm:$0xff]   ;;  %v3265_v22 = vcombine.high %v100_v14, %v108_v15  ;;  %v3264_v34 = vcombine.low %v100_v14, %v108_v15 }
  0x2c   :  { %3572 = vmatprep.subr.bf16.mxu1 %v4066_v25  ;;  %v4090_v20 = vld [vmem:[%s5199_s1 + $0x120] sm:$0xff]   ;;  %v3267_v24 = vcombine.high %v101_v16, %v109_v17  ;;  %v4095_v32 = vld [vmem:[%s5199_s1 + $0x1e8] sm:$0xff]  }
  0x2d   :  { %v4091_v23 = vld [vmem:[%s5199_s1 + $0x1e0] sm:$0xff]   ;;  %v4096_v33 = vld [vmem:[%s5199_s1 + $0x1a8] sm:$0xff]  }
  0x2e   :  { %3509 = vmatpush3.bf16.msra.mxu0 %v4067_v26  ;;  %v4092_v25 = vld [vmem:[%s5199_s1 + $0x1a0] sm:$0xff]   ;;  %v133_v44 = vld [vmem:[#allocation2 + $0x308] sm:$0xff] }
  0x2f   :  { %3573 = vmatpush3.bf16.msra.mxu1 %v4068_v27  ;;  %3510 = vmatprep.subr.bf16.mxu0 %v4069_v28  ;;  %v116_v26 = vld [vmem:[#allocation2 + $0x280] sm:$0xff]  ;;  %v4093_v28 = vld [vmem:[%s5199_s1 + $0x168] sm:$0xff]  }
  0x30   :  { %3574 = vmatprep.subr.bf16.mxu1 %v4070_v29  ;;  %v124_v27 = vld [vmem:[#allocation2 + $0x2c0] sm:$0xff]  ;;  %v117_v29 = vld [vmem:[#allocation2 + $0x288] sm:$0xff] }
  0x31   :  { %v3281_v36 = vcombine.high %v116_v26, %v124_v27  ;;  %v141_v45 = vld [vmem:[#allocation2 + $0x348] sm:$0xff]  ;;  %v3280_v47 = vcombine.low %v116_v26, %v124_v27  ;;  %v4105_v56 = vld [vmem:[%s5199_s1 + $0x240] sm:$0xff]   ;;  %v4113_v26 = vld [vmem:[%s5199_s1 + $0x250] sm:$0xff]  }
  0x32   :  { %3511 = vmatpush3.bf16.msra.mxu0 %v4071_v30  ;;  %v125_v30 = vld [vmem:[#allocation2 + $0x2c8] sm:$0xff]  ;;  %v4107_v58 = vld [vmem:[%s5199_s1 + $0x2c0] sm:$0xff]   ;;  %v4115_v27 = vld [vmem:[%s5199_s1 + $0x2d0] sm:$0xff]  }
  0x33   :  { %3575 = vmatpush3.bf16.msra.mxu1 %v4072_v31  ;;  %3624 = vmatprep.subr.bf16.mxu0 %v4073_v40  ;;  %v4094_v31 = vld [vmem:[%s5199_s1 + $0x128] sm:$0xff]   ;;  %v3283_v37 = vcombine.high %v117_v29, %v125_v30  ;;  %v4099_v40 = vld [vmem:[%s5199_s1 + $0x1f0] sm:$0xff]   ;;  %v4108_v15 = vld [vmem:[%s5199_s1 + $0x280] sm:$0xff]  }
  0x34   :  { %3688 = vmatprep.subr.bf16.mxu1 %v4075_v42  ;;  %v140_v42 = vld [vmem:[#allocation2 + $0x340] sm:$0xff]  ;;  %v149_v57 = vld [vmem:[#allocation2 + $0x388] sm:$0xff] }
  0x35   :  { %1861 = vmatmul.mubr.bf16.vlgmr.msra.gmra.mrb[0].mxu0 %v3200_v35  ;;  %v3266_v35 = vcombine.low %v101_v16, %v109_v17  ;;  %v157_v59 = vld [vmem:[#allocation2 + $0x3c8] sm:$0xff] }
  0x36   :  { %1958 = vmatmul.mubr.bf16.vlgmr.msra.gmra.mrb[0].mxu1 %v3202_v38  ;;  %3625 = vmatpush3.bf16.msra.mxu0 %v4074_v41  ;;  %v4097_v38 = vld [vmem:[%s5199_s1 + $0x170] sm:$0xff]   ;;  %v132_v41 = vld [vmem:[#allocation2 + $0x300] sm:$0xff]  ;;  %v3314_v5 = vcombine.low %v149_v57, %v157_v59  ;;  %v4109_v17 = vld [vmem:[%s5199_s1 + $0x248] sm:$0xff]  }
  0x37   :  { %3689 = vmatpush3.bf16.msra.mxu1 %v4076_v43  ;;  %1868 = vmatprep.mubr.bf16.mxu0 %v3217_v46  ;;  %v4100_v43 = vld [vmem:[%s5199_s1 + $0x1b0] sm:$0xff]   ;;  %v4101_v46 = vld [vmem:[%s5199_s1 + $0x178] sm:$0xff]  }
  0x38   :  { %1965 = vmatprep.mubr.bf16.mxu1 %v3219_v49  ;;  %3626 = vmatprep.subr.bf16.mxu0 %v4077_v50  ;;  %v3282_v49 = vcombine.low %v117_v29, %v125_v30  ;;  %v3297_v50 = vcombine.high %v132_v41, %v140_v42  ;;  %v4224_v29 = vmov 0  }
  0x39   :  { %3690 = vmatprep.subr.bf16.mxu1 %v4079_v54  ;;  %v148_v54 = vld [vmem:[#allocation2 + $0x380] sm:$0xff]  ;;  %4019 = vset.pattern.permute.xlu0 %v4224_v29 }
  0x3a   :  { %3627 = vmatpush3.bf16.msra.mxu0 %v4078_v52  ;;  %v3299_v52 = vcombine.high %v133_v44, %v141_v45  ;;  %4020 = vset.pattern.permute.xlu1 %v4224_v29 }
  0x3b   :  { %3691 = vmatpush3.bf16.msra.mxu1 %v4080_v55  ;;  %3628 = vmatprep.subr.bf16.mxu0 %v4081_v62  ;;  %v156_v55 = vld [vmem:[#allocation2 + $0x3c0] sm:$0xff] }
  0x3c   :  { %3692 = vmatprep.subr.bf16.mxu1 %v4083_v0  ;;  %v3313_v62 = vcombine.high %v148_v54, %v156_v55  ;;  %v38_v0 = vld [vmem:[#allocation2 + $0x10] sm:$0xff]  ;;  %v3312_v4 = vcombine.low %v148_v54, %v156_v55  ;;  %v103_v55 = vld [vmem:[#allocation2 + $0x218] sm:$0xff] }
  0x3d   :  { %1869 = vmatmul.mubr.bf16.gmra.mrb[4].mxu0 %v3216_v51  ;;  %v4103_v51 = vld [vmem:[%s5199_s1 + $0x1f8] sm:$0xff]   ;;  %v110_v54 = vld [vmem:[#allocation2 + $0x250] sm:$0xff] }
  0x3e   :  { %1966 = vmatmul.mubr.bf16.gmra.mrb[4].mxu1 %v3218_v53  ;;  %1876 = vmatprep.mubr.bf16.mxu0 %v3233_v60  ;;  %v4104_v53 = vld [vmem:[%s5199_s1 + $0x1b8] sm:$0xff]   ;;  %v3296_v60 = vcombine.low %v132_v41, %v140_v42 }
  0x3f   :  { %1973 = vmatprep.mubr.bf16.mxu1 %v3235_v61  ;;  %3629 = vmatpush3.bf16.msra.mxu0 %v4082_v63  ;;  %v3298_v61 = vcombine.low %v133_v44, %v141_v45  ;;  %v3315_v63 = vcombine.high %v149_v57, %v157_v59  ;;  %v4118_v41 = vld [vmem:[%s5199_s1 + $0x218] sm:$0xff]   ;;  %v4123_v45 = vld [vmem:[%s5199_s1 + $0x2e0] sm:$0xff]   ;;  %v4126_v57 = vld [vmem:[%s5199_s1 + $0x228] sm:$0xff]  }
  0x40   :  { %3693 = vmatpush3.bf16.msra.mxu1 %v4084_v1  ;;  %3630 = vmatprep.subr.bf16.mxu0 %v4085_v10  ;;  %v46_v1 = vld [vmem:[#allocation2 + $0x50] sm:$0xff]  ;;  %v4120_v42 = vld [vmem:[%s5199_s1 + $0x298] sm:$0xff]  }
  0x41   :  { %3694 = vmatprep.subr.bf16.mxu1 %v4087_v12  ;;  %v3204_v10 = vcombine.low %v38_v0, %v46_v1  ;;  %v55_v12 = vld [vmem:[#allocation2 + $0x98] sm:$0xff]  ;;  %v4129_v59 = vld [vmem:[%s5199_s1 + $0x270] sm:$0xff]  }
  0x43   :  { %3631 = vmatpush3.bf16.msra.mxu0 %v4086_v11  ;;  %v4106_v11 = vld [vmem:[%s5199_s1 + $0x200] sm:$0xff]  }
  0x44   :  { %3695 = vmatpush3.bf16.msra.mxu1 %v4088_v13  ;;  %3632 = vmatprep.subr.bf16.mxu0 %v4089_v18  ;;  %v63_v13 = vld [vmem:[#allocation2 + $0xd8] sm:$0xff] }
  0x45   :  { %1877 = vmatmul.mubr.bf16.gmra.mrb[8].mxu0 %v3232_v2  ;;  %3696 = vmatprep.subr.bf16.mxu1 %v4091_v23  ;;  %v39_v2 = vld [vmem:[#allocation2 + $0x18] sm:$0xff]  ;;  %v3223_v18 = vcombine.high %v55_v12, %v63_v13  ;;  %v78_v23 = vld [vmem:[#allocation2 + $0x150] sm:$0xff]  ;;  %v3222_v30 = vcombine.low %v55_v12, %v63_v13  ;;  %v4139_v13 = vld [vmem:[%s5199_s1 + $0x3c0] sm:$0xff]  }
  0x46   :  { %1974 = vmatmul.mubr.bf16.gmra.mrb[8].mxu1 %v3234_v6  ;;  %1884 = vmatprep.mubr.bf16.mxu0 %v3249_v7  ;;  %v3205_v6 = vcombine.high %v38_v0, %v46_v1  ;;  %v3207_v7 = vcombine.high %v39_v2, %v47_v3  ;;  %v3206_v14 = vcombine.low %v39_v2, %v47_v3  ;;  %v4130_v1 = vld [vmem:[%s5199_s1 + $0x230] sm:$0xff]   ;;  %v4133_v3 = vld [vmem:[%s5199_s1 + $0x278] sm:$0xff]  }
  0x47   :  { %1981 = vmatprep.mubr.bf16.mxu1 %v3251_v9  ;;  %3633 = vmatpush3.bf16.msra.mxu0 %v4090_v20  ;;  %v62_v9 = vld [vmem:[#allocation2 + $0xd0] sm:$0xff]  ;;  %v4111_v20 = vld [vmem:[%s5199_s1 + $0x2c8] sm:$0xff]  }
  0x48   :  { %3697 = vmatpush3.bf16.msra.mxu1 %v4092_v25  ;;  %3634 = vmatprep.subr.bf16.mxu0 %v4093_v28  ;;  %v3221_v16 = vcombine.high %v54_v8, %v62_v9  ;;  %v79_v25 = vld [vmem:[#allocation2 + $0x158] sm:$0xff]  ;;  %v3220_v28 = vcombine.low %v54_v8, %v62_v9  ;;  %v4132_v2 = vld [vmem:[%s5199_s1 + $0x2b0] sm:$0xff]  }
  0x49   :  { %3698 = vmatprep.subr.bf16.mxu1 %v4095_v32  ;;  %v127_v8 = vld [vmem:[#allocation2 + $0x2d8] sm:$0xff] }
  0x4a   :  { %v4134_v9 = vld [vmem:[%s5199_s1 + $0x238] sm:$0xff]  }
  0x4b   :  { %3635 = vmatpush3.bf16.msra.mxu0 %v4094_v31 }
  0x4c   :  { %3699 = vmatpush3.bf16.msra.mxu1 %v4096_v33  ;;  %3636 = vmatprep.subr.bf16.mxu0 %v4097_v38  ;;  %v4114_v33 = vld [vmem:[%s5199_s1 + $0x210] sm:$0xff]   ;;  %v4119_v38 = vld [vmem:[%s5199_s1 + $0x2d8] sm:$0xff]  }
  0x4d   :  { %1885 = vmatmul.mubr.bf16.gmra.mrb[12].mxu0 %v3248_v19  ;;  %3700 = vmatprep.subr.bf16.mxu1 %v4099_v40  ;;  %v4110_v19 = vld [vmem:[%s5199_s1 + $0x208] sm:$0xff]   ;;  %v95_v40 = vld [vmem:[#allocation2 + $0x1d8] sm:$0xff] }
  0x4e   :  { %1982 = vmatmul.mubr.bf16.gmra.mrb[12].mxu1 %v3250_v21  ;;  %1892 = vmatprep.mubr.bf16.mxu0 %v3265_v22  ;;  %v4112_v21 = vld [vmem:[%s5199_s1 + $0x288] sm:$0xff]   ;;  %v70_v22 = vld [vmem:[#allocation2 + $0x110] sm:$0xff] }
  0x4f   :  { %1989 = vmatprep.mubr.bf16.mxu1 %v3267_v24  ;;  %3637 = vmatpush3.bf16.msra.mxu0 %v4098_v39  ;;  %v71_v24 = vld [vmem:[#allocation2 + $0x118] sm:$0xff]  ;;  %v3237_v31 = vcombine.high %v70_v22, %v78_v23  ;;  %v3236_v44 = vcombine.low %v70_v22, %v78_v23 }
  0x50   :  { %3701 = vmatpush3.bf16.msra.mxu1 %v4100_v43  ;;  %3638 = vmatprep.subr.bf16.mxu0 %v4101_v46  ;;  %v3239_v32 = vcombine.high %v71_v24, %v79_v25  ;;  %v87_v39 = vld [vmem:[#allocation2 + $0x198] sm:$0xff]  ;;  %v4121_v43 = vld [vmem:[%s5199_s1 + $0x260] sm:$0xff]   ;;  %v3238_v46 = vcombine.low %v71_v24, %v79_v25  ;;  %v150_v25 = vld [vmem:[#allocation2 + $0x390] sm:$0xff] }
  0x51   :  { %3702 = vmatprep.subr.bf16.mxu1 %v4103_v51  ;;  %v4125_v51 = vld [vmem:[%s5199_s1 + $0x268] sm:$0xff]  }
  0x53   :  { %3639 = vmatpush3.bf16.msra.mxu0 %v4102_v48  ;;  %v4122_v48 = vld [vmem:[%s5199_s1 + $0x220] sm:$0xff]  }
  0x54   :  { %3703 = vmatpush3.bf16.msra.mxu1 %v4104_v53  ;;  %3752 = vmatprep.subr.bf16.mxu0 %v4105_v56  ;;  %v4127_v53 = vld [vmem:[%s5199_s1 + $0x2e8] sm:$0xff]   ;;  %v111_v56 = vld [vmem:[#allocation2 + $0x258] sm:$0xff] }
  0x55   :  { %1893 = vmatmul.mubr.bf16.gmra.mrb[16].mxu0 %v3264_v34  ;;  %3816 = vmatprep.subr.bf16.mxu1 %v4107_v58  ;;  %v4116_v34 = vld [vmem:[%s5199_s1 + $0x290] sm:$0xff]   ;;  %v4128_v58 = vld [vmem:[%s5199_s1 + $0x2a8] sm:$0xff]   ;;  %v3271_v0 = vcombine.high %v103_v55, %v111_v56 }
  0x56   :  { %1990 = vmatmul.mubr.bf16.gmra.mrb[16].mxu1 %v3266_v35  ;;  %1900 = vmatprep.mubr.bf16.mxu0 %v3281_v36  ;;  %v4117_v35 = vld [vmem:[%s5199_s1 + $0x258] sm:$0xff]   ;;  %v86_v36 = vld [vmem:[#allocation2 + $0x190] sm:$0xff] }
  0x57   :  { %1997 = vmatprep.mubr.bf16.mxu1 %v3283_v37  ;;  %v94_v37 = vld [vmem:[#allocation2 + $0x1d0] sm:$0xff] }
  0x5d   :  { %1901 = vmatmul.mubr.bf16.gmra.mrb[20].mxu0 %v3280_v47  ;;  %v3253_v47 = vcombine.high %v86_v36, %v94_v37 }
  0x5e   :  { %1998 = vmatmul.mubr.bf16.gmra.mrb[20].mxu1 %v3282_v49  ;;  %1908 = vmatprep.mubr.bf16.mxu0 %v3297_v50  ;;  %v3255_v49 = vcombine.high %v87_v39, %v95_v40  ;;  %v4124_v50 = vld [vmem:[%s5199_s1 + $0x2a0] sm:$0xff]  }
  0x5f   :  { %2005 = vmatprep.mubr.bf16.mxu1 %v3299_v52  ;;  %v102_v52 = vld [vmem:[#allocation2 + $0x210] sm:$0xff] }
  0x60   :  { %v3268_v12 = vcombine.low %v102_v52, %v110_v54 }
  0x65   :  { %1909 = vmatmul.mubr.bf16.gmra.mrb[24].mxu0 %v3296_v60  ;;  %v3252_v60 = vcombine.low %v86_v36, %v94_v37  ;;  %v49_v36 = vld [vmem:[#allocation2 + $0x68] sm:$0xff] }
  0x66   :  { %2006 = vmatmul.mubr.bf16.gmra.mrb[24].mxu1 %v3298_v61  ;;  %1916 = vmatprep.mubr.bf16.mxu0 %v3313_v62  ;;  %v4131_v61 = vld [vmem:[%s5199_s1 + $0x2f0] sm:$0xff]   ;;  %v3254_v62 = vcombine.low %v87_v39, %v95_v40 }
  0x67   :  { %2013 = vmatprep.mubr.bf16.mxu1 %v3315_v63  ;;  %v3269_v63 = vcombine.high %v102_v52, %v110_v54  ;;  %v4141_v52 = vld [vmem:[%s5199_s1 + $0x348] sm:$0xff]  }
  0x68   :  { %v4142_v54 = vld [vmem:[%s5199_s1 + $0x308] sm:$0xff]  }
  0x6d   :  { %1917 = vmatmul.mubr.bf16.gmra.mrb[28].mxu0 %v3312_v4  ;;  %v118_v4 = vld [vmem:[#allocation2 + $0x290] sm:$0xff] }
  0x6e   :  { %2014 = vmatmul.mubr.bf16.gmra.mrb[28].mxu1 %v3314_v5  ;;  %2054 = vmatprep.mubr.bf16.mxu0 %v3205_v6  ;;  %v126_v5 = vld [vmem:[#allocation2 + $0x2d0] sm:$0xff]  ;;  %v4135_v6 = vld [vmem:[%s5199_s1 + $0x2f8] sm:$0xff]  }
  0x6f   :  { %2151 = vmatprep.mubr.bf16.mxu1 %v3207_v7  ;;  %v119_v7 = vld [vmem:[#allocation2 + $0x298] sm:$0xff] }
  0x70   :  { %v3286_v22 = vcombine.low %v119_v7, %v127_v8 }
  0x75   :  { %2055 = vmatmul.mubr.bf16.vlgmr.msra.gmra.mrb[32].mxu0 %v3204_v10  ;;  %v4136_v10 = vld [vmem:[%s5199_s1 + $0x2b8] sm:$0xff]  }
  0x76   :  { %2152 = vmatmul.mubr.bf16.vlgmr.msra.gmra.mrb[32].mxu1 %v3206_v14  ;;  %3753 = vmatpush3.bf16.msra.mxu0 %v4106_v11  ;;  %v4137_v11 = vld [vmem:[%s5199_s1 + $0x340] sm:$0xff]   ;;  %v3270_v14 = vcombine.low %v103_v55, %v111_v56  ;;  %v4143_v55 = vld [vmem:[%s5199_s1 + $0x3c8] sm:$0xff]  }
  0x77   :  { %3817 = vmatpush3.bf16.msra.mxu1 %v4108_v15  ;;  %2062 = vmatprep.mubr.bf16.mxu0 %v3221_v16  ;;  %v3285_v15 = vcombine.high %v118_v4, %v126_v5  ;;  %v3287_v16 = vcombine.high %v119_v7, %v127_v8  ;;  %v4144_v56 = vld [vmem:[%s5199_s1 + $0x388] sm:$0xff]   ;;  %v4148_v7 = vld [vmem:[%s5199_s1 + $0x390] sm:$0xff]   ;;  %v4149_v8 = vld [vmem:[%s5199_s1 + $0x358] sm:$0xff]  }
  0x78   :  { %2159 = vmatprep.mubr.bf16.mxu1 %v3223_v18  ;;  %3754 = vmatprep.subr.bf16.mxu0 %v4109_v17  ;;  %v134_v17 = vld [vmem:[#allocation2 + $0x310] sm:$0xff] }
  0x79   :  { %3818 = vmatprep.subr.bf16.mxu1 %v4111_v20  ;;  %v142_v18 = vld [vmem:[#allocation2 + $0x350] sm:$0xff]  ;;  %v143_v20 = vld [vmem:[#allocation2 + $0x358] sm:$0xff] }
  0x7a   :  { %3755 = vmatpush3.bf16.msra.mxu0 %v4110_v19  ;;  %v135_v19 = vld [vmem:[#allocation2 + $0x318] sm:$0xff]  ;;  %v3301_v23 = vcombine.high %v134_v17, %v142_v18  ;;  %v3300_v29 = vcombine.low %v134_v17, %v142_v18  ;;  %v4153_v18 = vld [vmem:[%s5199_s1 + $0x360] sm:$0xff]  }
  0x7b   :  { %3819 = vmatpush3.bf16.msra.mxu1 %v4112_v21  ;;  %3756 = vmatprep.subr.bf16.mxu0 %v4113_v26  ;;  %v3284_v21 = vcombine.low %v118_v4, %v126_v5  ;;  %v3303_v24 = vcombine.high %v135_v19, %v143_v20  ;;  %v158_v26 = vld [vmem:[#allocation2 + $0x3d0] sm:$0xff]  ;;  %v2764_v4 = vld [vmem:[%s5201_s3] sm:$0xff]  ;;  %v4152_v17 = vld [vmem:[%s5199_s1 + $0x398] sm:$0xff]  }
  0x7c   :  { %3820 = vmatprep.subr.bf16.mxu1 %v4115_v27  ;;  %v151_v27 = vld [vmem:[#allocation2 + $0x398] sm:$0xff]  ;;  %v3316_v37 = vcombine.low %v150_v25, %v158_v26 }
  0x7d   :  { %2063 = vmatmul.mubr.bf16.gmra.mrb[36].mxu0 %v3220_v28  ;;  %v159_v28 = vld [vmem:[#allocation2 + $0x3d8] sm:$0xff] }
  0x7e   :  { %2160 = vmatmul.mubr.bf16.gmra.mrb[36].mxu1 %v3222_v30  ;;  %2070 = vmatprep.mubr.bf16.mxu0 %v3237_v31  ;;  %v3302_v30 = vcombine.low %v135_v19, %v143_v20  ;;  %v3317_v31 = vcombine.high %v150_v25, %v158_v26  ;;  %v4155_v20 = vld [vmem:[%s5199_s1 + $0x3e0] sm:$0xff]   ;;  %v4157_v26 = vld [vmem:[%s5199_s1 + $0x368] sm:$0xff]  }
  0x7f   :  { %2167 = vmatprep.mubr.bf16.mxu1 %v3239_v32  ;;  %3757 = vmatpush3.bf16.msra.mxu0 %v4114_v33  ;;  %v3319_v32 = vcombine.high %v151_v27, %v159_v28  ;;  %v40_v33 = vld [vmem:[#allocation2 + $0x20] sm:$0xff] }
  0x80   :  { %3821 = vmatpush3.bf16.msra.mxu1 %v4116_v34  ;;  %3758 = vmatprep.subr.bf16.mxu0 %v4117_v35  ;;  %v48_v34 = vld [vmem:[#allocation2 + $0x60] sm:$0xff]  ;;  %v41_v35 = vld [vmem:[#allocation2 + $0x28] sm:$0xff] }
  0x81   :  { %3822 = vmatprep.subr.bf16.mxu1 %v4119_v38  ;;  %v3318_v38 = vcombine.low %v151_v27, %v159_v28  ;;  %v3209_v39 = vcombine.high %v40_v33, %v48_v34  ;;  %v3211_v40 = vcombine.high %v41_v35, %v49_v36  ;;  %v4156_v25 = vld [vmem:[%s5199_s1 + $0x3a0] sm:$0xff]   ;;  %v4159_v27 = vld [vmem:[%s5199_s1 + $0x3e8] sm:$0xff]  }
  0x82   :  { %v104_v28 = vld [vmem:[#allocation2 + $0x220] sm:$0xff] }
  0x83   :  { %3759 = vmatpush3.bf16.msra.mxu0 %v4118_v41  ;;  %v56_v41 = vld [vmem:[#allocation2 + $0xa0] sm:$0xff] }
  0x84   :  { %3823 = vmatpush3.bf16.msra.mxu1 %v4120_v42  ;;  %3760 = vmatprep.subr.bf16.mxu0 %v4121_v43  ;;  %v64_v42 = vld [vmem:[#allocation2 + $0xe0] sm:$0xff]  ;;  %v3208_v43 = vcombine.low %v40_v33, %v48_v34  ;;  %v113_v34 = vld [vmem:[#allocation2 + $0x268] sm:$0xff] }
  0x85   :  { %2071 = vmatmul.mubr.bf16.gmra.mrb[40].mxu0 %v3236_v44  ;;  %3824 = vmatprep.subr.bf16.mxu1 %v4123_v45  ;;  %v57_v44 = vld [vmem:[#allocation2 + $0xa8] sm:$0xff]  ;;  %v2656_v33 = vld [vmem:[%s5200_s2 + $0x20] sm:$0xff] }
  0x86   :  { %2168 = vmatmul.mubr.bf16.gmra.mrb[40].mxu1 %v3238_v46  ;;  %2078 = vmatprep.mubr.bf16.mxu0 %v3253_v47  ;;  %v65_v45 = vld [vmem:[#allocation2 + $0xe8] sm:$0xff]  ;;  %v3210_v46 = vcombine.low %v41_v35, %v49_v36  ;;  %v4138_v47 = vld [vmem:[%s5199_s1 + $0x300] sm:$0xff]   ;;  %v4161_v36 = vld [vmem:[%s5199_s1 + $0x370] sm:$0xff]  }
  0x87   :  { %2175 = vmatprep.mubr.bf16.mxu1 %v3255_v49  ;;  %3761 = vmatpush3.bf16.msra.mxu0 %v4122_v48  ;;  %v4140_v48 = vld [vmem:[%s5199_s1 + $0x380] sm:$0xff]   ;;  %v3225_v49 = vcombine.high %v56_v41, %v64_v42  ;;  %v4160_v35 = vld [vmem:[%s5199_s1 + $0x3a8] sm:$0xff]  }
  0x88   :  { %3825 = vmatpush3.bf16.msra.mxu1 %v4124_v50  ;;  %3762 = vmatprep.subr.bf16.mxu0 %v4125_v51  ;;  %v2652_v50 = vld [vmem:[%s5200_s2] sm:$0xff]  ;;  %v3227_v51 = vcombine.high %v57_v44, %v65_v45 }
  0x89   :  { %3826 = vmatprep.subr.bf16.mxu1 %v4127_v53  ;;  %2670 = vperm.xlu0 %4019, %v2652_v50   ;;  %v2654_v53 = vld [vmem:[%s5200_s2 + $0x10] sm:$0xff]  ;;  %v2768_v50 = vld [vmem:[%s5201_s3 + $0x20] sm:$0xff] }
  0x8a   :  { %2680 = vperm.xlu1 %4020, %v2654_v53   ;;  %v4168_v53 = vld [vmem:[%s5199_s1 + $0x3b8] sm:$0xff]  }
  0x8b   :  { %3763 = vmatpush3.bf16.msra.mxu0 %v4126_v57  ;;  %v72_v57 = vld [vmem:[#allocation2 + $0x120] sm:$0xff] }
  0x8c   :  { %3827 = vmatpush3.bf16.msra.mxu1 %v4128_v58  ;;  %3764 = vmatprep.subr.bf16.mxu0 %v4129_v59  ;;  %v2653_v58 = vld [vmem:[%s5200_s2 + $0x8] sm:$0xff]  ;;  %v80_v59 = vld [vmem:[#allocation2 + $0x160] sm:$0xff] }
  0x8d   :  { %2079 = vmatmul.mubr.bf16.gmra.mrb[44].mxu0 %v3252_v60  ;;  %3828 = vmatprep.subr.bf16.mxu1 %v4131_v61  ;;  %v4145_v60 = vld [vmem:[%s5199_s1 + $0x350] sm:$0xff]   ;;  %v2655_v61 = vld [vmem:[%s5200_s2 + $0x18] sm:$0xff]  ;;  %v3240_v19 = vcombine.low %v72_v57, %v80_v59 }
  0x8e   :  { %2176 = vmatmul.mubr.bf16.gmra.mrb[44].mxu1 %v3254_v62  ;;  %2086 = vmatprep.mubr.bf16.mxu0 %v3269_v63  ;;  %v73_v62 = vld [vmem:[#allocation2 + $0x128] sm:$0xff] }
  0x8f   :  { %2183 = vmatprep.mubr.bf16.mxu1 %v3271_v0  ;;  %3765 = vmatpush3.bf16.msra.mxu0 %v4130_v1  ;;  %v81_v63 = vld [vmem:[#allocation2 + $0x168] sm:$0xff]  ;;  %v4147_v0 = vld [vmem:[%s5199_s1 + $0x3d0] sm:$0xff]   ;;  %v3224_v1 = vcombine.low %v56_v41, %v64_v42 }
  0x90   :  { %3829 = vmatpush3.bf16.msra.mxu1 %v4132_v2  ;;  %3766 = vmatprep.subr.bf16.mxu0 %v4133_v3  ;;  %v3226_v2 = vcombine.low %v57_v44, %v65_v45  ;;  %v3241_v3 = vcombine.high %v72_v57, %v80_v59  ;;  %v3243_v5 = vcombine.high %v73_v62, %v81_v63  ;;  %v4162_v42 = vld [vmem:[%s5199_s1 + $0x330] sm:$0xff]   ;;  %v4165_v44 = vld [vmem:[%s5199_s1 + $0x378] sm:$0xff]   ;;  %v2769_v57 = vld [vmem:[%s5201_s3 + $0x28] sm:$0xff] }
  0x91   :  { %3830 = vmatprep.subr.bf16.mxu1 %v4135_v6  ;;  %2675 = vperm.xlu0 %4019, %v2653_v58   ;;  %v4146_v6 = vld [vmem:[%s5199_s1 + $0x310] sm:$0xff]   ;;  %v4167_v45 = vld [vmem:[%s5199_s1 + $0x3f8] sm:$0xff]  }
  0x92   :  { %2685 = vperm.xlu1 %4020, %v2655_v61   ;;  %v2658_v59 = vld [vmem:[%s5200_s2 + $0x30] sm:$0xff]  ;;  %v136_v61 = vld [vmem:[#allocation2 + $0x320] sm:$0xff] }
  0x93   :  { %3767 = vmatpush3.bf16.msra.mxu0 %v4134_v9  ;;  %v4151_v9 = vld [vmem:[%s5199_s1 + $0x3d8] sm:$0xff]  }
  0x94   :  { %3831 = vmatpush3.bf16.msra.mxu1 %v4136_v10  ;;  %3880 = vmatprep.subr.bf16.mxu0 %v4137_v11  ;;  %v88_v10 = vld [vmem:[#allocation2 + $0x1a0] sm:$0xff] }
  0x95   :  { %2087 = vmatmul.mubr.bf16.gmra.mrb[48].mxu0 %v3268_v12  ;;  %3944 = vmatprep.subr.bf16.mxu1 %v4139_v13  ;;  %v96_v11 = vld [vmem:[#allocation2 + $0x1e0] sm:$0xff]  ;;  %v2765_v12 = vld [vmem:[%s5201_s3 + $0x8] sm:$0xff] }
  0x96   :  { %2184 = vmatmul.mubr.bf16.gmra.mrb[48].mxu1 %v3270_v14  ;;  %2094 = vmatprep.mubr.bf16.mxu0 %v3285_v15  ;;  %v89_v13 = vld [vmem:[#allocation2 + $0x1a8] sm:$0xff]  ;;  %v4150_v14 = vld [vmem:[%s5199_s1 + $0x318] sm:$0xff]   ;;  %v2766_v15 = vld [vmem:[%s5201_s3 + $0x10] sm:$0xff] }
  0x97   :  { %2191 = vmatprep.mubr.bf16.mxu1 %v3287_v16  ;;  %2782 = vperm.xlu0 %4019, %v2764_v4   ;;  %v97_v16 = vld [vmem:[#allocation2 + $0x1e8] sm:$0xff] }
  0x98   :  { %2787 = vperm.xlu1 %4020, %v2765_v12   ;;  %v4718_v12 = vld [vmem:[%s5202_s4 + $0x8] sm:$0xff]  }
  0x9b   :  { %2792 = vperm.xlu0 %4019, %v2766_v15  }
  0x9d   :  { %2095 = vmatmul.mubr.bf16.gmra.mrb[52].mxu0 %v3284_v21  ;;  %v3242_v21 = vcombine.low %v73_v62, %v81_v63  ;;  %v144_v62 = vld [vmem:[#allocation2 + $0x360] sm:$0xff]  ;;  %v137_v63 = vld [vmem:[#allocation2 + $0x328] sm:$0xff] }
  0x9e   :  { %2192 = vmatmul.mubr.bf16.gmra.mrb[52].mxu1 %v3286_v22  ;;  %2102 = vmatprep.mubr.bf16.mxu0 %v3301_v23  ;;  %v3257_v22 = vcombine.high %v88_v10, %v96_v11  ;;  %v3259_v23 = vcombine.high %v89_v13, %v97_v16 }
  0x9f   :  { %2199 = vmatprep.mubr.bf16.mxu1 %v3303_v24  ;;  %v4154_v24 = vld [vmem:[%s5199_s1 + $0x320] sm:$0xff]   ;;  %2690 = vperm.xlu0 %4019, %v2656_v33  }
  0xa3   :  { %2802 = vperm.xlu0 %4019, %v2768_v50   ;;  %v2664_v50 = vld [vmem:[%s5200_s2 + $0x60] sm:$0xff] }
  0xa5   :  { %2103 = vmatmul.mubr.bf16.gmra.mrb[56].mxu0 %v3300_v29  ;;  %v112_v29 = vld [vmem:[#allocation2 + $0x260] sm:$0xff] }
  0xa6   :  { %2200 = vmatmul.mubr.bf16.gmra.mrb[56].mxu1 %v3302_v30  ;;  %2110 = vmatprep.mubr.bf16.mxu0 %v3317_v31  ;;  %v2767_v30 = vld [vmem:[%s5201_s3 + $0x18] sm:$0xff]  ;;  %v105_v31 = vld [vmem:[#allocation2 + $0x228] sm:$0xff] }
  0xa7   :  { %2207 = vmatprep.mubr.bf16.mxu1 %v3319_v32  ;;  %v4158_v32 = vld [vmem:[%s5199_s1 + $0x328] sm:$0xff]   ;;  %2797 = vperm.xlu1 %4020, %v2767_v30   ;;  %v3275_v41 = vcombine.high %v105_v31, %v113_v34  ;;  %v51_v30 = vld [vmem:[#allocation2 + $0x78] sm:$0xff] }
  0xa8   :  { %2700 = vperm.xlu0 %4019, %v2658_v59   ;;  %v75_v59 = vld [vmem:[#allocation2 + $0x138] sm:$0xff] }
  0xad   :  { %2111 = vmatmul.mubr.bf16.gmra.mrb[60].mxu0 %v3316_v37  ;;  %v3256_v37 = vcombine.low %v88_v10, %v96_v11  ;;  %v2660_v10 = vld [vmem:[%s5200_s2 + $0x40] sm:$0xff]  ;;  %v2661_v11 = vld [vmem:[%s5200_s2 + $0x48] sm:$0xff] }
  0xae   :  { %2208 = vmatmul.mubr.bf16.gmra.mrb[60].mxu1 %v3318_v38  ;;  %2248 = vmatprep.mubr.bf16.mxu0 %v3209_v39  ;;  %v4163_v38 = vld [vmem:[%s5199_s1 + $0x3f0] sm:$0xff]   ;;  %v3258_v39 = vcombine.low %v89_v13, %v97_v16  ;;  %v152_v13 = vld [vmem:[#allocation2 + $0x3a0] sm:$0xff]  ;;  %v153_v16 = vld [vmem:[#allocation2 + $0x3a8] sm:$0xff] }
  0xaf   :  { %2345 = vmatprep.mubr.bf16.mxu1 %v3211_v40  ;;  %v3273_v40 = vcombine.high %v104_v28, %v112_v29 }
  0xb5   :  { %2249 = vmatmul.mubr.bf16.vlgmr.msra.gmra.mrb[64].mxu0 %v3208_v43  ;;  %v4164_v43 = vld [vmem:[%s5199_s1 + $0x3b0] sm:$0xff]  }
  0xb6   :  { %2346 = vmatmul.mubr.bf16.vlgmr.msra.gmra.mrb[64].mxu1 %v3210_v46  ;;  %3881 = vmatpush3.bf16.msra.mxu0 %v4138_v47  ;;  %v120_v46 = vld [vmem:[#allocation2 + $0x2a0] sm:$0xff]  ;;  %v2657_v47 = vld [vmem:[%s5200_s2 + $0x28] sm:$0xff] }
  0xb7   :  { %3945 = vmatpush3.bf16.msra.mxu1 %v4140_v48  ;;  %2256 = vmatprep.mubr.bf16.mxu0 %v3225_v49  ;;  %v128_v48 = vld [vmem:[#allocation2 + $0x2e0] sm:$0xff]  ;;  %v4166_v49 = vld [vmem:[%s5199_s1 + $0x338] sm:$0xff]  }
  0xb8   :  { %2353 = vmatprep.mubr.bf16.mxu1 %v3227_v51  ;;  %3882 = vmatprep.subr.bf16.mxu0 %v4141_v52  ;;  %v121_v51 = vld [vmem:[#allocation2 + $0x2a8] sm:$0xff] }
  0xb9   :  { %3946 = vmatprep.subr.bf16.mxu1 %v4143_v55  ;;  %v129_v52 = vld [vmem:[#allocation2 + $0x2e8] sm:$0xff]  ;;  %2695 = vperm.xlu1 %4020, %v2657_v47   ;;  %v3274_v55 = vcombine.low %v105_v31, %v113_v34  ;;  %v2662_v31 = vld [vmem:[%s5200_s2 + $0x50] sm:$0xff] }
  0xba   :  { %3883 = vmatpush3.bf16.msra.mxu0 %v4142_v54  ;;  %v3272_v54 = vcombine.low %v104_v28, %v112_v29  ;;  %v3291_v58 = vcombine.high %v121_v51, %v129_v52  ;;  %v3290_v4 = vcombine.low %v121_v51, %v129_v52  ;;  %v50_v28 = vld [vmem:[#allocation2 + $0x70] sm:$0xff]  ;;  %v43_v29 = vld [vmem:[#allocation2 + $0x38] sm:$0xff] }
  0xbb   :  { %3947 = vmatpush3.bf16.msra.mxu1 %v4144_v56  ;;  %3884 = vmatprep.subr.bf16.mxu0 %v4145_v60  ;;  %v3289_v56 = vcombine.high %v120_v46, %v128_v48  ;;  %v2659_v60 = vld [vmem:[%s5200_s2 + $0x38] sm:$0xff] }
  0xbc   :  { %3948 = vmatprep.subr.bf16.mxu1 %v4147_v0  ;;  %v145_v0 = vld [vmem:[#allocation2 + $0x368] sm:$0xff]  ;;  %v4767_v51 = vld [vmem:[%s5202_s4 + $0x18] sm:$0xff]  }
  0xbd   :  { %2257 = vmatmul.mubr.bf16.gmra.mrb[68].mxu0 %v3224_v1  ;;  %2807 = vperm.xlu1 %4020, %v2769_v57   ;;  %v2770_v1 = vld [vmem:[%s5201_s3 + $0x30] sm:$0xff] }
  0xbe   :  { %2354 = vmatmul.mubr.bf16.gmra.mrb[68].mxu1 %v3226_v2  ;;  %2264 = vmatprep.mubr.bf16.mxu0 %v3241_v3  ;;  %v4702_v2 = vld [vmem:[%s5202_s4] sm:$0xff]   ;;  %v3288_v3 = vcombine.low %v120_v46, %v128_v48  ;;  %v67_v46 = vld [vmem:[#allocation2 + $0xf8] sm:$0xff]  ;;  %v3214_v48 = vcombine.low %v43_v29, %v51_v30  ;;  %v74_v57 = vld [vmem:[#allocation2 + $0x130] sm:$0xff] }
  0xbf   :  { %2361 = vmatprep.mubr.bf16.mxu1 %v3243_v5  ;;  %3885 = vmatpush3.bf16.msra.mxu0 %v4146_v6  ;;  %v3305_v5 = vcombine.high %v136_v61, %v144_v62  ;;  %v2771_v6 = vld [vmem:[%s5201_s3 + $0x38] sm:$0xff] }
  0xc0   :  { %3949 = vmatpush3.bf16.msra.mxu1 %v4148_v7  ;;  %3886 = vmatprep.subr.bf16.mxu0 %v4149_v8  ;;  %v3307_v7 = vcombine.high %v137_v63, %v145_v0  ;;  %v5218_v8 = vunpack.c.l.bf16 %v4702_v2 }
  0xc1   :  { %3950 = vmatprep.subr.bf16.mxu1 %v4151_v9  ;;  %2705 = vperm.xlu1 %4020, %v2659_v60   ;;  %v5219_v9 = vunpack.c.h.bf16 %v4702_v2  ;;  %v83_v60 = vld [vmem:[#allocation2 + $0x178] sm:$0xff] }
  0xc2   :  { %2812 = vperm.xlu0 %4019, %v2770_v1  }
  0xc3   :  { %3887 = vmatpush3.bf16.msra.mxu0 %v4150_v14  ;;  %v160_v14 = vld [vmem:[#allocation2 + $0x3e0] sm:$0xff]  ;;  %v4021_v15 = vpack.i.bf16 %v5219_v9, %v5218_v8 }
  0xc4   :  { %3951 = vmatpush3.bf16.msra.mxu1 %v4152_v17  ;;  %3888 = vmatprep.subr.bf16.mxu0 %v4153_v18  ;;  %v161_v17 = vld [vmem:[#allocation2 + $0x3e8] sm:$0xff]  ;;  %v3304_v18 = vcombine.low %v136_v61, %v144_v62  ;;  %v3320_v33 = vcombine.low %v152_v13, %v160_v14 }
  0xc5   :  { %2265 = vmatmul.mubr.bf16.gmra.mrb[72].mxu0 %v3240_v19  ;;  %3952 = vmatprep.subr.bf16.mxu1 %v4155_v20  ;;  %v5216_v19 = vunpack.c.l.bf16 %v4718_v12  ;;  %v5217_v20 = vunpack.c.h.bf16 %v4718_v12  ;;  %v3322_v34 = vcombine.low %v153_v16, %v161_v17  ;;  %v2777_v61 = vld [vmem:[%s5201_s3 + $0x68] sm:$0xff] }
  0xc6   :  { %2362 = vmatmul.mubr.bf16.gmra.mrb[72].mxu1 %v3242_v21  ;;  %2272 = vmatprep.mubr.bf16.mxu0 %v3257_v22  ;;  %v3306_v21 = vcombine.low %v137_v63, %v145_v0  ;;  %v3321_v22 = vcombine.high %v152_v13, %v160_v14  ;;  %v2778_v13 = vld [vmem:[%s5201_s3 + $0x70] sm:$0xff] }
  0xc7   :  { %2369 = vmatprep.mubr.bf16.mxu1 %v3259_v23  ;;  %3889 = vmatpush3.bf16.msra.mxu0 %v4154_v24  ;;  %v2772_v23 = vld [vmem:[%s5201_s3 + $0x40] sm:$0xff]  ;;  %v3323_v24 = vcombine.high %v153_v16, %v161_v17  ;;  %v2779_v17 = vld [vmem:[%s5201_s3 + $0x78] sm:$0xff] }
  0xc8   :  { %3953 = vmatpush3.bf16.msra.mxu1 %v4156_v25  ;;  %3890 = vmatprep.subr.bf16.mxu0 %v4157_v26  ;;  %v2773_v25 = vld [vmem:[%s5201_s3 + $0x48] sm:$0xff]  ;;  %v4026_v26 = vpack.i.bf16 %v5217_v20, %v5216_v19 }
  0xc9   :  { %3954 = vmatprep.subr.bf16.mxu1 %v4159_v27  ;;  %2817 = vperm.xlu1 %4020, %v2771_v6   ;;  %v42_v27 = vld [vmem:[#allocation2 + $0x30] sm:$0xff] }
  0xca   :  { %2710 = vperm.xlu0 %4019, %v2660_v10   ;;  %v3212_v47 = vcombine.low %v42_v27, %v50_v28  ;;  %v90_v6 = vld [vmem:[#allocation2 + $0x1b0] sm:$0xff]  ;;  %v91_v10 = vld [vmem:[#allocation2 + $0x1b8] sm:$0xff] }
  0xcb   :  { %3891 = vmatpush3.bf16.msra.mxu0 %v4158_v32  ;;  %v4743_v32 = vld [vmem:[%s5202_s4 + $0x10] sm:$0xff]  }
  0xcc   :  { %3955 = vmatpush3.bf16.msra.mxu1 %v4160_v35  ;;  %3892 = vmatprep.subr.bf16.mxu0 %v4161_v36  ;;  %v3213_v35 = vcombine.high %v42_v27, %v50_v28  ;;  %v2663_v36 = vld [vmem:[%s5200_s2 + $0x58] sm:$0xff] }
  0xcd   :  { %2273 = vmatmul.mubr.bf16.gmra.mrb[76].mxu0 %v3256_v37  ;;  %3956 = vmatprep.subr.bf16.mxu1 %v4163_v38  ;;  %v3215_v37 = vcombine.high %v43_v29, %v51_v30  ;;  %v5214_v38 = vunpack.c.l.bf16 %v4743_v32 }
  0xce   :  { %2370 = vmatmul.mubr.bf16.gmra.mrb[76].mxu1 %v3258_v39  ;;  %2280 = vmatprep.mubr.bf16.mxu0 %v3273_v40  ;;  %v5215_v39 = vunpack.c.h.bf16 %v4743_v32  ;;  %v2774_v40 = vld [vmem:[%s5201_s3 + $0x50] sm:$0xff] }
  0xcf   :  { %2377 = vmatprep.mubr.bf16.mxu1 %v3275_v41  ;;  %3893 = vmatpush3.bf16.msra.mxu0 %v4162_v42  ;;  %v2775_v41 = vld [vmem:[%s5201_s3 + $0x58] sm:$0xff]  ;;  %v58_v42 = vld [vmem:[#allocation2 + $0xb0] sm:$0xff] }
  0xd0   :  { %3957 = vmatpush3.bf16.msra.mxu1 %v4164_v43  ;;  %3894 = vmatprep.subr.bf16.mxu0 %v4165_v44  ;;  %v66_v43 = vld [vmem:[#allocation2 + $0xf0] sm:$0xff]  ;;  %v4031_v44 = vpack.i.bf16 %v5215_v39, %v5214_v38 }
  0xd1   :  { %3958 = vmatprep.subr.bf16.mxu1 %v4167_v45  ;;  %2715 = vperm.xlu1 %4020, %v2661_v11   ;;  %v59_v45 = vld [vmem:[#allocation2 + $0xb8] sm:$0xff]  ;;  %v3228_v62 = vcombine.low %v58_v42, %v66_v43 }
  0xd2   :  { %4022 = vrot.lane.b32.xlu0 %v4021_v15, %s4225_s17  ;;  %v3231_v52 = vcombine.high %v59_v45, %v67_v46  ;;  %v3230_v0 = vcombine.low %v59_v45, %v67_v46  ;;  %v99_v11 = vld [vmem:[#allocation2 + $0x1f8] sm:$0xff]  ;;  %v3246_v15 = vcombine.low %v75_v59, %v83_v60 }
  0xd3   :  { %3895 = vmatpush3.bf16.msra.mxu0 %v4166_v49  ;;  %v3229_v49 = vcombine.high %v58_v42, %v66_v43 }
  0xd4   :  { %3959 = vmatpush3.bf16.msra.mxu1 %v4168_v53  ;;  %v2665_v53 = vld [vmem:[%s5200_s2 + $0x68] sm:$0xff] }
  0xd5   :  { %2281 = vmatmul.mubr.bf16.gmra.mrb[80].mxu0 %v3272_v54  ;;  %2822 = vperm.xlu1 %4020, %v2772_v23   ;;  %v5212_v54 = vunpack.c.l.bf16 %v4767_v51 }
  0xd6   :  { %2378 = vmatmul.mubr.bf16.gmra.mrb[80].mxu1 %v3274_v55  ;;  %2288 = vmatprep.mubr.bf16.mxu0 %v3289_v56  ;;  %v5213_v55 = vunpack.c.h.bf16 %v4767_v51  ;;  %v2776_v56 = vld [vmem:[%s5201_s3 + $0x60] sm:$0xff] }
  0xd7   :  { %2385 = vmatprep.mubr.bf16.mxu1 %v3291_v58  ;;  %2827 = vperm.xlu0 %4019, %v2773_v25   ;;  %v82_v58 = vld [vmem:[#allocation2 + $0x170] sm:$0xff]  ;;  %v115_v25 = vld [vmem:[#allocation2 + $0x278] sm:$0xff] }
  0xd8   :  { %v4036_v63 = vpack.i.bf16 %v5213_v55, %v5212_v54  ;;  %v3245_v1 = vcombine.high %v74_v57, %v82_v58  ;;  %v3244_v14 = vcombine.low %v74_v57, %v82_v58  ;;  %v4818_v57 = vld [vmem:[%s5202_s4 + $0x28] sm:$0xff]  }
  0xd9   :  { %4027 = vrot.lane.b32.xlu1 %v4026_v26, %s4225_s17  ;;  %v4801_v26 = vld [vmem:[%s5202_s4 + $0x20] sm:$0xff]   ;;  %5226 = vst [vmem:[#allocation8_spill] sm:$0xff] %v4818_v57 }
  0xda   :  { %v5211_v30 = vunpack.c.h.bf16 %v4801_v26 }
  0xdb   :  { %2720 = vperm.xlu0 %4019, %v2662_v31   ;;  %v5210_v31 = vunpack.c.l.bf16 %v4801_v26 }
  0xdd   :  { %2289 = vmatmul.mubr.bf16.gmra.mrb[84].mxu0 %v3288_v3  ;;  %2725 = vperm.xlu1 %4020, %v2663_v36   ;;  %v3247_v3 = vcombine.high %v75_v59, %v83_v60  ;;  %v3262_v36 = vcombine.low %v91_v10, %v99_v11 }
  0xde   :  { %2386 = vmatmul.mubr.bf16.gmra.mrb[84].mxu1 %v3290_v4  ;;  %2296 = vmatprep.mubr.bf16.mxu0 %v3305_v5  ;;  %v2666_v4 = vld [vmem:[%s5200_s2 + $0x70] sm:$0xff]  ;;  %v2667_v5 = vld [vmem:[%s5200_s2 + $0x78] sm:$0xff] }
  0xdf   :  { %2393 = vmatprep.mubr.bf16.mxu1 %v3307_v7  ;;  %2832 = vperm.xlu0 %4019, %v2774_v40   ;;  %v98_v7 = vld [vmem:[#allocation2 + $0x1f0] sm:$0xff] }
  0xe0   :  { %v3261_v16 = vcombine.high %v90_v6, %v98_v7  ;;  %v3260_v29 = vcombine.low %v90_v6, %v98_v7 }
  0xe1   :  { %2837 = vperm.xlu1 %4020, %v2775_v41  }
  0xe3   :  { %4032 = vrot.lane.b32.xlu0 %v4031_v44, %s4225_s17 }
  0xe5   :  { %2297 = vmatmul.mubr.bf16.gmra.mrb[88].mxu0 %v3304_v18  ;;  %2730 = vperm.xlu1 %4020, %v2664_v50   ;;  %v3263_v18 = vcombine.high %v91_v10, %v99_v11  ;;  %v130_v50 = vld [vmem:[#allocation2 + $0x2f0] sm:$0xff] }
  0xe6   :  { %2394 = vmatmul.mubr.bf16.gmra.mrb[88].mxu1 %v3306_v21  ;;  %2304 = vmatprep.mubr.bf16.mxu0 %v3321_v22  ;;  %v106_v21 = vld [vmem:[#allocation2 + $0x230] sm:$0xff] }
  0xe7   :  { %2401 = vmatprep.mubr.bf16.mxu1 %v3323_v24  ;;  %2735 = vperm.xlu0 %4019, %v2665_v53   ;;  %v114_v22 = vld [vmem:[#allocation2 + $0x270] sm:$0xff]  ;;  %v107_v24 = vld [vmem:[#allocation2 + $0x238] sm:$0xff] }
  0xe8   :  { %v3279_v43 = vcombine.high %v107_v24, %v115_v25  ;;  %v123_v53 = vld [vmem:[#allocation2 + $0x2b8] sm:$0xff]  ;;  %v3276_v60 = vcombine.low %v106_v21, %v114_v22 }
  0xe9   :  { %2842 = vperm.xlu1 %4020, %v2776_v56   ;;  %v131_v56 = vld [vmem:[#allocation2 + $0x2f8] sm:$0xff] }
  0xea   :  { %v3295_v10 = vcombine.high %v123_v53, %v131_v56 }
  0xeb   :  { %2847 = vperm.xlu0 %4019, %v2777_v61   ;;  %v5209_v61 = vunpack.c.h.bf16 %v4818_v57 }
  0xed   :  { %2305 = vmatmul.mubr.bf16.gmra.mrb[92].mxu0 %v3320_v33  ;;  %4037 = vrot.lane.b32.xlu1 %v4036_v63, %s4225_s17 }
  0xee   :  { %2402 = vmatmul.mubr.bf16.gmra.mrb[92].mxu1 %v3322_v34  ;;  %2442 = vmatprep.mubr.bf16.mxu0 %v3213_v35 }
  0xef   :  { %2539 = vmatprep.mubr.bf16.mxu1 %v3215_v37  ;;  %2740 = vperm.xlu0 %4019, %v2666_v4   ;;  %v3277_v37 = vcombine.high %v106_v21, %v114_v22  ;;  %v139_v22 = vld [vmem:[#allocation2 + $0x338] sm:$0xff] }
  0xf1   :  { %2745 = vperm.xlu1 %4020, %v2667_v5  }
  0xf3   :  { %2852 = vperm.xlu0 %4019, %v2778_v13  }
  0xf5   :  { %2443 = vmatmul.mubr.bf16.vlgmr.msra.gmra.mrb[96].mxu0 %v3212_v47  ;;  %2857 = vperm.xlu1 %4020, %v2779_v17   ;;  %v138_v17 = vld [vmem:[#allocation2 + $0x330] sm:$0xff] }
  0xf6   :  { %2540 = vmatmul.mubr.bf16.vlgmr.msra.gmra.mrb[96].mxu1 %v3214_v48  ;;  %2450 = vmatprep.mubr.bf16.mxu0 %v3229_v49  ;;  %v122_v49 = vld [vmem:[#allocation2 + $0x2b0] sm:$0xff] }
  0xf7   :  { %2547 = vmatprep.mubr.bf16.mxu1 %v3231_v52  ;;  %3022 = vrot.lane.b32.xlu0 %v5210_v31, %s4225_s17  ;;  %v3293_v4 = vcombine.high %v122_v49, %v130_v50 }
  0xf9   :  { %3024 = vrot.lane.b32.xlu1 %v5211_v30, %s4225_s17 }
  0xfd   :  { %2451 = vmatmul.mubr.bf16.gmra.mrb[100].mxu0 %v3228_v62  ;;  %v5208_v62 = vunpack.c.l.bf16 %v4818_v57  ;;  %3028 = vrot.lane.b32.xlu1 %v5209_v61, %s4225_s17 }
  0xfe   :  { %2548 = vmatmul.mubr.bf16.gmra.mrb[100].mxu1 %v3230_v0  ;;  %2458 = vmatprep.mubr.bf16.mxu0 %v3245_v1 }
  0xff   :  { %2555 = vmatprep.mubr.bf16.mxu1 %v3247_v3  ;;  %v3278_v3 = vcombine.low %v107_v24, %v115_v25  ;;  %3026 = vrot.lane.b32.xlu0 %v5208_v62, %s4225_s17  ;;  %v4835_v24 = vld [vmem:[%s5202_s4 + $0x30] sm:$0xff]  }
 0x100   :  { %5227 = vst [vmem:[#allocation9_spill] sm:$0xff] %v4835_v24 }
 0x105   :  { %2459 = vmatmul.mubr.bf16.gmra.mrb[104].mxu0 %v3244_v14 }
 0x106   :  { %2556 = vmatmul.mubr.bf16.gmra.mrb[104].mxu1 %v3246_v15  ;;  %2466 = vmatprep.mubr.bf16.mxu0 %v3261_v16 }
 0x107   :  { %2563 = vmatprep.mubr.bf16.mxu1 %v3263_v18  ;;  %v146_v18 = vld [vmem:[#allocation2 + $0x370] sm:$0xff] }
 0x108   :  { %v3512_v23 = vpop.f32.mrb[0].mxu0 }
 0x109   :  { %v3576_v27 = vpop.f32.mrb[0].mxu1  ;;  %v3513_v28 = vpop.f32.mrb[1].mxu0 }
 0x10a   :  { %v3514_v33 = vadd.f32 %v3513_v28, %v3512_v23  ;;  %v3577_v34 = vpop.f32.mrb[1].mxu1  ;;  %v3515_v35 = vpop.f32.mrb[2].mxu0  ;;  %v147_v23 = vld [vmem:[#allocation2 + $0x378] sm:$0xff]  ;;  %v3292_v28 = vcombine.low %v122_v49, %v130_v50 }
 0x10b   :  { %v3578_v40 = vadd.f32 %v3577_v34, %v3576_v27  ;;  %v3579_v41 = vpop.f32.mrb[2].mxu1  ;;  %v3516_v42 = vpop.f32.mrb[3].mxu0 }
 0x10c   :  { %v3517_v44 = vadd.f32 %v3516_v42, %v3515_v35  ;;  %v3580_v45 = vpop.f32.mrb[3].mxu1 }
 0x10d   :  { %v4811_v46 = vadd.f32 %v3578_v40, %v3514_v33  ;;  %v3581_v47 = vadd.f32 %v3580_v45, %v3579_v41  ;;  %2467 = vmatmul.mubr.bf16.gmra.mrb[108].mxu0 %v3260_v29  ;;  %v5207_v29 = vunpack.c.h.bf16 %v4835_v24  ;;  %v5206_v33 = vunpack.c.l.bf16 %v4835_v24 }
 0x10e   :  { %2564 = vmatmul.mubr.bf16.gmra.mrb[108].mxu1 %v3262_v36  ;;  %2474 = vmatprep.mubr.bf16.mxu0 %v3277_v37  ;;  %v3294_v37 = vcombine.low %v123_v53, %v131_v56  ;;  %v3309_v40 = vcombine.high %v138_v17, %v146_v18  ;;  %v154_v53 = vld [vmem:[#allocation2 + $0x3b0] sm:$0xff] }
 0x10f   :  { %v4813_v48 = vadd.f32 %v3581_v47, %v3517_v44  ;;  %2571 = vmatprep.mubr.bf16.mxu1 %v3279_v43  ;;  %v3311_v44 = vcombine.high %v139_v22, %v147_v23  ;;  %3032 = vrot.lane.b32.xlu1 %v5207_v29, %s4225_s17  ;;  %v162_v56 = vld [vmem:[#allocation2 + $0x3f0] sm:$0xff] }
 0x110   :  { %v3518_v52 = vpop.f32.mrb[4].mxu0  ;;  %3030 = vrot.lane.b32.xlu0 %v5206_v33, %s4225_s17 }
 0x111   :  { %v3582_v58 = vpop.f32.mrb[4].mxu1  ;;  %v3519_v59 = vpop.f32.mrb[5].mxu0 }
 0x112   :  { %v3520_v63 = vadd.f32 %v3519_v59, %v3518_v52  ;;  %v3583_v0 = vpop.f32.mrb[5].mxu1  ;;  %v3521_v1 = vpop.f32.mrb[6].mxu0  ;;  %v155_v59 = vld [vmem:[#allocation2 + $0x3b8] sm:$0xff] }
 0x113   :  { %v3584_v5 = vadd.f32 %v3583_v0, %v3582_v58  ;;  %v3585_v6 = vpop.f32.mrb[6].mxu1  ;;  %v3522_v7 = vpop.f32.mrb[7].mxu0 }
 0x114   :  { %v3523_v11 = vadd.f32 %v3522_v7, %v3521_v1  ;;  %v3586_v13 = vpop.f32.mrb[7].mxu1 }
 0x115   :  { %v4828_v14 = vadd.f32 %v3584_v5, %v3520_v63  ;;  %v3587_v15 = vadd.f32 %v3586_v13, %v3585_v6  ;;  %2475 = vmatmul.mubr.bf16.gmra.mrb[112].mxu0 %v3276_v60  ;;  %v163_v60 = vld [vmem:[#allocation2 + $0x3f8] sm:$0xff]  ;;  %v3325_v13 = vcombine.high %v154_v53, %v162_v56 }
 0x116   :  { %2572 = vmatmul.mubr.bf16.gmra.mrb[112].mxu1 %v3278_v3  ;;  %2482 = vmatprep.mubr.bf16.mxu0 %v3293_v4  ;;  %v4852_v63 = vld [vmem:[%s5202_s4 + $0x38] sm:$0xff]   ;;  %v3308_v3 = vcombine.low %v138_v17, %v146_v18  ;;  %s4226_s4 = smov 120  }
 0x117   :  { %v4830_v16 = vadd.f32 %v3587_v15, %v3523_v11  ;;  %2579 = vmatprep.mubr.bf16.mxu1 %v3295_v10  ;;  %5228 = vst [vmem:[#allocation10_spill] sm:$0xff] %v4852_v63  ;;  %v5204_v4 = vunpack.c.h.bf16 %v4852_v63  ;;  %v5205_v5 = vunpack.c.l.bf16 %v4852_v63  ;;  %v3310_v11 = vcombine.low %v139_v22, %v147_v23 }
 0x118   :  { %v3524_v21 = vpop.f32.mrb[8].mxu0 }
 0x119   :  { %v3588_v25 = vpop.f32.mrb[8].mxu1  ;;  %v3525_v27 = vpop.f32.mrb[9].mxu0  ;;  %3036 = vrot.lane.b32.xlu1 %v5204_v4, %s4225_s17  ;;  %3034 = vrot.lane.b32.xlu0 %v5205_v5, %s4225_s17 }
 0x11a   :  { %v3526_v34 = vadd.f32 %v3525_v27, %v3524_v21  ;;  %v3589_v35 = vpop.f32.mrb[9].mxu1  ;;  %v3527_v36 = vpop.f32.mrb[10].mxu0  ;;  %v3327_v27 = vcombine.high %v155_v59, %v163_v60 }
 0x11b   :  { %v3590_v41 = vadd.f32 %v3589_v35, %v3588_v25  ;;  %v3591_v42 = vpop.f32.mrb[10].mxu1  ;;  %v3528_v43 = vpop.f32.mrb[11].mxu0 }
 0x11c   :  { %v3529_v45 = vadd.f32 %v3528_v43, %v3527_v36  ;;  %v3592_v47 = vpop.f32.mrb[11].mxu1  ;;  %v3326_v43 = vcombine.low %v155_v59, %v163_v60 }
 0x11d   :  { %v4845_v49 = vadd.f32 %v3590_v41, %v3526_v34  ;;  %v3593_v50 = vadd.f32 %v3592_v47, %v3591_v42  ;;  %2483 = vmatmul.mubr.bf16.gmra.mrb[116].mxu0 %v3292_v28 }
 0x11e   :  { %2580 = vmatmul.mubr.bf16.gmra.mrb[116].mxu1 %v3294_v37  ;;  %2490 = vmatprep.mubr.bf16.mxu0 %v3309_v40  ;;  %v3324_v37 = vcombine.low %v154_v53, %v162_v56 }
 0x11f   :  { %v4847_v52 = vadd.f32 %v3593_v50, %v3529_v45  ;;  %2587 = vmatprep.mubr.bf16.mxu1 %v3311_v44 }
 0x120   :  { %v3530_v58 = vpop.f32.mrb[12].mxu0 }
 0x121   :  { %v3594_v0 = vpop.f32.mrb[12].mxu1  ;;  %v3531_v1 = vpop.f32.mrb[13].mxu0 }
 0x122   :  { %v3532_v6 = vadd.f32 %v3531_v1, %v3530_v58  ;;  %v3595_v7 = vpop.f32.mrb[13].mxu1  ;;  %v3533_v10 = vpop.f32.mrb[14].mxu0 }
 0x123   :  { %v3596_v15 = vadd.f32 %v3595_v7, %v3594_v0  ;;  %v3597_v21 = vpop.f32.mrb[14].mxu1  ;;  %v3534_v25 = vpop.f32.mrb[15].mxu0 }
 0x124   :  { %v3535_v17 = vadd.f32 %v3534_v25, %v3533_v10  ;;  %v3598_v18 = vpop.f32.mrb[15].mxu1 }
 0x125   :  { %v4862_v28 = vadd.f32 %v3596_v15, %v3532_v6  ;;  %v3599_v34 = vadd.f32 %v3598_v18, %v3597_v21  ;;  %2491 = vmatmul.mubr.bf16.gmra.mrb[120].mxu0 %v3308_v3 }
 0x126   :  { %2588 = vmatmul.mubr.bf16.gmra.mrb[120].mxu1 %v3310_v11  ;;  %2498 = vmatprep.mubr.bf16.mxu0 %v3325_v13 }
 0x127   :  { %v4864_v22 = vadd.f32 %v3599_v34, %v3535_v17  ;;  %2595 = vmatprep.mubr.bf16.mxu1 %v3327_v27 }
 0x128   :  { %v3536_v23 = vpop.f32.mrb[16].mxu0 }
 0x129   :  { %v3600_v35 = vpop.f32.mrb[16].mxu1  ;;  %v3537_v36 = vpop.f32.mrb[17].mxu0 }
 0x12a   :  { %v3538_v40 = vadd.f32 %v3537_v36, %v3536_v23  ;;  %v3601_v41 = vpop.f32.mrb[17].mxu1  ;;  %v3539_v42 = vpop.f32.mrb[18].mxu0 }
 0x12b   :  { %v3602_v44 = vadd.f32 %v3601_v41, %v3600_v35  ;;  %v3603_v45 = vpop.f32.mrb[18].mxu1  ;;  %v3540_v47 = vpop.f32.mrb[19].mxu0 }
 0x12c   :  { %v3541_v50 = vadd.f32 %v3540_v47, %v3539_v42  ;;  %v3604_v58 = vpop.f32.mrb[19].mxu1 }
 0x12d   :  { %v4866_v0 = vadd.f32 %v3602_v44, %v3538_v40  ;;  %v3605_v1 = vadd.f32 %v3604_v58, %v3603_v45  ;;  %2499 = vmatmul.mubr.bf16.gmra.mrb[124].mxu0 %v3324_v37 }
 0x12e   :  { %2596 = vmatmul.mubr.bf16.gmra.mrb[124].mxu1 %v3326_v43 }
 0x12f   :  { %v4868_v3 = vadd.f32 %v3605_v1, %v3541_v50 }
 0x130   :  { %v3542_v6 = vpop.f32.mrb[20].mxu0 }
 0x131   :  { %v3606_v7 = vpop.f32.mrb[20].mxu1  ;;  %v3543_v10 = vpop.f32.mrb[21].mxu0 }
 0x132   :  { %v3544_v53 = vadd.f32 %v3543_v10, %v3542_v6  ;;  %v3607_v56 = vpop.f32.mrb[21].mxu1  ;;  %v3545_v11 = vpop.f32.mrb[22].mxu0 }
 0x133   :  { %v3608_v13 = vadd.f32 %v3607_v56, %v3606_v7  ;;  %v3609_v59 = vpop.f32.mrb[22].mxu1  ;;  %v3546_v60 = vpop.f32.mrb[23].mxu0 }
 0x134   :  { %v3547_v15 = vadd.f32 %v3546_v60, %v3545_v11  ;;  %v3610_v21 = vpop.f32.mrb[23].mxu1 }
 0x135   :  { %v4870_v25 = vadd.f32 %v3608_v13, %v3544_v53  ;;  %v3611_v27 = vadd.f32 %v3610_v21, %v3609_v59 }
 0x137   :  { %v4872_v17 = vadd.f32 %v3611_v27, %v3547_v15 }
 0x138   :  { %v3548_v18 = vpop.f32.mrb[24].mxu0 }
 0x139   :  { %v3612_v34 = vpop.f32.mrb[24].mxu1  ;;  %v3549_v23 = vpop.f32.mrb[25].mxu0 }
 0x13a   :  { %v3550_v35 = vadd.f32 %v3549_v23, %v3548_v18  ;;  %v3613_v36 = vpop.f32.mrb[25].mxu1  ;;  %v3551_v37 = vpop.f32.mrb[26].mxu0 }
 0x13b   :  { %v3614_v40 = vadd.f32 %v3613_v36, %v3612_v34  ;;  %v3615_v41 = vpop.f32.mrb[26].mxu1  ;;  %v3552_v42 = vpop.f32.mrb[27].mxu0 }
 0x13c   :  { %v3553_v43 = vadd.f32 %v3552_v42, %v3551_v37  ;;  %v3616_v44 = vpop.f32.mrb[27].mxu1 }
 0x13d   :  { %v4874_v45 = vadd.f32 %v3614_v40, %v3550_v35  ;;  %v3617_v47 = vadd.f32 %v3616_v44, %v3615_v41 }
 0x13f   :  { %v4876_v50 = vadd.f32 %v3617_v47, %v3553_v43 }
 0x140   :  { %v3554_v58 = vpop.f32.mrb[28].mxu0 }
 0x141   :  { %v3618_v1 = vpop.f32.mrb[28].mxu1  ;;  %v3555_v6 = vpop.f32.mrb[29].mxu0 }
 0x142   :  { %v3556_v7 = vadd.f32 %v3555_v6, %v3554_v58  ;;  %v3619_v10 = vpop.f32.mrb[29].mxu1  ;;  %v3557_v53 = vpop.f32.mrb[30].mxu0 }
 0x143   :  { %v3620_v56 = vadd.f32 %v3619_v10, %v3618_v1  ;;  %v3621_v11 = vpop.f32.mrb[30].mxu1  ;;  %v3558_v13 = vpop.f32.mrb[31].mxu0 }
 0x144   :  { %v3559_v59 = vadd.f32 %v3558_v13, %v3557_v53  ;;  %v3622_v60 = vpop.f32.mrb[31].mxu1 }
 0x145   :  { %v4878_v15 = vadd.f32 %v3620_v56, %v3556_v7  ;;  %v3623_v21 = vadd.f32 %v3622_v60, %v3621_v11 }
 0x147   :  { %v4880_v27 = vadd.f32 %v3623_v21, %v3559_v59 }
 0x148   :  { %v3640_v18 = vpop.f32.mrb[32].mxu0 }
 0x149   :  { %v3704_v34 = vpop.f32.mrb[32].mxu1  ;;  %v3641_v23 = vpop.f32.mrb[33].mxu0 }
 0x14a   :  { %v3642_v35 = vadd.f32 %v3641_v23, %v3640_v18  ;;  %v3705_v36 = vpop.f32.mrb[33].mxu1  ;;  %v3643_v37 = vpop.f32.mrb[34].mxu0 }
 0x14b   :  { %v3706_v40 = vadd.f32 %v3705_v36, %v3704_v34  ;;  %v3707_v41 = vpop.f32.mrb[34].mxu1  ;;  %v3644_v42 = vpop.f32.mrb[35].mxu0 }
 0x14c   :  { %v2057_v43 = vadd.f32 %v3642_v35, %v4811_v46  ;;  %v3645_v44 = vadd.f32 %v3644_v42, %v3643_v37  ;;  %v3708_v47 = vpop.f32.mrb[35].mxu1 }
 0x14d   :  { %v3709_v58 = vadd.f32 %v3708_v47, %v3707_v41 }
 0x14e   :  { %v4883_v1 = vadd.f32 %v3706_v40, %v2057_v43  ;;  %v2060_v6 = vadd.f32 %v3645_v44, %v4813_v48 }
 0x150   :  { %v4886_v7 = vadd.f32 %v3709_v58, %v2060_v6  ;;  %v3646_v10 = vpop.f32.mrb[36].mxu0 }
 0x151   :  { %v3710_v53 = vpop.f32.mrb[36].mxu1  ;;  %v3647_v56 = vpop.f32.mrb[37].mxu0 }
 0x152   :  { %v3648_v11 = vadd.f32 %v3647_v56, %v3646_v10  ;;  %v3711_v13 = vpop.f32.mrb[37].mxu1  ;;  %v3649_v59 = vpop.f32.mrb[38].mxu0 }
 0x153   :  { %v3712_v60 = vadd.f32 %v3711_v13, %v3710_v53  ;;  %v3713_v21 = vpop.f32.mrb[38].mxu1  ;;  %v3650_v18 = vpop.f32.mrb[39].mxu0 }
 0x154   :  { %v2065_v46 = vadd.f32 %v3648_v11, %v4828_v14  ;;  %v3651_v34 = vadd.f32 %v3650_v18, %v3649_v59  ;;  %v3714_v23 = vpop.f32.mrb[39].mxu1 }
 0x155   :  { %v3715_v35 = vadd.f32 %v3714_v23, %v3713_v21 }
 0x156   :  { %v4889_v36 = vadd.f32 %v3712_v60, %v2065_v46  ;;  %v2068_v48 = vadd.f32 %v3651_v34, %v4830_v16 }
 0x158   :  { %v4892_v37 = vadd.f32 %v3715_v35, %v2068_v48  ;;  %v3652_v40 = vpop.f32.mrb[40].mxu0 }
 0x159   :  { %v3716_v41 = vpop.f32.mrb[40].mxu1  ;;  %v3653_v42 = vpop.f32.mrb[41].mxu0 }
 0x15a   :  { %v3654_v43 = vadd.f32 %v3653_v42, %v3652_v40  ;;  %v3717_v44 = vpop.f32.mrb[41].mxu1  ;;  %v3655_v47 = vpop.f32.mrb[42].mxu0 }
 0x15b   :  { %v3718_v58 = vadd.f32 %v3717_v44, %v3716_v41  ;;  %v3719_v6 = vpop.f32.mrb[42].mxu1  ;;  %v3656_v10 = vpop.f32.mrb[43].mxu0 }
 0x15c   :  { %v2073_v14 = vadd.f32 %v3654_v43, %v4845_v49  ;;  %v3657_v53 = vadd.f32 %v3656_v10, %v3655_v47  ;;  %v3720_v56 = vpop.f32.mrb[43].mxu1 }
 0x15d   :  { %v3721_v11 = vadd.f32 %v3720_v56, %v3719_v6  ;;  %v4906_v6 = vpop.permute.xlu0 %2670 }
 0x15e   :  { %v4895_v13 = vadd.f32 %v3718_v58, %v2073_v14  ;;  %v2076_v16 = vadd.f32 %v3657_v53, %v4847_v52 }
 0x160   :  { %v4898_v59 = vadd.f32 %v3721_v11, %v2076_v16  ;;  %v3658_v60 = vpop.f32.mrb[44].mxu0 }
 0x161   :  { %v3722_v21 = vpop.f32.mrb[44].mxu1  ;;  %v3659_v18 = vpop.f32.mrb[45].mxu0 }
 0x162   :  { %v3660_v46 = vadd.f32 %v3659_v18, %v3658_v60  ;;  %v3723_v34 = vpop.f32.mrb[45].mxu1  ;;  %v3661_v23 = vpop.f32.mrb[46].mxu0 }
 0x163   :  { %v3724_v35 = vadd.f32 %v3723_v34, %v3722_v21  ;;  %v3725_v48 = vpop.f32.mrb[46].mxu1  ;;  %v3662_v40 = vpop.f32.mrb[47].mxu0 }
 0x164   :  { %v2081_v49 = vadd.f32 %v3660_v46, %v4862_v28  ;;  %v3663_v41 = vadd.f32 %v3662_v40, %v3661_v23  ;;  %v3726_v42 = vpop.f32.mrb[47].mxu1 }
 0x165   :  { %v3727_v43 = vadd.f32 %v3726_v42, %v3725_v48 }
 0x166   :  { %v4901_v44 = vadd.f32 %v3724_v35, %v2081_v49  ;;  %v2084_v52 = vadd.f32 %v3663_v41, %v4864_v22  ;;  %v4912_v35 = vpop.permute.xlu1 %2680  ;;  %v4916_v49 = vpop.permute.xlu0 %2675 }
 0x168   :  { %v4904_v47 = vadd.f32 %v3727_v43, %v2084_v52  ;;  %v3664_v58 = vpop.f32.mrb[48].mxu0 }
 0x169   :  { %v3728_v10 = vpop.f32.mrb[48].mxu1  ;;  %v3665_v14 = vpop.f32.mrb[49].mxu0 }
 0x16a   :  { %v3666_v53 = vadd.f32 %v3665_v14, %v3664_v58  ;;  %v3729_v56 = vpop.f32.mrb[49].mxu1  ;;  %v3667_v11 = vpop.f32.mrb[50].mxu0 }
 0x16b   :  { %v3730_v16 = vadd.f32 %v3729_v56, %v3728_v10  ;;  %v3731_v60 = vpop.f32.mrb[50].mxu1  ;;  %v3668_v28 = vpop.f32.mrb[51].mxu0 }
 0x16c   :  { %v2089_v21 = vadd.f32 %v3666_v53, %v4866_v0  ;;  %v3669_v18 = vadd.f32 %v3668_v28, %v3667_v11  ;;  %v3732_v46 = vpop.f32.mrb[51].mxu1  ;;  %v4922_v28 = vpop.permute.xlu1 %2685 }
 0x16d   :  { %v3733_v34 = vadd.f32 %v3732_v46, %v3731_v60  ;;  %v4926_v46 = vpop.permute.xlu0 %2782 }
 0x16e   :  { %v4909_v23 = vadd.f32 %v3730_v16, %v2089_v21  ;;  %v2092_v22 = vadd.f32 %v3669_v18, %v4868_v3 }
 0x170   :  { %v4914_v48 = vadd.f32 %v3733_v34, %v2092_v22  ;;  %v3670_v40 = vpop.f32.mrb[52].mxu0 }
 0x171   :  { %v3734_v41 = vpop.f32.mrb[52].mxu1  ;;  %v3671_v42 = vpop.f32.mrb[53].mxu0 }
 0x172   :  { %v3672_v43 = vadd.f32 %v3671_v42, %v3670_v40  ;;  %v3735_v52 = vpop.f32.mrb[53].mxu1  ;;  %v3673_v58 = vpop.f32.mrb[54].mxu0 }
 0x173   :  { %v3736_v0 = vadd.f32 %v3735_v52, %v3734_v41  ;;  %v3737_v10 = vpop.f32.mrb[54].mxu1  ;;  %v3674_v14 = vpop.f32.mrb[55].mxu0 }
 0x174   :  { %v2097_v53 = vadd.f32 %v3672_v43, %v4870_v25  ;;  %v3675_v56 = vadd.f32 %v3674_v14, %v3673_v58  ;;  %v3738_v11 = vpop.f32.mrb[55].mxu1 }
 0x175   :  { %v3739_v3 = vadd.f32 %v3738_v11, %v3737_v10 }
 0x176   :  { %v4919_v16 = vadd.f32 %v3736_v0, %v2097_v53  ;;  %v2100_v60 = vadd.f32 %v3675_v56, %v4872_v17  ;;  %v4932_v56 = vpop.permute.xlu1 %2787 }
 0x178   :  { %v4924_v21 = vadd.f32 %v3739_v3, %v2100_v60  ;;  %v3676_v18 = vpop.f32.mrb[56].mxu0  ;;  %v4936_v60 = vpop.permute.xlu0 %2792 }
 0x179   :  { %v3740_v34 = vpop.f32.mrb[56].mxu1  ;;  %v3677_v22 = vpop.f32.mrb[57].mxu0 }
 0x17a   :  { %v3678_v40 = vadd.f32 %v3677_v22, %v3676_v18  ;;  %v3741_v41 = vpop.f32.mrb[57].mxu1  ;;  %v3679_v42 = vpop.f32.mrb[58].mxu0 }
 0x17b   :  { %v3742_v25 = vadd.f32 %v3741_v41, %v3740_v34  ;;  %v3743_v43 = vpop.f32.mrb[58].mxu1  ;;  %v3680_v52 = vpop.f32.mrb[59].mxu0 }
 0x17c   :  { %v2105_v58 = vadd.f32 %v3678_v40, %v4874_v45  ;;  %v3681_v0 = vadd.f32 %v3680_v52, %v3679_v42  ;;  %v3744_v10 = vpop.f32.mrb[59].mxu1 }
 0x17d   :  { %v3745_v17 = vadd.f32 %v3744_v10, %v3743_v43  ;;  %v4942_v10 = vpop.permute.xlu1 %2797 }
 0x17e   :  { %v4929_v14 = vadd.f32 %v3742_v25, %v2105_v58  ;;  %v2108_v53 = vadd.f32 %v3681_v0, %v4876_v50 }
 0x180   :  { %v4934_v11 = vadd.f32 %v3745_v17, %v2108_v53  ;;  %v3682_v3 = vpop.f32.mrb[60].mxu0 }
 0x181   :  { %v3746_v18 = vpop.f32.mrb[60].mxu1  ;;  %v3683_v34 = vpop.f32.mrb[61].mxu0 }
 0x182   :  { %v3684_v22 = vadd.f32 %v3683_v34, %v3682_v3  ;;  %v3747_v41 = vpop.f32.mrb[61].mxu1  ;;  %v3685_v4 = vpop.f32.mrb[62].mxu0 }
 0x183   :  { %v3748_v45 = vadd.f32 %v3747_v41, %v3746_v18  ;;  %v3749_v40 = vpop.f32.mrb[62].mxu1  ;;  %v3686_v42 = vpop.f32.mrb[63].mxu0 }
 0x184   :  { %v2113_v25 = vadd.f32 %v3684_v22, %v4878_v15  ;;  %v3687_v43 = vadd.f32 %v3686_v42, %v3685_v4  ;;  %v3750_v52 = vpop.f32.mrb[63].mxu1  ;;  %v4946_v3 = vpop.permute.xlu0 %2690 }
 0x185   :  { %v3751_v50 = vadd.f32 %v3750_v52, %v3749_v40  ;;  %v4952_v52 = vpop.permute.xlu1 %2695 }
 0x186   :  { %v4939_v58 = vadd.f32 %v3748_v45, %v2113_v25  ;;  %v2116_v0 = vadd.f32 %v3687_v43, %v4880_v27 }
 0x188   :  { %v4944_v17 = vadd.f32 %v3751_v50, %v2116_v0  ;;  %v3768_v53 = vpop.f32.mrb[64].mxu0 }
 0x189   :  { %v3832_v34 = vpop.f32.mrb[64].mxu1  ;;  %v3769_v18 = vpop.f32.mrb[65].mxu0 }
 0x18a   :  { %v3770_v41 = vadd.f32 %v3769_v18, %v3768_v53  ;;  %v3833_v5 = vpop.f32.mrb[65].mxu1  ;;  %v3771_v33 = vpop.f32.mrb[66].mxu0 }
 0x18b   :  { %v3834_v15 = vadd.f32 %v3833_v5, %v3832_v34  ;;  %v3835_v4 = vpop.f32.mrb[66].mxu1  ;;  %v3772_v22 = vpop.f32.mrb[67].mxu0 }
 0x18c   :  { %v2251_v45 = vadd.f32 %v3770_v41, %v4883_v1  ;;  %v3773_v40 = vadd.f32 %v3772_v22, %v3771_v33  ;;  %v3836_v42 = vpop.f32.mrb[67].mxu1  ;;  %v4956_v53 = vpop.permute.xlu0 %2802 }
 0x18d   :  { %v3837_v27 = vadd.f32 %v3836_v42, %v3835_v4  ;;  %v4962_v42 = vpop.permute.xlu1 %2807 }
 0x18e   :  { %v4949_v25 = vadd.f32 %v3834_v15, %v2251_v45  ;;  %v2254_v43 = vadd.f32 %v3773_v40, %v4886_v7 }
 0x190   :  { %v4954_v50 = vadd.f32 %v3837_v27, %v2254_v43  ;;  %v3774_v0 = vpop.f32.mrb[68].mxu0  ;;  %v4966_v43 = vpop.permute.xlu0 %2700 }
 0x191   :  { %v3838_v18 = vpop.f32.mrb[68].mxu1  ;;  %v3775_v5 = vpop.f32.mrb[69].mxu0 }
 0x192   :  { %v3776_v34 = vadd.f32 %v3775_v5, %v3774_v0  ;;  %v3839_v29 = vpop.f32.mrb[69].mxu1  ;;  %v3777_v62 = vpop.f32.mrb[70].mxu0 }
 0x193   :  { %v3840_v1 = vadd.f32 %v3839_v29, %v3838_v18  ;;  %v3841_v33 = vpop.f32.mrb[70].mxu1  ;;  %v3778_v41 = vpop.f32.mrb[71].mxu0 }
 0x194   :  { %v2259_v15 = vadd.f32 %v3776_v34, %v4889_v36  ;;  %v3779_v4 = vadd.f32 %v3778_v41, %v3777_v62  ;;  %v3842_v22 = vpop.f32.mrb[71].mxu1 }
 0x195   :  { %v3843_v7 = vadd.f32 %v3842_v22, %v3841_v33  ;;  %v4972_v22 = vpop.permute.xlu1 %2705 }
 0x196   :  { %v4959_v45 = vadd.f32 %v3840_v1, %v2259_v15  ;;  %v2262_v40 = vadd.f32 %v3779_v4, %v4892_v37 }
 0x198   :  { %v4964_v27 = vadd.f32 %v3843_v7, %v2262_v40  ;;  %v3780_v0 = vpop.f32.mrb[72].mxu0  ;;  %v4974_v7 = vpop.permute.xlu0 %2812 }
 0x199   :  { %v3844_v5 = vpop.f32.mrb[72].mxu1  ;;  %v3781_v29 = vpop.f32.mrb[73].mxu0 }
 0x19a   :  { %v3782_v18 = vadd.f32 %v3781_v29, %v3780_v0  ;;  %v3845_v61 = vpop.f32.mrb[73].mxu1  ;;  %v3783_v31 = vpop.f32.mrb[74].mxu0 }
 0x19b   :  { %v3846_v36 = vadd.f32 %v3845_v61, %v3844_v5  ;;  %v3847_v62 = vpop.f32.mrb[74].mxu1  ;;  %v3784_v34 = vpop.f32.mrb[75].mxu0 }
 0x19c   :  { %v2267_v1 = vadd.f32 %v3782_v18, %v4895_v13  ;;  %v3785_v33 = vadd.f32 %v3784_v34, %v3783_v31  ;;  %v3848_v41 = vpop.f32.mrb[75].mxu1 }
 0x19d   :  { %v3849_v37 = vadd.f32 %v3848_v41, %v3847_v62  ;;  %v4982_v41 = vpop.permute.xlu1 %2817 }
 0x19e   :  { %v4969_v15 = vadd.f32 %v3846_v36, %v2267_v1  ;;  %v2270_v4 = vadd.f32 %v3785_v33, %v4898_v59 }
 0x1a0   :  { %v4976_v40 = vadd.f32 %v3849_v37, %v2270_v4  ;;  %v3786_v0 = vpop.f32.mrb[76].mxu0  ;;  %v4984_v37 = vpop.permute.xlu0 %2710 }
 0x1a1   :  { %v3850_v29 = vpop.f32.mrb[76].mxu1  ;;  %v3787_v61 = vpop.f32.mrb[77].mxu0 }
 0x1a2   :  { %v3788_v5 = vadd.f32 %v3787_v61, %v3786_v0  ;;  %v3851_v30 = vpop.f32.mrb[77].mxu1  ;;  %v3789_v54 = vpop.f32.mrb[78].mxu0 }
 0x1a3   :  { %v3852_v13 = vadd.f32 %v3851_v30, %v3850_v29  ;;  %v3853_v31 = vpop.f32.mrb[78].mxu1  ;;  %v3790_v18 = vpop.f32.mrb[79].mxu0 }
 0x1a4   :  { %v2275_v36 = vadd.f32 %v3788_v5, %v4901_v44  ;;  %v3791_v62 = vadd.f32 %v3790_v18, %v3789_v54  ;;  %v3854_v34 = vpop.f32.mrb[79].mxu1 }
 0x1a5   :  { %v3855_v59 = vadd.f32 %v3854_v34, %v3853_v31  ;;  %v4992_v34 = vpop.permute.xlu1 %2715 }
 0x1a6   :  { %v4979_v1 = vadd.f32 %v3852_v13, %v2275_v36  ;;  %v2278_v33 = vadd.f32 %v3791_v62, %v4904_v47 }
 0x1a8   :  { %v4986_v4 = vadd.f32 %v3855_v59, %v2278_v33  ;;  %v3792_v0 = vpop.f32.mrb[80].mxu0  ;;  %v4994_v59 = vpop.permute.xlu0 %4022 }
 0x1a9   :  { %v3856_v61 = vpop.f32.mrb[80].mxu1  ;;  %v3793_v30 = vpop.f32.mrb[81].mxu0 }
 0x1aa   :  { %v3794_v29 = vadd.f32 %v3793_v30, %v3792_v0  ;;  %v3857_v55 = vpop.f32.mrb[81].mxu1  ;;  %v3795_v38 = vpop.f32.mrb[82].mxu0 }
 0x1ab   :  { %v3858_v44 = vadd.f32 %v3857_v55, %v3856_v61  ;;  %v3859_v54 = vpop.f32.mrb[82].mxu1  ;;  %v3796_v5 = vpop.f32.mrb[83].mxu0 }
 0x1ac   :  { %v2283_v13 = vadd.f32 %v3794_v29, %v4909_v23  ;;  %v3797_v31 = vadd.f32 %v3796_v5, %v3795_v38  ;;  %v3860_v18 = vpop.f32.mrb[83].mxu1 }
 0x1ad   :  { %v3861_v47 = vadd.f32 %v3860_v18, %v3859_v54  ;;  %v5002_v18 = vpop.permute.xlu1 %2822 }
 0x1ae   :  { %v4989_v36 = vadd.f32 %v3858_v44, %v2283_v13  ;;  %v2286_v62 = vadd.f32 %v3797_v31, %v4914_v48 }
 0x1b0   :  { %v4996_v33 = vadd.f32 %v3861_v47, %v2286_v62  ;;  %v3798_v0 = vpop.f32.mrb[84].mxu0  ;;  %v5004_v47 = vpop.permute.xlu0 %2827 }
 0x1b1   :  { %v3862_v30 = vpop.f32.mrb[84].mxu1  ;;  %v3799_v55 = vpop.f32.mrb[85].mxu0 }
 0x1b2   :  { %v3800_v61 = vadd.f32 %v3799_v55, %v3798_v0  ;;  %v3863_v39 = vpop.f32.mrb[85].mxu1  ;;  %v3801_v19 = vpop.f32.mrb[86].mxu0 }
 0x1b3   :  { %v3864_v23 = vadd.f32 %v3863_v39, %v3862_v30  ;;  %v3865_v38 = vpop.f32.mrb[86].mxu1  ;;  %v3802_v29 = vpop.f32.mrb[87].mxu0 }
 0x1b4   :  { %v2291_v44 = vadd.f32 %v3800_v61, %v4919_v16  ;;  %v3803_v54 = vadd.f32 %v3802_v29, %v3801_v19  ;;  %v3866_v5 = vpop.f32.mrb[87].mxu1 }
 0x1b5   :  { %v3867_v48 = vadd.f32 %v3866_v5, %v3865_v38  ;;  %v5012_v5 = vpop.permute.xlu1 %4027 }
 0x1b6   :  { %v4999_v13 = vadd.f32 %v3864_v23, %v2291_v44  ;;  %v2294_v31 = vadd.f32 %v3803_v54, %v4924_v21 }
 0x1b8   :  { %v5006_v62 = vadd.f32 %v3867_v48, %v2294_v31  ;;  %v3804_v0 = vpop.f32.mrb[88].mxu0  ;;  %v5014_v48 = vpop.permute.xlu0 %2720 }
 0x1b9   :  { %v3868_v55 = vpop.f32.mrb[88].mxu1  ;;  %v3805_v39 = vpop.f32.mrb[89].mxu0 }
 0x1ba   :  { %v3806_v30 = vadd.f32 %v3805_v39, %v3804_v0  ;;  %v3869_v20 = vpop.f32.mrb[89].mxu1  ;;  %v3807_v8 = vpop.f32.mrb[90].mxu0 }
 0x1bb   :  { %v3870_v16 = vadd.f32 %v3869_v20, %v3868_v55  ;;  %v3871_v19 = vpop.f32.mrb[90].mxu1  ;;  %v3808_v61 = vpop.f32.mrb[91].mxu0 }
 0x1bc   :  { %v2299_v23 = vadd.f32 %v3806_v30, %v4929_v14  ;;  %v3809_v38 = vadd.f32 %v3808_v61, %v3807_v8  ;;  %v3872_v29 = vpop.f32.mrb[91].mxu1 }
 0x1bd   :  { %v3873_v21 = vadd.f32 %v3872_v29, %v3871_v19  ;;  %v5022_v29 = vpop.permute.xlu1 %2725 }
 0x1be   :  { %v5009_v44 = vadd.f32 %v3870_v16, %v2299_v23  ;;  %v2302_v54 = vadd.f32 %v3809_v38, %v4934_v11 }
 0x1c0   :  { %v5016_v31 = vadd.f32 %v3873_v21, %v2302_v54  ;;  %v3810_v0 = vpop.f32.mrb[92].mxu0  ;;  %v5024_v21 = vpop.permute.xlu0 %2832 }
 0x1c1   :  { %v3874_v39 = vpop.f32.mrb[92].mxu1  ;;  %v3811_v20 = vpop.f32.mrb[93].mxu0  ;;  %5230 = vst [vmem:[#allocation12_spill] sm:$0xff] %v5024_v21 }
 0x1c2   :  { %v3812_v55 = vadd.f32 %v3811_v20, %v3810_v0  ;;  %v3875_v9 = vpop.f32.mrb[93].mxu1  ;;  %v3813_v63 = vpop.f32.mrb[94].mxu0 }
 0x1c3   :  { %v3876_v14 = vadd.f32 %v3875_v9, %v3874_v39  ;;  %v3877_v8 = vpop.f32.mrb[94].mxu1  ;;  %v3814_v30 = vpop.f32.mrb[95].mxu0 }
 0x1c4   :  { %v2307_v16 = vadd.f32 %v3812_v55, %v4939_v58  ;;  %v3815_v19 = vadd.f32 %v3814_v30, %v3813_v63  ;;  %v3878_v61 = vpop.f32.mrb[95].mxu1 }
 0x1c5   :  { %v3879_v11 = vadd.f32 %v3878_v61, %v3877_v8  ;;  %v5030_v61 = vpop.permute.xlu1 %2837 }
 0x1c6   :  { %v5019_v23 = vadd.f32 %v3876_v14, %v2307_v16  ;;  %v2310_v38 = vadd.f32 %v3815_v19, %v4944_v17  ;;  %5232 = vst [vmem:[#allocation14_spill] sm:$0xff] %v5030_v61 }
 0x1c8   :  { %5229 = vst [vmem:[#allocation11_spill] sm:$0xff] %v5019_v23  ;;  %v5026_v54 = vadd.f32 %v3879_v11, %v2310_v38  ;;  %v3896_v0 = vpop.f32.mrb[96].mxu0  ;;  %v5032_v11 = vpop.permute.xlu0 %4032 }
 0x1c9   :  { %v3960_v20 = vpop.f32.mrb[96].mxu1  ;;  %v3897_v9 = vpop.f32.mrb[97].mxu0 }
 0x1ca   :  { %5231 = vst [vmem:[#allocation13_spill] sm:$0xff] %v5026_v54  ;;  %v3898_v39 = vadd.f32 %v3897_v9, %v3896_v0  ;;  %v3961_v24 = vpop.f32.mrb[97].mxu1  ;;  %v3899_v57 = vpop.f32.mrb[98].mxu0 }
 0x1cb   :  { %v3962_v58 = vadd.f32 %v3961_v24, %v3960_v20  ;;  %v3963_v63 = vpop.f32.mrb[98].mxu1  ;;  %v3900_v55 = vpop.f32.mrb[99].mxu0 }
 0x1cc   :  { %v2445_v14 = vadd.f32 %v3898_v39, %v4949_v25  ;;  %v3901_v8 = vadd.f32 %v3900_v55, %v3899_v57  ;;  %v3964_v30 = vpop.f32.mrb[99].mxu1 }
 0x1cd   :  { %v3965_v17 = vadd.f32 %v3964_v30, %v3963_v63 }
 0x1ce   :  { %v2542_v16 = vadd.f32 %v3962_v58, %v2445_v14  ;;  %v2448_v19 = vadd.f32 %v3901_v8, %v4954_v50 }
 0x1d0   :  { %vm2604_vm0 = vcmp.ge.f32.partialorder %v2542_v16, 0.0  ;;  %v2620_v38 = vmul.f32 0.2, %v2542_v16  ;;  %v2545_v0 = vadd.f32 %v3965_v17, %v2448_v19  ;;  %v3902_v9 = vpop.f32.mrb[100].mxu0 }
 0x1d1   :  { %v3966_v54 = vpop.f32.mrb[100].mxu1  ;;  %v3903_v24 = vpop.f32.mrb[101].mxu0 }
 0x1d2   :  { %v2636_v20 = vsel %vm2604_vm0, %v2542_v16, %v2620_v38  ;;  %vm2605_vm1 = vcmp.ge.f32.partialorder %v2545_v0, 0.0  ;;  %v2621_v23 = vmul.f32 0.2, %v2545_v0  ;;  %v3904_v25 = vadd.f32 %v3903_v24, %v3902_v9  ;;  %v3967_v57 = vpop.f32.mrb[101].mxu1  ;;  %v3905_v39 = vpop.f32.mrb[102].mxu0 }
 0x1d3   :  { %v2748_v58 = vmul.f32 %v4906_v6, %v2636_v20  ;;  %v3968_v63 = vadd.f32 %v3967_v57, %v3966_v54  ;;  %v3969_v50 = vpop.f32.mrb[102].mxu1  ;;  %v3906_v55 = vpop.f32.mrb[103].mxu0  ;;  %v4025_v24 = vunpack.i.h.bf16 %v4994_v59 }
 0x1d4   :  { %v2637_v14 = vsel %vm2605_vm1, %v2545_v0, %v2621_v23  ;;  %v2453_v8 = vadd.f32 %v3904_v25, %v4959_v45  ;;  %v3907_v30 = vadd.f32 %v3906_v55, %v3905_v39  ;;  %v3970_v61 = vpop.f32.mrb[103].mxu1  ;;  %v5038_v38 = vpop.permute.xlu1 %2730  ;;  %vm3175_vm1 = vcmask 7168  }
 0x1d5   :  { %v2749_v17 = vmul.f32 %v4916_v49, %v2637_v14  ;;  %v3971_v19 = vadd.f32 %v3970_v61, %v3969_v50  ;;  %v2860_v9 = vadd.f32 %v4926_v46, %v2748_v58  ;;  %v5042_v54 = vpop.permute.xlu0 %2735 }
 0x1d6   :  { %v2550_v21 = vadd.f32 %v3968_v63, %v2453_v8  ;;  %v2456_v16 = vadd.f32 %v3907_v30, %v4964_v27  ;;  %v4024_v8 = vunpack.i.l.bf16 %v4994_v59 }
 0x1d7   :  { %v2861_v6 = vadd.f32 %v4932_v56, %v2749_v17 }
 0x1d8   :  { %vm2606_vm2 = vcmp.ge.f32.partialorder %v2550_v21, 0.0  ;;  %v2622_v23 = vmul.f32 0.2, %v2550_v21  ;;  %v2553_v0 = vadd.f32 %v3971_v19, %v2456_v16  ;;  %v3908_v45 = vpop.f32.mrb[104].mxu0 }
 0x1d9   :  { %v3972_v20 = vpop.f32.mrb[104].mxu1  ;;  %v3909_v49 = vpop.f32.mrb[105].mxu0  ;;  %v2876_v61 = vpack.c.bf16 %v2861_v6, %v2860_v9 }
 0x1da   :  { %v2638_v25 = vsel %vm2606_vm2, %v2550_v21, %v2622_v23  ;;  %vm2607_vm3 = vcmp.ge.f32.partialorder %v2553_v0, 0.0  ;;  %v2623_v27 = vmul.f32 0.2, %v2553_v0  ;;  %v3910_v57 = vadd.f32 %v3909_v49, %v3908_v45  ;;  %v3973_v39 = vpop.f32.mrb[105].mxu1  ;;  %v3911_v63 = vpop.f32.mrb[106].mxu0 }
 0x1db   :  { %v2750_v46 = vmul.f32 %v4912_v35, %v2638_v25  ;;  %v3974_v56 = vadd.f32 %v3973_v39, %v3972_v20  ;;  %v3975_v58 = vpop.f32.mrb[106].mxu1  ;;  %v3912_v50 = vpop.f32.mrb[107].mxu0  ;;  %v2885_v55 = vunpack.c.h.bf16 %v2876_v61  ;;  %v2884_v14 = vunpack.c.l.bf16 %v2876_v61 }
 0x1dc   :  { %v2639_v30 = vsel %vm2607_vm3, %v2553_v0, %v2623_v27  ;;  %v2461_v17 = vadd.f32 %v3910_v57, %v4969_v15  ;;  %v3913_v19 = vadd.f32 %v3912_v50, %v3911_v63  ;;  %v3976_v16 = vpop.f32.mrb[107].mxu1  ;;  %v5233_v23 = vunpack.c.h.bf16 %v4702_v2  ;;  %v5052_v61 = vpop.permute.xlu1 %2842 }
 0x1dd   :  { %v2751_v21 = vmul.f32 %v4922_v28, %v2639_v30  ;;  %v3977_v9 = vadd.f32 %v3976_v16, %v3975_v58  ;;  %v3055_v6 = vmul.f32 %v4025_v24, %v2885_v55  ;;  %v3054_v49 = vmul.f32 %v4024_v8, %v2884_v14  ;;  %v5057_v28 = vpop.permute.xlu0 %2847 }
 0x1de   :  { %v2933_v45 = vmul.f32 %v5233_v23, %v2885_v55  ;;  %v2558_v35 = vadd.f32 %v3974_v56, %v2461_v17  ;;  %v2464_v20 = vadd.f32 %v3913_v19, %v4976_v40  ;;  %v2862_v15 = vadd.f32 %v4936_v60, %v2750_v46 }
 0x1df   :  { %3088 = vrot.lane.b32.xlu1 %v3055_v6, %s4226_s4  ;;  %v2863_v59 = vadd.f32 %v4942_v10, %v2751_v21  ;;  %3086 = vrot.lane.b32.xlu0 %v3054_v49, %s4226_s4  ;;  %v5234_v40 = vunpack.c.l.bf16 %v4702_v2  ;;  %v4030_v57 = vunpack.i.h.bf16 %v5012_v5  ;;  %v4029_v39 = vunpack.i.l.bf16 %v5012_v5 }
 0x1e0   :  { %vm2608_vm5 = vcmp.ge.f32.partialorder %v2558_v35, 0.0  ;;  %v2624_v0 = vmul.f32 0.2, %v2558_v35  ;;  %v2561_v24 = vadd.f32 %v3977_v9, %v2464_v20  ;;  %v3914_v27 = vpop.f32.mrb[108].mxu0  ;;  %v2950_v63 = vsel %vm2948_vm4, %v2933_v45, 0.0 }
 0x1e1   :  { %v2932_v25 = vmul.f32 %v5234_v40, %v2884_v14  ;;  %v3978_v60 = vpop.f32.mrb[108].mxu1  ;;  %v3915_v46 = vpop.f32.mrb[109].mxu0  ;;  %v2877_v10 = vpack.c.bf16 %v2863_v59, %v2862_v15  ;;  %v5235_v20 = vunpack.c.h.bf16 %v4718_v12  ;;  %vm3183_vm2 = vcmask 8192  }
 0x1e2   :  { %v2640_v56 = vsel %vm2608_vm5, %v2558_v35, %v2624_v0  ;;  %vm2609_vm6 = vcmp.ge.f32.partialorder %v2561_v24, 0.0  ;;  %v2625_v58 = vmul.f32 0.2, %v2561_v24  ;;  %v3916_v50 = vadd.f32 %v3915_v46, %v3914_v27  ;;  %v3979_v55 = vpop.f32.mrb[109].mxu1  ;;  %v3917_v8 = vpop.f32.mrb[110].mxu0 }
 0x1e3   :  { %v2752_v30 = vmul.f32 %v4946_v3, %v2640_v56  ;;  %v3980_v2 = vadd.f32 %v3979_v55, %v3978_v60  ;;  %v3981_v14 = vpop.f32.mrb[110].mxu1  ;;  %v3918_v17 = vpop.f32.mrb[111].mxu0  ;;  %v2887_v19 = vunpack.c.h.bf16 %v2877_v10  ;;  %v2886_v16 = vunpack.c.l.bf16 %v2877_v10 }
 0x1e4   :  { %v2641_v21 = vsel %vm2609_vm6, %v2561_v24, %v2625_v58  ;;  %v2949_v5 = vsel %vm2948_vm4, %v2932_v25, 0.0  ;;  %v2469_v9 = vadd.f32 %v3916_v50, %v4979_v1  ;;  %v3919_v6 = vadd.f32 %v3918_v17, %v3917_v8  ;;  %v3982_v23 = vpop.f32.mrb[111].mxu1  ;;  %v5075_v27 = vpop.permute.xlu1 %4037 }
 0x1e5   :  { %v2753_v45 = vmul.f32 %v4952_v52, %v2641_v21  ;;  %v3983_v35 = vadd.f32 %v3982_v23, %v3981_v14  ;;  %v2935_v49 = vmul.f32 %v5235_v20, %v2887_v19  ;;  %v3057_v15 = vmul.f32 %v4030_v57, %v2887_v19  ;;  %v5080_v46 = vpop.permute.xlu0 %2740 }
 0x1e6   :  { %v2566_v3 = vadd.f32 %v3980_v2, %v2469_v9  ;;  %v2472_v59 = vadd.f32 %v3919_v6, %v4986_v4  ;;  %v5236_v0 = vunpack.c.l.bf16 %v4718_v12  ;;  %v3056_v24 = vmul.f32 %v4029_v39, %v2886_v16 }
 0x1e7   :  { %v4035_v25 = vunpack.i.h.bf16 %v5032_v11  ;;  %v2951_v1 = vadd.f32 %v2950_v63, %v2949_v5  ;;  %3092 = vrot.lane.b32.xlu1 %v3057_v15, %s4226_s4  ;;  %v2864_v52 = vadd.f32 %v4956_v53, %v2752_v30  ;;  %v2865_v60 = vadd.f32 %v4962_v42, %v2753_v45 }
 0x1e8   :  { %v2934_v40 = vmul.f32 %v5236_v0, %v2886_v16  ;;  %vm2610_vm7 = vcmp.ge.f32.partialorder %v2566_v3, 0.0  ;;  %v2626_v57 = vmul.f32 0.2, %v2566_v3  ;;  %v2569_v4 = vadd.f32 %v3983_v35, %v2472_v59  ;;  %3090 = vrot.lane.b32.xlu0 %v3056_v24, %s4226_s4  ;;  %v3920_v39 = vpop.f32.mrb[112].mxu0  ;;  %v5091_v59 = vpop.permute.xlu1 %2745 }
 0x1e9   :  { %v4034_v10 = vunpack.i.l.bf16 %v5032_v11  ;;  %v2954_v63 = vsel %vm2948_vm4, %v2935_v49, 0.0  ;;  %v3984_v58 = vpop.f32.mrb[112].mxu1  ;;  %v3921_v50 = vpop.f32.mrb[113].mxu0  ;;  %v2878_v53 = vpack.c.bf16 %v2865_v60, %v2864_v52  ;;  %v5237_v49 = vunpack.c.h.bf16 %v4743_v32 }
 0x1ea   :  { %v2952_v12 = vsel %vm2948_vm4, %v2934_v40, 0.0  ;;  %v2642_v55 = vsel %vm2610_vm7, %v2566_v3, %v2626_v57  ;;  %vm2611_vm8 = vcmp.ge.f32.partialorder %v2569_v4, 0.0  ;;  %v2627_v42 = vmul.f32 0.2, %v2569_v4  ;;  %v3985_v30 = vpop.f32.mrb[113].mxu1  ;;  %v3923_v2 = vpop.f32.mrb[114].mxu0 }
 0x1eb   :  { %v2953_v56 = vadd.f32 %v2952_v12, %v2951_v1  ;;  %v3922_v8 = vadd.f32 %v3921_v50, %v3920_v39  ;;  %v2754_v14 = vmul.f32 %v4966_v43, %v2642_v55  ;;  %v3986_v17 = vadd.f32 %v3985_v30, %v3984_v58  ;;  %v3987_v19 = vpop.f32.mrb[114].mxu1  ;;  %v3924_v16 = vpop.f32.mrb[115].mxu0 }
 0x1ec   :  { %v2889_v21 = vunpack.c.h.bf16 %v2878_v53  ;;  %v2888_v5 = vunpack.c.l.bf16 %v2878_v53  ;;  %v2643_v11 = vsel %vm2611_vm8, %v2569_v4, %v2627_v42  ;;  %v3925_v6 = vadd.f32 %v3924_v16, %v3923_v2  ;;  %v3988_v23 = vpop.f32.mrb[115].mxu1  ;;  %v5100_v60 = vpop.permute.xlu0 %2852 }
 0x1ed   :  { %v2477_v9 = vadd.f32 %v3922_v8, %v4989_v36  ;;  %v2955_v45 = vadd.f32 %v2954_v63, %v2953_v56  ;;  %v2755_v35 = vmul.f32 %v4972_v22, %v2643_v11  ;;  %v3989_v20 = vadd.f32 %v3988_v23, %v3987_v19 }
 0x1ee   :  { %v2937_v15 = vmul.f32 %v5237_v49, %v2889_v21  ;;  %v3059_v3 = vmul.f32 %v4035_v25, %v2889_v21  ;;  %v2480_v0 = vadd.f32 %v3925_v6, %v4996_v33  ;;  %v5238_v40 = vunpack.c.l.bf16 %v4743_v32 }
 0x1ef   :  { %v2574_v43 = vadd.f32 %v3986_v17, %v2477_v9  ;;  %v3058_v1 = vmul.f32 %v4034_v10, %v2888_v5  ;;  %v4040_v36 = vunpack.i.h.bf16 %v5075_v27  ;;  %v2866_v22 = vadd.f32 %v4974_v7, %v2754_v14 }
 0x1f0   :  { %v2936_v24 = vmul.f32 %v5238_v40, %v2888_v5  ;;  %3096 = vrot.lane.b32.xlu1 %v3059_v3, %s4226_s4  ;;  %v2867_v52 = vadd.f32 %v4982_v41, %v2755_v35  ;;  %v2577_v57 = vadd.f32 %v3989_v20, %v2480_v0  ;;  %v3926_v32 = vpop.f32.mrb[116].mxu0  ;;  %v4039_v33 = vunpack.i.l.bf16 %v5075_v27  ;;  %v5107_v27 = vpop.permute.xlu1 %2857 }
 0x1f1   :  { %vm2612_vm9 = vcmp.ge.f32.partialorder %v2574_v43, 0.0  ;;  %v2628_v25 = vmul.f32 0.2, %v2574_v43  ;;  %3094 = vrot.lane.b32.xlu0 %v3058_v1, %s4226_s4  ;;  %v2958_v12 = vsel %vm2948_vm4, %v2937_v15, 0.0  ;;  %v3990_v10 = vpop.f32.mrb[116].mxu1  ;;  %v3927_v63 = vpop.f32.mrb[117].mxu0  ;;  %v5239_v6 = vunpack.c.h.bf16 %v4767_v51 }
 0x1f2   :  { %v2956_v4 = vsel %vm2948_vm4, %v2936_v24, 0.0  ;;  %v2879_v7 = vpack.c.bf16 %v2867_v52, %v2866_v22  ;;  %vm2613_vm10 = vcmp.ge.f32.partialorder %v2577_v57, 0.0  ;;  %v2629_v41 = vmul.f32 0.2, %v2577_v57  ;;  %v3991_v50 = vpop.f32.mrb[117].mxu1  ;;  %v3929_v53 = vpop.f32.mrb[118].mxu0 }
 0x1f3   :  { %v2957_v39 = vadd.f32 %v2956_v4, %v2955_v45  ;;  %v2644_v56 = vsel %vm2612_vm9, %v2574_v43, %v2628_v25  ;;  %v3928_v58 = vadd.f32 %v3927_v63, %v3926_v32  ;;  %v3992_v42 = vadd.f32 %v3991_v50, %v3990_v10  ;;  %v3993_v8 = vpop.f32.mrb[118].mxu1  ;;  %v3930_v30 = vpop.f32.mrb[119].mxu0 }
 0x1f4   :  { %v2756_v55 = vmul.f32 %v4984_v37, %v2644_v56  ;;  %v2891_v2 = vunpack.c.h.bf16 %v2879_v7  ;;  %v2890_v14 = vunpack.c.l.bf16 %v2879_v7  ;;  %v2645_v17 = vsel %vm2613_vm10, %v2577_v57, %v2629_v41  ;;  %v3994_v21 = vpop.f32.mrb[119].mxu1  ;;  %v3023_v43 = vpop.permute.xlu0 %3022 }
 0x1f5   :  { %v2485_v19 = vadd.f32 %v3928_v58, %v4999_v13  ;;  %v3931_v16 = vadd.f32 %v3930_v30, %v3929_v53  ;;  %v2959_v5 = vadd.f32 %v2958_v12, %v2957_v39  ;;  %v2757_v11 = vmul.f32 %v4992_v34, %v2645_v17 }
 0x1f6   :  { %v3995_v9 = vadd.f32 %v3994_v21, %v3993_v8  ;;  %v2939_v23 = vmul.f32 %v5239_v6, %v2891_v2  ;;  %v3061_v37 = vmul.f32 %v4040_v36, %v2891_v2  ;;  %v5240_v20 = vunpack.c.l.bf16 %v4767_v51  ;;  %v5244_v21 = vld [vmem:[#allocation14_spill] sm:$0xff] }
 0x1f7   :  { %v2582_v45 = vadd.f32 %v3992_v42, %v2485_v19  ;;  %v2488_v35 = vadd.f32 %v3931_v16, %v5006_v62  ;;  %v3060_v15 = vmul.f32 %v4039_v33, %v2890_v14  ;;  %v2868_v13 = vadd.f32 %v5002_v18, %v2756_v55  ;;  %v3025_v62 = vpop.permute.xlu1 %3024 }
 0x1f8   :  { %v2938_v49 = vmul.f32 %v5240_v20, %v2890_v14  ;;  %3100 = vrot.lane.b32.xlu1 %v3061_v37, %s4226_s4  ;;  %v2869_v3 = vadd.f32 %v5004_v47, %v2757_v11  ;;  %v3932_v24 = vpop.f32.mrb[120].mxu0  ;;  %v2962_v51 = vsel %vm2948_vm4, %v2939_v23, 0.0  ;;  %v5241_v42 = vunpack.c.h.bf16 %v4801_v26  ;;  %v3027_v11 = vpop.permute.xlu0 %3026 }
 0x1f9   :  { %vm2614_vm11 = vcmp.ge.f32.partialorder %v2582_v45, 0.0  ;;  %v2630_v34 = vmul.f32 0.2, %v2582_v45  ;;  %v2585_v0 = vadd.f32 %v3995_v9, %v2488_v35  ;;  %3098 = vrot.lane.b32.xlu0 %v3060_v15, %s4226_s4  ;;  %v3996_v36 = vpop.f32.mrb[120].mxu1  ;;  %v3933_v22 = vpop.f32.mrb[121].mxu0  ;;  %v5242_v14 = vunpack.c.l.bf16 %v4801_v26 }
 0x1fa   :  { %v2960_v40 = vsel %vm2948_vm4, %v2938_v49, 0.0  ;;  %v2880_v52 = vpack.c.bf16 %v2869_v3, %v2868_v13  ;;  %v3934_v47 = vadd.f32 %v3933_v22, %v3932_v24  ;;  %v3997_v57 = vpop.f32.mrb[121].mxu1  ;;  %v3935_v4 = vpop.f32.mrb[122].mxu0 }
 0x1fb   :  { %v2961_v1 = vadd.f32 %v2960_v40, %v2959_v5  ;;  %v2646_v25 = vsel %vm2614_vm11, %v2582_v45, %v2630_v34  ;;  %vm2615_vm12 = vcmp.ge.f32.partialorder %v2585_v0, 0.0  ;;  %v2631_v18 = vmul.f32 0.2, %v2585_v0  ;;  %v3999_v12 = vpop.f32.mrb[122].mxu1  ;;  %v3936_v39 = vpop.f32.mrb[123].mxu0 }
 0x1fc   :  { %v2758_v32 = vmul.f32 %v5014_v48, %v2646_v25  ;;  %v3998_v33 = vadd.f32 %v3997_v57, %v3996_v36  ;;  %v2893_v10 = vunpack.c.h.bf16 %v2880_v52  ;;  %v2892_v63 = vunpack.c.l.bf16 %v2880_v52  ;;  %v4000_v58 = vpop.f32.mrb[123].mxu1  ;;  %v5245_v36 = vld [vmem:[#allocation11_spill] sm:$0xff] }
 0x1fd   :  { %v2647_v7 = vsel %vm2615_vm12, %v2585_v0, %v2631_v18  ;;  %v2493_v56 = vadd.f32 %v3934_v47, %v5009_v44  ;;  %v3937_v41 = vadd.f32 %v3936_v39, %v3935_v4  ;;  %v2963_v50 = vadd.f32 %v2962_v51, %v2961_v1  ;;  %v5243_v44 = vld [vmem:[#allocation12_spill] sm:$0xff] }
 0x1fe   :  { %v2759_v53 = vmul.f32 %v5022_v29, %v2647_v7  ;;  %v4001_v55 = vadd.f32 %v4000_v58, %v3999_v12  ;;  %v2941_v8 = vmul.f32 %v5241_v42, %v2893_v10  ;;  %v3063_v30 = vmul.f32 %v3025_v62, %v2893_v10  ;;  %v5246_v4 = vld [vmem:[#allocation8_spill] sm:$0xff] }
 0x1ff   :  { %v2590_v2 = vadd.f32 %v3998_v33, %v2493_v56  ;;  %v2496_v48 = vadd.f32 %v3937_v41, %v5016_v31  ;;  %v2940_v17 = vmul.f32 %v5242_v14, %v2892_v63  ;;  %v3062_v19 = vmul.f32 %v3023_v43, %v2892_v63  ;;  %v3029_v31 = vpop.permute.xlu1 %3028 }
 0x200   :  { %3104 = vrot.lane.b32.xlu1 %v3063_v30, %s4226_s4  ;;  %v2870_v16 = vadd.f32 %v5243_v44, %v2758_v32  ;;  %v2871_v5 = vadd.f32 %v5244_v21, %v2759_v53  ;;  %v3938_v23 = vpop.f32.mrb[124].mxu0  ;;  %v2966_v26 = vsel %vm2948_vm4, %v2941_v8, 0.0  ;;  %v5247_v32 = vunpack.c.h.bf16 %v5246_v4  ;;  %v5250_v21 = vld [vmem:[#allocation9_spill] sm:$0xff] }
 0x201   :  { %vm2616_vm13 = vcmp.ge.f32.partialorder %v2590_v2, 0.0  ;;  %v2632_v29 = vmul.f32 0.2, %v2590_v2  ;;  %v2593_v9 = vadd.f32 %v4001_v55, %v2496_v48  ;;  %v2964_v6 = vsel %vm2948_vm4, %v2940_v17, 0.0  ;;  %3102 = vrot.lane.b32.xlu0 %v3062_v19, %s4226_s4  ;;  %v4002_v45 = vpop.f32.mrb[124].mxu1  ;;  %v3939_v35 = vpop.f32.mrb[125].mxu0 }
 0x202   :  { %v2965_v37 = vadd.f32 %v2964_v6, %v2963_v50  ;;  %v2881_v20 = vpack.c.bf16 %v2871_v5, %v2870_v16  ;;  %v3940_v13 = vadd.f32 %v3939_v35, %v3938_v23  ;;  %v4003_v3 = vpop.f32.mrb[125].mxu1  ;;  %v3941_v43 = vpop.f32.mrb[126].mxu0  ;;  %v5249_v63 = vunpack.c.l.bf16 %v5246_v4 }
 0x203   :  { %v2648_v49 = vsel %vm2616_vm13, %v2590_v2, %v2632_v29  ;;  %vm2617_vm14 = vcmp.ge.f32.partialorder %v2593_v9, 0.0  ;;  %v2633_v15 = vmul.f32 0.2, %v2593_v9  ;;  %v4004_v0 = vadd.f32 %v4003_v3, %v4002_v45  ;;  %v4005_v40 = vpop.f32.mrb[126].mxu1  ;;  %v3942_v24 = vpop.f32.mrb[127].mxu0 }
 0x204   :  { %v2760_v34 = vmul.f32 %v5038_v38, %v2648_v49  ;;  %v2895_v62 = vunpack.c.h.bf16 %v2881_v20  ;;  %v2894_v51 = vunpack.c.l.bf16 %v2881_v20  ;;  %v2501_v22 = vadd.f32 %v3940_v13, %v5245_v36  ;;  %v4006_v25 = vpop.f32.mrb[127].mxu1  ;;  %v5248_v38 = vld [vmem:[#allocation13_spill] sm:$0xff]  ;;  %v3033_v48 = vpop.permute.xlu1 %3032 }
 0x205   :  { %v2649_v1 = vsel %vm2617_vm14, %v2593_v9, %v2633_v15  ;;  %v3943_v52 = vadd.f32 %v3942_v24, %v3941_v43  ;;  %v2967_v18 = vadd.f32 %v2966_v26, %v2965_v37  ;;  %v4007_v57 = vadd.f32 %v4006_v25, %v4005_v40  ;;  %v3031_v17 = vpop.permute.xlu0 %3030  ;;  %v5253_v43 = vld [vmem:[#allocation10_spill] sm:$0xff] }
 0x206   :  { %v2761_v47 = vmul.f32 %v5042_v54, %v2649_v1  ;;  %v2943_v33 = vmul.f32 %v5247_v32, %v2895_v62  ;;  %v3065_v12 = vmul.f32 %v3029_v31, %v2895_v62  ;;  %v2598_v39 = vadd.f32 %v4004_v0, %v2501_v22 }
 0x207   :  { %v2504_v10 = vadd.f32 %v3943_v52, %v5248_v38  ;;  %v2942_v7 = vmul.f32 %v5249_v63, %v2894_v51  ;;  %v3064_v56 = vmul.f32 %v3027_v11, %v2894_v51  ;;  %v2872_v41 = vadd.f32 %v5052_v61, %v2760_v34 }
 0x208   :  { %3108 = vrot.lane.b32.xlu1 %v3065_v12, %s4226_s4  ;;  %v2873_v58 = vadd.f32 %v5057_v28, %v2761_v47  ;;  %vm2618_vm15 = vcmp.ge.f32.partialorder %v2598_v39, 0.0  ;;  %v2634_v54 = vmul.f32 0.2, %v2598_v39  ;;  %v2970_v2 = vsel %vm2948_vm4, %v2943_v33, 0.0  ;;  %v3037_v35 = vpop.permute.xlu1 %3036 }
 0x209   :  { %v2601_v50 = vadd.f32 %v4007_v57, %v2504_v10  ;;  %v2968_v53 = vsel %vm2948_vm4, %v2942_v7, 0.0  ;;  %3106 = vrot.lane.b32.xlu0 %v3064_v56, %s4226_s4  ;;  %v5251_v5 = vunpack.c.h.bf16 %v5250_v21  ;;  %v5252_v9 = vunpack.c.l.bf16 %v5250_v21  ;;  %v3035_v20 = vpop.permute.xlu0 %3034 }
 0x20a   :  { %v2969_v55 = vadd.f32 %v2968_v53, %v2967_v18  ;;  %v2882_v42 = vpack.c.bf16 %v2873_v58, %v2872_v41  ;;  %v2650_v8 = vsel %vm2618_vm15, %v2598_v39, %v2634_v54  ;;  %v5254_v34 = vunpack.c.l.bf16 %v5253_v43 }
 0x20b   :  { %vm2619_vm0 = vcmp.ge.f32.partialorder %v2601_v50, 0.0  ;;  %v2635_v30 = vmul.f32 0.2, %v2601_v50  ;;  %v2762_v14 = vmul.f32 %v5080_v46, %v2650_v8 }
 0x20c   :  { %v2897_v61 = vunpack.c.h.bf16 %v2882_v42  ;;  %v2896_v28 = vunpack.c.l.bf16 %v2882_v42  ;;  %v2971_v19 = vadd.f32 %v2970_v2, %v2969_v55 }
 0x20d   :  { %v2651_v44 = vsel %vm2619_vm0, %v2601_v50, %v2635_v30  ;;  %v2874_v46 = vadd.f32 %v5100_v60, %v2762_v14  ;;  %v5255_v60 = vunpack.c.h.bf16 %v5253_v43 }
 0x20e   :  { %v2763_v16 = vmul.f32 %v5091_v59, %v2651_v44  ;;  %v2945_v11 = vmul.f32 %v5251_v5, %v2897_v61  ;;  %v3067_v29 = vmul.f32 %v3033_v48, %v2897_v61  ;;  %v2944_v6 = vmul.f32 %v5252_v9, %v2896_v28 }
 0x20f   :  { %v3066_v23 = vmul.f32 %v3031_v17, %v2896_v28 }
 0x210   :  { %v2972_v31 = vsel %vm2948_vm4, %v2944_v6, 0.0  ;;  %3112 = vrot.lane.b32.xlu1 %v3067_v29, %s4226_s4  ;;  %v2875_v26 = vadd.f32 %v5107_v27, %v2763_v16  ;;  %v2974_v45 = vsel %vm2948_vm4, %v2945_v11, 0.0 }
 0x211   :  { %3110 = vrot.lane.b32.xlu0 %v3066_v23, %s4226_s4  ;;  %v2973_v37 = vadd.f32 %v2972_v31, %v2971_v19 }
 0x212   :  { %v2883_v59 = vpack.c.bf16 %v2875_v26, %v2874_v46 }
 0x213   :  { %v2975_v49 = vadd.f32 %v2974_v45, %v2973_v37 }
 0x214   :  { %v2899_v15 = vunpack.c.h.bf16 %v2883_v59  ;;  %v2898_v13 = vunpack.c.l.bf16 %v2883_v59 }
 0x216   :  { %v3069_v3 = vmul.f32 %v3037_v35, %v2899_v15  ;;  %v2946_v0 = vmul.f32 %v5254_v34, %v2898_v13  ;;  %v3068_v40 = vmul.f32 %v3035_v20, %v2898_v13  ;;  %v2947_v24 = vmul.f32 %v5255_v60, %v2899_v15 }
 0x218   :  { %3116 = vrot.lane.b32.xlu1 %v3069_v3, %s4226_s4  ;;  %3114 = vrot.lane.b32.xlu0 %v3068_v40, %s4226_s4  ;;  %v2976_v27 = vsel %vm2948_vm4, %v2946_v0, 0.0  ;;  %v2978_v51 = vsel %vm2948_vm4, %v2947_v24, 0.0 }
 0x219   :  { %v2977_v62 = vadd.f32 %v2976_v27, %v2975_v49 }
 0x21b   :  { %v2979_v1 = vadd.f32 %v2978_v51, %v2977_v62 }
 0x237   :  { %2980 = vadd.xlane.f32.xlu0 %v2979_v1 }
 0x251   :  { %v3087_v36 = vpop.permute.xlu0 %3086  ;;  %v3089_v22 = vpop.permute.xlu1 %3088 }
 0x252   :  { %v3135_v25 = vsel %vm2948_vm4, %v3089_v22, 0.0  ;;  %v3134_v18 = vsel %vm2948_vm4, %v3087_v36, 0.0 }
 0x253   :  { %v3136_v57 = vadd.f32 %v3135_v25, %v3134_v18 }
 0x259   :  { %v3093_v4 = vpop.permute.xlu1 %3092 }
 0x25a   :  { %v3091_v52 = vpop.permute.xlu0 %3090  ;;  %v3139_v12 = vsel %vm2948_vm4, %v3093_v4, 0.0 }
 0x25b   :  { %v3137_v47 = vsel %vm2948_vm4, %v3091_v52, 0.0 }
 0x25c   :  { %v3138_v32 = vadd.f32 %v3137_v47, %v3136_v57 }
 0x25e   :  { %v3140_v38 = vadd.f32 %v3139_v12, %v3138_v32 }
 0x262   :  { %v3097_v10 = vpop.permute.xlu1 %3096 }
 0x263   :  { %v3095_v33 = vpop.permute.xlu0 %3094  ;;  %v3143_v56 = vsel %vm2948_vm4, %v3097_v10, 0.0 }
 0x264   :  { %v3141_v39 = vsel %vm2948_vm4, %v3095_v33, 0.0 }
 0x265   :  { %v3142_v63 = vadd.f32 %v3141_v39, %v3140_v38 }
 0x267   :  { %v3144_v58 = vadd.f32 %v3143_v56, %v3142_v63 }
 0x26a   :  { %v3101_v54 = vpop.permute.xlu1 %3100 }
 0x26b   :  { %v3099_v7 = vpop.permute.xlu0 %3098  ;;  %v3147_v55 = vsel %vm2948_vm4, %v3101_v54, 0.0 }
 0x26c   :  { %v3145_v41 = vsel %vm2948_vm4, %v3099_v7, 0.0 }
 0x26d   :  { %v3146_v50 = vadd.f32 %v3145_v41, %v3144_v58 }
 0x26f   :  { %v3148_v8 = vadd.f32 %v3147_v55, %v3146_v50 }
 0x272   :  { %v3105_v30 = vpop.permute.xlu1 %3104 }
 0x273   :  { %v3103_v53 = vpop.permute.xlu0 %3102  ;;  %v3151_v14 = vsel %vm2948_vm4, %v3105_v30, 0.0 }
 0x274   :  { %v3149_v42 = vsel %vm2948_vm4, %v3103_v53, 0.0 }
 0x275   :  { %v3150_v2 = vadd.f32 %v3149_v42, %v3148_v8 }
 0x277   :  { %v3152_v17 = vadd.f32 %v3151_v14, %v3150_v2 }
 0x27a   :  { %v3109_v28 = vpop.permute.xlu1 %3108 }
 0x27b   :  { %v3107_v48 = vpop.permute.xlu0 %3106  ;;  %v3155_v44 = vsel %vm2948_vm4, %v3109_v28, 0.0 }
 0x27c   :  { %v3153_v61 = vsel %vm2948_vm4, %v3107_v48, 0.0 }
 0x27d   :  { %v3154_v19 = vadd.f32 %v3153_v61, %v3152_v17 }
 0x27f   :  { %v3156_v21 = vadd.f32 %v3155_v44, %v3154_v19 }
 0x282   :  { %v3113_v11 = vpop.permute.xlu1 %3112 }
 0x283   :  { %v3111_v16 = vpop.permute.xlu0 %3110  ;;  %v3159_v9 = vsel %vm2948_vm4, %v3113_v11, 0.0 }
 0x284   :  { %v3157_v5 = vsel %vm2948_vm4, %v3111_v16, 0.0 }
 0x285   :  { %v3158_v29 = vadd.f32 %v3157_v5, %v3156_v21 }
 0x287   :  { %v3160_v23 = vadd.f32 %v3159_v9, %v3158_v29 }
 0x28a   :  { %v3117_v6 = vpop.permute.xlu1 %3116  ;;  %v3115_v31 = vpop.permute.xlu0 %3114 }
 0x28b   :  { %v3161_v46 = vsel %vm2948_vm4, %v3115_v31, 0.0  ;;  %v3163_v37 = vsel %vm2948_vm4, %v3117_v6, 0.0 }
 0x28c   :  { %v3162_v26 = vadd.f32 %v3161_v46, %v3160_v23 }
 0x28e   :  { %v3164_v59 = vadd.f32 %v3163_v37, %v3162_v26 }
 0x290   :  { %3165 = vadd.xlane.f32.xlu1 %v3164_v59 }
 0x2c4   :  { %v2981_v45 = vpop.xlane.xlu0 %2980 }
 0x2c5   :  { %v2982_v35 = vrot.slane %v2981_v45, 4 }
 0x2c7   :  { %v2983_v20 = vadd.f32 %v2982_v35, %v2981_v45 }
 0x2c9   :  { %v2984_v49 = vrot.slane %v2983_v20, 2 }
 0x2cb   :  { %v2985_v15 = vadd.f32 %v2984_v49, %v2983_v20 }
 0x2cd   :  { %v2986_v13 = vrot.slane %v2985_v15, 1 }
 0x2cf   :  { %v2987_v3 = vadd.f32 %v2986_v13, %v2985_v15 }
 0x2d1   :  { %4008 = vpush %v2987_v3 }
 0x302   :  { %s4009_s17 = spop %4008 }
 0x303   :  { %v2989_v62 = vstv %s4009_s17 }
 0x31d   :  { %v3166_v43 = vpop.xlane.xlu1 %3165 }
 0x31e   :  { %v3167_v34 = vrot.slane %v3166_v43, 4 }
 0x320   :  { %v3168_v0 = vadd.f32 %v3167_v34, %v3166_v43 }
 0x322   :  { %v3169_v40 = vrot.slane %v3168_v0, 2 }
 0x324   :  { %v3170_v60 = vadd.f32 %v3169_v40, %v3168_v0 }
 0x326   :  { %v3171_v24 = vrot.slane %v3170_v60, 1 }
 0x328   :  { %v3172_v27 = vadd.f32 %v3171_v24, %v3170_v60 }
 0x32a   :  { %4010 = vpush %v3172_v27 }
 0x35b   :  { %s4011_s1 = spop %4010 }
 0x35c   :  { %v3174_v51 = vstv %s4011_s1 }
 0x35d   :  { %v3176_v1 = vsel %vm3175_vm1, %v2989_v62, %v3174_v51 }
 0x35e   :  { %v3456_v36 = vmul.f32 -1.442695, %v3176_v1 }
 0x360   :  { %4169 = vpow2.f32 %v3456_v36 }
 0x36a   :  { %v4170_v22 = vpop.eup %4169 }
 0x36b   :  { %v3180_v52 = vadd.f32 1.0, %v4170_v22 }
 0x36d   :  { %4171 = vrcp.f32 %v3180_v52 }
 0x377   :  { %v4172_v25 = vpop.eup %4171 }
 0x378   :  { %3184 = vst.msk [vmem:[#allocation5] sm:$0x1] %vm3183_vm2, %v4172_v25 }
 0x379   :  { %4206 = shalt.err (!%p4203_p12)
}
 0x37a   :  { %s4207_s9 = scalar_lea.hbm %s5203_s5, 16 }
 0x37b   :  { %p4208_p13 = scmp.ne.s32.totalorder %s5203_s5, %s4207_s9  ;;  %p4211_p0 = scmp.lt.u32.totalorder %s4207_s9, %s5203_s5 }
 0x37d   :  { %p4213_p1 = pnand %p4211_p0, %p4208_p13 }
 0x37f   :  { %4216 = shalt.err (!%p4213_p1)
}
 0x380   :  { %3194 = dma.vmem_to_hbm [thread:$0]  %s3192_s29, 16, %s5203_s5, [#allocation4]  }
 0x381   :  { %4219 = dma.done.wait [#allocation4], 16  }
 0x382   :  { %4220 = vsyncadd [#allocation4], 4294967280 }
 0x383   :  { %3198 = vsyncpa [#allocation3], 1 }
 0x384   :  { %3199 = vsyncpa [#allocation4], 1 }

</bundles_post_ra>
